<compile_context>
chip_gen: v7x
topology: tpu7x:2x2x1
jax: 0.10.0
libtpu: 0.0.40
codegen_flags: <defaults>
</compile_context>

<pallas_src>
import functools

import jax
import jax.numpy as jnp
from jax.experimental import pallas as pl
from jax.experimental.pallas import tpu as pltpu

F32 = jnp.float32
BF16 = jnp.bfloat16
_NEG = -1e9


# ------------------------------ fused kernel -------------------------------

def _decoder_layer_kernel(
    x_ref, mem_ref, tgt_bias_ref, src_cross_ref, src_kbias_ref,
    ln_a_ref, ln_b_ref,
    w_sa_qkv_ref, b_sa_qkv_ref, w_sa_o_ref, b_sa_o_ref,
    w_ca_q_ref, b_ca_q_ref, w_ca_kv_ref, b_ca_kv_ref, w_ca_o_ref, b_ca_o_ref,
    w_ff1_ref, b_ff1_ref, w_ff2_ref, b_ff2_ref,
    o_ref,
    *, heads, eps,
):
    Bblk, T, D = x_ref.shape
    S = mem_ref.shape[1]
    dk = D // heads
    scale = 1.0 / (dk ** 0.5)

    xf = x_ref[...].reshape(Bblk * T, D)       # (Bblk*T, D) f32
    memf = mem_ref[...].reshape(Bblk * S, D)   # (Bblk*S, D) f32

    def layer_norm(v, idx):
        a = ln_a_ref[idx:idx + 1, :]           # (1, D) f32
        b = ln_b_ref[idx:idx + 1, :]
        mean = jnp.mean(v, axis=-1, keepdims=True)
        # torch Tensor.std() default is the unbiased (n-1) estimator.
        var = jnp.sum((v - mean) ** 2, axis=-1, keepdims=True) / (D - 1)
        std = jnp.sqrt(var)
        return a * (v - mean) / (std + eps) + b

    def mm(a, w_ref, b_ref):
        # Activations cast to bf16; weights already bf16; f32 accumulation.
        return (jnp.dot(a.astype(BF16), w_ref[...],
                        preferred_element_type=F32) + b_ref[...])

    def split_heads(z2, n):
        # (Bblk*n, heads*dk) -> (Bblk, heads*n, dk); head h occupies rows
        # [h*n, (h+1)*n) of each batch element (matches torch view+transpose).
        z3 = z2.reshape(Bblk, n, heads * dk)
        return jnp.concatenate(
            [z3[:, :, h * dk:(h + 1) * dk] for h in range(heads)], axis=1)

    def merge_heads(z3, n):
        # (Bblk, heads*n, dk) -> (Bblk*n, heads*dk)
        m = jnp.concatenate(
            [z3[:, h * n:(h + 1) * n, :] for h in range(heads)], axis=2)
        return m.reshape(Bblk * n, heads * dk)

    def attention(qh, kh, vh, bias):
        # qh: (Bblk, h*T, dk) bf16 ; kh/vh: (Bblk, h*n_kv, dk) bf16
        # bias: broadcastable to (Bblk, h*T, h*n_kv) f32 (user mask + cross-head
        # block-diagonal already fused in the wrapper).
        s = jnp.einsum('bqd,bkd->bqk', qh, kh,
                       preferred_element_type=F32) * scale
        s = s + bias
        s_max = jnp.max(s, axis=-1, keepdims=True)
        e = jnp.exp(s - s_max)
        p = e * pl.reciprocal(jnp.sum(e, axis=-1, keepdims=True), approx=True)
        return jnp.einsum('bqk,bkd->bqd', p.astype(BF16), vh,
                          preferred_element_type=F32)   # (Bblk, h*T, dk) f32

    # ---------------- sublayer 0: x + self_attn(LN(x), ..., tgt_mask) --------
    nx = layer_norm(xf, 0)
    qkv = mm(nx, w_sa_qkv_ref, b_sa_qkv_ref).astype(BF16)   # (Bblk*T, 3D)
    qh = split_heads(qkv[:, :D], T)
    kh = split_heads(qkv[:, D:2 * D], T)
    vh = split_heads(qkv[:, 2 * D:], T)
    ctx = attention(qh, kh, vh, tgt_bias_ref[...][None, :, :])
    x1 = xf + mm(merge_heads(ctx, T), w_sa_o_ref, b_sa_o_ref)

    # ---------------- sublayer 1: x + src_attn(LN(x), m, m, src_mask) --------
    nx1 = layer_norm(x1, 1)
    q2 = mm(nx1, w_ca_q_ref, b_ca_q_ref).astype(BF16)       # (Bblk*T, D)
    kv2 = mm(memf, w_ca_kv_ref, b_ca_kv_ref).astype(BF16)   # (Bblk*S, 2D)
    qh2 = split_heads(q2, T)
    kh2 = split_heads(kv2[:, :D], S)
    vh2 = split_heads(kv2[:, D:], S)
    src_bias = (src_cross_ref[...][None, :, :]
                + src_kbias_ref[...][:, None, :])
    ctx2 = attention(qh2, kh2, vh2, src_bias)
    x2 = x1 + mm(merge_heads(ctx2, T), w_ca_o_ref, b_ca_o_ref)

    # ---------------- sublayer 2: x + FFN(LN(x)) ------------------------------
    nx2 = layer_norm(x2, 2)
    h1 = jnp.maximum(mm(nx2, w_ff1_ref, b_ff1_ref), 0.0)
    x3 = x2 + mm(h1, w_ff2_ref, b_ff2_ref)

    o_ref[...] = x3.reshape(Bblk, T, D).astype(o_ref.dtype)


# ------------------------------- wrapper ------------------------------------

def _pick_batch_block(B, T, target_rows=256):
    cands = [c for c in range(1, B + 1) if B % c == 0]
    fit = [c for c in cands if c * T <= target_rows] or [1]
    best = max(fit)
    # Keep >= 2 grid steps (when B allows) so v7x's two TensorCores both work.
    if B // best < 2:
        smaller = [c for c in cands if B // c >= 2]
        if smaller:
            best = max(smaller)
    return best


def decoder_layer(params, x, memory, src_mask, tgt_mask, *, heads, eps=1e-6):
    B, T, D = x.shape
    S = memory.shape[1]
    assert D % heads == 0
    hT, hS = heads * T, heads * S
    Bblk = _pick_batch_block(B, T)

    x = x.astype(F32)
    memory = memory.astype(F32)

    # --- precomputed additive attention biases (mask fused with cross-head) --
    # TODO(synk): tgt_mask is assumed batch-invariant (shape broadcastable from
    # (1, T, T)) and src_mask query-invariant ((B or 1, 1, S)) — the canonical
    # DecoderLayer usage; fully general (B, T, S) masks need a per-batch bias.
    tgt_m2 = jnp.broadcast_to(tgt_mask.astype(F32), (1, T, T))[0]       # (T,T)
    src_m2 = jnp.broadcast_to(src_mask.astype(F32), (B, 1, S))[:, 0, :]  # (B,S)

    row_h = jnp.arange(hT) // T
    col_ht = jnp.arange(hT) // T
    col_hs = jnp.arange(hS) // S
    cross_tt = jnp.where(row_h[:, None] == col_ht[None, :], 0.0, _NEG)
    cross_ts = jnp.where(row_h[:, None] == col_hs[None, :], 0.0, _NEG)

    tgt_user = jnp.where(tgt_m2 > 0, 0.0, _NEG)
    tgt_bias = jnp.maximum(cross_tt + jnp.tile(tgt_user, (heads, heads)),
                           _NEG).astype(F32)                 # (hT, hT)
    src_cross = cross_ts.astype(F32)                          # (hT, hS)
    src_kbias = jnp.tile(jnp.where(src_m2 > 0, 0.0, _NEG),
                         (1, heads)).astype(F32)              # (B, hS)

    # --- weights: matmul weights in bf16, LN params / biases in f32 ----------
    def wcast(a):
        return a.astype(BF16)

    def fcast(a):
        return a.astype(F32)

    weight_args = (
        fcast(params['ln_a']), fcast(params['ln_b']),
        wcast(params['w_sa_qkv']), fcast(params['b_sa_qkv']),
        wcast(params['w_sa_o']), fcast(params['b_sa_o']),
        wcast(params['w_ca_q']), fcast(params['b_ca_q']),
        wcast(params['w_ca_kv']), fcast(params['b_ca_kv']),
        wcast(params['w_ca_o']), fcast(params['b_ca_o']),
        wcast(params['w_ff1']), fcast(params['b_ff1']),
        wcast(params['w_ff2']), fcast(params['b_ff2']),
    )

    def const_spec(arr):
        nd = arr.ndim
        return pl.BlockSpec(arr.shape, lambda b, _nd=nd: (0,) * _nd)

    in_specs = (
        [pl.BlockSpec((Bblk, T, D), lambda b: (b, 0, 0)),   # x
         pl.BlockSpec((Bblk, S, D), lambda b: (b, 0, 0)),   # memory
         const_spec(tgt_bias),                              # tgt bias (const)
         const_spec(src_cross),                             # src cross (const)
         pl.BlockSpec((Bblk, hS), lambda b: (b, 0))]        # src key-bias
        + [const_spec(w) for w in weight_args]
    )

    kern = functools.partial(_decoder_layer_kernel, heads=heads, eps=eps)
    return pl.pallas_call(
        kern,
        out_shape=jax.ShapeDtypeStruct((B, T, D), F32),
        grid=(B // Bblk,),
        in_specs=in_specs,
        out_specs=pl.BlockSpec((Bblk, T, D), lambda b: (b, 0, 0)),
        compiler_params=pltpu.CompilerParams(dimension_semantics=("parallel",)),
    )(x, memory, tgt_bias, src_cross, src_kbias, *weight_args)


# ------------------------- pure-JAX reference (f32) --------------------------

def reference_decoder_layer(params, x, memory, src_mask, tgt_mask, *, heads,
                            eps=1e-6):
    B, T, D = x.shape
    S = memory.shape[1]
    dk = D // heads

    def layer_norm(v, idx):
        a, b = params['ln_a'][idx], params['ln_b'][idx]
        mean = jnp.mean(v, axis=-1, keepdims=True)
        var = jnp.sum((v - mean) ** 2, axis=-1, keepdims=True) / (D - 1)
        return a * (v - mean) / (jnp.sqrt(var) + eps) + b

    def split(z):
        return z.reshape(z.shape[0], z.shape[1], heads, dk).transpose(0, 2, 1, 3)

    def merge(z):
        return z.transpose(0, 2, 1, 3).reshape(z.shape[0], z.shape[2], D)

    def attn(q, k, v, mask):
        s = jnp.einsum('bhtd,bhsd->bhts', q, k) / (dk ** 0.5)
        s = jnp.where(mask[:, None, :, :] > 0, s, _NEG)
        p = jax.nn.softmax(s, axis=-1)
        return jnp.einsum('bhts,bhsd->bhtd', p, v)

    nx = layer_norm(x, 0)
    qkv = nx @ params['w_sa_qkv'] + params['b_sa_qkv']
    q, k, v = qkv[..., :D], qkv[..., D:2 * D], qkv[..., 2 * D:]
    ctx = merge(attn(split(q), split(k), split(v),
                     jnp.broadcast_to(tgt_mask, (B, T, T))))
    x1 = x + (ctx @ params['w_sa_o'] + params['b_sa_o'])

    nx1 = layer_norm(x1, 1)
    q2 = nx1 @ params['w_ca_q'] + params['b_ca_q']
    kv2 = memory @ params['w_ca_kv'] + params['b_ca_kv']
    k2, v2 = kv2[..., :D], kv2[..., D:]
    ctx2 = merge(attn(split(q2), split(k2), split(v2),
                      jnp.broadcast_to(src_mask, (B, T, S))))
    x2 = x1 + (ctx2 @ params['w_ca_o'] + params['b_ca_o'])

    nx2 = layer_norm(x2, 2)
    h = jnp.maximum(nx2 @ params['w_ff1'] + params['b_ff1'], 0.0)
    return x2 + (h @ params['w_ff2'] + params['b_ff2'])


# ---------------------------- parameter init --------------------------------

def init_params(key, D, d_ff):
    def linear(k, fan_in, fan_out):
        kw, kb = jax.random.split(k)
        bound = 1.0 / (fan_in ** 0.5)
        w = jax.random.uniform(kw, (fan_in, fan_out), F32, -bound, bound)
        b = jax.random.uniform(kb, (1, fan_out), F32, -bound, bound)
        return w, b

    ks = jax.random.split(key, 7)
    w_sa_qkv, b_sa_qkv = linear(ks[0], D, 3 * D)
    w_sa_o, b_sa_o = linear(ks[1], D, D)
    w_ca_q, b_ca_q = linear(ks[2], D, D)
    w_ca_kv, b_ca_kv = linear(ks[3], D, 2 * D)
    w_ca_o, b_ca_o = linear(ks[4], D, D)
    w_ff1, b_ff1 = linear(ks[5], D, d_ff)
    w_ff2, b_ff2 = linear(ks[6], d_ff, D)
    return dict(
        ln_a=jnp.ones((3, D), F32), ln_b=jnp.zeros((3, D), F32),
        w_sa_qkv=w_sa_qkv, b_sa_qkv=b_sa_qkv, w_sa_o=w_sa_o, b_sa_o=b_sa_o,
        w_ca_q=w_ca_q, b_ca_q=b_ca_q, w_ca_kv=w_ca_kv, b_ca_kv=b_ca_kv,
        w_ca_o=w_ca_o, b_ca_o=b_ca_o,
        w_ff1=w_ff1, b_ff1=b_ff1, w_ff2=w_ff2, b_ff2=b_ff2,
    )


# --------------------------------- main --------------------------------------

if __name__ == "__main__":
    B, T, S, D, heads, d_ff = 16, 16, 16, 64, 4, 128

    key = jax.random.PRNGKey(0)
    kx, km, kp = jax.random.split(key, 3)
    x = jax.random.normal(kx, (B, T, D), F32)
    memory = jax.random.normal(km, (B, S, D), F32)

    tgt_mask = jnp.tril(jnp.ones((1, T, T), F32))        # causal target mask
    lengths = 8 + (jnp.arange(B) % (S - 8 + 1))          # per-batch src padding
    src_mask = (jnp.arange(S)[None, :] < lengths[:, None]).astype(F32)[:, None, :]

    params = init_params(kp, D, d_ff)

    out = decoder_layer(params, x, memory, src_mask, tgt_mask, heads=heads)
    out = jax.block_until_ready(out)

    ref = reference_decoder_layer(params, x, memory, src_mask, tgt_mask,
                                  heads=heads)

    assert out.shape == (B, T, D), out.shape
    assert bool(jnp.all(jnp.isfinite(out)))
    max_err = float(jnp.max(jnp.abs(out - ref)))
    # bf16 matmul weights/inputs + approx reciprocal => loose tolerance;
    # structural bugs would produce O(1) errors.
    assert max_err < 1e-1, f"max abs err vs f32 reference: {max_err}"
    print("KERNEL_OK")
</pallas_src>

<mosaic_0001>
module attributes {stable_mosaic.version = 11 : i64} {
  func.func @_decoder_layer_kernel(%arg0: i32, %arg1: memref<8x16x64xf32, #tpu.memory_space<vmem>>, %arg2: memref<8x16x64xf32, #tpu.memory_space<vmem>>, %arg3: memref<64x64xf32, #tpu.memory_space<vmem>>, %arg4: memref<64x64xf32, #tpu.memory_space<vmem>>, %arg5: memref<8x64xf32, #tpu.memory_space<vmem>>, %arg6: memref<3x64xf32, #tpu.memory_space<vmem>>, %arg7: memref<3x64xf32, #tpu.memory_space<vmem>>, %arg8: memref<64x192xbf16, #tpu.memory_space<vmem>>, %arg9: memref<1x192xf32, #tpu.memory_space<vmem>>, %arg10: memref<64x64xbf16, #tpu.memory_space<vmem>>, %arg11: memref<1x64xf32, #tpu.memory_space<vmem>>, %arg12: memref<64x64xbf16, #tpu.memory_space<vmem>>, %arg13: memref<1x64xf32, #tpu.memory_space<vmem>>, %arg14: memref<64x128xbf16, #tpu.memory_space<vmem>>, %arg15: memref<1x128xf32, #tpu.memory_space<vmem>>, %arg16: memref<64x64xbf16, #tpu.memory_space<vmem>>, %arg17: memref<1x64xf32, #tpu.memory_space<vmem>>, %arg18: memref<64x128xbf16, #tpu.memory_space<vmem>>, %arg19: memref<1x128xf32, #tpu.memory_space<vmem>>, %arg20: memref<128x64xbf16, #tpu.memory_space<vmem>>, %arg21: memref<1x64xf32, #tpu.memory_space<vmem>>, %arg22: memref<8x16x64xf32, #tpu.memory_space<vmem>>) attributes {dimension_semantics = [#tpu.dimension_semantics<parallel>], iteration_bounds = array<i64: 2>, scalar_prefetch = 0 : i64, scratch_operands = 0 : i64, tpu.core_type = #tpu.core_type<tc>, window_params = [{transform_indices = @transform_0, window_bounds = array<i64: 8, 16, 64>}, {transform_indices = @transform_1, window_bounds = array<i64: 8, 16, 64>}, {pipeline_mode = #tpu.pipeline_mode<synchronous>, transform_indices = @transform_2, window_bounds = array<i64: 64, 64>}, {pipeline_mode = #tpu.pipeline_mode<synchronous>, transform_indices = @transform_3, window_bounds = array<i64: 64, 64>}, {transform_indices = @transform_4, window_bounds = array<i64: 8, 64>}, {pipeline_mode = #tpu.pipeline_mode<synchronous>, transform_indices = @transform_5, window_bounds = array<i64: 3, 64>}, {pipeline_mode = #tpu.pipeline_mode<synchronous>, transform_indices = @transform_6, window_bounds = array<i64: 3, 64>}, {pipeline_mode = #tpu.pipeline_mode<synchronous>, transform_indices = @transform_7, window_bounds = array<i64: 64, 192>}, {pipeline_mode = #tpu.pipeline_mode<synchronous>, transform_indices = @transform_8, window_bounds = array<i64: 1, 192>}, {pipeline_mode = #tpu.pipeline_mode<synchronous>, transform_indices = @transform_9, window_bounds = array<i64: 64, 64>}, {pipeline_mode = #tpu.pipeline_mode<synchronous>, transform_indices = @transform_10, window_bounds = array<i64: 1, 64>}, {pipeline_mode = #tpu.pipeline_mode<synchronous>, transform_indices = @transform_11, window_bounds = array<i64: 64, 64>}, {pipeline_mode = #tpu.pipeline_mode<synchronous>, transform_indices = @transform_12, window_bounds = array<i64: 1, 64>}, {pipeline_mode = #tpu.pipeline_mode<synchronous>, transform_indices = @transform_13, window_bounds = array<i64: 64, 128>}, {pipeline_mode = #tpu.pipeline_mode<synchronous>, transform_indices = @transform_14, window_bounds = array<i64: 1, 128>}, {pipeline_mode = #tpu.pipeline_mode<synchronous>, transform_indices = @transform_15, window_bounds = array<i64: 64, 64>}, {pipeline_mode = #tpu.pipeline_mode<synchronous>, transform_indices = @transform_16, window_bounds = array<i64: 1, 64>}, {pipeline_mode = #tpu.pipeline_mode<synchronous>, transform_indices = @transform_17, window_bounds = array<i64: 64, 128>}, {pipeline_mode = #tpu.pipeline_mode<synchronous>, transform_indices = @transform_18, window_bounds = array<i64: 1, 128>}, {pipeline_mode = #tpu.pipeline_mode<synchronous>, transform_indices = @transform_19, window_bounds = array<i64: 128, 64>}, {pipeline_mode = #tpu.pipeline_mode<synchronous>, transform_indices = @transform_20, window_bounds = array<i64: 1, 64>}, {transform_indices = @transform_21, window_bounds = array<i64: 8, 16, 64>}]} {
    %c0 = arith.constant 0 : index
    %c0_0 = arith.constant 0 : index
    %c0_1 = arith.constant 0 : index
    %0 = vector.load %arg1[%c0, %c0_0, %c0_1] : memref<8x16x64xf32, #tpu.memory_space<vmem>>, vector<8x16x64xf32>
    %1 = vector.shape_cast %0 : vector<8x16x64xf32> to vector<128x64xf32>
    %c0_2 = arith.constant 0 : index
    %c0_3 = arith.constant 0 : index
    %c0_4 = arith.constant 0 : index
    %2 = vector.load %arg2[%c0_2, %c0_3, %c0_4] : memref<8x16x64xf32, #tpu.memory_space<vmem>>, vector<8x16x64xf32>
    %3 = vector.shape_cast %2 : vector<8x16x64xf32> to vector<128x64xf32>
    %c0_5 = arith.constant 0 : index
    %c0_6 = arith.constant 0 : index
    %4 = vector.load %arg6[%c0_5, %c0_6] : memref<3x64xf32, #tpu.memory_space<vmem>>, vector<1x64xf32>
    %c0_7 = arith.constant 0 : index
    %c0_8 = arith.constant 0 : index
    %5 = vector.load %arg7[%c0_7, %c0_8] : memref<3x64xf32, #tpu.memory_space<vmem>>, vector<1x64xf32>
    %cst = arith.constant dense<0.000000e+00> : vector<128xf32>
    %6 = vector.multi_reduction <add>, %1, %cst [1] : vector<128x64xf32> to vector<128xf32>
    %7 = vector.shape_cast %6 : vector<128xf32> to vector<128x1xf32>
    %cst_9 = arith.constant 6.400000e+01 : f32
    %8 = vector.broadcast %cst_9 : f32 to vector<128x1xf32>
    %9 = arith.divf %7, %8 : vector<128x1xf32>
    %10 = vector.broadcast %9 : vector<128x1xf32> to vector<128x64xf32>
    %11 = arith.subf %1, %10 : vector<128x64xf32>
    %12 = arith.mulf %11, %11 : vector<128x64xf32>
    %cst_10 = arith.constant dense<0.000000e+00> : vector<128xf32>
    %13 = vector.multi_reduction <add>, %12, %cst_10 [1] : vector<128x64xf32> to vector<128xf32>
    %14 = vector.shape_cast %13 : vector<128xf32> to vector<128x1xf32>
    %cst_11 = arith.constant 6.300000e+01 : f32
    %15 = vector.broadcast %cst_11 : f32 to vector<128x1xf32>
    %16 = arith.divf %14, %15 : vector<128x1xf32>
    %17 = math.sqrt %16 : vector<128x1xf32>
    %18 = vector.broadcast %9 : vector<128x1xf32> to vector<128x64xf32>
    %19 = arith.subf %1, %18 : vector<128x64xf32>
    %20 = vector.broadcast %4 : vector<1x64xf32> to vector<128x64xf32>
    %21 = arith.mulf %20, %19 : vector<128x64xf32>
    %cst_12 = arith.constant 9.99999997E-7 : f32
    %22 = vector.broadcast %cst_12 : f32 to vector<128x1xf32>
    %23 = arith.addf %17, %22 : vector<128x1xf32>
    %24 = vector.broadcast %23 : vector<128x1xf32> to vector<128x64xf32>
    %25 = arith.divf %21, %24 : vector<128x64xf32>
    %26 = vector.broadcast %5 : vector<1x64xf32> to vector<128x64xf32>
    %27 = arith.addf %25, %26 : vector<128x64xf32>
    %28 = arith.truncf %27 : vector<128x64xf32> to vector<128x64xbf16>
    %c0_13 = arith.constant 0 : index
    %c0_14 = arith.constant 0 : index
    %29 = vector.load %arg8[%c0_13, %c0_14] : memref<64x192xbf16, #tpu.memory_space<vmem>>, vector<64x192xbf16>
    %cst_15 = arith.constant dense<0.000000e+00> : vector<128x192xf32>
    %30 = tpu.matmul %28, %29, %cst_15 {dimension_numbers = #tpu.dot_dimension_numbers<[1], [0], [0], [1], [0, 0, 1, 1], [], []>} : vector<128x64xbf16>, vector<64x192xbf16>, vector<128x192xf32> -> vector<128x192xf32>
    %c0_16 = arith.constant 0 : index
    %c0_17 = arith.constant 0 : index
    %31 = vector.load %arg9[%c0_16, %c0_17] : memref<1x192xf32, #tpu.memory_space<vmem>>, vector<1x192xf32>
    %32 = vector.broadcast %31 : vector<1x192xf32> to vector<128x192xf32>
    %33 = arith.addf %30, %32 : vector<128x192xf32>
    %34 = arith.truncf %33 : vector<128x192xf32> to vector<128x192xbf16>
    %35 = vector.extract_strided_slice %34 {offsets = [0, 0], sizes = [128, 64], strides = [1, 1]} : vector<128x192xbf16> to vector<128x64xbf16>
    %36 = vector.shape_cast %35 : vector<128x64xbf16> to vector<8x16x64xbf16>
    %37 = vector.extract_strided_slice %36 {offsets = [0, 0, 0], sizes = [8, 16, 16], strides = [1, 1, 1]} : vector<8x16x64xbf16> to vector<8x16x16xbf16>
    %38 = vector.extract_strided_slice %36 {offsets = [0, 0, 16], sizes = [8, 16, 16], strides = [1, 1, 1]} : vector<8x16x64xbf16> to vector<8x16x16xbf16>
    %39 = vector.extract_strided_slice %36 {offsets = [0, 0, 32], sizes = [8, 16, 16], strides = [1, 1, 1]} : vector<8x16x64xbf16> to vector<8x16x16xbf16>
    %40 = vector.extract_strided_slice %36 {offsets = [0, 0, 48], sizes = [8, 16, 16], strides = [1, 1, 1]} : vector<8x16x64xbf16> to vector<8x16x16xbf16>
    %41 = tpu.concatenate %37, %38, %39, %40 in 1 : vector<8x16x16xbf16>, vector<8x16x16xbf16>, vector<8x16x16xbf16>, vector<8x16x16xbf16> -> vector<8x64x16xbf16>
    %42 = vector.extract_strided_slice %34 {offsets = [0, 64], sizes = [128, 64], strides = [1, 1]} : vector<128x192xbf16> to vector<128x64xbf16>
    %43 = vector.shape_cast %42 : vector<128x64xbf16> to vector<8x16x64xbf16>
    %44 = vector.extract_strided_slice %43 {offsets = [0, 0, 0], sizes = [8, 16, 16], strides = [1, 1, 1]} : vector<8x16x64xbf16> to vector<8x16x16xbf16>
    %45 = vector.extract_strided_slice %43 {offsets = [0, 0, 16], sizes = [8, 16, 16], strides = [1, 1, 1]} : vector<8x16x64xbf16> to vector<8x16x16xbf16>
    %46 = vector.extract_strided_slice %43 {offsets = [0, 0, 32], sizes = [8, 16, 16], strides = [1, 1, 1]} : vector<8x16x64xbf16> to vector<8x16x16xbf16>
    %47 = vector.extract_strided_slice %43 {offsets = [0, 0, 48], sizes = [8, 16, 16], strides = [1, 1, 1]} : vector<8x16x64xbf16> to vector<8x16x16xbf16>
    %48 = tpu.concatenate %44, %45, %46, %47 in 1 : vector<8x16x16xbf16>, vector<8x16x16xbf16>, vector<8x16x16xbf16>, vector<8x16x16xbf16> -> vector<8x64x16xbf16>
    %49 = vector.extract_strided_slice %34 {offsets = [0, 128], sizes = [128, 64], strides = [1, 1]} : vector<128x192xbf16> to vector<128x64xbf16>
    %50 = vector.shape_cast %49 : vector<128x64xbf16> to vector<8x16x64xbf16>
    %51 = vector.extract_strided_slice %50 {offsets = [0, 0, 0], sizes = [8, 16, 16], strides = [1, 1, 1]} : vector<8x16x64xbf16> to vector<8x16x16xbf16>
    %52 = vector.extract_strided_slice %50 {offsets = [0, 0, 16], sizes = [8, 16, 16], strides = [1, 1, 1]} : vector<8x16x64xbf16> to vector<8x16x16xbf16>
    %53 = vector.extract_strided_slice %50 {offsets = [0, 0, 32], sizes = [8, 16, 16], strides = [1, 1, 1]} : vector<8x16x64xbf16> to vector<8x16x16xbf16>
    %54 = vector.extract_strided_slice %50 {offsets = [0, 0, 48], sizes = [8, 16, 16], strides = [1, 1, 1]} : vector<8x16x64xbf16> to vector<8x16x16xbf16>
    %55 = tpu.concatenate %51, %52, %53, %54 in 1 : vector<8x16x16xbf16>, vector<8x16x16xbf16>, vector<8x16x16xbf16>, vector<8x16x16xbf16> -> vector<8x64x16xbf16>
    %c0_18 = arith.constant 0 : index
    %c0_19 = arith.constant 0 : index
    %56 = vector.load %arg3[%c0_18, %c0_19] : memref<64x64xf32, #tpu.memory_space<vmem>>, vector<64x64xf32>
    %57 = vector.shape_cast %56 : vector<64x64xf32> to vector<1x64x64xf32>
    "tpu.trace_start"() <{level = 10 : i32, message = "bqd,bkd->bqk"}> : () -> ()
    %cst_20 = arith.constant dense<0.000000e+00> : vector<8x64x64xf32>
    %58 = tpu.matmul %41, %48, %cst_20 {dimension_numbers = #tpu.dot_dimension_numbers<[2], [2], [1], [1], [0, 0, 0, 1, 1, 1], [0], [0]>} : vector<8x64x16xbf16>, vector<8x64x16xbf16>, vector<8x64x64xf32> -> vector<8x64x64xf32>
    "tpu.trace_stop"() : () -> ()
    %cst_21 = arith.constant 2.500000e-01 : f32
    %59 = vector.broadcast %cst_21 : f32 to vector<8x64x64xf32>
    %60 = arith.mulf %58, %59 : vector<8x64x64xf32>
    %61 = vector.broadcast %57 : vector<1x64x64xf32> to vector<8x64x64xf32>
    %62 = arith.addf %60, %61 : vector<8x64x64xf32>
    %cst_22 = arith.constant dense<0xFF800000> : vector<8x64xf32>
    %63 = vector.multi_reduction <maximumf>, %62, %cst_22 [2] : vector<8x64x64xf32> to vector<8x64xf32>
    %64 = vector.shape_cast %63 : vector<8x64xf32> to vector<8x64x1xf32>
    %65 = vector.broadcast %64 : vector<8x64x1xf32> to vector<8x64x64xf32>
    %66 = arith.subf %62, %65 : vector<8x64x64xf32>
    %67 = math.exp %66 : vector<8x64x64xf32>
    %cst_23 = arith.constant dense<0.000000e+00> : vector<8x64xf32>
    %68 = vector.multi_reduction <add>, %67, %cst_23 [2] : vector<8x64x64xf32> to vector<8x64xf32>
    %69 = vector.shape_cast %68 : vector<8x64xf32> to vector<8x64x1xf32>
    %70 = tpu.reciprocal %69 {approx = true} : vector<8x64x1xf32> -> vector<8x64x1xf32>
    %71 = vector.broadcast %70 : vector<8x64x1xf32> to vector<8x64x64xf32>
    %72 = arith.mulf %67, %71 : vector<8x64x64xf32>
    %73 = arith.truncf %72 : vector<8x64x64xf32> to vector<8x64x64xbf16>
    "tpu.trace_start"() <{level = 10 : i32, message = "bqk,bkd->bqd"}> : () -> ()
    %cst_24 = arith.constant dense<0.000000e+00> : vector<8x64x16xf32>
    %74 = tpu.matmul %73, %55, %cst_24 {dimension_numbers = #tpu.dot_dimension_numbers<[2], [1], [1], [2], [0, 0, 0, 1, 1, 2], [0], [0]>} : vector<8x64x64xbf16>, vector<8x64x16xbf16>, vector<8x64x16xf32> -> vector<8x64x16xf32>
    "tpu.trace_stop"() : () -> ()
    %75 = vector.extract_strided_slice %74 {offsets = [0, 0, 0], sizes = [8, 16, 16], strides = [1, 1, 1]} : vector<8x64x16xf32> to vector<8x16x16xf32>
    %76 = vector.extract_strided_slice %74 {offsets = [0, 16, 0], sizes = [8, 16, 16], strides = [1, 1, 1]} : vector<8x64x16xf32> to vector<8x16x16xf32>
    %77 = vector.extract_strided_slice %74 {offsets = [0, 32, 0], sizes = [8, 16, 16], strides = [1, 1, 1]} : vector<8x64x16xf32> to vector<8x16x16xf32>
    %78 = vector.extract_strided_slice %74 {offsets = [0, 48, 0], sizes = [8, 16, 16], strides = [1, 1, 1]} : vector<8x64x16xf32> to vector<8x16x16xf32>
    %79 = tpu.concatenate %75, %76, %77, %78 in 2 : vector<8x16x16xf32>, vector<8x16x16xf32>, vector<8x16x16xf32>, vector<8x16x16xf32> -> vector<8x16x64xf32>
    %80 = vector.shape_cast %79 : vector<8x16x64xf32> to vector<128x64xf32>
    %81 = arith.truncf %80 : vector<128x64xf32> to vector<128x64xbf16>
    %c0_25 = arith.constant 0 : index
    %c0_26 = arith.constant 0 : index
    %82 = vector.load %arg10[%c0_25, %c0_26] : memref<64x64xbf16, #tpu.memory_space<vmem>>, vector<64x64xbf16>
    %cst_27 = arith.constant dense<0.000000e+00> : vector<128x64xf32>
    %83 = tpu.matmul %81, %82, %cst_27 {dimension_numbers = #tpu.dot_dimension_numbers<[1], [0], [0], [1], [0, 0, 1, 1], [], []>} : vector<128x64xbf16>, vector<64x64xbf16>, vector<128x64xf32> -> vector<128x64xf32>
    %c0_28 = arith.constant 0 : index
    %c0_29 = arith.constant 0 : index
    %84 = vector.load %arg11[%c0_28, %c0_29] : memref<1x64xf32, #tpu.memory_space<vmem>>, vector<1x64xf32>
    %85 = vector.broadcast %84 : vector<1x64xf32> to vector<128x64xf32>
    %86 = arith.addf %83, %85 : vector<128x64xf32>
    %87 = arith.addf %1, %86 : vector<128x64xf32>
    %c1 = arith.constant 1 : index
    %c0_30 = arith.constant 0 : index
    %88 = vector.load %arg6[%c1, %c0_30] : memref<3x64xf32, #tpu.memory_space<vmem>>, vector<1x64xf32>
    %c1_31 = arith.constant 1 : index
    %c0_32 = arith.constant 0 : index
    %89 = vector.load %arg7[%c1_31, %c0_32] : memref<3x64xf32, #tpu.memory_space<vmem>>, vector<1x64xf32>
    %cst_33 = arith.constant dense<0.000000e+00> : vector<128xf32>
    %90 = vector.multi_reduction <add>, %87, %cst_33 [1] : vector<128x64xf32> to vector<128xf32>
    %91 = vector.shape_cast %90 : vector<128xf32> to vector<128x1xf32>
    %cst_34 = arith.constant 6.400000e+01 : f32
    %92 = vector.broadcast %cst_34 : f32 to vector<128x1xf32>
    %93 = arith.divf %91, %92 : vector<128x1xf32>
    %94 = vector.broadcast %93 : vector<128x1xf32> to vector<128x64xf32>
    %95 = arith.subf %87, %94 : vector<128x64xf32>
    %96 = arith.mulf %95, %95 : vector<128x64xf32>
    %cst_35 = arith.constant dense<0.000000e+00> : vector<128xf32>
    %97 = vector.multi_reduction <add>, %96, %cst_35 [1] : vector<128x64xf32> to vector<128xf32>
    %98 = vector.shape_cast %97 : vector<128xf32> to vector<128x1xf32>
    %cst_36 = arith.constant 6.300000e+01 : f32
    %99 = vector.broadcast %cst_36 : f32 to vector<128x1xf32>
    %100 = arith.divf %98, %99 : vector<128x1xf32>
    %101 = math.sqrt %100 : vector<128x1xf32>
    %102 = vector.broadcast %93 : vector<128x1xf32> to vector<128x64xf32>
    %103 = arith.subf %87, %102 : vector<128x64xf32>
    %104 = vector.broadcast %88 : vector<1x64xf32> to vector<128x64xf32>
    %105 = arith.mulf %104, %103 : vector<128x64xf32>
    %cst_37 = arith.constant 9.99999997E-7 : f32
    %106 = vector.broadcast %cst_37 : f32 to vector<128x1xf32>
    %107 = arith.addf %101, %106 : vector<128x1xf32>
    %108 = vector.broadcast %107 : vector<128x1xf32> to vector<128x64xf32>
    %109 = arith.divf %105, %108 : vector<128x64xf32>
    %110 = vector.broadcast %89 : vector<1x64xf32> to vector<128x64xf32>
    %111 = arith.addf %109, %110 : vector<128x64xf32>
    %112 = arith.truncf %111 : vector<128x64xf32> to vector<128x64xbf16>
    %c0_38 = arith.constant 0 : index
    %c0_39 = arith.constant 0 : index
    %113 = vector.load %arg12[%c0_38, %c0_39] : memref<64x64xbf16, #tpu.memory_space<vmem>>, vector<64x64xbf16>
    %cst_40 = arith.constant dense<0.000000e+00> : vector<128x64xf32>
    %114 = tpu.matmul %112, %113, %cst_40 {dimension_numbers = #tpu.dot_dimension_numbers<[1], [0], [0], [1], [0, 0, 1, 1], [], []>} : vector<128x64xbf16>, vector<64x64xbf16>, vector<128x64xf32> -> vector<128x64xf32>
    %c0_41 = arith.constant 0 : index
    %c0_42 = arith.constant 0 : index
    %115 = vector.load %arg13[%c0_41, %c0_42] : memref<1x64xf32, #tpu.memory_space<vmem>>, vector<1x64xf32>
    %116 = vector.broadcast %115 : vector<1x64xf32> to vector<128x64xf32>
    %117 = arith.addf %114, %116 : vector<128x64xf32>
    %118 = arith.truncf %117 : vector<128x64xf32> to vector<128x64xbf16>
    %119 = arith.truncf %3 : vector<128x64xf32> to vector<128x64xbf16>
    %c0_43 = arith.constant 0 : index
    %c0_44 = arith.constant 0 : index
    %120 = vector.load %arg14[%c0_43, %c0_44] : memref<64x128xbf16, #tpu.memory_space<vmem>>, vector<64x128xbf16>
    %cst_45 = arith.constant dense<0.000000e+00> : vector<128x128xf32>
    %121 = tpu.matmul %119, %120, %cst_45 {dimension_numbers = #tpu.dot_dimension_numbers<[1], [0], [0], [1], [0, 0, 1, 1], [], []>} : vector<128x64xbf16>, vector<64x128xbf16>, vector<128x128xf32> -> vector<128x128xf32>
    %c0_46 = arith.constant 0 : index
    %c0_47 = arith.constant 0 : index
    %122 = vector.load %arg15[%c0_46, %c0_47] : memref<1x128xf32, #tpu.memory_space<vmem>>, vector<1x128xf32>
    %123 = vector.broadcast %122 : vector<1x128xf32> to vector<128x128xf32>
    %124 = arith.addf %121, %123 : vector<128x128xf32>
    %125 = arith.truncf %124 : vector<128x128xf32> to vector<128x128xbf16>
    %126 = vector.shape_cast %118 : vector<128x64xbf16> to vector<8x16x64xbf16>
    %127 = vector.extract_strided_slice %126 {offsets = [0, 0, 0], sizes = [8, 16, 16], strides = [1, 1, 1]} : vector<8x16x64xbf16> to vector<8x16x16xbf16>
    %128 = vector.extract_strided_slice %126 {offsets = [0, 0, 16], sizes = [8, 16, 16], strides = [1, 1, 1]} : vector<8x16x64xbf16> to vector<8x16x16xbf16>
    %129 = vector.extract_strided_slice %126 {offsets = [0, 0, 32], sizes = [8, 16, 16], strides = [1, 1, 1]} : vector<8x16x64xbf16> to vector<8x16x16xbf16>
    %130 = vector.extract_strided_slice %126 {offsets = [0, 0, 48], sizes = [8, 16, 16], strides = [1, 1, 1]} : vector<8x16x64xbf16> to vector<8x16x16xbf16>
    %131 = tpu.concatenate %127, %128, %129, %130 in 1 : vector<8x16x16xbf16>, vector<8x16x16xbf16>, vector<8x16x16xbf16>, vector<8x16x16xbf16> -> vector<8x64x16xbf16>
    %132 = vector.extract_strided_slice %125 {offsets = [0, 0], sizes = [128, 64], strides = [1, 1]} : vector<128x128xbf16> to vector<128x64xbf16>
    %133 = vector.shape_cast %132 : vector<128x64xbf16> to vector<8x16x64xbf16>
    %134 = vector.extract_strided_slice %133 {offsets = [0, 0, 0], sizes = [8, 16, 16], strides = [1, 1, 1]} : vector<8x16x64xbf16> to vector<8x16x16xbf16>
    %135 = vector.extract_strided_slice %133 {offsets = [0, 0, 16], sizes = [8, 16, 16], strides = [1, 1, 1]} : vector<8x16x64xbf16> to vector<8x16x16xbf16>
    %136 = vector.extract_strided_slice %133 {offsets = [0, 0, 32], sizes = [8, 16, 16], strides = [1, 1, 1]} : vector<8x16x64xbf16> to vector<8x16x16xbf16>
    %137 = vector.extract_strided_slice %133 {offsets = [0, 0, 48], sizes = [8, 16, 16], strides = [1, 1, 1]} : vector<8x16x64xbf16> to vector<8x16x16xbf16>
    %138 = tpu.concatenate %134, %135, %136, %137 in 1 : vector<8x16x16xbf16>, vector<8x16x16xbf16>, vector<8x16x16xbf16>, vector<8x16x16xbf16> -> vector<8x64x16xbf16>
    %139 = vector.extract_strided_slice %125 {offsets = [0, 64], sizes = [128, 64], strides = [1, 1]} : vector<128x128xbf16> to vector<128x64xbf16>
    %140 = vector.shape_cast %139 : vector<128x64xbf16> to vector<8x16x64xbf16>
    %141 = vector.extract_strided_slice %140 {offsets = [0, 0, 0], sizes = [8, 16, 16], strides = [1, 1, 1]} : vector<8x16x64xbf16> to vector<8x16x16xbf16>
    %142 = vector.extract_strided_slice %140 {offsets = [0, 0, 16], sizes = [8, 16, 16], strides = [1, 1, 1]} : vector<8x16x64xbf16> to vector<8x16x16xbf16>
    %143 = vector.extract_strided_slice %140 {offsets = [0, 0, 32], sizes = [8, 16, 16], strides = [1, 1, 1]} : vector<8x16x64xbf16> to vector<8x16x16xbf16>
    %144 = vector.extract_strided_slice %140 {offsets = [0, 0, 48], sizes = [8, 16, 16], strides = [1, 1, 1]} : vector<8x16x64xbf16> to vector<8x16x16xbf16>
    %145 = tpu.concatenate %141, %142, %143, %144 in 1 : vector<8x16x16xbf16>, vector<8x16x16xbf16>, vector<8x16x16xbf16>, vector<8x16x16xbf16> -> vector<8x64x16xbf16>
    %c0_48 = arith.constant 0 : index
    %c0_49 = arith.constant 0 : index
    %146 = vector.load %arg4[%c0_48, %c0_49] : memref<64x64xf32, #tpu.memory_space<vmem>>, vector<64x64xf32>
    %147 = vector.shape_cast %146 : vector<64x64xf32> to vector<1x64x64xf32>
    %c0_50 = arith.constant 0 : index
    %c0_51 = arith.constant 0 : index
    %148 = vector.load %arg5[%c0_50, %c0_51] : memref<8x64xf32, #tpu.memory_space<vmem>>, vector<8x64xf32>
    %149 = vector.shape_cast %148 : vector<8x64xf32> to vector<8x1x64xf32>
    %150 = vector.broadcast %147 : vector<1x64x64xf32> to vector<8x64x64xf32>
    %151 = vector.broadcast %149 : vector<8x1x64xf32> to vector<8x64x64xf32>
    %152 = arith.addf %150, %151 : vector<8x64x64xf32>
    "tpu.trace_start"() <{level = 10 : i32, message = "bqd,bkd->bqk"}> : () -> ()
    %cst_52 = arith.constant dense<0.000000e+00> : vector<8x64x64xf32>
    %153 = tpu.matmul %131, %138, %cst_52 {dimension_numbers = #tpu.dot_dimension_numbers<[2], [2], [1], [1], [0, 0, 0, 1, 1, 1], [0], [0]>} : vector<8x64x16xbf16>, vector<8x64x16xbf16>, vector<8x64x64xf32> -> vector<8x64x64xf32>
    "tpu.trace_stop"() : () -> ()
    %cst_53 = arith.constant 2.500000e-01 : f32
    %154 = vector.broadcast %cst_53 : f32 to vector<8x64x64xf32>
    %155 = arith.mulf %153, %154 : vector<8x64x64xf32>
    %156 = arith.addf %155, %152 : vector<8x64x64xf32>
    %cst_54 = arith.constant dense<0xFF800000> : vector<8x64xf32>
    %157 = vector.multi_reduction <maximumf>, %156, %cst_54 [2] : vector<8x64x64xf32> to vector<8x64xf32>
    %158 = vector.shape_cast %157 : vector<8x64xf32> to vector<8x64x1xf32>
    %159 = vector.broadcast %158 : vector<8x64x1xf32> to vector<8x64x64xf32>
    %160 = arith.subf %156, %159 : vector<8x64x64xf32>
    %161 = math.exp %160 : vector<8x64x64xf32>
    %cst_55 = arith.constant dense<0.000000e+00> : vector<8x64xf32>
    %162 = vector.multi_reduction <add>, %161, %cst_55 [2] : vector<8x64x64xf32> to vector<8x64xf32>
    %163 = vector.shape_cast %162 : vector<8x64xf32> to vector<8x64x1xf32>
    %164 = tpu.reciprocal %163 {approx = true} : vector<8x64x1xf32> -> vector<8x64x1xf32>
    %165 = vector.broadcast %164 : vector<8x64x1xf32> to vector<8x64x64xf32>
    %166 = arith.mulf %161, %165 : vector<8x64x64xf32>
    %167 = arith.truncf %166 : vector<8x64x64xf32> to vector<8x64x64xbf16>
    "tpu.trace_start"() <{level = 10 : i32, message = "bqk,bkd->bqd"}> : () -> ()
    %cst_56 = arith.constant dense<0.000000e+00> : vector<8x64x16xf32>
    %168 = tpu.matmul %167, %145, %cst_56 {dimension_numbers = #tpu.dot_dimension_numbers<[2], [1], [1], [2], [0, 0, 0, 1, 1, 2], [0], [0]>} : vector<8x64x64xbf16>, vector<8x64x16xbf16>, vector<8x64x16xf32> -> vector<8x64x16xf32>
    "tpu.trace_stop"() : () -> ()
    %169 = vector.extract_strided_slice %168 {offsets = [0, 0, 0], sizes = [8, 16, 16], strides = [1, 1, 1]} : vector<8x64x16xf32> to vector<8x16x16xf32>
    %170 = vector.extract_strided_slice %168 {offsets = [0, 16, 0], sizes = [8, 16, 16], strides = [1, 1, 1]} : vector<8x64x16xf32> to vector<8x16x16xf32>
    %171 = vector.extract_strided_slice %168 {offsets = [0, 32, 0], sizes = [8, 16, 16], strides = [1, 1, 1]} : vector<8x64x16xf32> to vector<8x16x16xf32>
    %172 = vector.extract_strided_slice %168 {offsets = [0, 48, 0], sizes = [8, 16, 16], strides = [1, 1, 1]} : vector<8x64x16xf32> to vector<8x16x16xf32>
    %173 = tpu.concatenate %169, %170, %171, %172 in 2 : vector<8x16x16xf32>, vector<8x16x16xf32>, vector<8x16x16xf32>, vector<8x16x16xf32> -> vector<8x16x64xf32>
    %174 = vector.shape_cast %173 : vector<8x16x64xf32> to vector<128x64xf32>
    %175 = arith.truncf %174 : vector<128x64xf32> to vector<128x64xbf16>
    %c0_57 = arith.constant 0 : index
    %c0_58 = arith.constant 0 : index
    %176 = vector.load %arg16[%c0_57, %c0_58] : memref<64x64xbf16, #tpu.memory_space<vmem>>, vector<64x64xbf16>
    %cst_59 = arith.constant dense<0.000000e+00> : vector<128x64xf32>
    %177 = tpu.matmul %175, %176, %cst_59 {dimension_numbers = #tpu.dot_dimension_numbers<[1], [0], [0], [1], [0, 0, 1, 1], [], []>} : vector<128x64xbf16>, vector<64x64xbf16>, vector<128x64xf32> -> vector<128x64xf32>
    %c0_60 = arith.constant 0 : index
    %c0_61 = arith.constant 0 : index
    %178 = vector.load %arg17[%c0_60, %c0_61] : memref<1x64xf32, #tpu.memory_space<vmem>>, vector<1x64xf32>
    %179 = vector.broadcast %178 : vector<1x64xf32> to vector<128x64xf32>
    %180 = arith.addf %177, %179 : vector<128x64xf32>
    %181 = arith.addf %87, %180 : vector<128x64xf32>
    %c2 = arith.constant 2 : index
    %c0_62 = arith.constant 0 : index
    %182 = vector.load %arg6[%c2, %c0_62] : memref<3x64xf32, #tpu.memory_space<vmem>>, vector<1x64xf32>
    %c2_63 = arith.constant 2 : index
    %c0_64 = arith.constant 0 : index
    %183 = vector.load %arg7[%c2_63, %c0_64] : memref<3x64xf32, #tpu.memory_space<vmem>>, vector<1x64xf32>
    %cst_65 = arith.constant dense<0.000000e+00> : vector<128xf32>
    %184 = vector.multi_reduction <add>, %181, %cst_65 [1] : vector<128x64xf32> to vector<128xf32>
    %185 = vector.shape_cast %184 : vector<128xf32> to vector<128x1xf32>
    %cst_66 = arith.constant 6.400000e+01 : f32
    %186 = vector.broadcast %cst_66 : f32 to vector<128x1xf32>
    %187 = arith.divf %185, %186 : vector<128x1xf32>
    %188 = vector.broadcast %187 : vector<128x1xf32> to vector<128x64xf32>
    %189 = arith.subf %181, %188 : vector<128x64xf32>
    %190 = arith.mulf %189, %189 : vector<128x64xf32>
    %cst_67 = arith.constant dense<0.000000e+00> : vector<128xf32>
    %191 = vector.multi_reduction <add>, %190, %cst_67 [1] : vector<128x64xf32> to vector<128xf32>
    %192 = vector.shape_cast %191 : vector<128xf32> to vector<128x1xf32>
    %cst_68 = arith.constant 6.300000e+01 : f32
    %193 = vector.broadcast %cst_68 : f32 to vector<128x1xf32>
    %194 = arith.divf %192, %193 : vector<128x1xf32>
    %195 = math.sqrt %194 : vector<128x1xf32>
    %196 = vector.broadcast %187 : vector<128x1xf32> to vector<128x64xf32>
    %197 = arith.subf %181, %196 : vector<128x64xf32>
    %198 = vector.broadcast %182 : vector<1x64xf32> to vector<128x64xf32>
    %199 = arith.mulf %198, %197 : vector<128x64xf32>
    %cst_69 = arith.constant 9.99999997E-7 : f32
    %200 = vector.broadcast %cst_69 : f32 to vector<128x1xf32>
    %201 = arith.addf %195, %200 : vector<128x1xf32>
    %202 = vector.broadcast %201 : vector<128x1xf32> to vector<128x64xf32>
    %203 = arith.divf %199, %202 : vector<128x64xf32>
    %204 = vector.broadcast %183 : vector<1x64xf32> to vector<128x64xf32>
    %205 = arith.addf %203, %204 : vector<128x64xf32>
    %206 = arith.truncf %205 : vector<128x64xf32> to vector<128x64xbf16>
    %c0_70 = arith.constant 0 : index
    %c0_71 = arith.constant 0 : index
    %207 = vector.load %arg18[%c0_70, %c0_71] : memref<64x128xbf16, #tpu.memory_space<vmem>>, vector<64x128xbf16>
    %cst_72 = arith.constant dense<0.000000e+00> : vector<128x128xf32>
    %208 = tpu.matmul %206, %207, %cst_72 {dimension_numbers = #tpu.dot_dimension_numbers<[1], [0], [0], [1], [0, 0, 1, 1], [], []>} : vector<128x64xbf16>, vector<64x128xbf16>, vector<128x128xf32> -> vector<128x128xf32>
    %c0_73 = arith.constant 0 : index
    %c0_74 = arith.constant 0 : index
    %209 = vector.load %arg19[%c0_73, %c0_74] : memref<1x128xf32, #tpu.memory_space<vmem>>, vector<1x128xf32>
    %210 = vector.broadcast %209 : vector<1x128xf32> to vector<128x128xf32>
    %211 = arith.addf %208, %210 : vector<128x128xf32>
    %cst_75 = arith.constant 0.000000e+00 : f32
    %212 = vector.broadcast %cst_75 : f32 to vector<128x128xf32>
    %213 = arith.maximumf %211, %212 : vector<128x128xf32>
    %214 = arith.truncf %213 : vector<128x128xf32> to vector<128x128xbf16>
    %c0_76 = arith.constant 0 : index
    %c0_77 = arith.constant 0 : index
    %215 = vector.load %arg20[%c0_76, %c0_77] : memref<128x64xbf16, #tpu.memory_space<vmem>>, vector<128x64xbf16>
    %cst_78 = arith.constant dense<0.000000e+00> : vector<128x64xf32>
    %216 = tpu.matmul %214, %215, %cst_78 {dimension_numbers = #tpu.dot_dimension_numbers<[1], [0], [0], [1], [0, 0, 1, 1], [], []>} : vector<128x128xbf16>, vector<128x64xbf16>, vector<128x64xf32> -> vector<128x64xf32>
    %c0_79 = arith.constant 0 : index
    %c0_80 = arith.constant 0 : index
    %217 = vector.load %arg21[%c0_79, %c0_80] : memref<1x64xf32, #tpu.memory_space<vmem>>, vector<1x64xf32>
    %218 = vector.broadcast %217 : vector<1x64xf32> to vector<128x64xf32>
    %219 = arith.addf %216, %218 : vector<128x64xf32>
    %220 = arith.addf %181, %219 : vector<128x64xf32>
    %221 = vector.shape_cast %220 : vector<128x64xf32> to vector<8x16x64xf32>
    %c0_81 = arith.constant 0 : index
    %c0_82 = arith.constant 0 : index
    %c0_83 = arith.constant 0 : index
    %222 = vector.load %arg22[%c0_81, %c0_82, %c0_83] : memref<8x16x64xf32, #tpu.memory_space<vmem>>, vector<8x16x64xf32>
    tpu.vector_store %arg22[%c0_81, %c0_82, %c0_83], %221 {strides = array<i32>} : memref<8x16x64xf32, #tpu.memory_space<vmem>>, vector<8x16x64xf32>,
    return
  }
  func.func @transform_0(%arg0: i32) -> (i32, i32, i32) {
    %c0_i32 = arith.constant 0 : i32
    %c0_i32_0 = arith.constant 0 : i32
    %c0_i32_1 = arith.constant 0 : i32
    return %arg0, %c0_i32, %c0_i32_0 : i32, i32, i32
  }
  func.func @transform_1(%arg0: i32) -> (i32, i32, i32) {
    %c0_i32 = arith.constant 0 : i32
    %c0_i32_0 = arith.constant 0 : i32
    %c0_i32_1 = arith.constant 0 : i32
    return %arg0, %c0_i32, %c0_i32_0 : i32, i32, i32
  }
  func.func @transform_2(%arg0: i32) -> (i32, i32) {
    %c0_i32 = arith.constant 0 : i32
    %c0_i32_0 = arith.constant 0 : i32
    %c0_i32_1 = arith.constant 0 : i32
    return %c0_i32, %c0_i32_0 : i32, i32
  }
  func.func @transform_3(%arg0: i32) -> (i32, i32) {
    %c0_i32 = arith.constant 0 : i32
    %c0_i32_0 = arith.constant 0 : i32
    %c0_i32_1 = arith.constant 0 : i32
    return %c0_i32, %c0_i32_0 : i32, i32
  }
  func.func @transform_4(%arg0: i32) -> (i32, i32) {
    %c0_i32 = arith.constant 0 : i32
    %c0_i32_0 = arith.constant 0 : i32
    return %arg0, %c0_i32 : i32, i32
  }
  func.func @transform_5(%arg0: i32) -> (i32, i32) {
    %c0_i32 = arith.constant 0 : i32
    %c0_i32_0 = arith.constant 0 : i32
    %c0_i32_1 = arith.constant 0 : i32
    return %c0_i32, %c0_i32_0 : i32, i32
  }
  func.func @transform_6(%arg0: i32) -> (i32, i32) {
    %c0_i32 = arith.constant 0 : i32
    %c0_i32_0 = arith.constant 0 : i32
    %c0_i32_1 = arith.constant 0 : i32
    return %c0_i32, %c0_i32_0 : i32, i32
  }
  func.func @transform_7(%arg0: i32) -> (i32, i32) {
    %c0_i32 = arith.constant 0 : i32
    %c0_i32_0 = arith.constant 0 : i32
    %c0_i32_1 = arith.constant 0 : i32
    return %c0_i32, %c0_i32_0 : i32, i32
  }
  func.func @transform_8(%arg0: i32) -> (i32, i32) {
    %c0_i32 = arith.constant 0 : i32
    %c0_i32_0 = arith.constant 0 : i32
    %c0_i32_1 = arith.constant 0 : i32
    return %c0_i32, %c0_i32_0 : i32, i32
  }
  func.func @transform_9(%arg0: i32) -> (i32, i32) {
    %c0_i32 = arith.constant 0 : i32
    %c0_i32_0 = arith.constant 0 : i32
    %c0_i32_1 = arith.constant 0 : i32
    return %c0_i32, %c0_i32_0 : i32, i32
  }
  func.func @transform_10(%arg0: i32) -> (i32, i32) {
    %c0_i32 = arith.constant 0 : i32
    %c0_i32_0 = arith.constant 0 : i32
    %c0_i32_1 = arith.constant 0 : i32
    return %c0_i32, %c0_i32_0 : i32, i32
  }
  func.func @transform_11(%arg0: i32) -> (i32, i32) {
    %c0_i32 = arith.constant 0 : i32
    %c0_i32_0 = arith.constant 0 : i32
    %c0_i32_1 = arith.constant 0 : i32
    return %c0_i32, %c0_i32_0 : i32, i32
  }
  func.func @transform_12(%arg0: i32) -> (i32, i32) {
    %c0_i32 = arith.constant 0 : i32
    %c0_i32_0 = arith.constant 0 : i32
    %c0_i32_1 = arith.constant 0 : i32
    return %c0_i32, %c0_i32_0 : i32, i32
  }
  func.func @transform_13(%arg0: i32) -> (i32, i32) {
    %c0_i32 = arith.constant 0 : i32
    %c0_i32_0 = arith.constant 0 : i32
    %c0_i32_1 = arith.constant 0 : i32
    return %c0_i32, %c0_i32_0 : i32, i32
  }
  func.func @transform_14(%arg0: i32) -> (i32, i32) {
    %c0_i32 = arith.constant 0 : i32
    %c0_i32_0 = arith.constant 0 : i32
    %c0_i32_1 = arith.constant 0 : i32
    return %c0_i32, %c0_i32_0 : i32, i32
  }
  func.func @transform_15(%arg0: i32) -> (i32, i32) {
    %c0_i32 = arith.constant 0 : i32
    %c0_i32_0 = arith.constant 0 : i32
    %c0_i32_1 = arith.constant 0 : i32
    return %c0_i32, %c0_i32_0 : i32, i32
  }
  func.func @transform_16(%arg0: i32) -> (i32, i32) {
    %c0_i32 = arith.constant 0 : i32
    %c0_i32_0 = arith.constant 0 : i32
    %c0_i32_1 = arith.constant 0 : i32
    return %c0_i32, %c0_i32_0 : i32, i32
  }
  func.func @transform_17(%arg0: i32) -> (i32, i32) {
    %c0_i32 = arith.constant 0 : i32
    %c0_i32_0 = arith.constant 0 : i32
    %c0_i32_1 = arith.constant 0 : i32
    return %c0_i32, %c0_i32_0 : i32, i32
  }
  func.func @transform_18(%arg0: i32) -> (i32, i32) {
    %c0_i32 = arith.constant 0 : i32
    %c0_i32_0 = arith.constant 0 : i32
    %c0_i32_1 = arith.constant 0 : i32
    return %c0_i32, %c0_i32_0 : i32, i32
  }
  func.func @transform_19(%arg0: i32) -> (i32, i32) {
    %c0_i32 = arith.constant 0 : i32
    %c0_i32_0 = arith.constant 0 : i32
    %c0_i32_1 = arith.constant 0 : i32
    return %c0_i32, %c0_i32_0 : i32, i32
  }
  func.func @transform_20(%arg0: i32) -> (i32, i32) {
    %c0_i32 = arith.constant 0 : i32
    %c0_i32_0 = arith.constant 0 : i32
    %c0_i32_1 = arith.constant 0 : i32
    return %c0_i32, %c0_i32_0 : i32, i32
  }
  func.func @transform_21(%arg0: i32) -> (i32, i32, i32) {
    %c0_i32 = arith.constant 0 : i32
    %c0_i32_0 = arith.constant 0 : i32
    %c0_i32_1 = arith.constant 0 : i32
    return %arg0, %c0_i32, %c0_i32_0 : i32, i32, i32
  }
}

</mosaic_0001>

<bundles_post_ra>
// kernel: tpu_custom_call.1
= control target key start
LH: loop header
LB: loop body
LE: loop exit
PB: predicated region body
PF: predicated region fallthrough
CT: control target
= control target key end

     0   :  { %s16836_s0 = inlined_call_operand.hbm [shape: f32[16,16,64], index: 0, kind: input, shape index: {}]   ;;  %s16837_s1 = inlined_call_operand.hbm [shape: f32[16,16,64], index: 1, kind: input, shape index: {}]   ;;  %s16838_s2 = inlined_call_operand.vmem [shape: f32[64,64], index: 2, kind: input, shape index: {}]   ;;  %s16839_s3 = inlined_call_operand.hbm [shape: f32[64,64], index: 3, kind: input, shape index: {}]   ;;  %s16840_s4 = inlined_call_operand.hbm [shape: f32[16,64], index: 4, kind: input, shape index: {}]   ;;  %s16841_s5 = inlined_call_operand.hbm [shape: f32[3,64], index: 5, kind: input, shape index: {}]   ;;  %s16842_s6 = inlined_call_operand.hbm [shape: f32[3,64], index: 6, kind: input, shape index: {}]   ;;  %s16843_s7 = inlined_call_operand.hbm [shape: bf16[64,192], index: 7, kind: input, shape index: {}]   ;;  %s16844_s8 = inlined_call_operand.hbm [shape: f32[1,192], index: 8, kind: input, shape index: {}]   ;;  %s16845_s9 = inlined_call_operand.vmem [shape: bf16[64,64], index: 9, kind: input, shape index: {}]   ;;  %s16846_s10 = inlined_call_operand.hbm [shape: f32[1,64], index: 10, kind: input, shape index: {}]   ;;  %s16847_s11 = inlined_call_operand.vmem [shape: bf16[64,64], index: 11, kind: input, shape index: {}]   ;;  %s16848_s12 = inlined_call_operand.hbm [shape: f32[1,64], index: 12, kind: input, shape index: {}]   ;;  %s16849_s13 = inlined_call_operand.hbm [shape: bf16[64,128], index: 13, kind: input, shape index: {}]   ;;  %s16850_s14 = inlined_call_operand.hbm [shape: f32[1,128], index: 14, kind: input, shape index: {}]   ;;  %s16851_s15 = inlined_call_operand.hbm [shape: bf16[64,64], index: 15, kind: input, shape index: {}]   ;;  %s16852_s16 = inlined_call_operand.hbm [shape: f32[1,64], index: 16, kind: input, shape index: {}]   ;;  %s16853_s17 = inlined_call_operand.hbm [shape: bf16[64,128], index: 17, kind: input, shape index: {}]   ;;  %s16854_s18 = inlined_call_operand.vmem [shape: f32[1,128], index: 18, kind: input, shape index: {}]   ;;  %s16855_s19 = inlined_call_operand.vmem [shape: bf16[128,64], index: 19, kind: input, shape index: {}]   ;;  %s16856_s20 = inlined_call_operand.vmem [shape: f32[1,64], index: 20, kind: input, shape index: {}]   ;;  %s16857_s21 = inlined_call_operand.hbm [shape: f32[16,16,64], index: 21, kind: output, shape index: {}]  }
   0x1   :  { %17057 = sst [smem:[#allocation110_spill]] %s16836_s0 }
   0x2   :  { %17058 = sst [smem:[#allocation111_spill]] %s16837_s1 }
   0x3   :  { %17059 = sst [smem:[#allocation112_spill]] %s16838_s2 }
   0x4   :  { %17060 = sst [smem:[#allocation113_spill]] %s16839_s3 }
   0x5   :  { %17061 = sst [smem:[#allocation114_spill]] %s16840_s4 }
   0x6   :  { %17062 = sst [smem:[#allocation115_spill]] %s16841_s5 }
   0x7   :  { %17063 = sst [smem:[#allocation116_spill]] %s16842_s6 }
   0x8   :  { %17064 = sst [smem:[#allocation117_spill]] %s16843_s7 }
   0x9   :  { %17065 = sst [smem:[#allocation118_spill]] %s16844_s8 }
   0xa   :  { %17066 = sst [smem:[#allocation119_spill]] %s16845_s9 }
   0xb   :  { %17067 = sst [smem:[#allocation120_spill]] %s16846_s10 }
   0xc   :  { %17068 = sst [smem:[#allocation121_spill]] %s16847_s11 }
   0xd   :  { %17069 = sst [smem:[#allocation122_spill]] %s16848_s12 }
   0xe   :  { %17070 = sst [smem:[#allocation123_spill]] %s16849_s13 }
   0xf   :  { %17071 = sst [smem:[#allocation124_spill]] %s16850_s14 }
  0x10   :  { %17072 = sst [smem:[#allocation125_spill]] %s16854_s18 }
  0x11   :  { %17073 = sst [smem:[#allocation126_spill]] %s16855_s19 }
  0x12   :  { %17074 = sst [smem:[#allocation127_spill]] %s16856_s20 }
  0x13   :  { %17075 = sst [smem:[#allocation128_spill]] %s16857_s21 }
  0x14   :  { %26 = vsyncpa [#allocation3], 0 }
  0x15   :  { %28 = vsyncpa [#allocation3 + $0x1], 0 }
  0x16   :  { %29 = vsyncpa [#allocation6], 0 }
  0x17   :  { %31 = vsyncpa [#allocation6 + $0x1], 0 }
  0x18   :  { %32 = vsyncpa [#allocation9], 0 }
  0x19   :  { %34 = vsyncpa [#allocation9 + $0x1], 0 }
  0x1a   :  { %35 = vsyncpa [#allocation12], 0 }
  0x1b   :  { %36 = vsyncpa [#allocation15], 0 }
  0x1c   :  { %37 = vsyncpa [#allocation18], 0 }
  0x1d   :  { %38 = vsyncpa [#allocation21], 0 }
  0x1e   :  { %39 = vsyncpa [#allocation24], 0 }
  0x1f   :  { %40 = vsyncpa [#allocation4], 0 }
  0x20   :  { %42 = vsyncpa [#allocation4 + $0x1], 0  ;;  %s12282_s2 = smov 0   ;;  %s12284_s25 = smov 0  }
  0x21   :  { %s12286_s26 = smov 0   ;;  %s12288_s27 = smov 0  }
  0x22 LB: > { %17076 = sst [smem:[#allocation38_spill]] %s12127_s2  ;;  %s12141_s3 = smov [#allocation7]   ;;  %s12139_s27 = sphi %s12288_s27, %s17472_s27   ;;  %s12135_s26 = sphi %s12286_s26, %s17471_s26   ;;  %s12131_s25 = sphi %s12284_s25, %s17470_s25   ;;  %s12127_s2 = sphi %s12282_s2, %s17469_s2  }
  0x23   : > { %s550_s28 = sshll.u32 %s12141_s3, 4  ;;  %s12303_s29 = sadd.s32 4294967295, %s12139_s27   ;;  %s12308_s28 = int_to_ptr.vmem [resolvable:$true] %s550_s28 }
  0x24   : > { %17077 = sst [smem:[#allocation39_spill]] %s12303_s29  ;;  %p9065_p0 = scmp.ge.s32.totalorder %s12139_s27, 1 }
  0x25   : > { %p16874_p1 = scmp.eq.s32.totalorder %s12303_s29, 0  ;;  %p535_p2 = scmp.lt.s32.totalorder %s12139_s27, 3 }
  0x26   : > { %s12142_s4 = smov [#allocation10]   ;;  %s12143_s22 = smov [#allocation11]  }
  0x27   : > { %p12310_p3 = pnand %p9065_p0, %p535_p2  ;;  %s564_s30 = sshll.u32 %s12142_s4, 4  ;;  %s12323_s30 = int_to_ptr.vmem [resolvable:$true] %s564_s30 }
  0x28   : > { %s575_s23 = sshll.u32 %s12143_s22, 4  ;;  %s17081_s3 = sld [smem:[#allocation113_spill]]  ;;  %s12325_s23 = int_to_ptr.vmem [resolvable:$true] %s575_s23 }
  0x29   : > { %s17078_s0 = scalar_select %p12310_p3, 1, 0 }
  0x2a   : > { %p10474_p5 = pneg %p12310_p3 }
  0x2b   : > { %17079 = sst [smem:[#allocation40_spill]] %s17078_s0 }
  0x2c   : > { %p12319_p6 = pnand %p10474_p5, %p16874_p1 }
  0x2e   : > { %s11611_s21 = scalar_lea.hbm %s17081_s3, 1024  ;;  %p12335_p8 = pneg %p12319_p6 }
  0x2f   : > { %p11612_p7 = scmp.ne.s32.totalorder %s17081_s3, %s11611_s21  ;;  %p11618_p11 = scmp.lt.u32.totalorder %s11611_s21, %s17081_s3 }
  0x31   : > { %p11614_p9 = pnand %p12335_p8, %p11612_p7 }
  0x33   : > { %p11615_p10 = pneg %p11614_p9 }
  0x35   : > { %p11620_p12 = pnand %p11618_p11, %p11615_p10 }
  0x37   : > { %11623 = shalt.err (!%p11620_p12)
}
  0x38   : > { %s11624_s18 = scalar_lea.vmem %s12308_s28, 1024  ;;  %p11632_p5 = scmp.lt.s32.totalorder %s12308_s28, %s12308_s28 }
  0x39   : > { %p11625_p13 = scmp.ne.s32.totalorder %s12308_s28, %s11624_s18  ;;  %p11633_p4 = scmp.lt.s32.totalorder %s11624_s18, %s11624_s18 }
  0x3b   : > { %p11627_p0 = pnand %p11625_p13, %p12335_p8  ;;  %p11634_p7 = por %p11633_p4, %p11632_p5 }
  0x3d   : > { %p11628_p2 = pneg %p11627_p0 }
  0x3f   : > { %p11635_p9 = pnand %p11634_p7, %p11628_p2 }
  0x41   : > { %11638 = shalt.err (!%p11635_p9)
}
  0x42   : > { %s16872_s20 = smov 128   ;;  %s16876_s19 = smov 8  }
  0x43   : > { %10477 = dma.hbm_to_vmem [thread:$0]  (!%p12319_p6), %s17081_s3, 1024, %s12308_s28, [#allocation6], %s16872_s20, %s16872_s20, %s16876_s19  }
  0x44   : > { %s17083_s11 = sld [smem:[#allocation115_spill]] }
  0x4a   : > { %s11639_s18 = scalar_lea.hbm %s17083_s11, 64 }
  0x4b   : > { %p11640_p4 = scmp.ne.s32.totalorder %s17083_s11, %s11639_s18  ;;  %p11646_p12 = scmp.lt.u32.totalorder %s11639_s18, %s17083_s11 }
  0x4d   : > { %p11642_p10 = pnand %p11640_p4, %p12335_p8 }
  0x4f   : > { %p11643_p11 = pneg %p11642_p10 }
  0x51   : > { %p11648_p13 = pnand %p11646_p12, %p11643_p11 }
  0x53   : > { %11651 = shalt.err (!%p11648_p13)
}
  0x54   : > { %s11652_s28 = scalar_lea.vmem %s12323_s30, 64  ;;  %p11660_p7 = scmp.lt.s32.totalorder %s12323_s30, %s12323_s30 }
  0x55   : > { %p11653_p0 = scmp.ne.s32.totalorder %s12323_s30, %s11652_s28  ;;  %p11661_p9 = scmp.lt.s32.totalorder %s11652_s28, %s11652_s28 }
  0x57   : > { %p11655_p2 = pnand %p11653_p0, %p12335_p8  ;;  %p11662_p4 = por %p11661_p9, %p11660_p7 }
  0x59   : > { %p11656_p5 = pneg %p11655_p2 }
  0x5b   : > { %p11663_p10 = pnand %p11662_p4, %p11656_p5 }
  0x5d   : > { %11666 = shalt.err (!%p11663_p10)
}
  0x5e   : > { %10480 = dma.hbm_to_vmem [thread:$0]  (!%p12319_p6), %s17083_s11, 64, %s12323_s30, [#allocation9]  }
  0x5f   : > { %s17084_s6 = sld [smem:[#allocation116_spill]] }
  0x65   : > { %s11667_s21 = scalar_lea.hbm %s17084_s6, 64 }
  0x66   : > { %p11668_p11 = scmp.ne.s32.totalorder %s17084_s6, %s11667_s21  ;;  %p11674_p0 = scmp.lt.u32.totalorder %s11667_s21, %s17084_s6 }
  0x68   : > { %p11670_p12 = pnand %p11668_p11, %p12335_p8 }
  0x6a   : > { %p11671_p13 = pneg %p11670_p12 }
  0x6c   : > { %p11676_p2 = pnand %p11674_p0, %p11671_p13 }
  0x6e   : > { %11679 = shalt.err (!%p11676_p2)
}
  0x6f   : > { %s11680_s30 = scalar_lea.vmem %s12325_s23, 64  ;;  %p11688_p4 = scmp.lt.s32.totalorder %s12325_s23, %s12325_s23 }
  0x70   : > { %p11681_p5 = scmp.ne.s32.totalorder %s12325_s23, %s11680_s30  ;;  %p11689_p10 = scmp.lt.s32.totalorder %s11680_s30, %s11680_s30 }
  0x72   : > { %p11683_p7 = pnand %p11681_p5, %p12335_p8  ;;  %p11690_p11 = por %p11689_p10, %p11688_p4 }
  0x74   : > { %p11684_p9 = pneg %p11683_p7 }
  0x76   : > { %p11691_p12 = pnand %p11690_p11, %p11684_p9 }
  0x78   : > { %11694 = shalt.err (!%p11691_p12)
}
  0x79   : > { %10483 = dma.hbm_to_vmem [thread:$0]  (!%p12319_p6), %s17084_s6, 64, %s12325_s23, [#allocation12]  }
  0x7a   : > { %s12146_s2 = smov [#allocation14]   ;;  %s12147_s0 = smov [#allocation17]  }
  0x7b   : > { %s599_s29 = sshll.u32 %s12146_s2, 4  ;;  %s627_s21 = sshll.u32 %s12147_s0, 4  ;;  %s600_s29 = int_to_ptr.vmem [resolvable:$true] %s599_s29  ;;  %s628_s21 = int_to_ptr.vmem [resolvable:$true] %s627_s21 }
  0x7c   : > { %s17085_s8 = sld [smem:[#allocation118_spill]] }
  0x82   : > { %s11695_s22 = scalar_lea.hbm %s17085_s8, 32 }
  0x83   : > { %p11696_p13 = scmp.ne.s32.totalorder %s17085_s8, %s11695_s22  ;;  %p11702_p5 = scmp.lt.u32.totalorder %s11695_s22, %s17085_s8 }
  0x85   : > { %p11698_p0 = pnand %p11696_p13, %p12335_p8 }
  0x87   : > { %p11699_p2 = pneg %p11698_p0 }
  0x89   : > { %p11704_p7 = pnand %p11702_p5, %p11699_p2 }
  0x8b   : > { %11707 = shalt.err (!%p11704_p7)
}
  0x8c   : > { %s11708_s23 = scalar_lea.vmem %s600_s29, 32  ;;  %p11716_p11 = scmp.lt.s32.totalorder %s600_s29, %s600_s29 }
  0x8d   : > { %p11709_p9 = scmp.ne.s32.totalorder %s600_s29, %s11708_s23  ;;  %p11717_p12 = scmp.lt.s32.totalorder %s11708_s23, %s11708_s23 }
  0x8f   : > { %p11711_p4 = pnand %p11709_p9, %p12335_p8  ;;  %p11718_p1 = por %p11717_p12, %p11716_p11 }
  0x91   : > { %p11712_p10 = pneg %p11711_p4 }
  0x93   : > { %p11719_p3 = pnand %p11718_p1, %p11712_p10 }
  0x95   : > { %11722 = shalt.err (!%p11719_p3)
}
  0x96   : > { %10489 = dma.hbm_to_vmem [thread:$0]  (!%p12319_p6), %s17085_s8, 32, %s600_s29, [#allocation15]  }
  0x97   : > { %s17086_s12 = sld [smem:[#allocation122_spill]] }
  0x9d   : > { %s11723_s1 = scalar_lea.hbm %s17086_s12, 16 }
  0x9e   : > { %p11724_p13 = scmp.ne.s32.totalorder %s17086_s12, %s11723_s1  ;;  %p11730_p3 = scmp.lt.u32.totalorder %s11723_s1, %s17086_s12 }
  0xa0   : > { %p11726_p0 = pnand %p11724_p13, %p12335_p8 }
  0xa2   : > { %p11727_p1 = pneg %p11726_p0 }
  0xa4   : > { %p11732_p2 = pnand %p11730_p3, %p11727_p1 }
  0xa6   : > { %11735 = shalt.err (!%p11732_p2)
}
  0xa7   : > { %s11736_s28 = scalar_lea.vmem %s628_s21, 16  ;;  %s11743_s29 = scalar_lea.vmem %s628_s21, 32 }
  0xa8   : > { %p11737_p5 = scmp.ne.s32.totalorder %s628_s21, %s11736_s28  ;;  %p11744_p4 = scmp.lt.s32.totalorder %s628_s21, %s628_s21 }
  0xa9   : > { %p11745_p10 = scmp.lt.s32.totalorder %s11743_s29, %s11736_s28 }
  0xaa   : > { %p11739_p7 = pnand %p11737_p5, %p12335_p8 }
  0xab   : > { %p11746_p11 = por %p11745_p10, %p11744_p4 }
  0xac   : > { %p11740_p9 = pneg %p11739_p7 }
  0xae   : > { %p11747_p12 = pnand %p11746_p11, %p11740_p9 }
  0xb0   : > { %11750 = shalt.err (!%p11747_p12)
}
  0xb1   : > { %10495 = dma.hbm_to_vmem [thread:$0]  (!%p12319_p6), %s17086_s12, 16, %s628_s21, [#allocation18]  }
  0xb2   : > { %s12148_s2 = smov [#allocation20]   ;;  %s12149_s0 = smov [#allocation23]  }
  0xb3   : > { %s651_s20 = sshll.u32 %s12148_s2, 4  ;;  %s675_s1 = sshll.u32 %s12149_s0, 4  ;;  %s652_s20 = int_to_ptr.vmem [resolvable:$true] %s651_s20  ;;  %s676_s1 = int_to_ptr.vmem [resolvable:$true] %s675_s1 }
  0xb4   : > { %s17087_s14 = sld [smem:[#allocation124_spill]] }
  0xba   : > { %s11751_s18 = scalar_lea.hbm %s17087_s14, 16 }
  0xbb   : > { %p11752_p13 = scmp.ne.s32.totalorder %s17087_s14, %s11751_s18  ;;  %p11758_p3 = scmp.lt.u32.totalorder %s11751_s18, %s17087_s14 }
  0xbd   : > { %p11754_p0 = pnand %p11752_p13, %p12335_p8 }
  0xbf   : > { %p11755_p1 = pneg %p11754_p0 }
  0xc1   : > { %p11760_p2 = pnand %p11758_p3, %p11755_p1 }
  0xc3   : > { %11763 = shalt.err (!%p11760_p2)
}
  0xc4   : > { %s11764_s21 = scalar_lea.vmem %s652_s20, 16  ;;  %s11771_s9 = scalar_lea.vmem %s652_s20, 32 }
  0xc5   : > { %p11765_p5 = scmp.ne.s32.totalorder %s652_s20, %s11764_s21  ;;  %p11772_p4 = scmp.lt.s32.totalorder %s652_s20, %s652_s20 }
  0xc6   : > { %p11773_p10 = scmp.lt.s32.totalorder %s11771_s9, %s11764_s21 }
  0xc7   : > { %p11767_p7 = pnand %p11765_p5, %p12335_p8 }
  0xc8   : > { %p11774_p11 = por %p11773_p10, %p11772_p4 }
  0xc9   : > { %p11768_p9 = pneg %p11767_p7 }
  0xcb   : > { %p11775_p12 = pnand %p11774_p11, %p11768_p9 }
  0xcd   : > { %11778 = shalt.err (!%p11775_p12)
}
  0xce   : > { %10501 = dma.hbm_to_vmem [thread:$0]  (!%p12319_p6), %s17087_s14, 16, %s652_s20, [#allocation21]  }
  0xcf   : > { %s11779_s18 = scalar_lea.hbm %s16852_s16, 16 }
  0xd0   : > { %p11780_p13 = scmp.ne.s32.totalorder %s16852_s16, %s11779_s18  ;;  %p11786_p3 = scmp.lt.u32.totalorder %s11779_s18, %s16852_s16 }
  0xd2   : > { %p11782_p0 = pnand %p11780_p13, %p12335_p8 }
  0xd4   : > { %p11783_p1 = pneg %p11782_p0 }
  0xd6   : > { %p11788_p2 = pnand %p11786_p3, %p11783_p1 }
  0xd8   : > { %11791 = shalt.err (!%p11788_p2)
}
  0xd9   : > { %s11792_s21 = scalar_lea.vmem %s676_s1, 16  ;;  %s11799_s20 = scalar_lea.vmem %s676_s1, 32 }
  0xda   : > { %p11793_p5 = scmp.ne.s32.totalorder %s676_s1, %s11792_s21  ;;  %p11800_p4 = scmp.lt.s32.totalorder %s676_s1, %s676_s1 }
  0xdb   : > { %p11801_p10 = scmp.lt.s32.totalorder %s11799_s20, %s11792_s21 }
  0xdc   : > { %p11795_p7 = pnand %p11793_p5, %p12335_p8 }
  0xdd   : > { %p11802_p11 = por %p11801_p10, %p11800_p4 }
  0xde   : > { %p11796_p9 = pneg %p11795_p7 }
  0xe0   : > { %p11803_p12 = pnand %p11802_p11, %p11796_p9 }
  0xe2   : > { %11806 = shalt.err (!%p11803_p12)
}
  0xe3   : > { %10507 = dma.hbm_to_vmem [thread:$0]  (!%p12319_p6), %s16852_s16, 16, %s676_s1, [#allocation24]  }
  0xe4   : > { %s12150_s0 = smov [#allocation13]   ;;  %s12151_s22 = smov [#allocation16]  }
  0xe5   : > { %s585_s24 = sshll.u32 %s12150_s0, 4  ;;  %s613_s18 = sshll.u32 %s12151_s22, 4  ;;  %s586_s24 = int_to_ptr.vmem [resolvable:$true] %s585_s24  ;;  %s614_s18 = int_to_ptr.vmem [resolvable:$true] %s613_s18 }
  0xe6   : > { %s17088_s7 = sld [smem:[#allocation117_spill]] }
  0xec   : > { %s11807_s29 = scalar_lea.hbm %s17088_s7, 1024 }
  0xed   : > { %p11808_p13 = scmp.ne.s32.totalorder %s17088_s7, %s11807_s29  ;;  %p11814_p3 = scmp.lt.u32.totalorder %s11807_s29, %s17088_s7 }
  0xef   : > { %p11810_p0 = pnand %p11808_p13, %p12335_p8 }
  0xf1   : > { %p11811_p1 = pneg %p11810_p0 }
  0xf3   : > { %p11816_p2 = pnand %p11814_p3, %p11811_p1 }
  0xf5   : > { %11819 = shalt.err (!%p11816_p2)
}
  0xf6   : > { %s11820_s1 = scalar_lea.vmem %s586_s24, 1024  ;;  %p11828_p4 = scmp.lt.s32.totalorder %s586_s24, %s586_s24 }
  0xf7   : > { %p11821_p5 = scmp.ne.s32.totalorder %s586_s24, %s11820_s1  ;;  %p11829_p10 = scmp.lt.s32.totalorder %s11820_s1, %s11820_s1 }
  0xf9   : > { %p11823_p7 = pnand %p11821_p5, %p12335_p8  ;;  %p11830_p11 = por %p11829_p10, %p11828_p4 }
  0xfb   : > { %p11824_p9 = pneg %p11823_p7 }
  0xfd   : > { %p11831_p12 = pnand %p11830_p11, %p11824_p9 }
  0xff   : > { %11834 = shalt.err (!%p11831_p12)
}
 0x100   : > { %s17089_s2 = smov 128   ;;  %s17090_s10 = sld [smem:[#allocation120_spill]] }
 0x101   : > { %10486 = dma.hbm_to_vmem [thread:$0]  (!%p12319_p6), %s17088_s7, 1024, %s586_s24, [#allocation12], %s17089_s2, %s17089_s2, %s16876_s19  }
 0x106   : > { %s11835_s29 = scalar_lea.hbm %s17090_s10, 16 }
 0x107   : > { %p11836_p13 = scmp.ne.s32.totalorder %s17090_s10, %s11835_s29  ;;  %p11842_p3 = scmp.lt.u32.totalorder %s11835_s29, %s17090_s10 }
 0x109   : > { %p11838_p0 = pnand %p11836_p13, %p12335_p8 }
 0x10b   : > { %p11839_p1 = pneg %p11838_p0 }
 0x10d   : > { %p11844_p2 = pnand %p11842_p3, %p11839_p1 }
 0x10f   : > { %11847 = shalt.err (!%p11844_p2)
}
 0x110   : > { %s11848_s1 = scalar_lea.vmem %s614_s18, 16  ;;  %s11855_s24 = scalar_lea.vmem %s614_s18, 32 }
 0x111   : > { %p11849_p5 = scmp.ne.s32.totalorder %s614_s18, %s11848_s1  ;;  %p11856_p4 = scmp.lt.s32.totalorder %s614_s18, %s614_s18 }
 0x112   : > { %p11857_p10 = scmp.lt.s32.totalorder %s11855_s24, %s11848_s1 }
 0x113   : > { %p11851_p7 = pnand %p11849_p5, %p12335_p8 }
 0x114   : > { %p11858_p11 = por %p11857_p10, %p11856_p4 }
 0x115   : > { %p11852_p9 = pneg %p11851_p7 }
 0x117   : > { %p11859_p12 = pnand %p11858_p11, %p11852_p9 }
 0x119   : > { %11862 = shalt.err (!%p11859_p12)
}
 0x11a   : > { %10492 = dma.hbm_to_vmem [thread:$0]  (!%p12319_p6), %s17090_s10, 16, %s614_s18, [#allocation15]  }
 0x11b   : > { %s12152_s30 = smov [#allocation19]   ;;  %s17091_s13 = sld [smem:[#allocation123_spill]] }
 0x11c   : > { %s637_s28 = sshll.u32 %s12152_s30, 4  ;;  %s638_s28 = int_to_ptr.vmem [resolvable:$true] %s637_s28 }
 0x121   : > { %s11863_s21 = scalar_lea.hbm %s17091_s13, 512 }
 0x122   : > { %p11864_p13 = scmp.ne.s32.totalorder %s17091_s13, %s11863_s21  ;;  %p11870_p3 = scmp.lt.u32.totalorder %s11863_s21, %s17091_s13 }
 0x124   : > { %p11866_p0 = pnand %p11864_p13, %p12335_p8 }
 0x126   : > { %p11867_p1 = pneg %p11866_p0 }
 0x128   : > { %p11872_p2 = pnand %p11870_p3, %p11867_p1 }
 0x12a   : > { %11875 = shalt.err (!%p11872_p2)
}
 0x12b   : > { %s11876_s18 = scalar_lea.vmem %s638_s28, 512  ;;  %p11884_p4 = scmp.lt.s32.totalorder %s638_s28, %s638_s28 }
 0x12c   : > { %p11877_p5 = scmp.ne.s32.totalorder %s638_s28, %s11876_s18  ;;  %p11885_p10 = scmp.lt.s32.totalorder %s11876_s18, %s11876_s18 }
 0x12e   : > { %p11879_p7 = pnand %p11877_p5, %p12335_p8  ;;  %p11886_p11 = por %p11885_p10, %p11884_p4 }
 0x130   : > { %p11880_p9 = pneg %p11879_p7 }
 0x132   : > { %p11887_p12 = pnand %p11886_p11, %p11880_p9 }
 0x134   : > { %11890 = shalt.err (!%p11887_p12)
}
 0x135   : > { %s12153_s0 = smov 64   ;;  %s12154_s22 = smov 4  }
 0x136   : > { %10498 = dma.hbm_to_vmem [thread:$0]  (!%p12319_p6), %s17091_s13, 512, %s638_s28, [#allocation18], %s12153_s0, %s12153_s0, %s12154_s22  }
 0x137   : > { %s12155_s23 = smov [#allocation22]   ;;  %s12156_s20 = smov [#allocation25]  }
 0x138   : > { %s661_s21 = sshll.u32 %s12155_s23, 4  ;;  %s685_s9 = sshll.u32 %s12156_s20, 4  ;;  %s662_s21 = int_to_ptr.vmem [resolvable:$true] %s661_s21  ;;  %s12537_s9 = int_to_ptr.vmem [resolvable:$true] %s685_s9 }
 0x139   : > { %s11891_s18 = scalar_lea.hbm %s16851_s15, 512 }
 0x13a   : > { %p11892_p13 = scmp.ne.s32.totalorder %s16851_s15, %s11891_s18  ;;  %p11898_p3 = scmp.lt.u32.totalorder %s11891_s18, %s16851_s15 }
 0x13c   : > { %p11894_p0 = pnand %p11892_p13, %p12335_p8 }
 0x13e   : > { %p11895_p1 = pneg %p11894_p0 }
 0x140   : > { %p11900_p2 = pnand %p11898_p3, %p11895_p1 }
 0x142   : > { %11903 = shalt.err (!%p11900_p2)
}
 0x143   : > { %s11904_s29 = scalar_lea.vmem %s662_s21, 512  ;;  %p11912_p4 = scmp.lt.s32.totalorder %s662_s21, %s662_s21 }
 0x144   : > { %p11905_p5 = scmp.ne.s32.totalorder %s662_s21, %s11904_s29  ;;  %p11913_p10 = scmp.lt.s32.totalorder %s11904_s29, %s11904_s29 }
 0x146   : > { %p11907_p7 = pnand %p11905_p5, %p12335_p8  ;;  %p11914_p11 = por %p11913_p10, %p11912_p4 }
 0x148   : > { %p11908_p9 = pneg %p11907_p7 }
 0x14a   : > { %p11915_p12 = pnand %p11914_p11, %p11908_p9 }
 0x14c   : > { %11918 = shalt.err (!%p11915_p12)
}
 0x14d   : > { %10504 = dma.hbm_to_vmem [thread:$0]  (!%p12319_p6), %s16851_s15, 512, %s662_s21, [#allocation21], %s12153_s0, %s12153_s0, %s12154_s22  }
 0x14e   : > { %s11919_s1 = scalar_lea.hbm %s16853_s17, 512 }
 0x14f   : > { %p11920_p13 = scmp.ne.s32.totalorder %s16853_s17, %s11919_s1  ;;  %p11926_p3 = scmp.lt.u32.totalorder %s11919_s1, %s16853_s17 }
 0x151   : > { %p11922_p0 = pnand %p11920_p13, %p12335_p8 }
 0x153   : > { %p11923_p1 = pneg %p11922_p0 }
 0x155   : > { %p11928_p2 = pnand %p11926_p3, %p11923_p1 }
 0x157   : > { %11931 = shalt.err (!%p11928_p2)
}
 0x158   : > { %s11932_s21 = scalar_lea.vmem %s12537_s9, 512  ;;  %p11940_p4 = scmp.lt.s32.totalorder %s12537_s9, %s12537_s9 }
 0x159   : > { %p11933_p5 = scmp.ne.s32.totalorder %s12537_s9, %s11932_s21  ;;  %p11941_p10 = scmp.lt.s32.totalorder %s11932_s21, %s11932_s21 }
 0x15b   : > { %p11935_p7 = pnand %p11933_p5, %p12335_p8  ;;  %p11942_p11 = por %p11941_p10, %p11940_p4 }
 0x15d   : > { %p11936_p9 = pneg %p11935_p7 }
 0x15f   : > { %p11943_p12 = pnand %p11942_p11, %p11936_p9 }
 0x161   : > { %11946 = shalt.err (!%p11943_p12)
}
 0x162   : > { %s17092_s4 = sld [smem:[#allocation38_spill]]  ;;  %s17093_s19 = sld [smem:[#allocation39_spill]] }
 0x163   : > { %10510 = dma.hbm_to_vmem [thread:$0]  (!%p12319_p6), %s16853_s17, 512, %s12537_s9, [#allocation24], %s12153_s0, %s12153_s0, %s12154_s22  }
 0x164   : > { %s9064_s5 = sadd.s32 4294967294, %s12139_s27   ;;  %s12588_s23 = sadd.s32 1, %s12139_s27  }
 0x165   : > { %s52_s20 = ssub.s32 %s12139_s27, %s12588_s23  ;;  %s55_s1 = sadd.s32 1, %s12135_s26 }
 0x166   : > { %p53_p8 = scmp.eq.s32.totalorder %s52_s20, 0  ;;  %p62_p13 = scmp.ne.s32.totalorder %s12135_s26, %s12131_s25 }
 0x167   : > { %p63_p0 = scmp.eq.s32.totalorder %s12139_s27, 0  ;;  %p528_p7 = scmp.eq.s32.totalorder %s9064_s5, 1 }
 0x168   : > { %p68_p1 = scmp.ne.s32.totalorder %s12131_s25, %s17092_s4  ;;  %p17095_p2 = scmp.eq.s32.totalorder %s17093_s19, 0 }
 0x169   : > { %s12599_s24 = scalar_select %p53_p8, %s12135_s26, %s55_s1  }
 0x16a   : > { %p12601_p3 = por %p63_p0, %p62_p13  ;;  %p12607_p6 = por %p17095_p2, %p68_p1 }
 0x16b   : > { %p522_p5 = scmp.eq.s32.totalorder %s17093_s19, 1  ;;  %p10537_p9 = scmp.lt.s32.totalorder %s12139_s27, 2 }
 0x16c   : > { %s17096_s0 = scalar_select %p12607_p6, 1, 0 }
 0x16d   : > { %s12614_s22 = sand.u32 1, %s12135_s26   ;;  %p12616_p4 = por %p522_p5, %p62_p13 }
 0x16e   : > { %p12620_p10 = por %p528_p7, %p68_p1  ;;  %s9079_s28 = sshll.u32 %s12614_s22, 7 }
 0x16f   : > { %s17097_s9 = scalar_select %p12616_p4, 1, 0 }
 0x170   : > { %s17098_s30 = scalar_select %p12620_p10, 1, 0 }
 0x171   : > { %s9337_s21 = sshll.u32 %s12139_s27, 11  ;;  %s17099_s4 = sld [smem:[#allocation110_spill]] }
 0x172   : > { %s712_s5 = scalar_lea.vmem [#allocation2], %s9079_s28  ;;  %p12635_p11 = pnand %p10537_p9, %p12601_p3 }
 0x173   : > { %s720_s20 = sshll.u32 %s712_s5, 4  ;;  %s17101_s8 = sld [smem:[#allocation111_spill]]  ;;  %s12631_s20 = int_to_ptr.vmem [resolvable:$true] %s720_s20 }
 0x174   : > { %s17100_s1 = scalar_select %p12635_p11, 1, 0 }
 0x175   : > { %s12644_s3 = scalar_lea.vmem [#allocation5], %s9079_s28  ;;  %s709_s11 = scalar_lea.sflag [#allocation3], %s12614_s22 }
 0x176   : > { %p12652_p8 = pneg %p12635_p11 }
 0x177   : > { %s12629_s19 = scalar_lea.hbm %s17099_s4, %s9337_s21 }
 0x178   : > { %s11947_s5 = scalar_lea.hbm %s12629_s19, 2048  ;;  %p11953_p1 = scmp.lt.u32.totalorder %s12629_s19, %s17099_s4 }
 0x179   : > { %s12642_s29 = scalar_lea.hbm %s17101_s8, %s9337_s21  ;;  %p11948_p12 = scmp.ne.s32.totalorder %s12629_s19, %s11947_s5 }
 0x17a   : > { %s11952_s21 = scalar_lea.hbm %s17099_s4, 4096  ;;  %p11956_p5 = scmp.lt.u32.totalorder %s11947_s5, %s12629_s19 }
 0x17b   : > { %p11950_p13 = pnand %p12652_p8, %p11948_p12  ;;  %p11954_p3 = scmp.lt.u32.totalorder %s11952_s21, %s11947_s5 }
 0x17d   : > { %p11951_p0 = pneg %p11950_p13  ;;  %p11955_p2 = por %p11954_p3, %p11953_p1 }
 0x17f   : > { %p11957_p7 = por %p11956_p5, %p11955_p2 }
 0x181   : > { %p11958_p9 = pnand %p11957_p7, %p11951_p0 }
 0x183   : > { %11961 = shalt.err (!%p11958_p9)
}
 0x184   : > { %s11962_s10 = scalar_lea.vmem %s12631_s20, 2048  ;;  %s12157_s6 = smov [#allocation2]  }
 0x185   : > { %p11963_p12 = scmp.ne.s32.totalorder %s12631_s20, %s11962_s10  ;;  %s11967_s7 = sshll.u32 %s12157_s6, 4  ;;  %s11968_s7 = int_to_ptr.vmem [resolvable:$false] %s11967_s7 }
 0x186   : > { %s11969_s12 = scalar_lea.vmem %s11968_s7, 4096  ;;  %p11970_p4 = scmp.lt.s32.totalorder %s12631_s20, %s11968_s7 }
 0x187   : > { %p11965_p13 = pnand %p11963_p12, %p12652_p8  ;;  %p11971_p6 = scmp.lt.s32.totalorder %s11969_s12, %s11962_s10 }
 0x189   : > { %p11966_p10 = pneg %p11965_p13  ;;  %p11972_p1 = por %p11971_p6, %p11970_p4 }
 0x18b   : > { %p11973_p3 = pnand %p11972_p1, %p11966_p10 }
 0x18d   : > { %11976 = shalt.err (!%p11973_p3)
}
 0x18e   : > { %s17103_s5 = smov 8   ;;  %s17104_s10 = sshll.u32 %s12644_s3, 4  ;;  %s12682_s10 = int_to_ptr.vmem [resolvable:$true] %s17104_s10 }
 0x18f   : > { %10514 = dma.hbm_to_vmem [thread:$0]  (!%p12635_p11), %s12629_s19, 2048, %s12631_s20, %s709_s11, %s17089_s2, %s17089_s2, %s17103_s5  }
 0x190   : > { %s730_s21 = sand.u32 1, %s12139_s27   ;;  %s11977_s6 = scalar_lea.hbm %s12642_s29, 2048 }
 0x191   : > { %s12687_s28 = scalar_lea.sflag [#allocation6], %s730_s21  ;;  %p11978_p6 = scmp.ne.s32.totalorder %s12642_s29, %s11977_s6 }
 0x192   : > { %s11982_s4 = scalar_lea.hbm %s17101_s8, 4096  ;;  %p11983_p0 = scmp.lt.u32.totalorder %s12642_s29, %s17101_s8 }
 0x193   : > { %p11980_p4 = pnand %p11978_p6, %p12652_p8  ;;  %p11984_p2 = scmp.lt.u32.totalorder %s11982_s4, %s11977_s6 }
 0x194   : > { %p11986_p7 = scmp.lt.u32.totalorder %s11977_s6, %s12642_s29 }
 0x195   : > { %p11981_p10 = pneg %p11980_p4  ;;  %p11985_p5 = por %p11984_p2, %p11983_p0 }
 0x197   : > { %p11987_p9 = por %p11986_p7, %p11985_p5 }
 0x199   : > { %p11988_p12 = pnand %p11987_p9, %p11981_p10 }
 0x19b   : > { %11991 = shalt.err (!%p11988_p12)
}
 0x19c   : > { %s11992_s11 = scalar_lea.vmem %s12682_s10, 2048  ;;  %s12158_s19 = smov [#allocation5]  }
 0x19d   : > { %p11993_p13 = scmp.ne.s32.totalorder %s12682_s10, %s11992_s11  ;;  %s11997_s20 = sshll.u32 %s12158_s19, 4  ;;  %s11998_s20 = int_to_ptr.vmem [resolvable:$false] %s11997_s20 }
 0x19e   : > { %s11999_s13 = scalar_lea.vmem %s11998_s20, 4096  ;;  %p12000_p6 = scmp.lt.s32.totalorder %s12682_s10, %s11998_s20 }
 0x19f   : > { %p11995_p1 = pnand %p11993_p13, %p12652_p8  ;;  %p12001_p4 = scmp.lt.s32.totalorder %s11999_s13, %s11992_s11 }
 0x1a1   : > { %p11996_p3 = pneg %p11995_p1  ;;  %p12002_p0 = por %p12001_p4, %p12000_p6 }
 0x1a3   : > { %p12003_p2 = pnand %p12002_p0, %p11996_p3 }
 0x1a5   : > { %12006 = shalt.err (!%p12003_p2)
}
 0x1a6   : > { %10517 = dma.hbm_to_vmem [thread:$0]  (!%p12635_p11), %s12642_s29, 2048, %s12682_s10, %s12687_s28, %s17089_s2, %s17089_s2, %s17103_s5  }
 0x1a7   : > { %s9087_s14 = sshll.u32 %s12614_s22, 3  ;;  %s9088_s4 = sshll.u32 %s12139_s27, 7 }
 0x1a8   : > { %s17105_s7 = sld [smem:[#allocation114_spill]]  ;;  %s756_s11 = scalar_lea.vmem [#allocation8], %s9087_s14 }
 0x1a9   : > { %s763_s19 = sshll.u32 %s756_s11, 4  ;;  %s753_s20 = scalar_lea.sflag [#allocation9], %s730_s21  ;;  %s764_s19 = int_to_ptr.vmem [resolvable:$true] %s763_s19 }
 0x1ae   : > { %s12719_s12 = scalar_lea.hbm %s17105_s7, %s9088_s4  ;;  %s12012_s29 = scalar_lea.hbm %s17105_s7, 256 }
 0x1af   : > { %s12007_s13 = scalar_lea.hbm %s12719_s12, 128  ;;  %p12013_p9 = scmp.lt.u32.totalorder %s12719_s12, %s17105_s7 }
 0x1b0   : > { %p12008_p10 = scmp.ne.s32.totalorder %s12719_s12, %s12007_s13  ;;  %p12014_p12 = scmp.lt.u32.totalorder %s12012_s29, %s12007_s13 }
 0x1b1   : > { %p12016_p1 = scmp.lt.u32.totalorder %s12007_s13, %s12719_s12 }
 0x1b2   : > { %p12010_p5 = pnand %p12008_p10, %p12652_p8  ;;  %p12015_p13 = por %p12014_p12, %p12013_p9 }
 0x1b4   : > { %p12011_p7 = pneg %p12010_p5  ;;  %p12017_p3 = por %p12016_p1, %p12015_p13 }
 0x1b6   : > { %p12018_p6 = pnand %p12017_p3, %p12011_p7 }
 0x1b8   : > { %12021 = shalt.err (!%p12018_p6)
}
 0x1b9   : > { %s12022_s21 = scalar_lea.vmem %s764_s19, 128  ;;  %s12159_s28 = smov [#allocation8]  }
 0x1ba   : > { %p12023_p4 = scmp.ne.s32.totalorder %s764_s19, %s12022_s21  ;;  %s12027_s14 = sshll.u32 %s12159_s28, 4  ;;  %s12028_s14 = int_to_ptr.vmem [resolvable:$false] %s12027_s14 }
 0x1bb   : > { %s12029_s4 = scalar_lea.vmem %s12028_s14, 256  ;;  %p12030_p10 = scmp.lt.s32.totalorder %s764_s19, %s12028_s14 }
 0x1bc   : > { %p12025_p0 = pnand %p12023_p4, %p12652_p8  ;;  %p12031_p5 = scmp.lt.s32.totalorder %s12029_s4, %s12022_s21 }
 0x1be   : > { %p12026_p2 = pneg %p12025_p0  ;;  %p12032_p11 = por %p12031_p5, %p12030_p10 }
 0x1c0   : > { %p12033_p9 = pnand %p12032_p11, %p12026_p2 }
 0x1c2   : > { %12036 = shalt.err (!%p12033_p9)
}
 0x1c3   : > { %p17106_p12 = scmp.ne.s32.totalorder %s17100_s1, 0  ;;  %s17107_s3 = sld [smem:[#allocation40_spill]] }
 0x1c5   : > { %10520 = dma.hbm_to_vmem [thread:$0]  (!%p17106_p12), %s12719_s12, 128, %s764_s19, %s753_s20  }
 0x1c9   : > { %p17108_p7 = scmp.ne.s32.totalorder %s17107_s3, 0 }
 0x1cb   : > { %772 = sbr.rel (%p17108_p7) target bundleno = 5357 (0x14ed), region = 104 }
 0x1d2   : > { %s12743_s18 = sand.u32 1, %s12131_s25   ;;  %p17109_p11 = scmp.ne.s32.totalorder %s17096_s0, 0 }
 0x1d3   : > { %s12746_s6 = sshll.u32 %s12743_s18, 7  ;;  %s775_s11 = scalar_lea.sflag [#allocation3], %s12743_s18 }
 0x1d4   : > { %s12750_s13 = scalar_lea.vmem [#allocation2], %s12746_s6 }
 0x1d5   : > { %12082 = dma.done.wait (%p17109_p11), %s775_s11, 2048  }
 0x1d6   : > { %12084 = vsyncadd (%p17109_p11), %s775_s11, 4294965248  ;;  %s17110_s1 = sld [smem:[#allocation39_spill]]  ;;  %s12758_s20 = scalar_lea.vmem [#allocation5], %s12746_s6 }
 0x1dc   : > { %s783_s12 = sand.u32 1, %s17110_s1  }
 0x1dd   : > { %s784_s19 = scalar_lea.sflag [#allocation6], %s783_s12 }
 0x1de   : > { %12086 = dma.done.wait (%p17109_p11), %s784_s19, 2048  }
 0x1df   : > { %12088 = vsyncadd (%p17109_p11), %s784_s19, 4294965248  ;;  %p17111_p8 = scmp.eq.s32.totalorder %s17110_s1, 0 }
 0x1e1   : > { %12090 = dma.done.wait (%p17111_p8), [#allocation6], 1024   ;;  %p17112_p13 = pmov %p17111_p8 }
 0x1e2   : > { %s9093_s2 = sshll.u32 %s12743_s18, 3  ;;  %s797_s22 = scalar_lea.sflag [#allocation9], %s783_s12 }
 0x1e3   : > { %12092 = vsyncadd (%p17112_p13), [#allocation6], 4294966272  ;;  %s12769_s29 = scalar_lea.vmem [#allocation8], %s9093_s2 }
 0x1e4   : > { %12094 = dma.done.wait (%p17109_p11), %s797_s22, 128  }
 0x1e5   : > { %12096 = vsyncadd (%p17109_p11), %s797_s22, 4294967168  ;;  %p17113_p1 = pmov %p17111_p8 }
 0x1e7   : > { %12098 = dma.done.wait (%p17113_p1), [#allocation9], 64   ;;  %p17114_p3 = pmov %p17113_p1 }
 0x1e8   : > { %p17115_p6 = pmov %p17113_p1 }
 0x1e9   : > { %12100 = vsyncadd (%p17114_p3), [#allocation9], 4294967232 }
 0x1ea   : > { %12102 = dma.done.wait (%p17115_p6), [#allocation12], 1088   ;;  %p17116_p4 = pmov %p17113_p1 }
 0x1eb   : > { %p17117_p0 = pmov %p17113_p1 }
 0x1ec   : > { %12104 = vsyncadd (%p17116_p4), [#allocation12], 4294966208 }
 0x1ed   : > { %12106 = dma.done.wait (%p17117_p0), [#allocation15], 48   ;;  %p17118_p2 = pmov %p17117_p0 }
 0x1ee   : > { %p17119_p10 = pmov %p17117_p0 }
 0x1ef   : > { %12108 = vsyncadd (%p17118_p2), [#allocation15], 4294967248 }
 0x1f0   : > { %12110 = dma.done.wait (%p17119_p10), [#allocation18], 528   ;;  %p17120_p5 = pmov %p17117_p0 }
 0x1f1   : > { %p17121_p9 = pmov %p17117_p0 }
 0x1f2   : > { %12112 = vsyncadd (%p17120_p5), [#allocation18], 4294966768 }
 0x1f3   : > { %12114 = dma.done.wait (%p17121_p9), [#allocation21], 528   ;;  %p17122_p12 = pmov %p17117_p0 }
 0x1f4   : > { %p17123_p7 = pmov %p17117_p0 }
 0x1f5   : > { %12116 = vsyncadd (%p17122_p12), [#allocation21], 4294966768 }
 0x1f6   : > { %12118 = dma.done.wait (%p17123_p7), [#allocation24], 528   ;;  %p17124_p11 = pmov %p17117_p0 }
 0x1f7   : > { %vm951_vm0 = vcmask 523264   ;;  %v917_v0 = vld [vmem:[%s12750_s13] sm:$0xff]  ;;  %v918_v1 = vld [vmem:[%s12750_s13 + $0x8] sm:$0xff]  ;;  %v919_v2 = vld [vmem:[%s12750_s13 + $0x10] sm:$0xff]  ;;  %s12161_s0 = smov 96   ;;  %s12162_s5 = smov 112  }
 0x1f8   : > { %12120 = vsyncadd (%p17124_p11), [#allocation24], 4294966768  ;;  %v952_v3 = vsel %vm951_vm0, %v917_v0, 0.0  ;;  %v958_v4 = vsel %vm951_vm0, %v919_v2, 0.0  ;;  %v920_v5 = vld [vmem:[%s12750_s13 + $0x18] sm:$0xff]  ;;  %v921_v6 = vld [vmem:[%s12750_s13 + $0x20] sm:$0xff] }
 0x1f9   : > { %v12807_v7 = vld [vmem:[%s12750_s13 + $0x28] sm:$0xff]  ;;  %953 = vadd.xlane.f32.xlu0 %v952_v3  ;;  %959 = vadd.xlane.f32.xlu1 %v958_v4  ;;  %v12810_v8 = vld [vmem:[%s12750_s13 + $0x30] sm:$0xff]  ;;  %v12813_v9 = vld [vmem:[%s12750_s13 + $0x38] sm:$0xff]  ;;  %v955_v10 = vsel %vm951_vm0, %v918_v1, 0.0  ;;  %v961_v11 = vsel %vm951_vm0, %v920_v5, 0.0  ;;  %v964_v12 = vsel %vm951_vm0, %v921_v6, 0.0 }
 0x1fa   : > { %v967_v13 = vsel %vm951_vm0, %v12807_v7, 0.0  ;;  %v970_v14 = vsel %vm951_vm0, %v12810_v8, 0.0  ;;  %v973_v15 = vsel %vm951_vm0, %v12813_v9, 0.0  ;;  %v12829_v24 = vld [vmem:[%s12750_s13 + $0x40] sm:$0xff]  ;;  %v12841_v32 = vld [vmem:[%s12750_s13 + $0x50] sm:$0xff]  ;;  %v12844_v33 = vld [vmem:[%s12750_s13 + $0x48] sm:$0xff] }
 0x1fb   : > { %v976_v29 = vsel %vm951_vm0, %v12829_v24, 0.0  ;;  %v982_v37 = vsel %vm951_vm0, %v12841_v32, 0.0  ;;  %v979_v38 = vsel %vm951_vm0, %v12844_v33, 0.0  ;;  %v12856_v40 = vld [vmem:[%s12750_s13 + $0x58] sm:$0xff]  ;;  %v12862_v44 = vld [vmem:[%s12750_s13 + $0x60] sm:$0xff]  ;;  %v12872_v52 = vld [vmem:[%s12750_s13 + $0x70] sm:$0xff] }
 0x1fc   : > { %v985_v43 = vsel %vm951_vm0, %v12856_v40, 0.0  ;;  %v988_v48 = vsel %vm951_vm0, %v12862_v44, 0.0  ;;  %v12875_v53 = vld [vmem:[%s12750_s13 + $0x68] sm:$0xff]  ;;  %v994_v56 = vsel %vm951_vm0, %v12872_v52, 0.0  ;;  %v12888_v61 = vld [vmem:[%s12750_s13 + $0x78] sm:$0xff]  ;;  %s12163_s10 = smov 80  }
 0x1fd   : > { %956 = vadd.xlane.f32.xlu0 %v955_v10  ;;  %962 = vadd.xlane.f32.xlu1 %v961_v11  ;;  %v991_v57 = vsel %vm951_vm0, %v12875_v53, 0.0  ;;  %v997_v63 = vsel %vm951_vm0, %v12888_v61, 0.0  ;;  %v10853_v10 = vld [vmem:[#allocation13 + $0x14] ss:$8 sps:$4 sm:$0xff]   ;;  %v10855_v11 = vld [vmem:[#allocation13 + $0x10] ss:$8 sps:$4 sm:$0xff]  }
 0x1fe   : > { %s12164_s21 = smov 64   ;;  %s17133_s4 = sld [smem:[#allocation112_spill]] }
 0x1ff   : > { %s12165_s28 = smov 16   ;;  %s16960_s14 = smov 32  }
 0x200   : > { %s16962_s3 = smov 48   ;;  %s17269_s19 = sld [smem:[#allocation119_spill]] }
 0x201   : > { %965 = vadd.xlane.f32.xlu0 %v964_v12  ;;  %968 = vadd.xlane.f32.xlu1 %v967_v13  ;;  %v10856_v12 = vld [vmem:[#allocation13 + $0x24] ss:$8 sps:$4 sm:$0xff]   ;;  %v10858_v13 = vld [vmem:[#allocation13 + $0x20] ss:$8 sps:$4 sm:$0xff]   ;;  %s17286_s12 = sld [smem:[#allocation121_spill]]  ;;  %s17462_s2 = sld [smem:[#allocation125_spill]] }
 0x202   : > { %s17463_s11 = sld [smem:[#allocation127_spill]]  ;;  %p17465_p13 = scmp.ne.s32.totalorder %s17097_s9, 0 }
 0x205   : > { %971 = vadd.xlane.f32.xlu0 %v970_v14  ;;  %974 = vadd.xlane.f32.xlu1 %v973_v15  ;;  %v10859_v14 = vld [vmem:[#allocation13 + $0x34] ss:$8 sps:$4 sm:$0xff]   ;;  %v10861_v15 = vld [vmem:[#allocation13 + $0x30] ss:$8 sps:$4 sm:$0xff]  }
 0x286   : > { %v954_v16 = vpop.xlane.xlu0 %953  ;;  %v960_v17 = vpop.xlane.xlu1 %959 }
 0x287   : > { %v1001_v18 = vmul.f32 0.015625, %v954_v16  ;;  %v1003_v23 = vmul.f32 0.015625, %v960_v17  ;;  %v12160_v16 = vmov 0  }
 0x288   : > { %1438 = vmatprep.mubr.bf16.mxu0 %v12160_v16 }
 0x289   : > { %v12824_v19 = vsub.f32 %v917_v0, %v1001_v18  ;;  %v12834_v28 = vsub.f32 %v919_v2, %v1003_v23 }
 0x28a   : > { %v957_v20 = vpop.xlane.xlu0 %956  ;;  %v963_v25 = vpop.xlane.xlu1 %962 }
 0x28b   : > { %v1002_v21 = vmul.f32 0.015625, %v957_v20  ;;  %v1033_v22 = vmul.f32 %v12824_v19, %v12824_v19  ;;  %v1004_v31 = vmul.f32 0.015625, %v963_v25  ;;  %v1035_v39 = vmul.f32 %v12834_v28, %v12834_v28 }
 0x28d   : > { %v12831_v26 = vsub.f32 %v918_v1, %v1002_v21  ;;  %v1049_v27 = vsel %vm951_vm0, %v1033_v22, 0.0  ;;  %v12847_v36 = vsub.f32 %v920_v5, %v1004_v31  ;;  %v1055_v42 = vsel %vm951_vm0, %v1035_v39, 0.0 }
 0x28e   : > { %1050 = vadd.xlane.f32.xlu0 %v1049_v27  ;;  %v966_v35 = vpop.xlane.xlu0 %965  ;;  %v969_v41 = vpop.xlane.xlu1 %968 }
 0x28f   : > { %v1034_v30 = vmul.f32 %v12831_v26, %v12831_v26  ;;  %v1036_v45 = vmul.f32 %v12847_v36, %v12847_v36  ;;  %v1005_v46 = vmul.f32 0.015625, %v966_v35  ;;  %v1006_v51 = vmul.f32 0.015625, %v969_v41 }
 0x291   : > { %v1052_v34 = vsel %vm951_vm0, %v1034_v30, 0.0  ;;  %v1058_v49 = vsel %vm951_vm0, %v1036_v45, 0.0  ;;  %v12869_v50 = vsub.f32 %v921_v6, %v1005_v46  ;;  %v12882_v58 = vsub.f32 %v12807_v7, %v1006_v51 }
 0x292   : > { %977 = vadd.xlane.f32.xlu0 %v976_v29  ;;  %1053 = vadd.xlane.f32.xlu1 %v1052_v34  ;;  %v972_v47 = vpop.xlane.xlu0 %971  ;;  %v975_v55 = vpop.xlane.xlu1 %974 }
 0x293   : > { %v1007_v54 = vmul.f32 0.015625, %v972_v47  ;;  %v1008_v60 = vmul.f32 0.015625, %v975_v55  ;;  %v1037_v62 = vmul.f32 %v12869_v50, %v12869_v50  ;;  %v1038_v2 = vmul.f32 %v12882_v58, %v12882_v58 }
 0x295   : > { %v12885_v59 = vsub.f32 %v12810_v8, %v1007_v54  ;;  %v12895_v0 = vsub.f32 %v12813_v9, %v1008_v60  ;;  %v1061_v1 = vsel %vm951_vm0, %v1037_v62, 0.0  ;;  %v1064_v4 = vsel %vm951_vm0, %v1038_v2, 0.0  ;;  %v10850_v8 = vld [vmem:[#allocation13 + $0x4] ss:$8 sps:$4 sm:$0xff]   ;;  %v10852_v9 = vld [vmem:[#allocation13] ss:$8 sps:$4 sm:$0xff]  }
 0x296   : > { %983 = vadd.xlane.f32.xlu0 %v982_v37  ;;  %980 = vadd.xlane.f32.xlu1 %v979_v38 }
 0x297   : > { %v1039_v3 = vmul.f32 %v12885_v59, %v12885_v59  ;;  %v1040_v6 = vmul.f32 %v12895_v0, %v12895_v0  ;;  %1406 = vmatprep.subr.bf16.mxu0 %v10850_v8 }
 0x298   : > { %1407 = vmatpush1.bf16.msra.mxu0 %v10852_v9 }
 0x299   : > { %v1067_v5 = vsel %vm951_vm0, %v1039_v3, 0.0  ;;  %v1070_v7 = vsel %vm951_vm0, %v1040_v6, 0.0  ;;  %1408 = vmatprep.subr.bf16.mxu0 %v10853_v10 }
 0x29a   : > { %1056 = vadd.xlane.f32.xlu0 %v1055_v42  ;;  %986 = vadd.xlane.f32.xlu1 %v985_v43 }
 0x29c   : > { %1409 = vmatpush1.bf16.msra.mxu0 %v10855_v11 }
 0x29d   : > { %1410 = vmatprep.subr.bf16.mxu0 %v10856_v12 }
 0x29e   : > { %989 = vadd.xlane.f32.xlu0 %v988_v48  ;;  %1059 = vadd.xlane.f32.xlu1 %v1058_v49 }
 0x2a0   : > { %1411 = vmatpush1.bf16.msra.mxu0 %v10858_v13 }
 0x2a1   : > { %1412 = vmatprep.subr.bf16.mxu0 %v10859_v14 }
 0x2a2   : > { %995 = vadd.xlane.f32.xlu0 %v994_v56  ;;  %992 = vadd.xlane.f32.xlu1 %v991_v57 }
 0x2a4   : > { %1413 = vmatpush1.bf16.msra.mxu0 %v10861_v15 }
 0x2a6   : > { %998 = vadd.xlane.f32.xlu1 %v997_v63  ;;  %1062 = vadd.xlane.f32.xlu0 %v1061_v1 }
 0x2aa   : > { %1065 = vadd.xlane.f32.xlu1 %v1064_v4  ;;  %1068 = vadd.xlane.f32.xlu0 %v1067_v5 }
 0x2ae   : > { %1071 = vadd.xlane.f32.xlu1 %v1070_v7 }
 0x31b   : > { %v1051_v17 = vpop.xlane.xlu0 %1050 }
 0x31c   : > { %v1098_v18 = vmul.f32 0.015873017, %v1051_v17 }
 0x31e   : > { %10891 = vrsqrt.f32 %v1098_v18  ;;  %vm1116_vm1 = vcmp.eq.f32.partialorder %v1098_v18, inf  ;;  %v1119_v47 = vand.u32 2147483648, %v1098_v18  ;;  %vm1118_vm2 = vcmp.eq.f32.partialorder %v1098_v18, 0.0 }
 0x31f   : > { %v1054_v20 = vpop.xlane.xlu1 %1053  ;;  %v978_v21 = vpop.xlane.xlu0 %977 }
 0x320   : > { %v1099_v22 = vmul.f32 0.015873017, %v1054_v20  ;;  %v1009_v23 = vmul.f32 0.015625, %v978_v21 }
 0x322   : > { %10893 = vrsqrt.f32 %v1099_v22  ;;  %v12909_v25 = vsub.f32 %v12829_v24, %v1009_v23  ;;  %vm1123_vm3 = vcmp.eq.f32.partialorder %v1099_v22, inf  ;;  %v1126_v2 = vand.u32 2147483648, %v1099_v22 }
 0x323   : > { %v981_v27 = vpop.xlane.xlu1 %980  ;;  %v984_v29 = vpop.xlane.xlu0 %983  ;;  %vm1125_vm4 = vcmp.eq.f32.partialorder %v1099_v22, 0.0 }
 0x324   : > { %v1010_v30 = vmul.f32 0.015625, %v981_v27  ;;  %v1011_v31 = vmul.f32 0.015625, %v984_v29  ;;  %v1041_v34 = vmul.f32 %v12909_v25, %v12909_v25  ;;  %v12961_v29 = vld [vmem:[#allocation10] ss:$0 sm:$0xff] }
 0x326   : > { %v12914_v35 = vsub.f32 %v12844_v33, %v1010_v30  ;;  %v12917_v37 = vsub.f32 %v12841_v32, %v1011_v31  ;;  %v1073_v39 = vsel %vm951_vm0, %v1041_v34, 0.0 }
 0x327   : > { %v987_v38 = vpop.xlane.xlu1 %986  ;;  %v1057_v41 = vpop.xlane.xlu0 %1056  ;;  %1074 = vadd.xlane.f32.xlu0 %v1073_v39 }
 0x328   : > { %v10892_v42 = vpop.eup %10891  ;;  %v1012_v24 = vmul.f32 0.015625, %v987_v38  ;;  %v12920_v43 = vmul.f32 0.015873017, %v1057_v41  ;;  %v1042_v46 = vmul.f32 %v12914_v35, %v12914_v35  ;;  %v1043_v33 = vmul.f32 %v12917_v37, %v12917_v37 }
 0x329   : > { %v1115_v45 = vmul.f32 %v10892_v42, %v1098_v18 }
 0x32a   : > { %v12927_v32 = vsub.f32 %v12856_v40, %v1012_v24  ;;  %10895 = vrsqrt.f32 %v12920_v43  ;;  %v1076_v49 = vsel %vm951_vm0, %v1042_v46, 0.0  ;;  %v1079_v54 = vsel %vm951_vm0, %v1043_v33, 0.0 }
 0x32b   : > { %v1117_v48 = vsel %vm1116_vm1, %v1098_v18, %v1115_v45  ;;  %v1060_v51 = vpop.xlane.xlu1 %1059  ;;  %v990_v55 = vpop.xlane.xlu0 %989  ;;  %1077 = vadd.xlane.f32.xlu1 %v1076_v49  ;;  %1080 = vadd.xlane.f32.xlu0 %v1079_v54  ;;  %vm1130_vm5 = vcmp.eq.f32.partialorder %v12920_v43, inf  ;;  %v1133_v20 = vand.u32 2147483648, %v12920_v43  ;;  %vm1132_vm6 = vcmp.eq.f32.partialorder %v12920_v43, 0.0 }
 0x32c   : > { %v10894_v56 = vpop.eup %10893  ;;  %v1120_v57 = vsel %vm1118_vm2, %v1119_v47, %v1117_v48  ;;  %v12932_v60 = vmul.f32 0.015873017, %v1060_v51  ;;  %v1013_v62 = vmul.f32 0.015625, %v990_v55  ;;  %v1044_v1 = vmul.f32 %v12927_v32, %v12927_v32 }
 0x32d   : > { %v1246_v63 = vadd.f32 1e-06, %v1120_v57  ;;  %v1122_v40 = vmul.f32 %v10894_v56, %v1099_v22  ;;  %v1230_v48 = vmul.f32 %v12961_v29, %v12824_v19  ;;  %v12980_v19 = vld [vmem:[#allocation11] ss:$0 sm:$0xff] }
 0x32e   : > { %10897 = vrsqrt.f32 %v12932_v60  ;;  %v12938_v4 = vsub.f32 %v12862_v44, %v1013_v62  ;;  %v1082_v5 = vsel %vm951_vm0, %v1044_v1, 0.0  ;;  %vm1137_vm7 = vcmp.eq.f32.partialorder %v12932_v60, inf }
 0x32f   : > { %v1124_v3 = vsel %vm1123_vm3, %v1099_v22, %v1122_v40  ;;  %v993_v6 = vpop.xlane.xlu1 %992  ;;  %v996_v7 = vpop.xlane.xlu0 %995  ;;  %1083 = vadd.xlane.f32.xlu1 %v1082_v5  ;;  %10899 = vrcp.f32 %v1246_v63  ;;  %v1140_v24 = vand.u32 2147483648, %v12932_v60  ;;  %vm1139_vm8 = vcmp.eq.f32.partialorder %v12932_v60, 0.0 }
 0x330   : > { %v1127_v8 = vsel %vm1125_vm4, %v1126_v2, %v1124_v3  ;;  %v1014_v9 = vmul.f32 0.015625, %v993_v6  ;;  %v1015_v10 = vmul.f32 0.015625, %v996_v7  ;;  %v1045_v12 = vmul.f32 %v12938_v4, %v12938_v4 }
 0x331   : > { %v1247_v11 = vadd.f32 1e-06, %v1127_v8  ;;  %v1231_v62 = vmul.f32 %v12961_v29, %v12831_v26 }
 0x332   : > { %v12944_v13 = vsub.f32 %v12875_v53, %v1014_v9  ;;  %v12947_v14 = vsub.f32 %v12872_v52, %v1015_v10  ;;  %v1085_v15 = vsel %vm951_vm0, %v1045_v12, 0.0 }
 0x333   : > { %v999_v44 = vpop.xlane.xlu1 %998  ;;  %v1063_v17 = vpop.xlane.xlu0 %1062  ;;  %10901 = vrcp.f32 %v1247_v11  ;;  %1086 = vadd.xlane.f32.xlu0 %v1085_v15 }
 0x334   : > { %v10896_v18 = vpop.eup %10895  ;;  %v1016_v21 = vmul.f32 0.015625, %v999_v44  ;;  %v1102_v22 = vmul.f32 0.015873017, %v1063_v17  ;;  %v1046_v52 = vmul.f32 %v12944_v13, %v12944_v13  ;;  %v1047_v53 = vmul.f32 %v12947_v14, %v12947_v14 }
 0x335   : > { %v1129_v23 = vmul.f32 %v10896_v18, %v12920_v43  ;;  %v1232_v17 = vmul.f32 %v12961_v29, %v12834_v28 }
 0x336   : > { %v12959_v27 = vsub.f32 %v12888_v61, %v1016_v21  ;;  %10903 = vrsqrt.f32 %v1102_v22  ;;  %v1088_v31 = vsel %vm951_vm0, %v1046_v52, 0.0  ;;  %v1091_v38 = vsel %vm951_vm0, %v1047_v53, 0.0 }
 0x337   : > { %v1131_v30 = vsel %vm1130_vm5, %v12920_v43, %v1129_v23  ;;  %v1066_v34 = vpop.xlane.xlu1 %1065  ;;  %v1069_v39 = vpop.xlane.xlu0 %1068  ;;  %1089 = vadd.xlane.f32.xlu1 %v1088_v31  ;;  %1092 = vadd.xlane.f32.xlu0 %v1091_v38  ;;  %vm1144_vm9 = vcmp.eq.f32.partialorder %v1102_v22, inf  ;;  %v1147_v2 = vand.u32 2147483648, %v1102_v22  ;;  %vm1146_vm10 = vcmp.eq.f32.partialorder %v1102_v22, 0.0 }
 0x338   : > { %v10898_v41 = vpop.eup %10897  ;;  %v1134_v42 = vsel %vm1132_vm6, %v1133_v20, %v1131_v30  ;;  %v1103_v61 = vmul.f32 0.015873017, %v1066_v34  ;;  %v1104_v45 = vmul.f32 0.015873017, %v1069_v39  ;;  %v1048_v43 = vmul.f32 %v12959_v27, %v12959_v27 }
 0x339   : > { %v1248_v46 = vadd.f32 1e-06, %v1134_v42  ;;  %v1136_v33 = vmul.f32 %v10898_v41, %v12932_v60  ;;  %v10900_v47 = vpop.eup %10899  ;;  %v1233_v21 = vmul.f32 %v12961_v29, %v12847_v36 }
 0x33a   : > { %10905 = vrsqrt.f32 %v1103_v61  ;;  %v1094_v55 = vsel %vm951_vm0, %v1048_v43, 0.0  ;;  %v1263_v40 = vmul.f32 %v10900_v47, %v1230_v48  ;;  %vm1151_vm11 = vcmp.eq.f32.partialorder %v1103_v61, inf }
 0x33b   : > { %v1138_v49 = vsel %vm1137_vm7, %v12932_v60, %v1136_v33  ;;  %10907 = vrsqrt.f32 %v1104_v45  ;;  %v1072_v51 = vpop.xlane.xlu1 %1071  ;;  %1095 = vadd.xlane.f32.xlu1 %v1094_v55  ;;  %vm1153_vm12 = vcmp.eq.f32.partialorder %v1103_v61, 0.0  ;;  %v1154_v10 = vand.u32 2147483648, %v1103_v61 }
 0x33c   : > { %v1141_v54 = vsel %vm1139_vm8, %v1140_v24, %v1138_v49  ;;  %v1105_v56 = vmul.f32 0.015873017, %v1072_v51  ;;  %10909 = vrcp.f32 %v1248_v46  ;;  %v1298_v5 = vadd.f32 %v12980_v19, %v1263_v40 }
 0x33d   : > { %v10902_v57 = vpop.eup %10901  ;;  %v1249_v63 = vadd.f32 1e-06, %v1141_v54  ;;  %vm1158_vm13 = vcmp.eq.f32.partialorder %v1104_v45, inf  ;;  %v1161_v15 = vand.u32 2147483648, %v1104_v45  ;;  %vm1160_vm14 = vcmp.eq.f32.partialorder %v1104_v45, 0.0 }
 0x33e   : > { %10911 = vrsqrt.f32 %v1105_v56  ;;  %v1265_v1 = vmul.f32 %v10902_v57, %v1231_v62  ;;  %vm1165_vm15 = vcmp.eq.f32.partialorder %v1105_v56, inf  ;;  %v1168_v30 = vand.u32 2147483648, %v1105_v56 }
 0x33f   : > { %10913 = vrcp.f32 %v1249_v63  ;;  %vm1167_vm1 = vcmp.eq.f32.partialorder %v1105_v56, 0.0  ;;  %v1234_v47 = vmul.f32 %v12961_v29, %v12869_v50  ;;  %v1235_v48 = vmul.f32 %v12961_v29, %v12882_v58 }
 0x340   : > { %v10904_v60 = vpop.eup %10903  ;;  %v1299_v6 = vadd.f32 %v12980_v19, %v1265_v1  ;;  %v1236_v55 = vmul.f32 %v12961_v29, %v12885_v59  ;;  %v1237_v57 = vmul.f32 %v12961_v29, %v12895_v0 }
 0x341   : > { %v1143_v3 = vmul.f32 %v10904_v60, %v1102_v22 }
 0x342   : > { %v1314_v26 = vpack.c.bf16 %v1299_v6, %v1298_v5 }
 0x343   : > { %v1145_v7 = vsel %vm1144_vm9, %v1102_v22, %v1143_v3 }
 0x344   : > { %v10906_v8 = vpop.eup %10905  ;;  %v1148_v9 = vsel %vm1146_vm10, %v1147_v2, %v1145_v7  ;;  %9116 = vmatmul.mubr.msk.bf16.vlgmr.msra.gmra.mrb[0].mxu0 %vm951_vm0, %v1314_v26 }
 0x345   : > { %v10908_v11 = vpop.eup %10907  ;;  %v1250_v12 = vadd.f32 1e-06, %v1148_v9  ;;  %v1150_v44 = vmul.f32 %v10906_v8, %v1103_v61  ;;  %1448 = vmatprep.mubr.bf16.mxu0 %v12160_v16 }
 0x346   : > { %v1157_v18 = vmul.f32 %v10908_v11, %v1104_v45  ;;  %v10910_v20 = vpop.eup %10909 }
 0x347   : > { %v1152_v22 = vsel %vm1151_vm11, %v1103_v61, %v1150_v44  ;;  %10915 = vrcp.f32 %v1250_v12  ;;  %v1267_v31 = vmul.f32 %v10910_v20, %v1232_v17 }
 0x348   : > { %v10912_v23 = vpop.eup %10911  ;;  %v1155_v52 = vsel %vm1153_vm12, %v1154_v10, %v1152_v22  ;;  %v1159_v53 = vsel %vm1158_vm13, %v1104_v45, %v1157_v18 }
 0x349   : > { %v10914_v34 = vpop.eup %10913  ;;  %v1251_v38 = vadd.f32 1e-06, %v1155_v52  ;;  %v1162_v28 = vsel %vm1160_vm14, %v1161_v15, %v1159_v53  ;;  %v1164_v39 = vmul.f32 %v10912_v23, %v1105_v56  ;;  %v1300_v36 = vadd.f32 %v12980_v19, %v1267_v31 }
 0x34a   : > { %v1252_v41 = vadd.f32 1e-06, %v1162_v28  ;;  %v1269_v42 = vmul.f32 %v10914_v34, %v1233_v21 }
 0x34b   : > { %v1166_v24 = vsel %vm1165_vm15, %v1105_v56, %v1164_v39  ;;  %10917 = vrcp.f32 %v1251_v38 }
 0x34c   : > { %v1169_v46 = vsel %vm1167_vm1, %v1168_v30, %v1166_v24  ;;  %v1301_v33 = vadd.f32 %v12980_v19, %v1269_v42  ;;  %10919 = vrcp.f32 %v1252_v41 }
 0x34d   : > { %v1253_v61 = vadd.f32 1e-06, %v1169_v46 }
 0x34e   : > { %v1315_v43 = vpack.c.bf16 %v1301_v33, %v1300_v36 }
 0x34f   : > { %10921 = vrcp.f32 %v1253_v61 }
 0x350   : > { %9117 = vmatmul.mubr.msk.bf16.gmra.mrb[4].mxu0 %vm951_vm0, %v1315_v43 }
 0x351   : > { %v10916_v45 = vpop.eup %10915  ;;  %1458 = vmatprep.mubr.bf16.mxu0 %v12160_v16 }
 0x352   : > { %v1271_v49 = vmul.f32 %v10916_v45, %v1234_v47 }
 0x354   : > { %v1302_v62 = vadd.f32 %v12980_v19, %v1271_v49 }
 0x355   : > { %v10918_v51 = vpop.eup %10917 }
 0x356   : > { %v10920_v54 = vpop.eup %10919  ;;  %v1273_v56 = vmul.f32 %v10918_v51, %v1235_v48 }
 0x357   : > { %v1275_v40 = vmul.f32 %v10920_v54, %v1236_v55 }
 0x358   : > { %v1303_v63 = vadd.f32 %v12980_v19, %v1273_v56 }
 0x359   : > { %v10922_v1 = vpop.eup %10921  ;;  %v1304_v58 = vadd.f32 %v12980_v19, %v1275_v40 }
 0x35a   : > { %v1316_v50 = vpack.c.bf16 %v1303_v63, %v1302_v62  ;;  %v1277_v60 = vmul.f32 %v10922_v1, %v1237_v57 }
 0x35c   : > { %9118 = vmatmul.mubr.msk.bf16.gmra.mrb[8].mxu0 %vm951_vm0, %v1316_v50  ;;  %v1305_v2 = vadd.f32 %v12980_v19, %v1277_v60 }
 0x35d   : > { %1468 = vmatprep.mubr.bf16.mxu0 %v12160_v16 }
 0x35e   : > { %v1317_v59 = vpack.c.bf16 %v1305_v2, %v1304_v58 }
 0x364   : > { %9119 = vmatmul.mubr.msk.bf16.gmra.mrb[12].mxu0 %vm951_vm0, %v1317_v59  ;;  %v1238_v59 = vmul.f32 %v12961_v29, %v12909_v25 }
 0x365   : > { %1478 = vmatprep.mubr.bf16.mxu0 %v12160_v16 }
 0x3b4   : > { %v1075_v0 = vpop.xlane.xlu0 %1074 }
 0x3b5   : > { %v1106_v3 = vmul.f32 0.015873017, %v1075_v0 }
 0x3b7   : > { %10923 = vrsqrt.f32 %v1106_v3  ;;  %vm1172_vm2 = vcmp.eq.f32.partialorder %v1106_v3, inf  ;;  %v1175_v12 = vand.u32 2147483648, %v1106_v3  ;;  %vm1174_vm3 = vcmp.eq.f32.partialorder %v1106_v3, 0.0 }
 0x3b8   : > { %v1078_v5 = vpop.xlane.xlu1 %1077  ;;  %v1081_v6 = vpop.xlane.xlu0 %1080 }
 0x3b9   : > { %v1107_v7 = vmul.f32 0.015873017, %v1078_v5  ;;  %v1108_v26 = vmul.f32 0.015873017, %v1081_v6  ;;  %v1239_v5 = vmul.f32 %v12961_v29, %v12914_v35  ;;  %v1241_v35 = vmul.f32 %v12961_v29, %v12927_v32 }
 0x3ba   : > { %v1242_v32 = vmul.f32 %v12961_v29, %v12938_v4  ;;  %v1245_v4 = vmul.f32 %v12961_v29, %v12959_v27  ;;  %v1332_v27 = vlaneseq }
 0x3bb   : > { %10925 = vrsqrt.f32 %v1107_v7  ;;  %vm1179_vm4 = vcmp.eq.f32.partialorder %v1107_v7, inf  ;;  %v1182_v23 = vand.u32 2147483648, %v1107_v7  ;;  %vm1181_vm5 = vcmp.eq.f32.partialorder %v1107_v7, 0.0 }
 0x3bc   : > { %10927 = vrsqrt.f32 %v1108_v26  ;;  %v1084_v8 = vpop.xlane.xlu1 %1083  ;;  %vm1186_vm6 = vcmp.eq.f32.partialorder %v1108_v26, inf  ;;  %v1189_v34 = vand.u32 2147483648, %v1108_v26  ;;  %vm1188_vm7 = vcmp.eq.f32.partialorder %v1108_v26, 0.0 }
 0x3bd   : > { %v1109_v9 = vmul.f32 0.015873017, %v1084_v8 }
 0x3bf   : > { %10929 = vrsqrt.f32 %v1109_v9  ;;  %vm1193_vm8 = vcmp.eq.f32.partialorder %v1109_v9, inf  ;;  %vm1195_vm9 = vcmp.eq.f32.partialorder %v1109_v9, 0.0  ;;  %v1196_v46 = vand.u32 2147483648, %v1109_v9 }
 0x3c0   : > { %v1087_v10 = vpop.xlane.xlu0 %1086 }
 0x3c1   : > { %v10924_v11 = vpop.eup %10923  ;;  %v1110_v44 = vmul.f32 0.015873017, %v1087_v10 }
 0x3c2   : > { %v1171_v15 = vmul.f32 %v10924_v11, %v1106_v3 }
 0x3c3   : > { %10931 = vrsqrt.f32 %v1110_v44  ;;  %vm1200_vm10 = vcmp.eq.f32.partialorder %v1110_v44, inf  ;;  %v1203_v54 = vand.u32 2147483648, %v1110_v44  ;;  %vm1202_vm11 = vcmp.eq.f32.partialorder %v1110_v44, 0.0 }
 0x3c4   : > { %v1173_v17 = vsel %vm1172_vm2, %v1106_v3, %v1171_v15  ;;  %v1090_v18 = vpop.xlane.xlu1 %1089  ;;  %v1093_v20 = vpop.xlane.xlu0 %1092 }
 0x3c5   : > { %v10926_v21 = vpop.eup %10925  ;;  %v1176_v22 = vsel %vm1174_vm3, %v1175_v12, %v1173_v17  ;;  %v1111_v52 = vmul.f32 0.015873017, %v1090_v18  ;;  %v1112_v53 = vmul.f32 0.015873017, %v1093_v20  ;;  %vm1687_vm3 = vcmask 130048  }
 0x3c6   : > { %v10928_v30 = vpop.eup %10927  ;;  %v1178_v31 = vmul.f32 %v10926_v21, %v1107_v7  ;;  %v1254_v38 = vadd.f32 1e-06, %v1176_v22 }
 0x3c7   : > { %v1185_v28 = vmul.f32 %v10928_v30, %v1108_v26  ;;  %10933 = vrsqrt.f32 %v1111_v52  ;;  %vm1207_vm12 = vcmp.eq.f32.partialorder %v1111_v52, inf  ;;  %vm1209_vm13 = vcmp.eq.f32.partialorder %v1111_v52, 0.0 }
 0x3c8   : > { %v1180_v39 = vsel %vm1179_vm4, %v1107_v7, %v1178_v31  ;;  %10935 = vrsqrt.f32 %v1112_v53  ;;  %v1096_v36 = vpop.xlane.xlu1 %1095  ;;  %v1210_v40 = vand.u32 2147483648, %v1111_v52  ;;  %vm1214_vm14 = vcmp.eq.f32.partialorder %v1112_v53, inf }
 0x3c9   : > { %v10930_v41 = vpop.eup %10929  ;;  %v1183_v42 = vsel %vm1181_vm5, %v1182_v23, %v1180_v39  ;;  %v1187_v24 = vsel %vm1186_vm6, %v1108_v26, %v1185_v28  ;;  %v1113_v45 = vmul.f32 0.015873017, %v1096_v36  ;;  %10937 = vrcp.f32 %v1254_v38 }
 0x3ca   : > { %v1255_v33 = vadd.f32 1e-06, %v1183_v42  ;;  %v1190_v61 = vsel %vm1188_vm7, %v1189_v34, %v1187_v24  ;;  %v1192_v43 = vmul.f32 %v10930_v41, %v1109_v9  ;;  %v1217_v58 = vand.u32 2147483648, %v1112_v53 }
 0x3cb   : > { %v1256_v47 = vadd.f32 1e-06, %v1190_v61  ;;  %10939 = vrsqrt.f32 %v1113_v45  ;;  %vm1216_vm15 = vcmp.eq.f32.partialorder %v1112_v53, 0.0  ;;  %vm1221_vm1 = vcmp.eq.f32.partialorder %v1113_v45, inf }
 0x3cc   : > { %v1194_v48 = vsel %vm1193_vm8, %v1109_v9, %v1192_v43  ;;  %10941 = vrcp.f32 %v1255_v33  ;;  %v1224_v10 = vand.u32 2147483648, %v1113_v45  ;;  %vm1223_vm2 = vcmp.eq.f32.partialorder %v1113_v45, 0.0 }
 0x3cd   : > { %v10932_v49 = vpop.eup %10931  ;;  %v1197_v51 = vsel %vm1195_vm9, %v1196_v46, %v1194_v48  ;;  %10943 = vrcp.f32 %v1256_v47  ;;  %v1243_v41 = vmul.f32 %v12961_v29, %v12944_v13  ;;  %v1244_v33 = vmul.f32 %v12961_v29, %v12947_v14 }
 0x3ce   : > { %v1257_v55 = vadd.f32 1e-06, %v1197_v51  ;;  %v1199_v56 = vmul.f32 %v10932_v49, %v1110_v44  ;;  %vm4144_vm4 = vcmask 261120   ;;  %vm4161_vm5 = vcmask 392192  }
 0x3d0   : > { %v1201_v57 = vsel %vm1200_vm10, %v1110_v44, %v1199_v56  ;;  %10945 = vrcp.f32 %v1257_v55  ;;  %v1240_v44 = vmul.f32 %v12961_v29, %v12917_v37  ;;  %v13043_v29 = vshrl.u32 %v1332_v27, 7  ;;  %v1330_v55 = vld [vmem:[#allocation14] sm:$0x3] }
 0x3d1   : > { %v10934_v62 = vpop.eup %10933  ;;  %v1204_v63 = vsel %vm1202_vm11, %v1203_v54, %v1201_v57 }
 0x3d2   : > { %v10936_v1 = vpop.eup %10935  ;;  %v1258_v50 = vadd.f32 1e-06, %v1204_v63  ;;  %v1206_v60 = vmul.f32 %v10934_v62, %v1111_v52  ;;  %17125 = vst [vmem:[#allocation41_spill] sm:$0xff] %v13043_v29  ;;  %v13046_v54 = vsub.s32 0, %v13043_v29  ;;  %v1338_v56 = vsub.s32 1, %v13043_v29 }
 0x3d3   : > { %v1213_v2 = vmul.f32 %v10936_v1, %v1112_v53  ;;  %v10938_v3 = vpop.eup %10937 }
 0x3d4   : > { %v1208_v0 = vsel %vm1207_vm12, %v1111_v52, %v1206_v60  ;;  %10947 = vrcp.f32 %v1258_v50  ;;  %v1279_v11 = vmul.f32 %v10938_v3, %v1238_v59  ;;  %17126 = vst [vmem:[#allocation42_spill] sm:$0xff] %v13046_v54  ;;  %v13050_v57 = vrot.slane %v1330_v55, %v13046_v54 }
 0x3d5   : > { %v1211_v6 = vsel %vm1209_vm13, %v1210_v40, %v1208_v0  ;;  %v1215_v7 = vsel %vm1214_vm14, %v1112_v53, %v1213_v2  ;;  %v10940_v26 = vpop.eup %10939  ;;  %v13052_v62 = vrot.slane %v1330_v55, %v1338_v56 }
 0x3d6   : > { %v1259_v8 = vadd.f32 1e-06, %v1211_v6  ;;  %v1218_v9 = vsel %vm1216_vm15, %v1217_v58, %v1215_v7  ;;  %v10942_v12 = vpop.eup %10941  ;;  %v1220_v25 = vmul.f32 %v10940_v26, %v1113_v45  ;;  %v1306_v52 = vadd.f32 %v12980_v19, %v1279_v11 }
 0x3d7   : > { %v1260_v15 = vadd.f32 1e-06, %v1218_v9  ;;  %v10944_v17 = vpop.eup %10943  ;;  %v1281_v18 = vmul.f32 %v10942_v12, %v1239_v5 }
 0x3d8   : > { %10949 = vrcp.f32 %v1259_v8  ;;  %v1222_v20 = vsel %vm1221_vm1, %v1113_v45, %v1220_v25  ;;  %v1283_v21 = vmul.f32 %v10944_v17, %v1240_v44 }
 0x3d9   : > { %10951 = vrcp.f32 %v1260_v15  ;;  %v1225_v23 = vsel %vm1223_vm2, %v1224_v10, %v1222_v20  ;;  %v1307_v53 = vadd.f32 %v12980_v19, %v1281_v18 }
 0x3da   : > { %v10946_v22 = vpop.eup %10945  ;;  %v1261_v30 = vadd.f32 1e-06, %v1225_v23  ;;  %v1308_v34 = vadd.f32 %v12980_v19, %v1283_v21 }
 0x3db   : > { %v1285_v37 = vmul.f32 %v10946_v22, %v1241_v35  ;;  %v1318_v31 = vpack.c.bf16 %v1307_v53, %v1306_v52 }
 0x3dc   : > { %10953 = vrcp.f32 %v1261_v30 }
 0x3dd   : > { %v1309_v38 = vadd.f32 %v12980_v19, %v1285_v37  ;;  %9120 = vmatmul.mubr.msk.bf16.gmra.mrb[16].mxu0 %vm951_vm0, %v1318_v31 }
 0x3de   : > { %v10948_v28 = vpop.eup %10947  ;;  %1488 = vmatprep.mubr.bf16.mxu0 %v12160_v16 }
 0x3df   : > { %v1319_v39 = vpack.c.bf16 %v1309_v38, %v1308_v34  ;;  %v1287_v42 = vmul.f32 %v10948_v28, %v1242_v32 }
 0x3e1   : > { %v1310_v61 = vadd.f32 %v12980_v19, %v1287_v42 }
 0x3e2   : > { %v10950_v24 = vpop.eup %10949 }
 0x3e3   : > { %v10952_v46 = vpop.eup %10951  ;;  %v1289_v36 = vmul.f32 %v10950_v24, %v1243_v41 }
 0x3e4   : > { %v1291_v45 = vmul.f32 %v10952_v46, %v1244_v33 }
 0x3e5   : > { %v1311_v43 = vadd.f32 %v12980_v19, %v1289_v36  ;;  %9121 = vmatmul.mubr.msk.bf16.gmra.mrb[20].mxu0 %vm951_vm0, %v1319_v39 }
 0x3e6   : > { %v10954_v47 = vpop.eup %10953  ;;  %1498 = vmatprep.mubr.bf16.mxu0 %v12160_v16  ;;  %v1312_v49 = vadd.f32 %v12980_v19, %v1291_v45 }
 0x3e7   : > { %v1320_v13 = vpack.c.bf16 %v1311_v43, %v1310_v61  ;;  %v1293_v48 = vmul.f32 %v10954_v47, %v1245_v4 }
 0x3e9   : > { %v1313_v51 = vadd.f32 %v12980_v19, %v1293_v48 }
 0x3eb   : > { %v1321_v14 = vpack.c.bf16 %v1313_v51, %v1312_v49 }
 0x3ed   : > { %9122 = vmatmul.mubr.msk.bf16.gmra.mrb[24].mxu0 %vm951_vm0, %v1320_v13 }
 0x3ee   : > { %1508 = vmatprep.mubr.bf16.mxu0 %v12160_v16 }
 0x3f5   : > { %9123 = vmatmul.mubr.msk.bf16.gmra.mrb[28].mxu0 %vm951_vm0, %v1321_v14 }
 0x417   : > { %v1440_v19 = vpop.f32.mrb[0].mxu0 }
 0x418   : > { %v1442_v63 = vpop.f32.mrb[1].mxu0  ;;  %v1441_v16 = vadd.f32 %v1440_v19, %v13050_v57 }
 0x419   : > { %v1444_v40 = vpop.f32.mrb[2].mxu0  ;;  %v1443_v60 = vadd.f32 %v1442_v63, %v13052_v62 }
 0x41a   : > { %v1445_v1 = vadd.f32 %v1444_v40, %v13050_v57  ;;  %v1446_v50 = vpop.f32.mrb[3].mxu0 }
 0x41b   : > { %v1447_v58 = vadd.f32 %v1446_v50, %v13052_v62 }
 0x41c   : > { %v1519_v2 = vpack.c.bf16 %v1445_v1, %v1441_v16 }
 0x41d   : > { %v13058_v59 = vpack.c.bf16 %v1447_v58, %v1443_v60 }
 0x41e   : > { %1559 = vrot.lane.b32.xlu1 %v1519_v2, %s12161_s0  ;;  %9682 = vmatprep.mubr.msk.bf16.mxu1 %vm1687_vm3, %v1519_v2 }
 0x41f   : > { %1543 = vrot.lane.b32.xlu0 %v1519_v2, %s12162_s5 }
 0x422   : > { %1575 = vrot.lane.b32.xlu1 %v1519_v2, %s12163_s10 }
 0x423   : > { %v1450_v0 = vpop.f32.mrb[4].mxu0 }
 0x424   : > { %v1452_v3 = vpop.f32.mrb[5].mxu0  ;;  %v1451_v6 = vadd.f32 %v1450_v0, %v13050_v57 }
 0x425   : > { %v1454_v5 = vpop.f32.mrb[6].mxu0  ;;  %v1453_v8 = vadd.f32 %v1452_v3, %v13052_v62 }
 0x426   : > { %v1455_v7 = vadd.f32 %v1454_v5, %v13050_v57  ;;  %v1456_v26 = vpop.f32.mrb[7].mxu0 }
 0x427   : > { %v1457_v9 = vadd.f32 %v1456_v26, %v13052_v62 }
 0x428   : > { %v13068_v10 = vpack.c.bf16 %v1455_v7, %v1451_v6 }
 0x429   : > { %v13070_v11 = vpack.c.bf16 %v1457_v9, %v1453_v8 }
 0x42a   : > { %1545 = vrot.lane.b32.xlu1 %v13068_v10, %s12162_s5  ;;  %1561 = vrot.lane.b32.xlu0 %v13068_v10, %s12161_s0 }
 0x42b   : > { %17127 = vst [vmem:[#allocation43_spill] sm:$0xff] %v13070_v11 }
 0x42e   : > { %1577 = vrot.lane.b32.xlu1 %v13068_v10, %s12163_s10  ;;  %1679 = vrot.lane.b32.xlu0 %v1519_v2, %s12164_s21 }
 0x42f   : > { %v1460_v12 = vpop.f32.mrb[8].mxu0 }
 0x430   : > { %v1462_v44 = vpop.f32.mrb[9].mxu0  ;;  %v1461_v25 = vadd.f32 %v1460_v12, %v13050_v57 }
 0x431   : > { %v1464_v15 = vpop.f32.mrb[10].mxu0  ;;  %v1463_v35 = vadd.f32 %v1462_v44, %v13052_v62 }
 0x432   : > { %v1465_v17 = vadd.f32 %v1464_v15, %v13050_v57  ;;  %v1466_v18 = vpop.f32.mrb[11].mxu0 }
 0x433   : > { %v1467_v20 = vadd.f32 %v1466_v18, %v13052_v62 }
 0x434   : > { %v13083_v21 = vpack.c.bf16 %v1465_v17, %v1461_v25 }
 0x435   : > { %v13085_v22 = vpack.c.bf16 %v1467_v20, %v1463_v35 }
 0x436   : > { %1547 = vrot.lane.b32.xlu0 %v13083_v21, %s12162_s5  ;;  %9714 = vmatprep.mubr.msk.bf16.mxu0 %vm1687_vm3, %v13083_v21 }
 0x437   : > { %v1470_v23 = vpop.f32.mrb[12].mxu0 }
 0x438   : > { %v1472_v52 = vpop.f32.mrb[13].mxu0  ;;  %v1471_v30 = vadd.f32 %v1470_v23, %v13050_v57 }
 0x439   : > { %v1474_v53 = vpop.f32.mrb[14].mxu0  ;;  %v1473_v34 = vadd.f32 %v1472_v52, %v13052_v62 }
 0x43a   : > { %v1475_v37 = vadd.f32 %v1474_v53, %v13050_v57  ;;  %v1476_v31 = vpop.f32.mrb[15].mxu0 }
 0x43b   : > { %v1477_v38 = vadd.f32 %v1476_v31, %v13052_v62 }
 0x43c   : > { %v13095_v28 = vpack.c.bf16 %v1475_v37, %v1471_v30 }
 0x43d   : > { %v13097_v32 = vpack.c.bf16 %v1477_v38, %v1473_v34 }
 0x43f   : > { %17128 = vst [vmem:[#allocation44_spill] sm:$0xff] %v13097_v32 }
 0x490   : > { %v13099_v39 = vpop.permute.xlu1 %1559 }
 0x491   : > { %v13101_v41 = vpop.permute.xlu0 %1543  ;;  %1683 = vrot.lane.b32.xlu0 %v13099_v39, %s12164_s21 }
 0x492   : > { %1681 = vrot.lane.b32.xlu1 %v13101_v41, %s12164_s21 }
 0x494   : > { %v13117_v24 = vpop.permute.xlu1 %1575 }
 0x495   : > { %1565 = vrot.lane.b32.xlu0 %v13095_v28, %s12161_s0 }
 0x496   : > { %1549 = vrot.lane.b32.xlu1 %v13095_v28, %s12162_s5 }
 0x499   : > { %1579 = vrot.lane.b32.xlu0 %v13083_v21, %s12163_s10 }
 0x49a   : > { %1563 = vrot.lane.b32.xlu1 %v13083_v21, %s12161_s0 }
 0x49c   : > { %v13115_v42 = vpop.permute.xlu0 %1561  ;;  %v13127_v33 = vpop.permute.xlu1 %1545 }
 0x49d   : > { %1777 = vrot.lane.b32.xlu0 %v13068_v10, %s12164_s21 }
 0x49e   : > { %1685 = vrot.lane.b32.xlu1 %v13117_v24, %s12164_s21 }
 0x4a0   : > { %v1680_v46 = vpop.permute.xlu0 %1679  ;;  %v13165_v9 = vpop.permute.xlu1 %1577 }
 0x4a1   : > { %10354 = vmatprep.subr.msk.bf16.mxu1 %vm1687_vm3, %v1680_v46  ;;  %v1701_v36 = vsel %vm1687_vm3, %v1680_v46, 0 }
 0x4a2   : > { %9675 = vmatpush3.bf16.xpose.msra.mxu1 %v1701_v36  ;;  %1581 = vrot.lane.b32.xlu1 %v13095_v28, %s12163_s10 }
 0x4a6   : > { %1779 = vrot.lane.b32.xlu1 %v13127_v33, %s12164_s21 }
 0x4a8   : > { %v13173_v25 = vpop.permute.xlu0 %1547 }
 0x4b0   : > { %v1480_v61 = vpop.f32.mrb[16].mxu0 }
 0x4b1   : > { %v1482_v43 = vpop.f32.mrb[17].mxu0  ;;  %v1481_v45 = vadd.f32 %v1480_v61, %v13050_v57 }
 0x4b2   : > { %v1484_v4 = vpop.f32.mrb[18].mxu0  ;;  %v1483_v48 = vadd.f32 %v1482_v43, %v13052_v62 }
 0x4b3   : > { %v1485_v47 = vadd.f32 %v1484_v4, %v13050_v57  ;;  %v1486_v13 = vpop.f32.mrb[19].mxu0 }
 0x4b4   : > { %v1487_v49 = vadd.f32 %v1486_v13, %v13052_v62 }
 0x4b5   : > { %v13135_v51 = vpack.c.bf16 %v1485_v47, %v1481_v45 }
 0x4b6   : > { %v13137_v14 = vpack.c.bf16 %v1487_v49, %v1483_v48 }
 0x4b7   : > { %1551 = vrot.lane.b32.xlu0 %v13135_v51, %s12162_s5 }
 0x4b8   : > { %17129 = vst [vmem:[#allocation45_spill] sm:$0xff] %v13137_v14  ;;  %v1490_v27 = vpop.f32.mrb[20].mxu0 }
 0x4b9   : > { %v1492_v55 = vpop.f32.mrb[21].mxu0  ;;  %v1491_v19 = vadd.f32 %v1490_v27, %v13050_v57 }
 0x4ba   : > { %v1494_v56 = vpop.f32.mrb[22].mxu0  ;;  %v1493_v16 = vadd.f32 %v1492_v55, %v13052_v62 }
 0x4bb   : > { %v1495_v63 = vadd.f32 %v1494_v56, %v13050_v57  ;;  %v1496_v40 = vpop.f32.mrb[23].mxu0  ;;  %1781 = vrot.lane.b32.xlu0 %v13115_v42, %s12164_s21 }
 0x4bc   : > { %v1497_v1 = vadd.f32 %v1496_v40, %v13052_v62 }
 0x4bd   : > { %v13147_v50 = vpack.c.bf16 %v1495_v63, %v1491_v19 }
 0x4be   : > { %v13149_v60 = vpack.c.bf16 %v1497_v1, %v1493_v16 }
 0x4bf   : > { %1553 = vrot.lane.b32.xlu1 %v13147_v50, %s12162_s5  ;;  %1569 = vrot.lane.b32.xlu0 %v13147_v50, %s12161_s0 }
 0x4c0   : > { %17130 = vst [vmem:[#allocation46_spill] sm:$0xff] %v13149_v60  ;;  %v1500_v58 = vpop.f32.mrb[24].mxu0 }
 0x4c1   : > { %v1502_v2 = vpop.f32.mrb[25].mxu0  ;;  %v1501_v3 = vadd.f32 %v1500_v58, %v13050_v57 }
 0x4c2   : > { %v1504_v0 = vpop.f32.mrb[26].mxu0  ;;  %v1503_v7 = vadd.f32 %v1502_v2, %v13052_v62 }
 0x4c3   : > { %v1505_v5 = vadd.f32 %v1504_v0, %v13050_v57  ;;  %v1506_v6 = vpop.f32.mrb[27].mxu0  ;;  %1567 = vrot.lane.b32.xlu1 %v13135_v51, %s12161_s0  ;;  %1583 = vrot.lane.b32.xlu0 %v13135_v51, %s12163_s10 }
 0x4c4   : > { %v1507_v26 = vadd.f32 %v1506_v6, %v13052_v62 }
 0x4c5   : > { %v13163_v8 = vpack.c.bf16 %v1505_v5, %v1501_v3 }
 0x4c6   : > { %v13167_v12 = vpack.c.bf16 %v1507_v26, %v1503_v7 }
 0x4c7   : > { %1783 = vrot.lane.b32.xlu1 %v13165_v9, %s12164_s21  ;;  %1874 = vrot.lane.b32.xlu0 %v13083_v21, %s12164_s21 }
 0x4c8   : > { %17131 = vst [vmem:[#allocation47_spill] sm:$0xff] %v13167_v12  ;;  %v1510_v44 = vpop.f32.mrb[28].mxu0 }
 0x4c9   : > { %v1512_v15 = vpop.f32.mrb[29].mxu0  ;;  %v1511_v18 = vadd.f32 %v1510_v44, %v13050_v57 }
 0x4ca   : > { %v1514_v17 = vpop.f32.mrb[30].mxu0  ;;  %v1513_v23 = vadd.f32 %v1512_v15, %v13052_v62 }
 0x4cb   : > { %v1515_v35 = vadd.f32 %v1514_v17, %v13050_v57  ;;  %v1516_v20 = vpop.f32.mrb[31].mxu0  ;;  %1585 = vrot.lane.b32.xlu1 %v13147_v50, %s12163_s10  ;;  %1876 = vrot.lane.b32.xlu0 %v13173_v25, %s12164_s21 }
 0x4cc   : > { %v1517_v21 = vadd.f32 %v1516_v20, %v13052_v62 }
 0x4cd   : > { %v13183_v52 = vpack.c.bf16 %v1515_v35, %v1511_v18 }
 0x4ce   : > { %v13185_v53 = vpack.c.bf16 %v1517_v21, %v1513_v23 }
 0x4cf   : > { %1971 = vrot.lane.b32.xlu1 %v13095_v28, %s12164_s21  ;;  %1555 = vrot.lane.b32.xlu0 %v13163_v8, %s12162_s5 }
 0x4d0   : > { %17132 = vst [vmem:[#allocation48_spill] sm:$0xff] %v13185_v53 }
 0x503   : > { %v1684_v30 = vpop.permute.xlu0 %1683 }
 0x504   : > { %v1682_v57 = vpop.permute.xlu1 %1681  ;;  %v1707_v38 = vsel %vm1687_vm3, %v1684_v30, 0 }
 0x505   : > { %10355 = vmatprep.subr.msk.bf16.mxu1 %vm1687_vm3, %v1682_v57  ;;  %v1704_v37 = vsel %vm1687_vm3, %v1682_v57, 0 }
 0x506   : > { %9677 = vmatpush3.bf16.xpose.msra.mxu1 %v1704_v37 }
 0x507   : > { %10356 = vmatprep.subr.msk.bf16.mxu1 %vm1687_vm3, %v1684_v30  ;;  %v13198_v31 = vpop.permute.xlu0 %1565 }
 0x508   : > { %v13194_v62 = vpop.permute.xlu1 %1549 }
 0x509   : > { %1973 = vrot.lane.b32.xlu1 %v13194_v62, %s12164_s21 }
 0x50b   : > { %v13207_v46 = vpop.permute.xlu0 %1579 }
 0x50c   : > { %v13200_v34 = vpop.permute.xlu1 %1563 }
 0x50d   : > { %1557 = vrot.lane.b32.xlu1 %v13183_v52, %s12162_s5  ;;  %1878 = vrot.lane.b32.xlu0 %v13200_v34, %s12164_s21 }
 0x50e   : > { %9679 = vmatpush3.bf16.xpose.msra.mxu1 %v1707_v38 }
 0x50f   : > { %v1778_v43 = vpop.permute.xlu0 %1777 }
 0x510   : > { %v1686_v36 = vpop.permute.xlu1 %1685  ;;  %v1798_v45 = vsel %vm1687_vm3, %v1778_v43, 0 }
 0x511   : > { %1571 = vrot.lane.b32.xlu0 %v13163_v8, %s12161_s0  ;;  %10357 = vmatprep.subr.msk.bf16.mxu1 %vm1687_vm3, %v1686_v36  ;;  %v1710_v61 = vsel %vm1687_vm3, %v1686_v36, 0 }
 0x512   : > { %1975 = vrot.lane.b32.xlu1 %v13198_v31, %s12164_s21 }
 0x514   : > { %v13220_v4 = vpop.permute.xlu1 %1581 }
 0x515   : > { %1880 = vrot.lane.b32.xlu0 %v13207_v46, %s12164_s21 }
 0x516   : > { %1573 = vrot.lane.b32.xlu1 %v13183_v52, %s12161_s0  ;;  %9681 = vmatpush3.bf16.xpose.msra.mxu1 %v1710_v61 }
 0x517   : > { %10358 = vmatprep.subr.msk.bf16.mxu1 %vm1687_vm3, %v1778_v43 }
 0x518   : > { %v1780_v47 = vpop.permute.xlu1 %1779 }
 0x519   : > { %1587 = vrot.lane.b32.xlu0 %v13163_v8, %s12163_s10 }
 0x51a   : > { %1977 = vrot.lane.b32.xlu1 %v13220_v4, %s12164_s21 }
 0x51d   : > { %9683 = vmatmul.mubr.msk.bf16.vlgmr.msra.gmra.mrb[0].mxu1 %vm1687_vm3, %v13101_v41  ;;  %2068 = vrot.lane.b32.xlu0 %v13135_v51, %s12164_s21  ;;  %v1801_v41 = vsel %vm1687_vm3, %v1780_v47, 0 }
 0x51e   : > { %1589 = vrot.lane.b32.xlu1 %v13183_v52, %s12163_s10  ;;  %9686 = vmatprep.mubr.msk.bf16.mxu1 %vm1687_vm3, %v13099_v39 }
 0x51f   : > { %9691 = vmatpush3.bf16.xpose.msra.mxu1 %v1798_v45 }
 0x520   : > { %10359 = vmatprep.subr.msk.bf16.mxu1 %vm1687_vm3, %v1780_v47 }
 0x522   : > { %2165 = vrot.lane.b32.xlu1 %v13147_v50, %s12164_s21 }
 0x525   : > { %9687 = vmatmul.mubr.msk.bf16.gmra.mrb[4].mxu1 %vm1687_vm3, %v13117_v24 }
 0x526   : > { %9698 = vmatprep.mubr.msk.bf16.mxu1 %vm1687_vm3, %v13068_v10 }
 0x527   : > { %9693 = vmatpush3.bf16.xpose.msra.mxu1 %v1801_v41 }
 0x529   : > { %v13243_v13 = vpop.permute.xlu0 %1551 }
 0x52a   : > { %2070 = vrot.lane.b32.xlu0 %v13243_v13, %s12164_s21 }
 0x52d   : > { %v1782_v39 = vpop.permute.xlu0 %1781 }
 0x52e   : > { %10360 = vmatprep.subr.msk.bf16.mxu1 %vm1687_vm3, %v1782_v39  ;;  %v1804_v48 = vsel %vm1687_vm3, %v1782_v39, 0 }
 0x52f   : > { %9695 = vmatpush3.bf16.xpose.msra.mxu1 %v1804_v48  ;;  %v13416_v48 = vld [vmem:[%s17133_s4 + $0x10] sm:$0xff] }
 0x531   : > { %v13249_v49 = vpop.permute.xlu1 %1553  ;;  %v13251_v24 = vpop.permute.xlu0 %1569 }
 0x532   : > { %2167 = vrot.lane.b32.xlu1 %v13249_v49, %s12164_s21 }
 0x535   : > { %v13255_v10 = vpop.permute.xlu1 %1567  ;;  %v13257_v27 = vpop.permute.xlu0 %1583 }
 0x536   : > { %2072 = vrot.lane.b32.xlu0 %v13255_v10, %s12164_s21  ;;  %2169 = vrot.lane.b32.xlu1 %v13251_v24, %s12164_s21 }
 0x539   : > { %v1784_v55 = vpop.permute.xlu1 %1783  ;;  %v1875_v56 = vpop.permute.xlu0 %1874 }
 0x53a   : > { %10361 = vmatprep.subr.msk.bf16.mxu1 %vm1687_vm3, %v1784_v55  ;;  %2074 = vrot.lane.b32.xlu0 %v13257_v27, %s12164_s21  ;;  %v1807_v19 = vsel %vm1687_vm3, %v1784_v55, 0  ;;  %v1895_v63 = vsel %vm1687_vm3, %v1875_v56, 0 }
 0x53b   : > { %10362 = vmatprep.subr.msk.bf16.mxu0 %vm1687_vm3, %v1875_v56  ;;  %9697 = vmatpush3.bf16.xpose.msra.mxu1 %v1807_v19 }
 0x53c   : > { %9707 = vmatpush3.bf16.xpose.msra.mxu0 %v1895_v63 }
 0x53d   : > { %v13269_v40 = vpop.permute.xlu1 %1585  ;;  %v1877_v16 = vpop.permute.xlu0 %1876 }
 0x53e   : > { %2171 = vrot.lane.b32.xlu1 %v13269_v40, %s12164_s21  ;;  %2262 = vrot.lane.b32.xlu0 %v13163_v8, %s12164_s21  ;;  %v1898_v0 = vsel %vm1687_vm3, %v1877_v16, 0 }
 0x53f   : > { %10363 = vmatprep.subr.msk.bf16.mxu0 %vm1687_vm3, %v1877_v16 }
 0x541   : > { %v1972_v1 = vpop.permute.xlu1 %1971  ;;  %v13276_v58 = vpop.permute.xlu0 %1555 }
 0x542   : > { %9699 = vmatmul.mubr.msk.bf16.vlgmr.msra.gmra.mrb[8].mxu1 %vm1687_vm3, %v13127_v33  ;;  %10366 = vmatprep.subr.msk.bf16.mxu1 %vm1687_vm3, %v1972_v1  ;;  %v1992_v2 = vsel %vm1687_vm3, %v1972_v1, 0 }
 0x543   : > { %2359 = vrot.lane.b32.xlu1 %v13183_v52, %s12164_s21  ;;  %2264 = vrot.lane.b32.xlu0 %v13276_v58, %s12164_s21 }
 0x544   : > { %9702 = vmatprep.mubr.msk.bf16.mxu1 %vm1687_vm3, %v13115_v42  ;;  %9709 = vmatpush3.bf16.xpose.msra.mxu0 %v1898_v0 }
 0x545   : > { %9723 = vmatpush3.bf16.xpose.msra.mxu1 %v1992_v2 }
 0x54a   : > { %9703 = vmatmul.mubr.msk.bf16.gmra.mrb[12].mxu1 %vm1687_vm3, %v13165_v9 }
 0x54b   : > { %9730 = vmatprep.mubr.msk.bf16.mxu1 %vm1687_vm3, %v13095_v28 }
 0x57b   : > { %v1974_v33 = vpop.permute.xlu1 %1973 }
 0x57c   : > { %10367 = vmatprep.subr.msk.bf16.mxu1 %vm1687_vm3, %v1974_v33  ;;  %v1995_v3 = vsel %vm1687_vm3, %v1974_v33, 0  ;;  %v13441_v33 = vld [vmem:[%s17133_s4 + $0x18] sm:$0xff] }
 0x57d   : > { %9725 = vmatpush3.bf16.xpose.msra.mxu1 %v1995_v3 }
 0x57f   : > { %v13295_v5 = vpop.permute.xlu1 %1557  ;;  %v1879_v6 = vpop.permute.xlu0 %1878 }
 0x580   : > { %2361 = vrot.lane.b32.xlu1 %v13295_v5, %s12164_s21  ;;  %10364 = vmatprep.subr.msk.bf16.mxu0 %vm1687_vm3, %v1879_v6  ;;  %v1901_v42 = vsel %vm1687_vm3, %v1879_v6, 0 }
 0x581   : > { %9711 = vmatpush3.bf16.xpose.msra.mxu0 %v1901_v42 }
 0x583   : > { %v13301_v7 = vpop.permute.xlu0 %1571 }
 0x584   : > { %v1976_v28 = vpop.permute.xlu1 %1975  ;;  %2266 = vrot.lane.b32.xlu0 %v13301_v7, %s12164_s21 }
 0x585   : > { %10368 = vmatprep.subr.msk.bf16.mxu1 %vm1687_vm3, %v1976_v28  ;;  %v1998_v26 = vsel %vm1687_vm3, %v1976_v28, 0 }
 0x586   : > { %9727 = vmatpush3.bf16.xpose.msra.mxu1 %v1998_v26 }
 0x587   : > { %v1881_v9 = vpop.permute.xlu0 %1880 }
 0x588   : > { %v13307_v44 = vpop.permute.xlu1 %1573  ;;  %10365 = vmatprep.subr.msk.bf16.mxu0 %vm1687_vm3, %v1881_v9  ;;  %v1904_v15 = vsel %vm1687_vm3, %v1881_v9, 0 }
 0x589   : > { %2363 = vrot.lane.b32.xlu1 %v13307_v44, %s12164_s21  ;;  %9713 = vmatpush3.bf16.xpose.msra.mxu0 %v1904_v15 }
 0x58b   : > { %v13313_v17 = vpop.permute.xlu0 %1587 }
 0x58c   : > { %v1978_v18 = vpop.permute.xlu1 %1977  ;;  %2268 = vrot.lane.b32.xlu0 %v13313_v17, %s12164_s21 }
 0x58d   : > { %10369 = vmatprep.subr.msk.bf16.mxu1 %vm1687_vm3, %v1978_v18  ;;  %v2001_v35 = vsel %vm1687_vm3, %v1978_v18, 0 }
 0x58e   : > { %9729 = vmatpush3.bf16.xpose.msra.mxu1 %v2001_v35 }
 0x58f   : > { %v2069_v20 = vpop.permute.xlu0 %2068 }
 0x590   : > { %v13319_v23 = vpop.permute.xlu1 %1589  ;;  %9715 = vmatmul.mubr.msk.bf16.vlgmr.msra.gmra.mrb[32].mxu0 %vm1687_vm3, %v13173_v25  ;;  %1599 = vrot.lane.b32.xlu0 %v13058_v59, %s12162_s5  ;;  %v2089_v21 = vsel %vm1687_vm3, %v2069_v20, 0 }
 0x591   : > { %2365 = vrot.lane.b32.xlu1 %v13319_v23, %s12164_s21  ;;  %10370 = vmatprep.subr.msk.bf16.mxu0 %vm1687_vm3, %v2069_v20  ;;  %v13458_v20 = vld [vmem:[%s17133_s4 + $0x30] sm:$0xff] }
 0x592   : > { %9718 = vmatprep.mubr.msk.bf16.mxu0 %vm1687_vm3, %v13200_v34  ;;  %9739 = vmatpush3.bf16.xpose.msra.mxu0 %v2089_v21  ;;  %v13463_v21 = vld [vmem:[%s17133_s4 + $0x38] sm:$0xff] }
 0x594   : > { %v2166_v57 = vpop.permute.xlu1 %2165  ;;  %1647 = vrot.lane.b32.xlu0 %v13058_v59, %s12163_s10 }
 0x595   : > { %9731 = vmatmul.mubr.msk.bf16.vlgmr.msra.gmra.mrb[16].mxu1 %vm1687_vm3, %v13194_v62  ;;  %10374 = vmatprep.subr.msk.bf16.mxu1 %vm1687_vm3, %v2166_v57  ;;  %v2186_v25 = vsel %vm1687_vm3, %v2166_v57, 0 }
 0x596   : > { %1623 = vrot.lane.b32.xlu1 %v13058_v59, %s12161_s0  ;;  %9734 = vmatprep.mubr.msk.bf16.mxu1 %vm1687_vm3, %v13198_v31 }
 0x597   : > { %9755 = vmatpush3.bf16.xpose.msra.mxu1 %v2186_v25 }
 0x598   : > { %9719 = vmatmul.mubr.msk.bf16.gmra.mrb[36].mxu0 %vm1687_vm3, %v13207_v46  ;;  %1603 = vrot.lane.b32.xlu0 %v13085_v22, %s12162_s5 }
 0x599   : > { %9746 = vmatprep.mubr.msk.bf16.mxu0 %vm1687_vm3, %v13135_v51 }
 0x59a   : > { %1601 = vrot.lane.b32.xlu1 %v13070_v11, %s12162_s5 }
 0x59c   : > { %1651 = vrot.lane.b32.xlu0 %v13085_v22, %s12163_s10  ;;  %v2071_v30 = vpop.permute.xlu0 %2070 }
 0x59d   : > { %9735 = vmatmul.mubr.msk.bf16.gmra.mrb[20].mxu1 %vm1687_vm3, %v13220_v4  ;;  %v2092_v37 = vsel %vm1687_vm3, %v2071_v30, 0  ;;  %10371 = vmatprep.subr.msk.bf16.mxu0 %vm1687_vm3, %v2071_v30 }
 0x59e   : > { %1625 = vrot.lane.b32.xlu1 %v13070_v11, %s12161_s0  ;;  %9762 = vmatprep.mubr.msk.bf16.mxu1 %vm1687_vm3, %v13147_v50 }
 0x59f   : > { %9741 = vmatpush3.bf16.xpose.msra.mxu0 %v2092_v37 }
 0x5a0   : > { %1607 = vrot.lane.b32.xlu0 %v13137_v14, %s12162_s5 }
 0x5a2   : > { %1649 = vrot.lane.b32.xlu1 %v13070_v11, %s12163_s10 }
 0x5a4   : > { %1655 = vrot.lane.b32.xlu0 %v13137_v14, %s12163_s10  ;;  %v2168_v51 = vpop.permute.xlu1 %2167 }
 0x5a5   : > { %10375 = vmatprep.subr.msk.bf16.mxu1 %vm1687_vm3, %v2168_v51  ;;  %v2189_v50 = vsel %vm1687_vm3, %v2168_v51, 0  ;;  %v13468_v51 = vld [vmem:[%s17133_s4 + $0x28] sm:$0xff] }
 0x5a6   : > { %1605 = vrot.lane.b32.xlu1 %v13097_v32, %s12162_s5  ;;  %9757 = vmatpush3.bf16.xpose.msra.mxu1 %v2189_v50 }
 0x5a8   : > { %v2170_v62 = vpop.permute.xlu1 %2169  ;;  %v2073_v31 = vpop.permute.xlu0 %2072 }
 0x5a9   : > { %10372 = vmatprep.subr.msk.bf16.mxu0 %vm1687_vm3, %v2073_v31  ;;  %v2095_v34 = vsel %vm1687_vm3, %v2073_v31, 0  ;;  %10376 = vmatprep.subr.msk.bf16.mxu1 %vm1687_vm3, %v2170_v62  ;;  %v2192_v46 = vsel %vm1687_vm3, %v2170_v62, 0 }
 0x5aa   : > { %1627 = vrot.lane.b32.xlu1 %v13085_v22, %s12161_s0  ;;  %9743 = vmatpush3.bf16.xpose.msra.mxu0 %v2095_v34 }
 0x5ac   : > { %v2075_v38 = vpop.permute.xlu0 %2074 }
 0x5ad   : > { %10373 = vmatprep.subr.msk.bf16.mxu0 %vm1687_vm3, %v2075_v38  ;;  %v2098_v61 = vsel %vm1687_vm3, %v2075_v38, 0 }
 0x5ae   : > { %1629 = vrot.lane.b32.xlu1 %v13097_v32, %s12161_s0  ;;  %9759 = vmatpush3.bf16.xpose.msra.mxu1 %v2192_v46 }
 0x5b0   : > { %v2172_v36 = vpop.permute.xlu1 %2171  ;;  %v2263_v43 = vpop.permute.xlu0 %2262 }
 0x5b1   : > { %10377 = vmatprep.subr.msk.bf16.mxu1 %vm1687_vm3, %v2172_v36  ;;  %v2195_v4 = vsel %vm1687_vm3, %v2172_v36, 0  ;;  %v2283_v47 = vsel %vm1687_vm3, %v2263_v43, 0  ;;  %v13483_v36 = vld [vmem:[%s17133_s4 + $0x20] sm:$0xff] }
 0x5b2   : > { %1653 = vrot.lane.b32.xlu1 %v13097_v32, %s12163_s10  ;;  %9745 = vmatpush3.bf16.xpose.msra.mxu0 %v2098_v61 }
 0x5b3   : > { %10378 = vmatprep.subr.msk.bf16.mxu0 %vm1687_vm3, %v2263_v43 }
 0x5b5   : > { %v2360_v45 = vpop.permute.xlu1 %2359  ;;  %v2265_v41 = vpop.permute.xlu0 %2264 }
 0x5b6   : > { %1609 = vrot.lane.b32.xlu1 %v13149_v60, %s12162_s5  ;;  %9761 = vmatpush3.bf16.xpose.msra.mxu1 %v2195_v4  ;;  %v2380_v39 = vsel %vm1687_vm3, %v2360_v45, 0 }
 0x5b7   : > { %10382 = vmatprep.subr.msk.bf16.mxu1 %vm1687_vm3, %v2360_v45 }
 0x5b9   : > { %9747 = vmatmul.mubr.msk.bf16.vlgmr.msra.gmra.mrb[40].mxu0 %vm1687_vm3, %v13243_v13  ;;  %v2286_v13 = vsel %vm1687_vm3, %v2265_v41, 0 }
 0x5ba   : > { %1631 = vrot.lane.b32.xlu1 %v13137_v14, %s12161_s0  ;;  %9750 = vmatprep.mubr.msk.bf16.mxu0 %vm1687_vm3, %v13255_v10 }
 0x5bb   : > { %9771 = vmatpush3.bf16.xpose.msra.mxu0 %v2283_v47 }
 0x5bc   : > { %10379 = vmatprep.subr.msk.bf16.mxu0 %vm1687_vm3, %v2265_v41 }
 0x5bd   : > { %9763 = vmatmul.mubr.msk.bf16.vlgmr.msra.gmra.mrb[24].mxu1 %vm1687_vm3, %v13249_v49 }
 0x5be   : > { %1633 = vrot.lane.b32.xlu1 %v13149_v60, %s12161_s0  ;;  %9766 = vmatprep.mubr.msk.bf16.mxu1 %vm1687_vm3, %v13251_v24 }
 0x5bf   : > { %9787 = vmatpush3.bf16.xpose.msra.mxu1 %v2380_v39 }
 0x5c1   : > { %9751 = vmatmul.mubr.msk.bf16.gmra.mrb[44].mxu0 %vm1687_vm3, %v13257_v27  ;;  %v13421_v27 = vld [vmem:[%s17133_s4] sm:$0xff] }
 0x5c2   : > { %1657 = vrot.lane.b32.xlu1 %v13149_v60, %s12163_s10  ;;  %9778 = vmatprep.mubr.msk.bf16.mxu0 %vm1687_vm3, %v13163_v8 }
 0x5c3   : > { %9773 = vmatpush3.bf16.xpose.msra.mxu0 %v2286_v13 }
 0x5c5   : > { %9767 = vmatmul.mubr.msk.bf16.gmra.mrb[28].mxu1 %vm1687_vm3, %v13269_v40 }
 0x5c6   : > { %9794 = vmatprep.mubr.msk.bf16.mxu1 %vm1687_vm3, %v13183_v52  ;;  %v13429_v52 = vld [vmem:[%s17133_s4 + $0x8] sm:$0xff] }
 0x5f0   : > { %v9684_v49 = vpop.f32.mrb[0].mxu1 }
 0x5f1   : > { %v2458_v24 = vmul.f32 0.25, %v9684_v49  ;;  %v1746_v10 = vpop.f32.mrb[1].mxu1 }
 0x5f2   : > { %v2456_v8 = vmul.f32 0.25, %v1746_v10  ;;  %v9685_v55 = vpop.f32.mrb[2].mxu1  ;;  %v2362_v56 = vpop.permute.xlu1 %2361 }
 0x5f3   : > { %v13424_v19 = vadd.f32 %v2458_v24, %v13416_v48  ;;  %v1749_v63 = vpop.f32.mrb[3].mxu1  ;;  %10383 = vmatprep.subr.msk.bf16.mxu1 %vm1687_vm3, %v2362_v56  ;;  %v2383_v40 = vsel %vm1687_vm3, %v2362_v56, 0  ;;  %v2459_v2 = vmul.f32 0.25, %v9685_v55 }
 0x5f4   : > { %v2457_v16 = vmul.f32 0.25, %v1749_v63  ;;  %9789 = vmatpush3.bf16.xpose.msra.mxu1 %v2383_v40  ;;  %v13434_v1 = vadd.f32 %v2456_v8, %v13421_v27 }
 0x5f5   : > { %v2590_v0 = vsel %vm951_vm0, %v13424_v19, -inf  ;;  %v13451_v9 = vadd.f32 %v2459_v2, %v13441_v33 }
 0x5f6   : > { %v13444_v3 = vadd.f32 %v2457_v16, %v13429_v52  ;;  %2591 = vmax.xlane.f32.xlu0 %v2590_v0  ;;  %v2267_v6 = vpop.permute.xlu0 %2266  ;;  %v2584_v35 = vsel %vm951_vm0, %v13434_v1, -inf }
 0x5f7   : > { %10380 = vmatprep.subr.msk.bf16.mxu0 %vm1687_vm3, %v2267_v6  ;;  %v2289_v42 = vsel %vm1687_vm3, %v2267_v6, 0  ;;  %v2593_v46 = vsel %vm951_vm0, %v13451_v9, -inf }
 0x5f8   : > { %v9688_v28 = vpop.f32.mrb[4].mxu1  ;;  %9775 = vmatpush3.bf16.xpose.msra.mxu0 %v2289_v42  ;;  %v2587_v26 = vsel %vm951_vm0, %v13444_v3, -inf }
 0x5f9   : > { %v2462_v15 = vmul.f32 0.25, %v9688_v28  ;;  %v1762_v18 = vpop.f32.mrb[5].mxu1  ;;  %2588 = vmax.xlane.f32.xlu1 %v2587_v26 }
 0x5fa   : > { %v9689_v57 = vpop.f32.mrb[6].mxu1  ;;  %2585 = vmax.xlane.f32.xlu0 %v2584_v35  ;;  %v2460_v34 = vmul.f32 0.25, %v1762_v18 }
 0x5fb   : > { %v2463_v25 = vmul.f32 0.25, %v9689_v57  ;;  %v2364_v30 = vpop.permute.xlu1 %2363  ;;  %v1765_v37 = vpop.f32.mrb[7].mxu1  ;;  %v13473_v31 = vadd.f32 %v2462_v15, %v13458_v20 }
 0x5fc   : > { %v2461_v50 = vmul.f32 0.25, %v1765_v37  ;;  %10384 = vmatprep.subr.msk.bf16.mxu1 %vm1687_vm3, %v2364_v30  ;;  %v2386_v62 = vsel %vm1687_vm3, %v2364_v30, 0  ;;  %v13493_v47 = vadd.f32 %v2460_v34, %v13483_v36 }
 0x5fd   : > { %v13476_v38 = vadd.f32 %v2463_v25, %v13463_v21  ;;  %9791 = vmatpush3.bf16.xpose.msra.mxu1 %v2386_v62  ;;  %v2602_v41 = vsel %vm951_vm0, %v13473_v31, -inf }
 0x5fe   : > { %2594 = vmax.xlane.f32.xlu0 %v2593_v46  ;;  %v2269_v61 = vpop.permute.xlu0 %2268  ;;  %v13486_v43 = vadd.f32 %v2461_v50, %v13468_v51  ;;  %v2596_v10 = vsel %vm951_vm0, %v13493_v47, -inf }
 0x5ff   : > { %10381 = vmatprep.subr.msk.bf16.mxu0 %vm1687_vm3, %v2269_v61  ;;  %v2605_v4 = vsel %vm951_vm0, %v13476_v38, -inf  ;;  %v2292_v45 = vsel %vm1687_vm3, %v2269_v61, 0 }
 0x600   : > { %2606 = vmax.xlane.f32.xlu1 %v2605_v4  ;;  %9777 = vmatpush3.bf16.xpose.msra.mxu0 %v2292_v45  ;;  %v2599_v49 = vsel %vm951_vm0, %v13486_v43, -inf }
 0x601   : > { %9802 = vmatprep.subr.bf16.mxu0 %v13058_v59 }
 0x602   : > { %2603 = vmax.xlane.f32.xlu0 %v2602_v41  ;;  %v1600_v39 = vpop.permute.xlu0 %1599 }
 0x603   : > { %v2366_v13 = vpop.permute.xlu1 %2365 }
 0x604   : > { %10385 = vmatprep.subr.msk.bf16.mxu1 %vm1687_vm3, %v2366_v13  ;;  %2600 = vmax.xlane.f32.xlu1 %v2599_v49  ;;  %v2389_v24 = vsel %vm1687_vm3, %v2366_v13, 0 }
 0x605   : > { %9793 = vmatpush3.bf16.xpose.msra.mxu1 %v2389_v24 }
 0x606   : > { %9834 = vmatprep.subr.bf16.mxu1 %v13085_v22  ;;  %2597 = vmax.xlane.f32.xlu0 %v2596_v10  ;;  %v1648_v8 = vpop.permute.xlu0 %1647 }
 0x607   : > { %9779 = vmatmul.mubr.msk.bf16.vlgmr.msra.gmra.mrb[48].mxu0 %vm1687_vm3, %v13276_v58 }
 0x608   : > { %v1624_v55 = vpop.permute.xlu1 %1623  ;;  %9782 = vmatprep.mubr.msk.bf16.mxu0 %vm1687_vm3, %v13301_v7  ;;  %9803 = vmatpush3.bf16.msra.mxu0 %v13058_v59 }
 0x609   : > { %9804 = vmatprep.subr.bf16.mxu0 %v1600_v39 }
 0x60a   : > { %v1604_v63 = vpop.permute.xlu0 %1603 }
 0x60c   : > { %v13510_v56 = vpop.permute.xlu1 %1601  ;;  %9795 = vmatmul.mubr.msk.bf16.vlgmr.msra.gmra.mrb[32].mxu1 %vm1687_vm3, %v13295_v5  ;;  %9805 = vmatpush3.bf16.msra.mxu0 %v1600_v39 }
 0x60d   : > { %17134 = vst [vmem:[#allocation49_spill] sm:$0xff] %v13510_v56  ;;  %9798 = vmatprep.mubr.msk.bf16.mxu1 %vm1687_vm3, %v13307_v44  ;;  %9835 = vmatpush3.bf16.msra.mxu1 %v13085_v22 }
 0x60e   : > { %9806 = vmatprep.subr.bf16.mxu0 %v1624_v55  ;;  %9836 = vmatprep.subr.bf16.mxu1 %v1604_v63  ;;  %v1652_v16 = vpop.permute.xlu0 %1651 }
 0x60f   : > { %9783 = vmatmul.mubr.msk.bf16.gmra.mrb[52].mxu0 %vm1687_vm3, %v13313_v17 }
 0x610   : > { %v13519_v58 = vpop.permute.xlu1 %1625  ;;  %9807 = vmatpush3.bf16.msra.mxu0 %v1624_v55 }
 0x611   : > { %17135 = vst [vmem:[#allocation50_spill] sm:$0xff] %v13519_v58  ;;  %9837 = vmatpush3.bf16.msra.mxu1 %v1604_v63  ;;  %9808 = vmatprep.subr.bf16.mxu0 %v1648_v8 }
 0x614   : > { %v13521_v59 = vpop.permute.xlu1 %1649  ;;  %9799 = vmatmul.mubr.msk.bf16.gmra.mrb[36].mxu1 %vm1687_vm3, %v13319_v23  ;;  %9809 = vmatpush3.bf16.msra.mxu0 %v1648_v8 }
 0x615   : > { %17136 = vst [vmem:[#allocation51_spill] sm:$0xff] %v13521_v59  ;;  %9818 = vmatprep.subr.bf16.mxu0 %v13070_v11  ;;  %v9700_v5 = vpop.f32.mrb[8].mxu1 }
 0x616   : > { %v1843_v22 = vpop.f32.mrb[9].mxu1 }
 0x617   : > { %v9701_v44 = vpop.f32.mrb[10].mxu1 }
 0x618   : > { %v13526_v7 = vpop.permute.xlu1 %1605  ;;  %v13528_v40 = vpop.f32.mrb[11].mxu1 }
 0x619   : > { %17137 = vst [vmem:[#allocation52_spill] sm:$0xff] %v13526_v7 }
 0x61c   : > { %v1628_v17 = vpop.permute.xlu1 %1627 }
 0x61d   : > { %9838 = vmatprep.subr.bf16.mxu1 %v1628_v17  ;;  %v9704_v2 = vpop.f32.mrb[12].mxu1 }
 0x61e   : > { %9839 = vmatpush3.bf16.msra.mxu1 %v1628_v17  ;;  %v13530_v0 = vpop.f32.mrb[13].mxu1 }
 0x61f   : > { %9840 = vmatprep.subr.bf16.mxu1 %v1652_v16  ;;  %v13532_v6 = vpop.f32.mrb[14].mxu1 }
 0x620   : > { %v13534_v23 = vpop.f32.mrb[15].mxu1 }
 0x622   : > { %9841 = vmatpush3.bf16.msra.mxu1 %v1652_v16 }
 0x623   : > { %9866 = vmatprep.subr.bf16.mxu1 %v13137_v14 }
 0x663   : > { %v9716_v42 = vpop.f32.mrb[32].mxu0 }
 0x664   : > { %v2474_v28 = vmul.f32 0.25, %v9716_v42  ;;  %v1940_v26 = vpop.f32.mrb[33].mxu0 }
 0x665   : > { %v2472_v15 = vmul.f32 0.25, %v1940_v26  ;;  %v9717_v18 = vpop.f32.mrb[34].mxu0 }
 0x666   : > { %v13538_v35 = vadd.f32 %v2474_v28, %v13416_v48  ;;  %v2475_v57 = vmul.f32 0.25, %v9717_v18  ;;  %v1943_v25 = vpop.f32.mrb[35].mxu0  ;;  %v2466_v28 = vmul.f32 0.25, %v9700_v5 }
 0x667   : > { %v2473_v30 = vmul.f32 0.25, %v1943_v25  ;;  %v13541_v37 = vadd.f32 %v2472_v15, %v13421_v27 }
 0x668   : > { %v13544_v50 = vadd.f32 %v2475_v57, %v13441_v33  ;;  %v13546_v62 = vpop.f32.mrb[16].mxu1  ;;  %v2638_v34 = vsel %vm951_vm0, %v13538_v35, -inf }
 0x669   : > { %v13550_v46 = vpop.f32.mrb[17].mxu1  ;;  %2639 = vmax.xlane.f32.xlu0 %v2638_v34  ;;  %v13553_v61 = vadd.f32 %v2473_v30, %v13429_v52  ;;  %v2632_v24 = vsel %vm951_vm0, %v13541_v37, -inf  ;;  %v2467_v30 = vmul.f32 0.25, %v9701_v44 }
 0x66a   : > { %v13555_v4 = vpop.f32.mrb[18].mxu1  ;;  %v2641_v45 = vsel %vm951_vm0, %v13544_v50, -inf }
 0x66b   : > { %v13559_v41 = vpop.f32.mrb[19].mxu1  ;;  %2642 = vmax.xlane.f32.xlu1 %v2641_v45  ;;  %v9720_v39 = vpop.f32.mrb[36].mxu0  ;;  %v2635_v16 = vsel %vm951_vm0, %v13553_v61, -inf  ;;  %v13595_v44 = vadd.f32 %v2467_v30, %v13441_v33 }
 0x66c   : > { %v2478_v13 = vmul.f32 0.25, %v9720_v39  ;;  %v1956_v49 = vpop.f32.mrb[37].mxu0  ;;  %v2481_v53 = vmul.f32 0.25, %v13559_v41 }
 0x66d   : > { %v2476_v10 = vmul.f32 0.25, %v1956_v49  ;;  %v9721_v8 = vpop.f32.mrb[38].mxu0  ;;  %2633 = vmax.xlane.f32.xlu0 %v2632_v24  ;;  %v2464_v49 = vmul.f32 0.25, %v1843_v22 }
 0x66e   : > { %v13564_v55 = vadd.f32 %v2478_v13, %v13458_v20  ;;  %v2479_v63 = vmul.f32 0.25, %v9721_v8  ;;  %v1959_v17 = vpop.f32.mrb[39].mxu0  ;;  %v13590_v13 = vadd.f32 %v2466_v28, %v13416_v48 }
 0x66f   : > { %v2477_v42 = vmul.f32 0.25, %v1959_v17  ;;  %2636 = vmax.xlane.f32.xlu1 %v2635_v16  ;;  %v13569_v26 = vadd.f32 %v2476_v10, %v13483_v36  ;;  %v2465_v10 = vmul.f32 0.25, %v13528_v40  ;;  %v2470_v17 = vmul.f32 0.25, %v9704_v2 }
 0x670   : > { %v13572_v15 = vadd.f32 %v2479_v63, %v13463_v21  ;;  %v13574_v18 = vpop.f32.mrb[20].mxu1  ;;  %v2650_v57 = vsel %vm951_vm0, %v13564_v55, -inf  ;;  %v13601_v63 = vadd.f32 %v2464_v49, %v13421_v27  ;;  %v2614_v22 = vsel %vm951_vm0, %v13590_v13, -inf }
 0x671   : > { %v13578_v25 = vpop.f32.mrb[21].mxu1  ;;  %2651 = vmax.xlane.f32.xlu0 %v2650_v57  ;;  %v13581_v34 = vadd.f32 %v2477_v42, %v13468_v51  ;;  %v2644_v24 = vsel %vm951_vm0, %v13569_v26, -inf  ;;  %v13606_v16 = vadd.f32 %v2465_v10, %v13429_v52  ;;  %v2471_v42 = vmul.f32 0.25, %v13532_v6 }
 0x672   : > { %v13583_v45 = vpop.f32.mrb[22].mxu1  ;;  %v2653_v5 = vsel %vm951_vm0, %v13572_v15, -inf  ;;  %v2617_v40 = vsel %vm951_vm0, %v13595_v44, -inf  ;;  %v13612_v28 = vadd.f32 %v2470_v17, %v13458_v20  ;;  %v2468_v57 = vmul.f32 0.25, %v13530_v0 }
 0x673   : > { %v13587_v39 = vpop.f32.mrb[23].mxu1  ;;  %2654 = vmax.xlane.f32.xlu1 %v2653_v5  ;;  %v2647_v8 = vsel %vm951_vm0, %v13581_v34, -inf  ;;  %v2608_v2 = vsel %vm951_vm0, %v13601_v63, -inf  ;;  %v13618_v30 = vadd.f32 %v2471_v42, %v13463_v21  ;;  %v2469_v5 = vmul.f32 0.25, %v13534_v23 }
 0x674   : > { %v2611_v6 = vsel %vm951_vm0, %v13606_v16, -inf  ;;  %v13624_v49 = vadd.f32 %v2468_v57, %v13483_v36 }
 0x675   : > { %2645 = vmax.xlane.f32.xlu0 %v2644_v24  ;;  %v2626_v24 = vsel %vm951_vm0, %v13612_v28, -inf  ;;  %v13629_v0 = vadd.f32 %v2469_v5, %v13468_v51  ;;  %v2629_v10 = vsel %vm951_vm0, %v13618_v30, -inf }
 0x676   : > { %v2620_v23 = vsel %vm951_vm0, %v13624_v49, -inf }
 0x677   : > { %2648 = vmax.xlane.f32.xlu1 %v2647_v8  ;;  %17138 = vst [vmem:[#allocation53_spill] sm:$0xff] %v13629_v0  ;;  %v2623_v8 = vsel %vm951_vm0, %v13629_v0, -inf }
 0x679   : > { %2615 = vmax.xlane.f32.xlu0 %v2614_v22 }
 0x67b   : > { %2618 = vmax.xlane.f32.xlu1 %v2617_v40 }
 0x67d   : > { %2609 = vmax.xlane.f32.xlu0 %v2608_v2 }
 0x67f   : > { %2612 = vmax.xlane.f32.xlu1 %v2611_v6 }
 0x681   : > { %2627 = vmax.xlane.f32.xlu0 %v2626_v24 }
 0x683   : > { %2630 = vmax.xlane.f32.xlu1 %v2629_v10 }
 0x685   : > { %2621 = vmax.xlane.f32.xlu0 %v2620_v23 }
 0x687   : > { %2624 = vmax.xlane.f32.xlu1 %v2623_v8 }
 0x68c   : > { %v9748_v17 = vpop.f32.mrb[40].mxu0 }
 0x68d   : > { %v2490_v22 = vmul.f32 0.25, %v9748_v17  ;;  %v2134_v42 = vpop.f32.mrb[41].mxu0 }
 0x68e   : > { %v2488_v40 = vmul.f32 0.25, %v2134_v42  ;;  %v9749_v57 = vpop.f32.mrb[42].mxu0 }
 0x68f   : > { %v13638_v2 = vadd.f32 %v2490_v22, %v13416_v48  ;;  %v2491_v5 = vmul.f32 0.25, %v9749_v57  ;;  %v2137_v6 = vpop.f32.mrb[43].mxu0 }
 0x690   : > { %v2489_v24 = vmul.f32 0.25, %v2137_v6  ;;  %v13640_v10 = vpop.f32.mrb[24].mxu1  ;;  %v13648_v8 = vadd.f32 %v2488_v40, %v13421_v27 }
 0x691   : > { %v13643_v54 = vadd.f32 %v2491_v5, %v13441_v33  ;;  %v13645_v23 = vpop.f32.mrb[25].mxu1  ;;  %v2686_v42 = vsel %vm951_vm0, %v13638_v2, -inf }
 0x692   : > { %v13650_v17 = vpop.f32.mrb[26].mxu1  ;;  %2687 = vmax.xlane.f32.xlu0 %v2686_v42  ;;  %v13657_v57 = vadd.f32 %v2489_v24, %v13429_v52  ;;  %v2680_v7 = vsel %vm951_vm0, %v13648_v8, -inf }
 0x693   : > { %17139 = vst [vmem:[#allocation54_spill] sm:$0xff] %v13643_v54  ;;  %v13654_v22 = vpop.f32.mrb[27].mxu1  ;;  %v2689_v5 = vsel %vm951_vm0, %v13643_v54, -inf }
 0x694   : > { %17140 = vst [vmem:[#allocation55_spill] sm:$0xff] %v13657_v57  ;;  %v9752_v6 = vpop.f32.mrb[44].mxu0  ;;  %2690 = vmax.xlane.f32.xlu1 %v2689_v5  ;;  %v2683_v56 = vsel %vm951_vm0, %v13657_v57, -inf }
 0x695   : > { %v2494_v29 = vmul.f32 0.25, %v9752_v6  ;;  %v2150_v60 = vpop.f32.mrb[45].mxu0 }
 0x696   : > { %v2492_v40 = vmul.f32 0.25, %v2150_v60  ;;  %v9753_v32 = vpop.f32.mrb[46].mxu0  ;;  %2681 = vmax.xlane.f32.xlu0 %v2680_v7 }
 0x697   : > { %v13664_v14 = vadd.f32 %v2494_v29, %v13458_v20  ;;  %v2495_v42 = vmul.f32 0.25, %v9753_v32  ;;  %v2153_v59 = vpop.f32.mrb[47].mxu0  ;;  %v2482_v29 = vmul.f32 0.25, %v13546_v62  ;;  %v2480_v62 = vmul.f32 0.25, %v13550_v46 }
 0x698   : > { %v2493_v24 = vmul.f32 0.25, %v2153_v59  ;;  %v13666_v58 = vpop.f32.mrb[28].mxu1  ;;  %2684 = vmax.xlane.f32.xlu1 %v2683_v56  ;;  %v13679_v32 = vadd.f32 %v2492_v40, %v13483_v36  ;;  %v2483_v56 = vmul.f32 0.25, %v13555_v4 }
 0x699   : > { %17141 = vst [vmem:[#allocation56_spill] sm:$0xff] %v13664_v14  ;;  %v13671_v5 = vadd.f32 %v2495_v42, %v13463_v21  ;;  %v13673_v60 = vpop.f32.mrb[29].mxu1  ;;  %v2698_v6 = vsel %vm951_vm0, %v13664_v14, -inf  ;;  %v13692_v12 = vadd.f32 %v2482_v29, %v13416_v48  ;;  %v2486_v29 = vmul.f32 0.25, %v13574_v18 }
 0x69a   : > { %17143 = vst [vmem:[#allocation58_spill] sm:$0xff] %v13679_v32  ;;  %v13681_v59 = vpop.f32.mrb[30].mxu1  ;;  %2699 = vmax.xlane.f32.xlu0 %v2698_v6  ;;  %v13689_v11 = vadd.f32 %v2493_v24, %v13468_v51  ;;  %v2692_v40 = vsel %vm951_vm0, %v13679_v32, -inf  ;;  %v13698_v6 = vadd.f32 %v2483_v56, %v13441_v33  ;;  %v13704_v24 = vadd.f32 %v2480_v62, %v13421_v27 }
 0x69b   : > { %17142 = vst [vmem:[#allocation57_spill] sm:$0xff] %v13671_v5  ;;  %v13683_v7 = vpop.f32.mrb[31].mxu1  ;;  %v2701_v42 = vsel %vm951_vm0, %v13671_v5, -inf  ;;  %17145 = vst [vmem:[#allocation60_spill] sm:$0xff] %v13692_v12  ;;  %v2662_v46 = vsel %vm951_vm0, %v13692_v12, -inf  ;;  %v2487_v56 = vmul.f32 0.25, %v13583_v45 }
 0x69c   : > { %17144 = vst [vmem:[#allocation59_spill] sm:$0xff] %v13689_v11  ;;  %2702 = vmax.xlane.f32.xlu1 %v2701_v42  ;;  %17146 = vst [vmem:[#allocation61_spill] sm:$0xff] %v13698_v6  ;;  %v2695_v4 = vsel %vm951_vm0, %v13689_v11, -inf  ;;  %v13710_v42 = vadd.f32 %v2481_v53, %v13429_v52  ;;  %v2665_v41 = vsel %vm951_vm0, %v13698_v6, -inf  ;;  %v2484_v62 = vmul.f32 0.25, %v13578_v25 }
 0x69d   : > { %17147 = vst [vmem:[#allocation62_spill] sm:$0xff] %v13704_v24  ;;  %v2656_v18 = vsel %vm951_vm0, %v13704_v24, -inf  ;;  %v2485_v53 = vmul.f32 0.25, %v13587_v39 }
 0x69e   : > { %2693 = vmax.xlane.f32.xlu0 %v2692_v40  ;;  %17148 = vst [vmem:[#allocation63_spill] sm:$0xff] %v13710_v42  ;;  %v13716_v40 = vadd.f32 %v2486_v29, %v13458_v20  ;;  %v2659_v45 = vsel %vm951_vm0, %v13710_v42, -inf }
 0x69f   : > { %v13733_v25 = vadd.f32 %v2485_v53, %v13468_v51 }
 0x6a0   : > { %2696 = vmax.xlane.f32.xlu1 %v2695_v4  ;;  %17149 = vst [vmem:[#allocation64_spill] sm:$0xff] %v13716_v40  ;;  %v13722_v4 = vadd.f32 %v2487_v56, %v13463_v21  ;;  %v2674_v29 = vsel %vm951_vm0, %v13716_v40, -inf }
 0x6a1   : > { %17152 = vst [vmem:[#allocation67_spill] sm:$0xff] %v13733_v25 }
 0x6a2   : > { %2663 = vmax.xlane.f32.xlu0 %v2662_v46  ;;  %17150 = vst [vmem:[#allocation65_spill] sm:$0xff] %v13722_v4  ;;  %v13728_v46 = vadd.f32 %v2484_v62, %v13483_v36  ;;  %v2677_v56 = vsel %vm951_vm0, %v13722_v4, -inf  ;;  %v13741_v62 = vpop.permute.xlu1 %1629 }
 0x6a3   : > { %17153 = vst [vmem:[#allocation68_spill] sm:$0xff] %v13741_v62 }
 0x6a4   : > { %2666 = vmax.xlane.f32.xlu1 %v2665_v41  ;;  %17151 = vst [vmem:[#allocation66_spill] sm:$0xff] %v13728_v46  ;;  %v2668_v39 = vsel %vm951_vm0, %v13728_v46, -inf  ;;  %v2671_v41 = vsel %vm951_vm0, %v13733_v25, -inf }
 0x6a6   : > { %2657 = vmax.xlane.f32.xlu0 %v2656_v18  ;;  %v13743_v18 = vpop.permute.xlu1 %1653 }
 0x6a7   : > { %17154 = vst [vmem:[#allocation69_spill] sm:$0xff] %v13743_v18 }
 0x6a8   : > { %2660 = vmax.xlane.f32.xlu1 %v2659_v45  ;;  %v13745_v45 = vpop.permute.xlu0 %1607 }
 0x6a9   : > { %17155 = vst [vmem:[#allocation70_spill] sm:$0xff] %v13745_v45 }
 0x6aa   : > { %2675 = vmax.xlane.f32.xlu0 %v2674_v29  ;;  %v13747_v53 = vpop.permute.xlu1 %1609 }
 0x6ab   : > { %17156 = vst [vmem:[#allocation71_spill] sm:$0xff] %v13747_v53 }
 0x6ac   : > { %2678 = vmax.xlane.f32.xlu1 %v2677_v56  ;;  %v13749_v29 = vpop.permute.xlu0 %1655 }
 0x6ad   : > { %17157 = vst [vmem:[#allocation72_spill] sm:$0xff] %v13749_v29  ;;  %v2498_v29 = vmul.f32 0.25, %v13640_v10 }
 0x6ae   : > { %2669 = vmax.xlane.f32.xlu0 %v2668_v39  ;;  %v13751_v40 = vpop.permute.xlu1 %1631 }
 0x6af   : > { %17158 = vst [vmem:[#allocation73_spill] sm:$0xff] %v13751_v40 }
 0x6b0   : > { %2672 = vmax.xlane.f32.xlu1 %v2671_v41  ;;  %v13753_v56 = vpop.xlane.xlu0 %2591 }
 0x6b1   : > { %v2778_v54 = vsub.f32 %v13424_v19, %v13753_v56 }
 0x6b2   : > { %v13761_v24 = vpop.permute.xlu1 %1633 }
 0x6b3   : > { %17161 = vst [vmem:[#allocation76_spill] sm:$0xff] %v13761_v24  ;;  %v2844_v19 = vmul.f32 1.442695, %v2778_v54 }
 0x6b4   : > { %v13766_v4 = vpop.xlane.xlu0 %2585 }
 0x6b5   : > { %v2776_v56 = vsub.f32 %v13434_v1, %v13766_v4  ;;  %10955 = vpow2.f32 %v2844_v19 }
 0x6b6   : > { %v13791_v14 = vpop.permute.xlu1 %1657 }
 0x6b7   : > { %17166 = vst [vmem:[#allocation81_spill] sm:$0xff] %v13791_v14  ;;  %v2840_v1 = vmul.f32 1.442695, %v2776_v56 }
 0x6b9   : > { %10957 = vpow2.f32 %v2840_v1 }
 0x6da   : > { %v9780_v46 = vpop.f32.mrb[48].mxu0 }
 0x6db   : > { %v2506_v39 = vmul.f32 0.25, %v9780_v46  ;;  %v2328_v42 = vpop.f32.mrb[49].mxu0 }
 0x6dc   : > { %v2504_v6 = vmul.f32 0.25, %v2328_v42  ;;  %v9781_v25 = vpop.f32.mrb[50].mxu0 }
 0x6dd   : > { %v13756_v41 = vadd.f32 %v2506_v39, %v13416_v48  ;;  %v2507_v62 = vmul.f32 0.25, %v9781_v25  ;;  %v2331_v18 = vpop.f32.mrb[51].mxu0 }
 0x6de   : > { %v13759_v45 = vadd.f32 %v2504_v6, %v13421_v27  ;;  %v2505_v53 = vmul.f32 0.25, %v2331_v18 }
 0x6df   : > { %17159 = vst [vmem:[#allocation74_spill] sm:$0xff] %v13756_v41  ;;  %v9796_v40 = vpop.f32.mrb[32].mxu1  ;;  %v2734_v46 = vsel %vm951_vm0, %v13756_v41, -inf  ;;  %v13769_v42 = vadd.f32 %v2507_v62, %v13441_v33  ;;  %v13783_v62 = vadd.f32 %v2498_v29, %v13416_v48 }
 0x6e0   : > { %17160 = vst [vmem:[#allocation75_spill] sm:$0xff] %v13759_v45  ;;  %v13772_v25 = vadd.f32 %v2505_v53, %v13429_v52  ;;  %v2425_v39 = vpop.f32.mrb[33].mxu1  ;;  %2735 = vmax.xlane.f32.xlu0 %v2734_v46  ;;  %v2728_v6 = vsel %vm951_vm0, %v13759_v45, -inf  ;;  %v2496_v53 = vmul.f32 0.25, %v13645_v23  ;;  %v2502_v23 = vmul.f32 0.25, %v13666_v58 }
 0x6e1   : > { %17162 = vst [vmem:[#allocation77_spill] sm:$0xff] %v13769_v42  ;;  %v13776_v18 = vpop.f32.mrb[34].mxu1  ;;  %2729 = vmax.xlane.f32.xlu1 %v2728_v6  ;;  %17164 = vst [vmem:[#allocation79_spill] sm:$0xff] %v13783_v62  ;;  %v2737_v45 = vsel %vm951_vm0, %v13769_v42, -inf  ;;  %v2514_v0 = vmul.f32 0.25, %v9796_v40 }
 0x6e2   : > { %17163 = vst [vmem:[#allocation78_spill] sm:$0xff] %v13772_v25  ;;  %v13778_v10 = vpop.f32.mrb[35].mxu1  ;;  %v9784_v24 = vpop.f32.mrb[52].mxu0  ;;  %v2731_v41 = vsel %vm951_vm0, %v13772_v25, -inf  ;;  %v13796_v29 = vadd.f32 %v2496_v53, %v13421_v27  ;;  %v13815_v57 = vadd.f32 %v2502_v23, %v13458_v20 }
 0x6e3   : > { %v2510_v12 = vmul.f32 0.25, %v9784_v24  ;;  %v2344_v11 = vpop.f32.mrb[53].mxu0  ;;  %v13793_v25 = vpop.xlane.xlu0 %2594  ;;  %v2710_v24 = vsel %vm951_vm0, %v13783_v62, -inf  ;;  %v2500_v62 = vmul.f32 0.25, %v13673_v60  ;;  %v13843_v40 = vadd.f32 %v2514_v0, %v13416_v48 }
 0x6e4   : > { %v2508_v46 = vmul.f32 0.25, %v2344_v11  ;;  %2732 = vmax.xlane.f32.xlu0 %v2731_v41  ;;  %v9785_v32 = vpop.f32.mrb[54].mxu0  ;;  %17167 = vst [vmem:[#allocation82_spill] sm:$0xff] %v13796_v29  ;;  %v13810_v53 = vpop.xlane.xlu1 %2588  ;;  %17168 = vst [vmem:[#allocation83_spill] sm:$0xff] %v13815_v57 }
 0x6e5   : > { %v13789_v6 = vadd.f32 %v2510_v12, %v13458_v20  ;;  %2738 = vmax.xlane.f32.xlu1 %v2737_v45  ;;  %v2347_v5 = vpop.f32.mrb[55].mxu0  ;;  %v2511_v45 = vmul.f32 0.25, %v9785_v32  ;;  %v13830_v60 = vadd.f32 %v2500_v62, %v13483_v36 }
 0x6e6   : > { %v13804_v12 = vadd.f32 %v2508_v46, %v13483_v36  ;;  %v2704_v46 = vsel %vm951_vm0, %v13796_v29, -inf  ;;  %v2722_v29 = vsel %vm951_vm0, %v13815_v57, -inf }
 0x6e7   : > { %17165 = vst [vmem:[#allocation80_spill] sm:$0xff] %v13789_v6  ;;  %v9800_v11 = vpop.f32.mrb[36].mxu1  ;;  %v2746_v41 = vsel %vm951_vm0, %v13789_v6, -inf  ;;  %v2604_v6 = vpop.xlane.xlu0 %2603  ;;  %v13821_v32 = vadd.f32 %v2511_v45, %v13463_v21  ;;  %v2499_v45 = vmul.f32 0.25, %v13650_v17  ;;  %v2716_v17 = vsel %vm951_vm0, %v13830_v60, -inf }
 0x6e8   : > { %v13806_v42 = vpop.f32.mrb[37].mxu1  ;;  %2711 = vmax.xlane.f32.xlu0 %v2710_v24  ;;  %v2509_v24 = vmul.f32 0.25, %v2347_v5  ;;  %v13827_v23 = vpop.xlane.xlu1 %2606  ;;  %v2782_v48 = vsub.f32 %v13473_v31, %v2604_v6 }
 0x6e9   : > { %v13808_v14 = vpop.f32.mrb[38].mxu1  ;;  %2747 = vmax.xlane.f32.xlu1 %v2746_v41  ;;  %v2740_v41 = vsel %vm951_vm0, %v13804_v12, -inf }
 0x6ea   : > { %v13812_v58 = vpop.f32.mrb[39].mxu1  ;;  %v13836_v5 = vadd.f32 %v2509_v24, %v13468_v51  ;;  %v2497_v24 = vmul.f32 0.25, %v13654_v22  ;;  %v2503_v22 = vmul.f32 0.25, %v13681_v59  ;;  %v2852_v31 = vmul.f32 1.442695, %v2782_v48  ;;  %v13884_v48 = vpop.eup %10955 }
 0x6eb   : > { %v2598_v62 = vpop.xlane.xlu0 %2597  ;;  %v2501_v59 = vmul.f32 0.25, %v13683_v7  ;;  %v2515_v7 = vmul.f32 0.25, %v13776_v18  ;;  %v2513_v18 = vmul.f32 0.25, %v13778_v10 }
 0x6ec   : > { %2705 = vmax.xlane.f32.xlu0 %v2704_v46  ;;  %v2749_v46 = vsel %vm951_vm0, %v13821_v32, -inf  ;;  %v13847_v57 = vpop.xlane.xlu1 %2600  ;;  %v2743_v54 = vsel %vm951_vm0, %v13836_v5, -inf  ;;  %10959 = vpow2.f32 %v2852_v31  ;;  %v13897_v31 = vpop.eup %10957 }
 0x6ed   : > { %2741 = vmax.xlane.f32.xlu1 %v2740_v41  ;;  %v2512_v41 = vmul.f32 0.25, %v2425_v39  ;;  %v2518_v39 = vmul.f32 0.25, %v9800_v11  ;;  %v13913_v10 = vadd.f32 %v2513_v18, %v13429_v52  ;;  %v2783_v18 = vsub.f32 %v13476_v38, %v13827_v23 }
 0x6ef   : > { %v13857_v4 = vadd.f32 %v2512_v41, %v13421_v27  ;;  %v2780_v27 = vsub.f32 %v13493_v47, %v2598_v62  ;;  %v13869_v11 = vadd.f32 %v2518_v39, %v13458_v20  ;;  %v13874_v41 = vadd.f32 %v2503_v22, %v13463_v21 }
 0x6f0   : > { %2723 = vmax.xlane.f32.xlu0 %v2722_v29  ;;  %v13850_v29 = vadd.f32 %v2499_v45, %v13441_v33  ;;  %v2758_v45 = vsel %vm951_vm0, %v13843_v40, -inf  ;;  %v13887_v39 = vadd.f32 %v2501_v59, %v13468_v51  ;;  %v2854_v23 = vmul.f32 1.442695, %v2783_v18 }
 0x6f1   : > { %2750 = vmax.xlane.f32.xlu1 %v2749_v46  ;;  %v13862_v46 = vadd.f32 %v2497_v24, %v13429_v52  ;;  %v2752_v56 = vsel %vm951_vm0, %v13857_v4, -inf  ;;  %v2848_v47 = vmul.f32 1.442695, %v2780_v27  ;;  %v2770_v1 = vsel %vm951_vm0, %v13869_v11, -inf }
 0x6f2   : > { %v2713_v19 = vsel %vm951_vm0, %v13850_v29, -inf  ;;  %v13900_v27 = vadd.f32 %v2515_v7, %v13441_v33  ;;  %v2968_v33 = vsel %vm951_vm0, %v13897_v31, 0.0 }
 0x6f3   : > { %10961 = vpow2.f32 %v2848_v47 }
 0x6f4   : > { %2717 = vmax.xlane.f32.xlu0 %v2716_v17  ;;  %v2761_v7 = vsel %vm951_vm0, %v13900_v27, -inf }
 0x6f5   : > { %2744 = vmax.xlane.f32.xlu1 %v2743_v54  ;;  %v2707_v54 = vsel %vm951_vm0, %v13862_v46, -inf }
 0x6f6   : > { %v2640_v0 = vpop.xlane.xlu0 %2639 }
 0x6f7   : > { %v2794_v20 = vsub.f32 %v13538_v35, %v2640_v0 }
 0x6f8   : > { %v2643_v17 = vpop.xlane.xlu1 %2642  ;;  %2759 = vmax.xlane.f32.xlu0 %v2758_v45  ;;  %v2725_v45 = vsel %vm951_vm0, %v13874_v41, -inf }
 0x6f9   : > { %2714 = vmax.xlane.f32.xlu1 %v2713_v19  ;;  %v2876_v35 = vmul.f32 1.442695, %v2794_v20  ;;  %v2974_v19 = vsel %vm951_vm0, %v13884_v48, 0.0  ;;  %v13910_v20 = vpop.eup %10959 }
 0x6fa   : > { %v2634_v6 = vpop.xlane.xlu0 %2633  ;;  %v2986_v52 = vsel %vm951_vm0, %v13910_v20, 0.0 }
 0x6fb   : > { %v2792_v0 = vsub.f32 %v13541_v37, %v2634_v6  ;;  %10963 = vpow2.f32 %v2876_v35  ;;  %v2779_v6 = vsub.f32 %v13451_v9, %v13793_v25  ;;  %v2777_v25 = vsub.f32 %v13444_v3, %v13810_v53 }
 0x6fc   : > { %v13877_v24 = vpop.xlane.xlu1 %2636  ;;  %2753 = vmax.xlane.f32.xlu0 %v2752_v56  ;;  %v2719_v56 = vsel %vm951_vm0, %v13887_v39, -inf }
 0x6fd   : > { %2708 = vmax.xlane.f32.xlu1 %v2707_v54  ;;  %v2795_v54 = vsub.f32 %v13544_v50, %v2643_v17  ;;  %v2872_v37 = vmul.f32 1.442695, %v2792_v0  ;;  %v2846_v17 = vmul.f32 1.442695, %v2779_v6  ;;  %v13923_v35 = vpop.eup %10961  ;;  %v2519_v0 = vmul.f32 0.25, %v13808_v14 }
 0x6fe   : > { %v2652_v62 = vpop.xlane.xlu0 %2651  ;;  %v2781_v6 = vsub.f32 %v13486_v43, %v13847_v57  ;;  %v2793_v57 = vsub.f32 %v13553_v61, %v13877_v24 }
 0x6ff   : > { %v2878_v50 = vmul.f32 1.442695, %v2795_v54  ;;  %10965 = vpow2.f32 %v2872_v37  ;;  %v2798_v9 = vsub.f32 %v13564_v55, %v2652_v62  ;;  %v2842_v62 = vmul.f32 1.442695, %v2777_v25 }
 0x700   : > { %2771 = vmax.xlane.f32.xlu0 %v2770_v1  ;;  %v13892_v22 = vpop.xlane.xlu1 %2654  ;;  %v2516_v1 = vmul.f32 0.25, %v13806_v42  ;;  %v2517_v54 = vmul.f32 0.25, %v13812_v58  ;;  %v2850_v43 = vmul.f32 1.442695, %v2781_v6  ;;  %v2874_v61 = vmul.f32 1.442695, %v2793_v57 }
 0x701   : > { %2726 = vmax.xlane.f32.xlu1 %v2725_v45  ;;  %10967 = vpow2.f32 %v2878_v50  ;;  %v2884_v3 = vmul.f32 1.442695, %v2798_v9  ;;  %v2799_v24 = vsub.f32 %v13572_v15, %v13892_v22 }
 0x702   : > { %v2646_v59 = vpop.xlane.xlu0 %2645  ;;  %v13926_v42 = vadd.f32 %v2516_v1, %v13483_v36  ;;  %10969 = vpow2.f32 %v2846_v17  ;;  %v2980_v36 = vsel %vm951_vm0, %v13923_v35, 0.0  ;;  %v13956_v1 = vadd.f32 %v2517_v54, %v13468_v51 }
 0x703   : > { %v2796_v53 = vsub.f32 %v13569_v26, %v2646_v59  ;;  %10971 = vpow2.f32 %v2884_v3 }
 0x704   : > { %2975 = vadd.xlane.f32.xlu0 %v2974_v19  ;;  %v2649_v47 = vpop.xlane.xlu1 %2648  ;;  %v2755_v19 = vsel %vm951_vm0, %v13913_v10, -inf  ;;  %v2764_v37 = vsel %vm951_vm0, %v13926_v42, -inf  ;;  %10973 = vpow2.f32 %v2842_v62  ;;  %v2767_v25 = vsel %vm951_vm0, %v13956_v1, -inf }
 0x705   : > { %2720 = vmax.xlane.f32.xlu1 %v2719_v56  ;;  %v13938_v14 = vpop.eup %10963  ;;  %v13941_v56 = vadd.f32 %v2519_v0, %v13463_v21  ;;  %v2880_v59 = vmul.f32 1.442695, %v2796_v53  ;;  %v2797_v38 = vsub.f32 %v13581_v34, %v2649_v47 }
 0x706   : > { %v2616_v45 = vpop.xlane.xlu0 %2615  ;;  %v3022_v21 = vsel %vm951_vm0, %v13938_v14, 0.0 }
 0x707   : > { %10975 = vpow2.f32 %v2880_v59  ;;  %v2882_v34 = vmul.f32 1.442695, %v2797_v38  ;;  %v2786_v47 = vsub.f32 %v13590_v13, %v2616_v45 }
 0x708   : > { %2969 = vadd.xlane.f32.xlu0 %v2968_v33  ;;  %v13931_v55 = vpop.xlane.xlu1 %2618  ;;  %10977 = vpow2.f32 %v2854_v23 }
 0x709   : > { %2762 = vmax.xlane.f32.xlu1 %v2761_v7  ;;  %v13953_v58 = vpop.eup %10965  ;;  %v2773_v7 = vsel %vm951_vm0, %v13941_v56, -inf  ;;  %10979 = vpow2.f32 %v2882_v34  ;;  %v2860_v13 = vmul.f32 1.442695, %v2786_v47  ;;  %v2787_v15 = vsub.f32 %v13595_v44, %v13931_v55 }
 0x70a   : > { %v2610_v26 = vpop.xlane.xlu0 %2609  ;;  %v3016_v9 = vsel %vm951_vm0, %v13953_v58, 0.0  ;;  %10981 = vpow2.f32 %v2850_v43 }
 0x70b   : > { %v13965_v51 = vpop.eup %10967  ;;  %v2784_v45 = vsub.f32 %v13601_v63, %v2610_v26  ;;  %10983 = vpow2.f32 %v2860_v13  ;;  %v2862_v44 = vmul.f32 1.442695, %v2787_v15  ;;  %v17170_v15 = vld [vmem:[#allocation54_spill] sm:$0xff] }
 0x70c   : > { %2987 = vadd.xlane.f32.xlu0 %v2986_v52  ;;  %v13949_v33 = vpop.xlane.xlu1 %2612  ;;  %v13969_v17 = vpop.eup %10969  ;;  %v3025_v0 = vsel %vm951_vm0, %v13965_v51, 0.0  ;;  %10985 = vpow2.f32 %v2874_v61 }
 0x70d   : > { %2756 = vmax.xlane.f32.xlu1 %v2755_v19  ;;  %v13976_v19 = vpop.eup %10971  ;;  %v2977_v3 = vsel %vm951_vm0, %v13969_v17, 0.0  ;;  %v2856_v63 = vmul.f32 1.442695, %v2784_v45  ;;  %v2785_v55 = vsub.f32 %v13606_v16, %v13949_v33 }
 0x70e   : > { %v2628_v50 = vpop.xlane.xlu0 %2627  ;;  %v13980_v53 = vpop.eup %10973  ;;  %v3034_v54 = vsel %vm951_vm0, %v13976_v19, 0.0 }
 0x70f   : > { %v2790_v18 = vsub.f32 %v13612_v28, %v2628_v50  ;;  %v2971_v26 = vsel %vm951_vm0, %v13980_v53, 0.0  ;;  %10987 = vpow2.f32 %v2856_v63  ;;  %v2858_v16 = vmul.f32 1.442695, %v2785_v55 }
 0x710   : > { %2981 = vadd.xlane.f32.xlu0 %v2980_v36  ;;  %v2631_v52 = vpop.xlane.xlu1 %2630  ;;  %v2886_v36 = vmul.f32 1.442695, %v2799_v24 }
 0x711   : > { %2765 = vmax.xlane.f32.xlu1 %v2764_v37  ;;  %v13987_v37 = vpop.eup %10975  ;;  %v2868_v28 = vmul.f32 1.442695, %v2790_v18  ;;  %v2791_v33 = vsub.f32 %v13618_v30, %v2631_v52  ;;  %v17169_v52 = vld [vmem:[#allocation53_spill] sm:$0xff] }
 0x712   : > { %v2622_v62 = vpop.xlane.xlu0 %2621  ;;  %v13991_v59 = vpop.eup %10977  ;;  %10989 = vpow2.f32 %v2886_v36 }
 0x713   : > { %v2788_v23 = vsub.f32 %v13624_v49, %v2622_v62  ;;  %v2989_v34 = vsel %vm951_vm0, %v13991_v59, 0.0  ;;  %10991 = vpow2.f32 %v2868_v28  ;;  %v2870_v30 = vmul.f32 1.442695, %v2791_v33 }
 0x714   : > { %3023 = vadd.xlane.f32.xlu0 %v3022_v21  ;;  %v2625_v22 = vpop.xlane.xlu1 %2624  ;;  %v3028_v21 = vsel %vm951_vm0, %v13987_v37, 0.0  ;;  %10993 = vpow2.f32 %v2862_v44 }
 0x715   : > { %2774 = vmax.xlane.f32.xlu1 %v2773_v7  ;;  %v13998_v7 = vpop.eup %10979  ;;  %v2864_v49 = vmul.f32 1.442695, %v2788_v23 }
 0x716   : > { %v14002_v47 = vpop.eup %10981 }
 0x717   : > { %v2983_v13 = vsel %vm951_vm0, %v14002_v47, 0.0  ;;  %10995 = vpow2.f32 %v2864_v49 }
 0x718   : > { %3017 = vadd.xlane.f32.xlu0 %v3016_v9  ;;  %v3031_v9 = vsel %vm951_vm0, %v13998_v7, 0.0  ;;  %10997 = vpow2.f32 %v2858_v16  ;;  %v17173_v16 = vld [vmem:[#allocation57_spill] sm:$0xff] }
 0x719   : > { %2768 = vmax.xlane.f32.xlu1 %v2767_v25  ;;  %v14008_v25 = vpop.eup %10983 }
 0x71a   : > { %v14012_v45 = vpop.eup %10985  ;;  %v2998_v62 = vsel %vm951_vm0, %v14008_v25, 0.0 }
 0x71b   : > { %v14018_v63 = vpop.eup %10987  ;;  %v3019_v18 = vsel %vm951_vm0, %v14012_v45, 0.0 }
 0x71c   : > { %3026 = vadd.xlane.f32.xlu0 %v3025_v0  ;;  %v2789_v0 = vsub.f32 %v17169_v52, %v2625_v22  ;;  %v14022_v36 = vpop.eup %10989  ;;  %v17171_v22 = vld [vmem:[#allocation55_spill] sm:$0xff]  ;;  %v2992_v44 = vsel %vm951_vm0, %v14018_v63, 0.0  ;;  %v17174_v52 = vld [vmem:[#allocation58_spill] sm:$0xff] }
 0x71d   : > { %2978 = vadd.xlane.f32.xlu1 %v2977_v3  ;;  %v14028_v55 = vpop.eup %10991 }
 0x71f   : > { %v2688_v38 = vpop.xlane.xlu0 %2687 }
 0x720   : > { %3035 = vadd.xlane.f32.xlu0 %v3034_v54  ;;  %v2810_v57 = vsub.f32 %v13638_v2, %v2688_v38 }
 0x721   : > { %2972 = vadd.xlane.f32.xlu1 %v2971_v26  ;;  %v2691_v6 = vpop.xlane.xlu1 %2690  ;;  %v2866_v26 = vmul.f32 1.442695, %v2789_v0 }
 0x722   : > { %v2908_v2 = vmul.f32 1.442695, %v2810_v57 }
 0x723   : > { %v2682_v43 = vpop.xlane.xlu0 %2681 }
 0x724   : > { %3029 = vadd.xlane.f32.xlu0 %v3028_v21  ;;  %v2808_v24 = vsub.f32 %v13648_v8, %v2682_v43  ;;  %10999 = vpow2.f32 %v2908_v2  ;;  %v2811_v8 = vsub.f32 %v17170_v15, %v2691_v6  ;;  %v3037_v21 = vsel %vm951_vm0, %v14022_v36, 0.0  ;;  %v17172_v43 = vld [vmem:[#allocation56_spill] sm:$0xff] }
 0x725   : > { %2990 = vadd.xlane.f32.xlu1 %v2989_v34  ;;  %v2685_v50 = vpop.xlane.xlu1 %2684  ;;  %11001 = vpow2.f32 %v2870_v30  ;;  %v14032_v34 = vpop.eup %10993 }
 0x726   : > { %v2904_v54 = vmul.f32 1.442695, %v2808_v24  ;;  %v2809_v38 = vsub.f32 %v17171_v22, %v2685_v50  ;;  %v2910_v6 = vmul.f32 1.442695, %v2811_v8  ;;  %v3001_v2 = vsel %vm951_vm0, %v14032_v34, 0.0 }
 0x727   : > { %v2700_v61 = vpop.xlane.xlu0 %2699 }
 0x728   : > { %3032 = vadd.xlane.f32.xlu0 %v3031_v9  ;;  %11003 = vpow2.f32 %v2904_v54  ;;  %v2814_v49 = vsub.f32 %v17172_v43, %v2700_v61  ;;  %v2906_v57 = vmul.f32 1.442695, %v2809_v38  ;;  %v3010_v9 = vsel %vm951_vm0, %v14028_v55, 0.0 }
 0x729   : > { %2984 = vadd.xlane.f32.xlu1 %v2983_v13  ;;  %v2703_v3 = vpop.xlane.xlu1 %2702  ;;  %11005 = vpow2.f32 %v2866_v26  ;;  %v14038_v13 = vpop.eup %10995 }
 0x72a   : > { %v2815_v33 = vsub.f32 %v17173_v16, %v2703_v3  ;;  %v14042_v24 = vpop.eup %10997  ;;  %11007 = vpow2.f32 %v2910_v6  ;;  %v2916_v61 = vmul.f32 1.442695, %v2814_v49  ;;  %v3004_v8 = vsel %vm951_vm0, %v14038_v13, 0.0 }
 0x72b   : > { %v2694_v28 = vpop.xlane.xlu0 %2693  ;;  %11009 = vpow2.f32 %v2906_v57  ;;  %v2995_v26 = vsel %vm951_vm0, %v14042_v24, 0.0  ;;  %v17179_v57 = vld [vmem:[#allocation65_spill] sm:$0xff] }
 0x72c   : > { %2999 = vadd.xlane.f32.xlu0 %v2998_v62  ;;  %v2812_v0 = vsub.f32 %v17174_v52, %v2694_v28  ;;  %v2918_v3 = vmul.f32 1.442695, %v2815_v33  ;;  %v17175_v62 = vld [vmem:[#allocation59_spill] sm:$0xff]  ;;  %11011 = vpow2.f32 %v2916_v61  ;;  %v17177_v28 = vld [vmem:[#allocation60_spill] sm:$0xff] }
 0x72d   : > { %3020 = vadd.xlane.f32.xlu1 %v3019_v18  ;;  %v2697_v23 = vpop.xlane.xlu1 %2696 }
 0x72e   : > { %v2813_v18 = vsub.f32 %v17175_v62, %v2697_v23  ;;  %v14048_v54 = vpop.eup %10999  ;;  %v2912_v38 = vmul.f32 1.442695, %v2812_v0  ;;  %11013 = vpow2.f32 %v2918_v3 }
 0x72f   : > { %v2664_v30 = vpop.xlane.xlu0 %2663  ;;  %17176 = vst [vmem:[#allocation53_spill] sm:$0xff] %v14048_v54  ;;  %v14052_v22 = vpop.eup %11001  ;;  %v3070_v43 = vsel %vm951_vm0, %v14048_v54, 0.0 }
 0x730   : > { %2993 = vadd.xlane.f32.xlu0 %v2992_v44  ;;  %v2802_v44 = vsub.f32 %v17177_v28, %v2664_v30  ;;  %v3013_v33 = vsel %vm951_vm0, %v14052_v22, 0.0  ;;  %11015 = vpow2.f32 %v2912_v38  ;;  %v17180_v30 = vld [vmem:[#allocation62_spill] sm:$0xff]  ;;  %v17183_v38 = vld [vmem:[#allocation61_spill] sm:$0xff] }
 0x731   : > { %3038 = vadd.xlane.f32.xlu1 %v3037_v21  ;;  %v2667_v50 = vpop.xlane.xlu1 %2666  ;;  %v2914_v21 = vmul.f32 1.442695, %v2813_v18  ;;  %v17181_v18 = vld [vmem:[#allocation67_spill] sm:$0xff] }
 0x732   : > { %v14057_v49 = vpop.eup %11003 }
 0x733   : > { %v2658_v23 = vpop.xlane.xlu0 %2657  ;;  %17178 = vst [vmem:[#allocation54_spill] sm:$0xff] %v14057_v49  ;;  %11017 = vpow2.f32 %v2914_v21  ;;  %v3064_v3 = vsel %vm951_vm0, %v14057_v49, 0.0 }
 0x734   : > { %3011 = vadd.xlane.f32.xlu0 %v3010_v9  ;;  %v14062_v9 = vpop.eup %11005  ;;  %v2800_v61 = vsub.f32 %v17180_v30, %v2658_v23 }
 0x735   : > { %3002 = vadd.xlane.f32.xlu1 %v3001_v2  ;;  %v2661_v15 = vpop.xlane.xlu1 %2660  ;;  %v2892_v2 = vmul.f32 1.442695, %v2802_v44  ;;  %v14067_v62 = vpop.eup %11007  ;;  %v2803_v44 = vsub.f32 %v17183_v38, %v2667_v50 }
 0x736   : > { %v14072_v28 = vpop.eup %11009  ;;  %v2888_v21 = vmul.f32 1.442695, %v2800_v61 }
 0x737   : > { %17182 = vst [vmem:[#allocation55_spill] sm:$0xff] %v14072_v28  ;;  %11019 = vpow2.f32 %v2892_v2  ;;  %v2894_v30 = vmul.f32 1.442695, %v2803_v44  ;;  %v17186_v2 = vld [vmem:[#allocation63_spill] sm:$0xff] }
 0x738   : > { %3005 = vadd.xlane.f32.xlu0 %v3004_v8  ;;  %v2801_v50 = vsub.f32 %v17186_v2, %v2661_v15 }
 0x739   : > { %2996 = vadd.xlane.f32.xlu1 %v2995_v26  ;;  %v2679_v6 = vpop.xlane.xlu1 %2678  ;;  %v3007_v26 = vsel %vm951_vm0, %v14062_v9, 0.0 }
 0x73a   : > { %v2807_v16 = vsub.f32 %v17179_v57, %v2679_v6  ;;  %v3073_v6 = vsel %vm951_vm0, %v14067_v62, 0.0  ;;  %v3067_v57 = vsel %vm951_vm0, %v14072_v28, 0.0 }
 0x73c   : > { %3071 = vadd.xlane.f32.xlu0 %v3070_v43  ;;  %v2902_v52 = vmul.f32 1.442695, %v2807_v16  ;;  %v14077_v43 = vpop.eup %11011 }
 0x73d   : > { %3014 = vadd.xlane.f32.xlu1 %v3013_v33  ;;  %v2673_v0 = vpop.xlane.xlu1 %2672  ;;  %17184 = vst [vmem:[#allocation56_spill] sm:$0xff] %v14077_v43  ;;  %v14081_v16 = vpop.eup %11013  ;;  %v3082_v61 = vsel %vm951_vm0, %v14077_v43, 0.0  ;;  %v17203_v43 = vld [vmem:[#allocation80_spill] sm:$0xff] }
 0x73e   : > { %v2805_v8 = vsub.f32 %v17181_v18, %v2673_v0  ;;  %11021 = vpow2.f32 %v2902_v52  ;;  %17185 = vst [vmem:[#allocation57_spill] sm:$0xff] %v14081_v16  ;;  %v2676_v33 = vpop.xlane.xlu0 %2675  ;;  %v14086_v52 = vpop.eup %11015  ;;  %v3085_v0 = vsel %vm951_vm0, %v14081_v16, 0.0  ;;  %v2890_v18 = vmul.f32 1.442695, %v2801_v50 }
 0x73f   : > { %11023 = vpow2.f32 %v2888_v21  ;;  %17187 = vst [vmem:[#allocation58_spill] sm:$0xff] %v14086_v52  ;;  %v3076_v15 = vsel %vm951_vm0, %v14086_v52, 0.0 }
 0x740   : > { %3065 = vadd.xlane.f32.xlu0 %v3064_v3  ;;  %v2898_v23 = vmul.f32 1.442695, %v2805_v8  ;;  %v14090_v3 = vpop.eup %11017  ;;  %v17189_v8 = vld [vmem:[#allocation64_spill] sm:$0xff] }
 0x741   : > { %3008 = vadd.xlane.f32.xlu1 %v3007_v26  ;;  %17188 = vst [vmem:[#allocation59_spill] sm:$0xff] %v14090_v3  ;;  %v2806_v26 = vsub.f32 %v17189_v8, %v2676_v33  ;;  %v14095_v44 = vpop.eup %11019  ;;  %v3079_v21 = vsel %vm951_vm0, %v14090_v3, 0.0 }
 0x742   : > { %11025 = vpow2.f32 %v2898_v23  ;;  %v2670_v38 = vpop.xlane.xlu0 %2669  ;;  %17190 = vst [vmem:[#allocation60_spill] sm:$0xff] %v14095_v44  ;;  %v3046_v33 = vsel %vm951_vm0, %v14095_v44, 0.0 }
 0x743   : > { %11027 = vpow2.f32 %v2894_v30 }
 0x744   : > { %3074 = vadd.xlane.f32.xlu0 %v3073_v6  ;;  %11029 = vpow2.f32 %v2890_v18  ;;  %v2900_v6 = vmul.f32 1.442695, %v2806_v26 }
 0x745   : > { %3068 = vadd.xlane.f32.xlu1 %v3067_v57  ;;  %v17192_v57 = vld [vmem:[#allocation66_spill] sm:$0xff] }
 0x746   : > { %v2804_v30 = vsub.f32 %v17192_v57, %v2670_v38  ;;  %11031 = vpow2.f32 %v2900_v6 }
 0x748   : > { %3083 = vadd.xlane.f32.xlu0 %v3082_v61  ;;  %v14099_v23 = vpop.eup %11021 }
 0x749   : > { %3086 = vadd.xlane.f32.xlu1 %v3085_v0  ;;  %17191 = vst [vmem:[#allocation65_spill] sm:$0xff] %v14099_v23  ;;  %v14104_v2 = vpop.eup %11023  ;;  %v3061_v50 = vsel %vm951_vm0, %v14099_v23, 0.0  ;;  %v2896_v0 = vmul.f32 1.442695, %v2804_v30 }
 0x74a   : > { %17193 = vst [vmem:[#allocation62_spill] sm:$0xff] %v14104_v2  ;;  %v3040_v18 = vsel %vm951_vm0, %v14104_v2, 0.0 }
 0x74b   : > { %11033 = vpow2.f32 %v2896_v0  ;;  %v17199_v0 = vld [vmem:[#allocation74_spill] sm:$0xff] }
 0x74c   : > { %3077 = vadd.xlane.f32.xlu0 %v3076_v15  ;;  %v14108_v61 = vpop.eup %11025 }
 0x74d   : > { %3080 = vadd.xlane.f32.xlu1 %v3079_v21  ;;  %17194 = vst [vmem:[#allocation67_spill] sm:$0xff] %v14108_v61  ;;  %v14112_v8 = vpop.eup %11027  ;;  %v3055_v26 = vsel %vm951_vm0, %v14108_v61, 0.0 }
 0x74e   : > { %17195 = vst [vmem:[#allocation61_spill] sm:$0xff] %v14112_v8  ;;  %v3049_v38 = vsel %vm951_vm0, %v14112_v8, 0.0  ;;  %v14118_v15 = vpop.eup %11029  ;;  %v17202_v8 = vld [vmem:[#allocation77_spill] sm:$0xff] }
 0x74f   : > { %17196 = vst [vmem:[#allocation63_spill] sm:$0xff] %v14118_v15  ;;  %v3043_v21 = vsel %vm951_vm0, %v14118_v15, 0.0 }
 0x750   : > { %3047 = vadd.xlane.f32.xlu0 %v3046_v33  ;;  %v14122_v6 = vpop.eup %11031 }
 0x751   : > { %3062 = vadd.xlane.f32.xlu1 %v3061_v50  ;;  %17197 = vst [vmem:[#allocation64_spill] sm:$0xff] %v14122_v6  ;;  %v3058_v57 = vsel %vm951_vm0, %v14122_v6, 0.0 }
 0x754   : > { %3041 = vadd.xlane.f32.xlu0 %v3040_v18 }
 0x755   : > { %3056 = vadd.xlane.f32.xlu1 %v3055_v26  ;;  %v14126_v30 = vpop.eup %11033 }
 0x756   : > { %17198 = vst [vmem:[#allocation66_spill] sm:$0xff] %v14126_v30  ;;  %v3052_v33 = vsel %vm951_vm0, %v14126_v30, 0.0 }
 0x758   : > { %3050 = vadd.xlane.f32.xlu0 %v3049_v38  ;;  %v17200_v38 = vld [vmem:[#allocation75_spill] sm:$0xff] }
 0x75c   : > { %3044 = vadd.xlane.f32.xlu0 %v3043_v21  ;;  %v17201_v21 = vld [vmem:[#allocation78_spill] sm:$0xff] }
 0x760   : > { %3059 = vadd.xlane.f32.xlu0 %v3058_v57 }
 0x764   : > { %3053 = vadd.xlane.f32.xlu0 %v3052_v33 }
 0x76d   : > { %v2736_v50 = vpop.xlane.xlu0 %2735 }
 0x76e   : > { %v2826_v18 = vsub.f32 %v17199_v0, %v2736_v50  ;;  %v2730_v26 = vpop.xlane.xlu1 %2729 }
 0x76f   : > { %v2824_v23 = vsub.f32 %v17200_v38, %v2730_v26 }
 0x770   : > { %v2940_v61 = vmul.f32 1.442695, %v2826_v18 }
 0x771   : > { %v2936_v44 = vmul.f32 1.442695, %v2824_v23  ;;  %v2733_v15 = vpop.xlane.xlu0 %2732 }
 0x772   : > { %11035 = vpow2.f32 %v2940_v61  ;;  %v2825_v2 = vsub.f32 %v17201_v21, %v2733_v15  ;;  %v2739_v6 = vpop.xlane.xlu1 %2738  ;;  %v17205_v15 = vld [vmem:[#allocation79_spill] sm:$0xff] }
 0x773   : > { %v2827_v3 = vsub.f32 %v17202_v8, %v2739_v6  ;;  %11037 = vpow2.f32 %v2936_v44 }
 0x774   : > { %v2938_v57 = vmul.f32 1.442695, %v2825_v2 }
 0x775   : > { %v2942_v16 = vmul.f32 1.442695, %v2827_v3  ;;  %v2712_v30 = vpop.xlane.xlu0 %2711 }
 0x776   : > { %11039 = vpow2.f32 %v2938_v57  ;;  %v2748_v33 = vpop.xlane.xlu1 %2747  ;;  %v2818_v38 = vsub.f32 %v17205_v15, %v2712_v30 }
 0x777   : > { %v2830_v50 = vsub.f32 %v17203_v43, %v2748_v33  ;;  %11041 = vpow2.f32 %v2942_v16 }
 0x778   : > { %v2924_v21 = vmul.f32 1.442695, %v2818_v38 }
 0x779   : > { %v2948_v0 = vmul.f32 1.442695, %v2830_v50  ;;  %v2706_v26 = vpop.xlane.xlu0 %2705 }
 0x77a   : > { %v2742_v18 = vpop.xlane.xlu1 %2741 }
 0x77b   : > { %v2828_v23 = vsub.f32 %v13804_v12, %v2742_v18  ;;  %11043 = vpow2.f32 %v2948_v0  ;;  %v17208_v12 = vld [vmem:[#allocation82_spill] sm:$0xff] }
 0x77c   : > { %v14136_v61 = vpop.eup %11035  ;;  %v2816_v57 = vsub.f32 %v17208_v12, %v2706_v26  ;;  %v17210_v26 = vld [vmem:[#allocation83_spill] sm:$0xff] }
 0x77d   : > { %17204 = vst [vmem:[#allocation74_spill] sm:$0xff] %v14136_v61  ;;  %v2944_v8 = vmul.f32 1.442695, %v2828_v23  ;;  %v2724_v44 = vpop.xlane.xlu0 %2723  ;;  %v3118_v3 = vsel %vm951_vm0, %v14136_v61, 0.0  ;;  %v14141_v2 = vpop.eup %11037 }
 0x77e   : > { %17206 = vst [vmem:[#allocation75_spill] sm:$0xff] %v14141_v2  ;;  %v2751_v6 = vpop.xlane.xlu1 %2750  ;;  %3119 = vadd.xlane.f32.xlu0 %v3118_v3  ;;  %v3112_v50 = vsel %vm951_vm0, %v14141_v2, 0.0  ;;  %v2920_v15 = vmul.f32 1.442695, %v2816_v57  ;;  %v2822_v38 = vsub.f32 %v17210_v26, %v2724_v44 }
 0x77f   : > { %v2831_v43 = vsub.f32 %v13821_v32, %v2751_v6  ;;  %11045 = vpow2.f32 %v2944_v8 }
 0x780   : > { %v14144_v16 = vpop.eup %11039 }
 0x781   : > { %17207 = vst [vmem:[#allocation78_spill] sm:$0xff] %v14144_v16  ;;  %v2950_v33 = vmul.f32 1.442695, %v2831_v43  ;;  %v2718_v30 = vpop.xlane.xlu0 %2717  ;;  %v3115_v0 = vsel %vm951_vm0, %v14144_v16, 0.0  ;;  %v14151_v18 = vpop.eup %11041 }
 0x782   : > { %17209 = vst [vmem:[#allocation77_spill] sm:$0xff] %v14151_v18  ;;  %v2745_v23 = vpop.xlane.xlu1 %2744  ;;  %3113 = vadd.xlane.f32.xlu0 %v3112_v50  ;;  %3116 = vadd.xlane.f32.xlu1 %v3115_v0  ;;  %v3121_v6 = vsel %vm951_vm0, %v14151_v18, 0.0 }
 0x783   : > { %11047 = vpow2.f32 %v2950_v33  ;;  %v2829_v32 = vsub.f32 %v13836_v5, %v2745_v23  ;;  %v2932_v33 = vmul.f32 1.442695, %v2822_v38  ;;  %v2820_v5 = vsub.f32 %v13830_v60, %v2718_v30 }
 0x784   : > { %11049 = vpow2.f32 %v2924_v21 }
 0x785   : > { %v2946_v8 = vmul.f32 1.442695, %v2829_v32  ;;  %v14155_v3 = vpop.xlane.xlu0 %2759  ;;  %v14159_v43 = vpop.eup %11043  ;;  %v2928_v26 = vmul.f32 1.442695, %v2820_v5 }
 0x786   : > { %17211 = vst [vmem:[#allocation80_spill] sm:$0xff] %v14159_v43  ;;  %v2715_v12 = vpop.xlane.xlu1 %2714  ;;  %3122 = vadd.xlane.f32.xlu0 %v3121_v6  ;;  %v3130_v44 = vsel %vm951_vm0, %v14159_v43, 0.0 }
 0x787   : > { %11051 = vpow2.f32 %v2946_v8  ;;  %v2819_v50 = vsub.f32 %v13850_v29, %v2715_v12 }
 0x788   : > { %11053 = vpow2.f32 %v2920_v15 }
 0x789   : > { %v2926_v21 = vmul.f32 1.442695, %v2819_v50  ;;  %v14163_v57 = vpop.xlane.xlu0 %2753  ;;  %v14167_v0 = vpop.eup %11045 }
 0x78a   : > { %17212 = vst [vmem:[#allocation79_spill] sm:$0xff] %v14167_v0  ;;  %v2709_v23 = vpop.xlane.xlu1 %2708  ;;  %3131 = vadd.xlane.f32.xlu0 %v3130_v44  ;;  %v3124_v60 = vsel %vm951_vm0, %v14167_v0, 0.0 }
 0x78b   : > { %11055 = vpow2.f32 %v2926_v21  ;;  %v2817_v32 = vsub.f32 %v13862_v46, %v2709_v23 }
 0x78c   : > { %11057 = vpow2.f32 %v2932_v33 }
 0x78d   : > { %v14170_v29 = vpop.eup %11047  ;;  %v2922_v15 = vmul.f32 1.442695, %v2817_v32  ;;  %v14172_v38 = vpop.xlane.xlu0 %2771 }
 0x78e   : > { %17213 = vst [vmem:[#allocation82_spill] sm:$0xff] %v14170_v29  ;;  %v14176_v30 = vpop.eup %11049  ;;  %v14178_v8 = vpop.xlane.xlu1 %2726  ;;  %3125 = vadd.xlane.f32.xlu0 %v3124_v60  ;;  %v3133_v6 = vsel %vm951_vm0, %v14170_v29, 0.0 }
 0x78f   : > { %17214 = vst [vmem:[#allocation83_spill] sm:$0xff] %v14176_v30  ;;  %11059 = vpow2.f32 %v2922_v15  ;;  %3134 = vadd.xlane.f32.xlu1 %v3133_v6  ;;  %v3094_v50 = vsel %vm951_vm0, %v14176_v30, 0.0 }
 0x790   : > { %11061 = vpow2.f32 %v2928_v26 }
 0x791   : > { %v14182_v46 = vpop.eup %11051  ;;  %v2976_v12 = vpop.xlane.xlu0 %2975 }
 0x792   : > { %17215 = vst [vmem:[#allocation84_spill] sm:$0xff] %v14182_v46  ;;  %v14186_v33 = vpop.eup %11053  ;;  %v14188_v5 = vpop.xlane.xlu1 %2720  ;;  %3095 = vadd.xlane.f32.xlu0 %v3094_v50  ;;  %v3127_v21 = vsel %vm951_vm0, %v14182_v46, 0.0 }
 0x793   : > { %17216 = vst [vmem:[#allocation85_spill] sm:$0xff] %v14186_v33  ;;  %3128 = vadd.xlane.f32.xlu1 %v3127_v21  ;;  %v3088_v32 = vsel %vm951_vm0, %v14186_v33, 0.0 }
 0x795   : > { %v14192_v44 = vpop.eup %11055  ;;  %v2970_v23 = vpop.xlane.xlu0 %2969 }
 0x796   : > { %17217 = vst [vmem:[#allocation86_spill] sm:$0xff] %v14192_v44  ;;  %v14196_v26 = vpop.eup %11057  ;;  %v14198_v15 = vpop.xlane.xlu1 %2762  ;;  %3089 = vadd.xlane.f32.xlu0 %v3088_v32  ;;  %v3097_v60 = vsel %vm951_vm0, %v14192_v44, 0.0 }
 0x797   : > { %17218 = vst [vmem:[#allocation87_spill] sm:$0xff] %v14196_v26  ;;  %3098 = vadd.xlane.f32.xlu1 %v3097_v60  ;;  %v3106_v21 = vsel %vm951_vm0, %v14196_v26, 0.0 }
 0x799   : > { %v14202_v6 = vpop.eup %11059  ;;  %v2988_v50 = vpop.xlane.xlu0 %2987 }
 0x79a   : > { %17219 = vst [vmem:[#allocation88_spill] sm:$0xff] %v14202_v6  ;;  %v14206_v43 = vpop.eup %11061  ;;  %v14208_v29 = vpop.xlane.xlu1 %2756  ;;  %3107 = vadd.xlane.f32.xlu0 %v3106_v21  ;;  %v3091_v0 = vsel %vm951_vm0, %v14202_v6, 0.0  ;;  %v17221_v21 = vld [vmem:[#allocation48_spill] sm:$0xff] }
 0x79b   : > { %17220 = vst [vmem:[#allocation89_spill] sm:$0xff] %v14206_v43  ;;  %3092 = vadd.xlane.f32.xlu1 %v3091_v0  ;;  %v3100_v61 = vsel %vm951_vm0, %v14206_v43, 0.0  ;;  %v17222_v43 = vld [vmem:[#allocation47_spill] sm:$0xff] }
 0x79d   : > { %v2982_v32 = vpop.xlane.xlu0 %2981 }
 0x79e   : > { %v14214_v60 = vpop.xlane.xlu1 %2765  ;;  %3101 = vadd.xlane.f32.xlu0 %v3100_v61 }
 0x7a1   : > { %v3024_v46 = vpop.xlane.xlu0 %3023 }
 0x7a2   : > { %v14216_v18 = vpop.xlane.xlu1 %2774 }
 0x7a5   : > { %v3018_v26 = vpop.xlane.xlu0 %3017 }
 0x7a6   : > { %v14218_v30 = vpop.xlane.xlu1 %2768 }
 0x7a9   : > { %v3027_v33 = vpop.xlane.xlu0 %3026 }
 0x7aa   : > { %v2979_v44 = vpop.xlane.xlu1 %2978 }
 0x7ab   : > { %11063 = vrcp.f32 %v2979_v44 }
 0x7ac   : > { %1613 = vrot.lane.b32.xlu1 %v17221_v21, %s12162_s5  ;;  %11065 = vrcp.f32 %v2970_v23 }
 0x7ad   : > { %v3036_v0 = vpop.xlane.xlu0 %3035  ;;  %11067 = vrcp.f32 %v2976_v12 }
 0x7ae   : > { %v2973_v6 = vpop.xlane.xlu1 %2972 }
 0x7af   : > { %11069 = vrcp.f32 %v2973_v6  ;;  %v2834_v6 = vsub.f32 %v13843_v40, %v14155_v3  ;;  %v2838_v40 = vsub.f32 %v13869_v11, %v14172_v38  ;;  %v2823_v11 = vsub.f32 %v13874_v41, %v14178_v8  ;;  %v17224_v38 = vld [vmem:[#allocation49_spill] sm:$0xff] }
 0x7b0   : > { %1635 = vrot.lane.b32.xlu1 %v17222_v43, %s12161_s0  ;;  %11071 = vrcp.f32 %v2988_v50 }
 0x7b1   : > { %v3030_v61 = vpop.xlane.xlu0 %3029  ;;  %v2956_v49 = vmul.f32 1.442695, %v2834_v6 }
 0x7b2   : > { %v2991_v2 = vpop.xlane.xlu1 %2990 }
 0x7b3   : > { %11073 = vrcp.f32 %v2991_v2  ;;  %v2832_v2 = vsub.f32 %v13857_v4, %v14163_v57 }
 0x7b4   : > { %1637 = vrot.lane.b32.xlu1 %v17221_v21, %s12161_s0  ;;  %1611 = vrot.lane.b32.xlu0 %v17222_v43, %s12162_s5  ;;  %11075 = vrcp.f32 %v2982_v32 }
 0x7b5   : > { %v3033_v44 = vpop.xlane.xlu0 %3032  ;;  %v11064_v23 = vpop.eup %11063  ;;  %11077 = vrcp.f32 %v3024_v46  ;;  %v2952_v57 = vmul.f32 1.442695, %v2832_v2 }
 0x7b6   : > { %v2985_v12 = vpop.xlane.xlu1 %2984  ;;  %v11066_v16 = vpop.eup %11065  ;;  %v3227_v21 = vmul.f32 %v11064_v23, %v13969_v17 }
 0x7b7   : > { %11079 = vrcp.f32 %v2985_v12  ;;  %v11068_v52 = vpop.eup %11067  ;;  %v3224_v46 = vmul.f32 %v11066_v16, %v13897_v31  ;;  %v2835_v12 = vsub.f32 %v13900_v27, %v14198_v15 }
 0x7b8   : > { %11081 = vrcp.f32 %v3027_v33  ;;  %v3226_v3 = vmul.f32 %v11068_v52, %v13884_v48  ;;  %v17223_v48 = vld [vmem:[#allocation43_spill] sm:$0xff]  ;;  %v2821_v52 = vsub.f32 %v13887_v39, %v14188_v5  ;;  %v2836_v39 = vsub.f32 %v13926_v42, %v14214_v60 }
 0x7b9   : > { %v11070_v50 = vpop.eup %11069  ;;  %11083 = vrcp.f32 %v3018_v26  ;;  %v3000_v54 = vpop.xlane.xlu0 %2999 }
 0x7ba   : > { %11085 = vrcp.f32 %v3033_v44  ;;  %v3021_v32 = vpop.xlane.xlu1 %3020  ;;  %v3225_v28 = vmul.f32 %v11070_v50, %v13980_v53  ;;  %v11072_v4 = vpop.eup %11071  ;;  %v3289_v26 = vpack.c.bf16 %v3227_v21, %v3226_v3  ;;  %v2964_v53 = vmul.f32 1.442695, %v2838_v40 }
 0x7bb   : > { %11087 = vrcp.f32 %v3021_v32  ;;  %v3230_v5 = vmul.f32 %v11072_v4, %v13910_v20  ;;  %v2934_v32 = vmul.f32 1.442695, %v2823_v11  ;;  %v2930_v15 = vmul.f32 1.442695, %v2821_v52 }
 0x7bc   : > { %11089 = vrcp.f32 %v3030_v61  ;;  %v3288_v33 = vpack.c.bf16 %v3225_v28, %v3224_v46  ;;  %v2958_v3 = vmul.f32 1.442695, %v2835_v12  ;;  %v2833_v52 = vsub.f32 %v13913_v10, %v14208_v29 }
 0x7bd   : > { %v2994_v17 = vpop.xlane.xlu0 %2993  ;;  %v11074_v23 = vpop.eup %11073  ;;  %11091 = vpow2.f32 %v2956_v49  ;;  %v2839_v10 = vsub.f32 %v13941_v56, %v14216_v18 }
 0x7be   : > { %v3039_v44 = vpop.xlane.xlu1 %3038  ;;  %9810 = vmatprep.mubr.msk.bf16.mxu0 %vm951_vm0, %v3288_v33  ;;  %v11076_v31 = vpop.eup %11075  ;;  %v3231_v49 = vmul.f32 %v11074_v23, %v13991_v59  ;;  %v2960_v33 = vmul.f32 1.442695, %v2836_v39 }
 0x7bf   : > { %9811 = vmatmul.mubr.msk.bf16.vlgmr.msra.gmra.mrb[56].mxu0 %vm951_vm0, %v3289_v26  ;;  %v11078_v16 = vpop.eup %11077  ;;  %11093 = vrcp.f32 %v3039_v44  ;;  %v3228_v8 = vmul.f32 %v11076_v31, %v13923_v35  ;;  %v17225_v35 = vld [vmem:[#allocation50_spill] sm:$0xff] }
 0x7c0   : > { %9819 = vmatpush3.bf16.msra.mxu0 %v17223_v48  ;;  %11095 = vpow2.f32 %v2952_v57  ;;  %v3291_v46 = vpack.c.bf16 %v3231_v49, %v3230_v5  ;;  %v3242_v4 = vmul.f32 %v11078_v16, %v13938_v14 }
 0x7c1   : > { %v11080_v28 = vpop.eup %11079  ;;  %9820 = vmatprep.subr.bf16.mxu0 %v17224_v38  ;;  %v14246_v21 = vpop.xlane.xlu0 %3011  ;;  %11097 = vrcp.f32 %v3036_v0 }
 0x7c2   : > { %v11082_v61 = vpop.eup %11081  ;;  %v3003_v41 = vpop.xlane.xlu1 %3002  ;;  %v3229_v6 = vmul.f32 %v11080_v28, %v14002_v47  ;;  %11099 = vpow2.f32 %v2964_v53  ;;  %v17227_v53 = vld [vmem:[#allocation45_spill] sm:$0xff] }
 0x7c3   : > { %v11084_v50 = vpop.eup %11083  ;;  %11101 = vrcp.f32 %v3003_v41  ;;  %v3243_v0 = vmul.f32 %v11082_v61, %v13965_v51 }
 0x7c4   : > { %v11086_v2 = vpop.eup %11085  ;;  %9821 = vmatpush3.bf16.msra.mxu0 %v17224_v38  ;;  %v3290_v59 = vpack.c.bf16 %v3229_v6, %v3228_v8  ;;  %11103 = vrcp.f32 %v2994_v17  ;;  %v3240_v20 = vmul.f32 %v11084_v50, %v13953_v58  ;;  %v17226_v17 = vld [vmem:[#allocation51_spill] sm:$0xff]  ;;  %v17229_v38 = vld [vmem:[#allocation70_spill] sm:$0xff] }
 0x7c5   : > { %v11088_v27 = vpop.eup %11087  ;;  %9822 = vmatprep.subr.bf16.mxu0 %v17225_v35  ;;  %v3006_v47 = vpop.xlane.xlu0 %3005  ;;  %11105 = vrcp.f32 %v3000_v54  ;;  %v3245_v51 = vmul.f32 %v11086_v2, %v13998_v7  ;;  %v3297_v26 = vpack.c.bf16 %v3243_v0, %v3242_v4 }
 0x7c6   : > { %v11090_v40 = vpop.eup %11089  ;;  %v2997_v42 = vpop.xlane.xlu1 %2996  ;;  %9814 = vmatprep.mubr.msk.bf16.mxu0 %vm951_vm0, %v3290_v59  ;;  %v3241_v60 = vmul.f32 %v11088_v27, %v14012_v45 }
 0x7c7   : > { %11107 = vrcp.f32 %v2997_v42  ;;  %9815 = vmatmul.mubr.msk.bf16.gmra.mrb[60].mxu0 %vm951_vm0, %v3291_v46  ;;  %v14266_v54 = vpop.eup %11091  ;;  %v3244_v45 = vmul.f32 %v11090_v40, %v13987_v37  ;;  %v17228_v37 = vld [vmem:[#allocation44_spill] sm:$0xff]  ;;  %v2837_v40 = vsub.f32 %v13956_v1, %v14218_v30 }
 0x7c8   : > { %11109 = vpow2.f32 %v2934_v32  ;;  %9823 = vmatpush3.bf16.msra.mxu0 %v17225_v35  ;;  %v3296_v57 = vpack.c.bf16 %v3241_v60, %v3240_v20  ;;  %v17232_v60 = vld [vmem:[#allocation52_spill] sm:$0xff] }
 0x7c9   : > { %11111 = vpow2.f32 %v2930_v15  ;;  %9824 = vmatprep.subr.bf16.mxu0 %v17226_v17  ;;  %v3072_v58 = vpop.xlane.xlu0 %3071  ;;  %v11094_v23 = vpop.eup %11093  ;;  %v3298_v7 = vpack.c.bf16 %v3245_v51, %v3244_v45  ;;  %v2966_v15 = vmul.f32 1.442695, %v2839_v10 }
 0x7ca   : > { %11113 = vpow2.f32 %v2958_v3  ;;  %v3015_v14 = vpop.xlane.xlu1 %3014  ;;  %9842 = vmatprep.mubr.msk.bf16.mxu1 %vm951_vm0, %v3296_v57  ;;  %v14271_v44 = vpop.eup %11095  ;;  %v3247_v48 = vmul.f32 %v11094_v23, %v14022_v36  ;;  %v3142_v36 = vsel %vm951_vm0, %v14266_v54, 0.0 }
 0x7cb   : > { %11115 = vpow2.f32 %v2960_v33  ;;  %9843 = vmatmul.mubr.msk.bf16.vlgmr.msra.gmra.mrb[40].mxu1 %vm951_vm0, %v3297_v26  ;;  %v11098_v31 = vpop.eup %11097 }
 0x7cc   : > { %11117 = vrcp.f32 %v3015_v14  ;;  %9825 = vmatpush3.bf16.msra.mxu0 %v17226_v17  ;;  %9867 = vmatpush3.bf16.msra.mxu1 %v17227_v53  ;;  %v14276_v16 = vpop.eup %11099  ;;  %v3246_v12 = vmul.f32 %v11098_v31, %v13976_v19  ;;  %v2954_v19 = vmul.f32 1.442695, %v2833_v52  ;;  %v17236_v52 = vld [vmem:[#allocation53_spill] sm:$0xff] }
 0x7cd   : > { %11119 = vrcp.f32 %v3006_v47  ;;  %9846 = vmatprep.mubr.msk.bf16.mxu1 %vm951_vm0, %v3298_v7  ;;  %9850 = vmatprep.subr.bf16.mxu0 %v17228_v37  ;;  %v3066_v11 = vpop.xlane.xlu0 %3065  ;;  %v11102_v28 = vpop.eup %11101  ;;  %v3154_v51 = vsel %vm951_vm0, %v14276_v16, 0.0 }
 0x7ce   : > { %11121 = vrcp.f32 %v14246_v21  ;;  %9868 = vmatprep.subr.bf16.mxu1 %v17229_v38  ;;  %v3009_v49 = vpop.xlane.xlu1 %3008  ;;  %v11104_v61 = vpop.eup %11103  ;;  %v3235_v29 = vmul.f32 %v11102_v28, %v14032_v34  ;;  %v17230_v21 = vld [vmem:[#allocation73_spill] sm:$0xff]  ;;  %v3299_v50 = vpack.c.bf16 %v3247_v48, %v3246_v12  ;;  %v17235_v48 = vld [vmem:[#allocation55_spill] sm:$0xff] }
 0x7cf   : > { %11123 = vrcp.f32 %v3009_v49  ;;  %v11106_v41 = vpop.eup %11105  ;;  %v3232_v2 = vmul.f32 %v11104_v61, %v14018_v63  ;;  %v17231_v63 = vld [vmem:[#allocation72_spill] sm:$0xff] }
 0x7d0   : > { %11125 = vrcp.f32 %v3072_v58  ;;  %9869 = vmatpush3.bf16.msra.mxu1 %v17229_v38  ;;  %v3234_v56 = vmul.f32 %v11106_v41, %v14008_v25  ;;  %v3136_v25 = vsel %vm951_vm0, %v14271_v44, 0.0  ;;  %v2962_v58 = vmul.f32 1.442695, %v2837_v40 }
 0x7d1   : > { %v11108_v8 = vpop.eup %11107  ;;  %11127 = vrcp.f32 %v3066_v11  ;;  %9870 = vmatprep.subr.bf16.mxu1 %v17230_v21  ;;  %v3075_v6 = vpop.xlane.xlu0 %3074 }
 0x7d2   : > { %v14293_v39 = vpop.eup %11109  ;;  %11129 = vrcp.f32 %v3075_v6  ;;  %v3069_v5 = vpop.xlane.xlu1 %3068  ;;  %v3233_v32 = vmul.f32 %v11108_v8, %v14042_v24  ;;  %v3293_v0 = vpack.c.bf16 %v3235_v29, %v3234_v56  ;;  %v17240_v56 = vld [vmem:[#allocation56_spill] sm:$0xff] }
 0x7d3   : > { %v14297_v59 = vpop.eup %11111  ;;  %11131 = vrcp.f32 %v3069_v5  ;;  %3143 = vadd.xlane.f32.xlu0 %v3142_v36  ;;  %9847 = vmatmul.mubr.msk.bf16.gmra.mrb[44].mxu1 %vm951_vm0, %v3299_v50  ;;  %v3109_v42 = vsel %vm951_vm0, %v14293_v39, 0.0  ;;  %v17237_v36 = vld [vmem:[#allocation69_spill] sm:$0xff] }
 0x7d4   : > { %v14301_v34 = vpop.eup %11113  ;;  %9871 = vmatpush3.bf16.msra.mxu1 %v17230_v21  ;;  %v3292_v18 = vpack.c.bf16 %v3233_v32, %v3232_v2  ;;  %11133 = vpow2.f32 %v2954_v19  ;;  %v17238_v19 = vld [vmem:[#allocation46_spill] sm:$0xff] }
 0x7d5   : > { %v14304_v27 = vpop.eup %11115  ;;  %9872 = vmatprep.subr.bf16.mxu1 %v17231_v63  ;;  %v3084_v24 = vpop.xlane.xlu0 %3083  ;;  %v3145_v49 = vsel %vm951_vm0, %v14301_v34, 0.0  ;;  %v17239_v2 = vld [vmem:[#allocation58_spill] sm:$0xff] }
 0x7d6   : > { %v11118_v35 = vpop.eup %11117  ;;  %v3087_v47 = vpop.xlane.xlu1 %3086  ;;  %9826 = vmatprep.mubr.msk.bf16.mxu0 %vm951_vm0, %v3292_v18  ;;  %11135 = vrcp.f32 %v3084_v24 }
 0x7d7   : > { %v11120_v46 = vpop.eup %11119  ;;  %3137 = vadd.xlane.f32.xlu0 %v3136_v25  ;;  %9827 = vmatmul.mubr.msk.bf16.vlgmr.msra.gmra.mrb[64].mxu0 %vm951_vm0, %v3293_v0  ;;  %11137 = vrcp.f32 %v3087_v47  ;;  %v3239_v1 = vmul.f32 %v11118_v35, %v14052_v22  ;;  %v3103_v22 = vsel %vm951_vm0, %v14297_v59, 0.0 }
 0x7d8   : > { %v11122_v3 = vpop.eup %11121  ;;  %9851 = vmatpush3.bf16.msra.mxu0 %v17228_v37  ;;  %9873 = vmatpush3.bf16.msra.mxu1 %v17231_v63  ;;  %11139 = vpow2.f32 %v2966_v15  ;;  %v3236_v57 = vmul.f32 %v11120_v46, %v14038_v13  ;;  %v17233_v13 = vld [vmem:[#allocation68_spill] sm:$0xff]  ;;  %v17234_v37 = vld [vmem:[#allocation54_spill] sm:$0xff]  ;;  %v17241_v15 = vld [vmem:[#allocation57_spill] sm:$0xff] }
 0x7d9   : > { %v11124_v20 = vpop.eup %11123  ;;  %3110 = vadd.xlane.f32.xlu1 %v3109_v42  ;;  %9852 = vmatprep.subr.bf16.mxu0 %v17232_v60  ;;  %v3078_v33 = vpop.xlane.xlu0 %3077  ;;  %v3238_v45 = vmul.f32 %v11122_v3, %v14028_v55  ;;  %v3148_v55 = vsel %vm951_vm0, %v14304_v27, 0.0  ;;  %v17242_v63 = vld [vmem:[#allocation59_spill] sm:$0xff] }
 0x7da   : > { %v11126_v30 = vpop.eup %11125  ;;  %9898 = vmatprep.subr.bf16.mxu1 %v17222_v43  ;;  %11141 = vrcp.f32 %v3078_v33  ;;  %v3081_v4 = vpop.xlane.xlu1 %3080  ;;  %v3237_v26 = vmul.f32 %v11124_v20, %v14062_v9 }
 0x7db   : > { %v11128_v17 = vpop.eup %11127  ;;  %11143 = vrcp.f32 %v3081_v4  ;;  %3155 = vadd.xlane.f32.xlu0 %v3154_v51  ;;  %v3295_v53 = vpack.c.bf16 %v3239_v1, %v3238_v45  ;;  %v3258_v38 = vmul.f32 %v11126_v30, %v17236_v52  ;;  %v17245_v45 = vld [vmem:[#allocation63_spill] sm:$0xff] }
 0x7dc   : > { %v11130_v23 = vpop.eup %11129  ;;  %9853 = vmatpush3.bf16.msra.mxu0 %v17232_v60  ;;  %v3294_v14 = vpack.c.bf16 %v3237_v26, %v3236_v57  ;;  %v3256_v11 = vmul.f32 %v11128_v17, %v17234_v37  ;;  %11145 = vpow2.f32 %v2962_v58  ;;  %v17243_v57 = vld [vmem:[#allocation61_spill] sm:$0xff]  ;;  %v17244_v17 = vld [vmem:[#allocation62_spill] sm:$0xff]  ;;  %v17247_v37 = vld [vmem:[#allocation71_spill] sm:$0xff] }
 0x7dd   : > { %v11132_v7 = vpop.eup %11131  ;;  %v3259_v31 = vmul.f32 %v11130_v23, %v14067_v62  ;;  %3104 = vadd.xlane.f32.xlu1 %v3103_v22  ;;  %9854 = vmatprep.subr.bf16.mxu0 %v17233_v13  ;;  %v3048_v9 = vpop.xlane.xlu0 %3047  ;;  %v17246_v22 = vld [vmem:[#allocation60_spill] sm:$0xff]  ;;  %v17250_v52 = vld [vmem:[#allocation67_spill] sm:$0xff] }
 0x7de   : > { %9830 = vmatprep.mubr.msk.bf16.mxu0 %vm951_vm0, %v3294_v14  ;;  %v3257_v28 = vmul.f32 %v11132_v7, %v17235_v48  ;;  %v14337_v62 = vpop.eup %11133  ;;  %v3063_v35 = vpop.xlane.xlu1 %3062  ;;  %v17249_v48 = vld [vmem:[#allocation66_spill] sm:$0xff] }
 0x7df   : > { %3149 = vadd.xlane.f32.xlu0 %v3148_v55  ;;  %9831 = vmatmul.mubr.msk.bf16.gmra.mrb[68].mxu0 %vm951_vm0, %v3295_v53  ;;  %v3305_v41 = vpack.c.bf16 %v3259_v31, %v3258_v38  ;;  %v3139_v6 = vsel %vm951_vm0, %v14337_v62, 0.0 }
 0x7e0   : > { %9855 = vmatpush3.bf16.msra.mxu0 %v17233_v13  ;;  %v3304_v61 = vpack.c.bf16 %v3257_v28, %v3256_v11  ;;  %v11136_v12 = vpop.eup %11135 }
 0x7e1   : > { %3146 = vadd.xlane.f32.xlu1 %v3145_v49  ;;  %9856 = vmatprep.subr.bf16.mxu0 %v17237_v36  ;;  %v3042_v8 = vpop.xlane.xlu0 %3041  ;;  %v11138_v10 = vpop.eup %11137  ;;  %v3262_v18 = vmul.f32 %v11136_v12, %v17240_v56  ;;  %v17251_v49 = vld [vmem:[#allocation48_spill] sm:$0xff] }
 0x7e2   : > { %9874 = vmatprep.mubr.msk.bf16.mxu1 %vm951_vm0, %v3304_v61  ;;  %v14344_v29 = vpop.eup %11139  ;;  %v3263_v0 = vmul.f32 %v11138_v10, %v17241_v15  ;;  %v3057_v20 = vpop.xlane.xlu1 %3056  ;;  %v17252_v61 = vld [vmem:[#allocation65_spill] sm:$0xff] }
 0x7e3   : > { %9875 = vmatmul.mubr.msk.bf16.vlgmr.msra.gmra.mrb[48].mxu1 %vm951_vm0, %v3305_v41  ;;  %v3157_v47 = vsel %vm951_vm0, %v14344_v29, 0.0  ;;  %v17254_v10 = vld [vmem:[#allocation81_spill] sm:$0xff] }
 0x7e4   : > { %v11142_v21 = vpop.eup %11141  ;;  %9857 = vmatpush3.bf16.msra.mxu0 %v17237_v36  ;;  %9899 = vmatpush3.bf16.msra.mxu1 %v17222_v43  ;;  %v3307_v3 = vpack.c.bf16 %v3263_v0, %v3262_v18  ;;  %v17253_v36 = vld [vmem:[#allocation76_spill] sm:$0xff]  ;;  %v17255_v18 = vld [vmem:[#allocation78_spill] sm:$0xff] }
 0x7e5   : > { %v11144_v50 = vpop.eup %11143  ;;  %3140 = vadd.xlane.f32.xlu1 %v3139_v6  ;;  %9882 = vmatprep.subr.bf16.mxu0 %v17238_v19  ;;  %v3051_v5 = vpop.xlane.xlu0 %3050  ;;  %v3260_v32 = vmul.f32 %v11142_v21, %v17239_v2 }
 0x7e6   : > { %v3261_v24 = vmul.f32 %v11144_v50, %v17242_v63  ;;  %11147 = vrcp.f32 %v3051_v5  ;;  %v14358_v46 = vpop.eup %11145  ;;  %v17256_v63 = vld [vmem:[#allocation75_spill] sm:$0xff] }
 0x7e7   : > { %11149 = vrcp.f32 %v3042_v8  ;;  %v3151_v42 = vsel %vm951_vm0, %v14358_v46, 0.0 }
 0x7e8   : > { %v3306_v25 = vpack.c.bf16 %v3261_v24, %v3260_v32  ;;  %11151 = vrcp.f32 %v3048_v9 }
 0x7e9   : > { %3158 = vadd.xlane.f32.xlu1 %v3157_v47  ;;  %v3045_v40 = vpop.xlane.xlu0 %3044 }
 0x7ea   : > { %11153 = vrcp.f32 %v3045_v40  ;;  %9878 = vmatprep.mubr.msk.bf16.mxu1 %vm951_vm0, %v3306_v25 }
 0x7eb   : > { %9879 = vmatmul.mubr.msk.bf16.gmra.mrb[52].mxu1 %vm951_vm0, %v3307_v3 }
 0x7ed   : > { %3152 = vadd.xlane.f32.xlu1 %v3151_v42  ;;  %v3060_v60 = vpop.xlane.xlu0 %3059 }
 0x7ee   : > { %11155 = vrcp.f32 %v3060_v60 }
 0x7ef   : > { %11157 = vrcp.f32 %v3057_v20 }
 0x7f0   : > { %v11148_v33 = vpop.eup %11147  ;;  %11159 = vrcp.f32 %v3063_v35 }
 0x7f1   : > { %v3054_v1 = vpop.xlane.xlu0 %3053  ;;  %v11150_v30 = vpop.eup %11149  ;;  %v3251_v26 = vmul.f32 %v11148_v33, %v17243_v57 }
 0x7f2   : > { %11161 = vrcp.f32 %v3054_v1  ;;  %v11152_v4 = vpop.eup %11151  ;;  %v3248_v58 = vmul.f32 %v11150_v30, %v17244_v17  ;;  %v17257_v17 = vld [vmem:[#allocation86_spill] sm:$0xff] }
 0x7f3   : > { %v3250_v14 = vmul.f32 %v11152_v4, %v17246_v22  ;;  %v17259_v22 = vld [vmem:[#allocation88_spill] sm:$0xff] }
 0x7f4   : > { %v11154_v51 = vpop.eup %11153 }
 0x7f5   : > { %1659 = vrot.lane.b32.xlu0 %v17222_v43, %s12163_s10  ;;  %v3249_v23 = vmul.f32 %v11154_v51, %v17245_v45  ;;  %v3301_v31 = vpack.c.bf16 %v3251_v26, %v3250_v14  ;;  %v17248_v43 = vld [vmem:[#allocation64_spill] sm:$0xff]  ;;  %v17258_v45 = vld [vmem:[#allocation85_spill] sm:$0xff] }
 0x7f7   : > { %v3300_v7 = vpack.c.bf16 %v3249_v23, %v3248_v58 }
 0x7f8   : > { %v11156_v13 = vpop.eup %11155 }
 0x7f9   : > { %9858 = vmatprep.mubr.msk.bf16.mxu0 %vm951_vm0, %v3300_v7  ;;  %v11158_v9 = vpop.eup %11157  ;;  %v3254_v11 = vmul.f32 %v11156_v13, %v17248_v43  ;;  %v17260_v7 = vld [vmem:[#allocation83_spill] sm:$0xff] }
 0x7fa   : > { %9859 = vmatmul.mubr.msk.bf16.vlgmr.msra.gmra.mrb[72].mxu0 %vm951_vm0, %v3301_v31  ;;  %v11160_v53 = vpop.eup %11159  ;;  %v3253_v38 = vmul.f32 %v11158_v9, %v17250_v52 }
 0x7fb   : > { %9883 = vmatpush3.bf16.msra.mxu0 %v17238_v19  ;;  %v3255_v12 = vmul.f32 %v11160_v53, %v17252_v61 }
 0x7fc   : > { %v11162_v55 = vpop.eup %11161  ;;  %9884 = vmatprep.subr.bf16.mxu0 %v17247_v37 }
 0x7fd   : > { %v3252_v28 = vmul.f32 %v11162_v55, %v17249_v48  ;;  %v3303_v8 = vpack.c.bf16 %v3255_v12, %v3254_v11 }
 0x7fe   : > { %1661 = vrot.lane.b32.xlu1 %v17251_v49, %s12163_s10 }
 0x7ff   : > { %9885 = vmatpush3.bf16.msra.mxu0 %v17247_v37  ;;  %v3302_v41 = vpack.c.bf16 %v3253_v38, %v3252_v28 }
 0x800   : > { %9886 = vmatprep.subr.bf16.mxu0 %v17253_v36 }
 0x801   : > { %9862 = vmatprep.mubr.msk.bf16.mxu0 %vm951_vm0, %v3302_v41  ;;  %v17261_v41 = vld [vmem:[#allocation77_spill] sm:$0xff] }
 0x802   : > { %9863 = vmatmul.mubr.msk.bf16.gmra.mrb[76].mxu0 %vm951_vm0, %v3303_v8 }
 0x803   : > { %9887 = vmatpush3.bf16.msra.mxu0 %v17253_v36 }
 0x804   : > { %9888 = vmatprep.subr.bf16.mxu0 %v17254_v10 }
 0x807   : > { %9889 = vmatpush3.bf16.msra.mxu0 %v17254_v10  ;;  %v17262_v10 = vld [vmem:[#allocation84_spill] sm:$0xff] }
 0x808   : > { %9914 = vmatprep.subr.bf16.mxu0 %v17251_v49 }
 0x80b   : > { %v3120_v21 = vpop.xlane.xlu0 %3119 }
 0x80f   : > { %v3117_v6 = vpop.xlane.xlu1 %3116  ;;  %v3114_v50 = vpop.xlane.xlu0 %3113 }
 0x810   : > { %11163 = vrcp.f32 %v3117_v6 }
 0x811   : > { %11165 = vrcp.f32 %v3114_v50  ;;  %v17263_v50 = vld [vmem:[#allocation74_spill] sm:$0xff] }
 0x813   : > { %v3123_v19 = vpop.xlane.xlu0 %3122 }
 0x817   : > { %v3132_v5 = vpop.xlane.xlu0 %3131 }
 0x81a   : > { %v11164_v2 = vpop.eup %11163 }
 0x81b   : > { %v11166_v32 = vpop.eup %11165  ;;  %v3126_v56 = vpop.xlane.xlu0 %3125  ;;  %v3273_v15 = vmul.f32 %v11164_v2, %v17255_v18 }
 0x81c   : > { %v3135_v0 = vpop.xlane.xlu1 %3134  ;;  %v3272_v24 = vmul.f32 %v11166_v32, %v17256_v63 }
 0x81e   : > { %v3312_v35 = vpack.c.bf16 %v3273_v15, %v3272_v24 }
 0x81f   : > { %v3096_v47 = vpop.xlane.xlu0 %3095 }
 0x820   : > { %9906 = vmatprep.mubr.msk.bf16.mxu1 %vm951_vm0, %v3312_v35  ;;  %v3129_v25 = vpop.xlane.xlu1 %3128 }
 0x823   : > { %v3090_v40 = vpop.xlane.xlu0 %3089 }
 0x824   : > { %v3099_v3 = vpop.xlane.xlu1 %3098 }
 0x825   : > { %11167 = vrcp.f32 %v3099_v3 }
 0x826   : > { %11169 = vrcp.f32 %v3090_v40  ;;  %v17265_v40 = vld [vmem:[#allocation89_spill] sm:$0xff] }
 0x827   : > { %v3108_v42 = vpop.xlane.xlu0 %3107  ;;  %11171 = vrcp.f32 %v3096_v47 }
 0x828   : > { %v3093_v20 = vpop.xlane.xlu1 %3092 }
 0x829   : > { %11173 = vrcp.f32 %v3093_v20  ;;  %v17266_v20 = vld [vmem:[#allocation87_spill] sm:$0xff] }
 0x82a   : > { %11175 = vrcp.f32 %v3123_v19 }
 0x82b   : > { %v3102_v60 = vpop.xlane.xlu0 %3101  ;;  %11177 = vrcp.f32 %v3129_v25 }
 0x82c   : > { %v1614_v33 = vpop.permute.xlu1 %1613  ;;  %11179 = vrcp.f32 %v3120_v21 }
 0x82d   : > { %11181 = vrcp.f32 %v3126_v56 }
 0x82e   : > { %11183 = vrcp.f32 %v3135_v0 }
 0x82f   : > { %v1612_v1 = vpop.permute.xlu0 %1611  ;;  %v11168_v30 = vpop.eup %11167 }
 0x830   : > { %v1636_v4 = vpop.permute.xlu1 %1635  ;;  %9900 = vmatprep.subr.bf16.mxu1 %v1612_v1  ;;  %v11170_v51 = vpop.eup %11169  ;;  %v3267_v58 = vmul.f32 %v11168_v30, %v17257_v17 }
 0x831   : > { %9901 = vmatpush3.bf16.msra.mxu1 %v1612_v1  ;;  %v11172_v57 = vpop.eup %11171  ;;  %v3264_v23 = vmul.f32 %v11170_v51, %v17258_v45  ;;  %v17268_v51 = vld [vmem:[#allocation80_spill] sm:$0xff] }
 0x832   : > { %9902 = vmatprep.subr.bf16.mxu1 %v1636_v4  ;;  %v3266_v31 = vmul.f32 %v11172_v57, %v17260_v7 }
 0x833   : > { %v11174_v26 = vpop.eup %11173 }
 0x834   : > { %v3265_v14 = vmul.f32 %v11174_v26, %v17259_v22  ;;  %v3309_v9 = vpack.c.bf16 %v3267_v58, %v3266_v31  ;;  %v1638_v53 = vpop.permute.xlu1 %1637  ;;  %v11176_v28 = vpop.eup %11175 }
 0x835   : > { %9903 = vmatpush3.bf16.msra.mxu1 %v1636_v4  ;;  %v11178_v38 = vpop.eup %11177  ;;  %v3275_v36 = vmul.f32 %v11176_v28, %v17261_v41 }
 0x836   : > { %v3308_v13 = vpack.c.bf16 %v3265_v14, %v3264_v23  ;;  %v3277_v21 = vmul.f32 %v11178_v38, %v17262_v10 }
 0x838   : > { %9890 = vmatprep.mubr.msk.bf16.mxu0 %vm951_vm0, %v3308_v13 }
 0x839   : > { %9891 = vmatmul.mubr.msk.bf16.vlgmr.msra.gmra.mrb[80].mxu0 %vm951_vm0, %v3309_v9 }
 0x83a   : > { %9915 = vmatpush3.bf16.msra.mxu0 %v17251_v49  ;;  %v11180_v49 = vpop.eup %11179 }
 0x83b   : > { %9916 = vmatprep.subr.bf16.mxu0 %v1614_v33  ;;  %v11182_v12 = vpop.eup %11181  ;;  %v3274_v19 = vmul.f32 %v11180_v49, %v17263_v50  ;;  %v10862_v50 = vld [vmem:[%s17269_s19] sm:$0xff]  }
 0x83c   : > { %v11184_v6 = vpop.eup %11183 }
 0x83d   : > { %v3313_v15 = vpack.c.bf16 %v3275_v36, %v3274_v19  ;;  %v10863_v19 = vld [vmem:[%s17269_s19 + $0x8] sm:$0xff]  }
 0x83e   : > { %9917 = vmatpush3.bf16.msra.mxu0 %v1614_v33  ;;  %v17267_v33 = vld [vmem:[#allocation82_spill] sm:$0xff] }
 0x83f   : > { %9918 = vmatprep.subr.bf16.mxu0 %v1638_v53  ;;  %v3279_v1 = vmul.f32 %v11184_v6, %v17267_v33 }
 0x842   : > { %9919 = vmatpush3.bf16.msra.mxu0 %v1638_v53 }
 0x860   : > { %v3144_v55 = vpop.xlane.xlu0 %3143 }
 0x864   : > { %v3138_v37 = vpop.xlane.xlu0 %3137 }
 0x866   : > { %v3111_v43 = vpop.xlane.xlu1 %3110 }
 0x867   : > { %11185 = vrcp.f32 %v3111_v43 }
 0x868   : > { %v3156_v11 = vpop.xlane.xlu0 %3155  ;;  %11187 = vrcp.f32 %v3102_v60 }
 0x869   : > { %11189 = vrcp.f32 %v3108_v42 }
 0x86a   : > { %v3105_v48 = vpop.xlane.xlu1 %3104 }
 0x86b   : > { %11191 = vrcp.f32 %v3105_v48 }
 0x86c   : > { %11193 = vrcp.f32 %v3132_v5  ;;  %v3150_v52 = vpop.xlane.xlu0 %3149  ;;  %v17264_v5 = vld [vmem:[#allocation79_spill] sm:$0xff] }
 0x86d   : > { %v3276_v56 = vmul.f32 %v11182_v12, %v17264_v5 }
 0x86e   : > { %v3147_v61 = vpop.xlane.xlu1 %3146 }
 0x86f   : > { %11195 = vrcp.f32 %v3147_v61  ;;  %v3314_v63 = vpack.c.bf16 %v3277_v21, %v3276_v56 }
 0x870   : > { %v1660_v8 = vpop.permute.xlu0 %1659  ;;  %11197 = vrcp.f32 %v3138_v37 }
 0x871   : > { %9904 = vmatprep.subr.bf16.mxu1 %v1660_v8  ;;  %v11186_v2 = vpop.eup %11185  ;;  %11199 = vrcp.f32 %v3144_v55 }
 0x872   : > { %v3141_v32 = vpop.xlane.xlu1 %3140  ;;  %9905 = vmatpush3.bf16.msra.mxu1 %v1660_v8  ;;  %v11188_v18 = vpop.eup %11187  ;;  %v3271_v35 = vmul.f32 %v11186_v2, %v14293_v39 }
 0x873   : > { %11201 = vrcp.f32 %v3141_v32  ;;  %v11190_v0 = vpop.eup %11189  ;;  %v3268_v3 = vmul.f32 %v11188_v18, %v17265_v40  ;;  %9930 = vmatprep.subr.bf16.mxu1 %v10862_v50 }
 0x874   : > { %v3270_v60 = vmul.f32 %v11190_v0, %v17266_v20 }
 0x875   : > { %v11192_v24 = vpop.eup %11191  ;;  %9907 = vmatmul.mubr.msk.bf16.vlgmr.msra.gmra.mrb[56].mxu1 %vm951_vm0, %v3313_v15 }
 0x876   : > { %v11194_v47 = vpop.eup %11193  ;;  %v3159_v25 = vpop.xlane.xlu1 %3158  ;;  %9910 = vmatprep.mubr.msk.bf16.mxu1 %vm951_vm0, %v3314_v63  ;;  %v3269_v42 = vmul.f32 %v11192_v24, %v14297_v59  ;;  %v3311_v4 = vpack.c.bf16 %v3271_v35, %v3270_v60  ;;  %9931 = vmatpush3.bf16.msra.mxu1 %v10862_v50 }
 0x877   : > { %11203 = vrcp.f32 %v3159_v25  ;;  %v3278_v57 = vmul.f32 %v11194_v47, %v17268_v51  ;;  %9932 = vmatprep.subr.bf16.mxu1 %v10863_v19  ;;  %v10864_v25 = vld [vmem:[%s17269_s19 + $0x10] sm:$0xff]  }
 0x878   : > { %v3310_v30 = vpack.c.bf16 %v3269_v42, %v3268_v3  ;;  %11205 = vrcp.f32 %v3150_v52  ;;  %v10865_v3 = vld [vmem:[%s17269_s19 + $0x18] sm:$0xff]  }
 0x879   : > { %v11196_v26 = vpop.eup %11195  ;;  %11207 = vrcp.f32 %v3156_v11  ;;  %v3315_v59 = vpack.c.bf16 %v3279_v1, %v3278_v57 }
 0x87a   : > { %v3153_v39 = vpop.xlane.xlu1 %3152  ;;  %9894 = vmatprep.mubr.msk.bf16.mxu0 %vm951_vm0, %v3310_v30  ;;  %v11198_v17 = vpop.eup %11197  ;;  %v3283_v23 = vmul.f32 %v11196_v26, %v14301_v34  ;;  %9933 = vmatpush3.bf16.msra.mxu1 %v10863_v19 }
 0x87b   : > { %11209 = vrcp.f32 %v3153_v39  ;;  %9895 = vmatmul.mubr.msk.bf16.gmra.mrb[84].mxu0 %vm951_vm0, %v3311_v4  ;;  %v11200_v58 = vpop.eup %11199  ;;  %v3280_v14 = vmul.f32 %v11198_v17, %v14271_v44  ;;  %9934 = vmatprep.subr.bf16.mxu1 %v10864_v25 }
 0x87c   : > { %v3282_v31 = vmul.f32 %v11200_v58, %v14266_v54 }
 0x87d   : > { %v11202_v45 = vpop.eup %11201  ;;  %9911 = vmatmul.mubr.msk.bf16.gmra.mrb[60].mxu1 %vm951_vm0, %v3315_v59 }
 0x87e   : > { %v1662_v22 = vpop.permute.xlu1 %1661  ;;  %v3281_v7 = vmul.f32 %v11202_v45, %v14337_v62  ;;  %v3317_v9 = vpack.c.bf16 %v3283_v23, %v3282_v31  ;;  %9935 = vmatpush3.bf16.msra.mxu1 %v10864_v25 }
 0x87f   : > { %9920 = vmatprep.subr.bf16.mxu0 %v1662_v22  ;;  %9936 = vmatprep.subr.bf16.mxu1 %v10865_v3 }
 0x880   : > { %9921 = vmatpush3.bf16.msra.mxu0 %v1662_v22  ;;  %v3316_v13 = vpack.c.bf16 %v3281_v7, %v3280_v14 }
 0x881   : > { %v11204_v53 = vpop.eup %11203 }
 0x882   : > { %9922 = vmatprep.mubr.msk.bf16.mxu0 %vm951_vm0, %v3316_v13  ;;  %v11206_v55 = vpop.eup %11205  ;;  %v3287_v43 = vmul.f32 %v11204_v53, %v14344_v29  ;;  %9937 = vmatpush3.bf16.msra.mxu1 %v10865_v3 }
 0x883   : > { %9923 = vmatmul.mubr.msk.bf16.vlgmr.msra.gmra.mrb[88].mxu0 %vm951_vm0, %v3317_v9  ;;  %v11208_v34 = vpop.eup %11207  ;;  %v3284_v44 = vmul.f32 %v11206_v55, %v14304_v27 }
 0x884   : > { %v3286_v54 = vmul.f32 %v11208_v34, %v14276_v16 }
 0x885   : > { %v11210_v37 = vpop.eup %11209 }
 0x886   : > { %v3285_v62 = vmul.f32 %v11210_v37, %v14358_v46  ;;  %v3319_v48 = vpack.c.bf16 %v3287_v43, %v3286_v54 }
 0x888   : > { %v3318_v11 = vpack.c.bf16 %v3285_v62, %v3284_v44 }
 0x88a   : > { %9926 = vmatprep.mubr.msk.bf16.mxu0 %vm951_vm0, %v3318_v11 }
 0x88b   : > { %9927 = vmatmul.mubr.msk.bf16.gmra.mrb[92].mxu0 %vm951_vm0, %v3319_v48 }
 0x892   : > { %v9812_v28 = vpop.f32.mrb[56].mxu0 }
 0x893   : > { %v14425_v52 = vpop.f32.mrb[57].mxu0 }
 0x894   : > { %v9813_v38 = vpop.f32.mrb[58].mxu0 }
 0x895   : > { %v10610_v49 = vpack.i.bf16 %v9813_v38, %v9812_v28  ;;  %v14427_v61 = vpop.f32.mrb[59].mxu0 }
 0x897   : > { %10611 = vrot.lane.b32.xlu0 %v10610_v49, %s12165_s28 }
 0x89a   : > { %v9816_v27 = vpop.f32.mrb[60].mxu0 }
 0x89b   : > { %v3382_v29 = vpop.f32.mrb[61].mxu0 }
 0x89c   : > { %v9817_v46 = vpop.f32.mrb[62].mxu0 }
 0x89d   : > { %v10620_v16 = vpack.i.bf16 %v9817_v46, %v9816_v27  ;;  %v3385_v12 = vpop.f32.mrb[63].mxu0 }
 0x89e   : > { %v10615_v41 = vpack.i.bf16 %v3385_v12, %v3382_v29  ;;  %v9844_v36 = vpop.f32.mrb[40].mxu1 }
 0x89f   : > { %v14430_v8 = vpop.f32.mrb[41].mxu1 }
 0x8a0   : > { %10616 = vrot.lane.b32.xlu0 %v10615_v41, %s16960_s14  ;;  %v9845_v10 = vpop.f32.mrb[42].mxu1 }
 0x8a1   : > { %v10640_v21 = vpack.i.bf16 %v9845_v10, %v9844_v36  ;;  %v14433_v6 = vpop.f32.mrb[43].mxu1 }
 0x8a4   : > { %10621 = vrot.lane.b32.xlu0 %v10620_v16, %s16962_s3 }
 0x8a6   : > { %v9848_v2 = vpop.f32.mrb[44].mxu1 }
 0x8a7   : > { %v3536_v32 = vpop.f32.mrb[45].mxu1 }
 0x8a8   : > { %10641 = vrot.lane.b32.xlu0 %v10640_v21, %s12165_s28  ;;  %v9849_v5 = vpop.f32.mrb[46].mxu1 }
 0x8a9   : > { %v10650_v56 = vpack.i.bf16 %v9849_v5, %v9848_v2  ;;  %v3539_v18 = vpop.f32.mrb[47].mxu1 }
 0x8aa   : > { %v10645_v15 = vpack.i.bf16 %v3539_v18, %v3536_v32  ;;  %v9828_v0 = vpop.f32.mrb[64].mxu0 }
 0x8ab   : > { %v14443_v63 = vpop.f32.mrb[65].mxu0 }
 0x8ac   : > { %10646 = vrot.lane.b32.xlu0 %v10645_v15, %s16960_s14  ;;  %v9829_v24 = vpop.f32.mrb[66].mxu0 }
 0x8ad   : > { %v10625_v35 = vpack.i.bf16 %v9829_v24, %v9828_v0  ;;  %v14446_v47 = vpop.f32.mrb[67].mxu0 }
 0x8af   : > { %10626 = vrot.lane.b32.xlu1 %v10625_v35, %s12165_s28 }
 0x8b0   : > { %10651 = vrot.lane.b32.xlu0 %v10650_v56, %s16962_s3 }
 0x8b2   : > { %v9832_v40 = vpop.f32.mrb[68].mxu0 }
 0x8b3   : > { %v3459_v42 = vpop.f32.mrb[69].mxu0 }
 0x8b4   : > { %v9833_v20 = vpop.f32.mrb[70].mxu0 }
 0x8b5   : > { %v10635_v60 = vpack.i.bf16 %v9833_v20, %v9832_v40  ;;  %v3462_v33 = vpop.f32.mrb[71].mxu0 }
 0x8b6   : > { %v10630_v1 = vpack.i.bf16 %v3462_v33, %v3459_v42  ;;  %v9876_v30 = vpop.f32.mrb[48].mxu1 }
 0x8b7   : > { %v14456_v4 = vpop.f32.mrb[49].mxu1 }
 0x8b8   : > { %10631 = vrot.lane.b32.xlu1 %v10630_v1, %s16960_s14  ;;  %v9877_v51 = vpop.f32.mrb[50].mxu1 }
 0x8b9   : > { %v10670_v57 = vpack.i.bf16 %v9877_v51, %v9876_v30  ;;  %v14459_v26 = vpop.f32.mrb[51].mxu1 }
 0x8bb   : > { %10671 = vrot.lane.b32.xlu0 %v10670_v57, %s12165_s28 }
 0x8bc   : > { %10636 = vrot.lane.b32.xlu1 %v10635_v60, %s16962_s3 }
 0x8be   : > { %v9880_v39 = vpop.f32.mrb[52].mxu1 }
 0x8bf   : > { %v3690_v17 = vpop.f32.mrb[53].mxu1 }
 0x8c0   : > { %v9881_v59 = vpop.f32.mrb[54].mxu1 }
 0x8c1   : > { %v10680_v58 = vpack.i.bf16 %v9881_v59, %v9880_v39  ;;  %v3693_v45 = vpop.f32.mrb[55].mxu1 }
 0x8c2   : > { %v10675_v23 = vpack.i.bf16 %v3693_v45, %v3690_v17 }
 0x8c4   : > { %10676 = vrot.lane.b32.xlu0 %v10675_v23, %s16960_s14 }
 0x8c8   : > { %10681 = vrot.lane.b32.xlu0 %v10680_v58, %s16962_s3 }
 0x8cd   : > { %v9860_v22 = vpop.f32.mrb[72].mxu0 }
 0x8ce   : > { %v14465_v14 = vpop.f32.mrb[73].mxu0 }
 0x8cf   : > { %v9861_v7 = vpop.f32.mrb[74].mxu0 }
 0x8d0   : > { %v10655_v31 = vpack.i.bf16 %v9861_v7, %v9860_v22  ;;  %v14467_v13 = vpop.f32.mrb[75].mxu0 }
 0x8d2   : > { %10656 = vrot.lane.b32.xlu1 %v10655_v31, %s12165_s28 }
 0x8d5   : > { %v9864_v9 = vpop.f32.mrb[76].mxu0 }
 0x8d6   : > { %v3613_v53 = vpop.f32.mrb[77].mxu0 }
 0x8d7   : > { %v9865_v55 = vpop.f32.mrb[78].mxu0 }
 0x8d8   : > { %v10665_v34 = vpack.i.bf16 %v9865_v55, %v9864_v9  ;;  %v3616_v37 = vpop.f32.mrb[79].mxu0 }
 0x8d9   : > { %v10660_v43 = vpack.i.bf16 %v3616_v37, %v3613_v53 }
 0x8db   : > { %10661 = vrot.lane.b32.xlu1 %v10660_v43, %s16960_s14 }
 0x8df   : > { %10666 = vrot.lane.b32.xlu1 %v10665_v34, %s16962_s3 }
 0x909   : > { %v10612_v54 = vpop.permute.xlu0 %10611 }
 0x90a   : > { %v10614_v49 = vunpack.i.h.bf16 %v10612_v54  ;;  %v10613_v27 = vunpack.i.l.bf16 %v10612_v54 }
 0x90c   : > { %v9892_v44 = vpop.f32.mrb[80].mxu0  ;;  %v4129_v12 = vsel %vm1687_vm3, %v14427_v61, %v10614_v49  ;;  %v4128_v41 = vsel %vm1687_vm3, %v14425_v52, %v10613_v27 }
 0x90d   : > { %v14472_v62 = vpop.f32.mrb[81].mxu0 }
 0x90e   : > { %v9893_v11 = vpop.f32.mrb[82].mxu0 }
 0x90f   : > { %v10685_v48 = vpack.i.bf16 %v9893_v11, %v9892_v44  ;;  %v14474_v28 = vpop.f32.mrb[83].mxu0 }
 0x911   : > { %10686 = vrot.lane.b32.xlu1 %v10685_v48, %s12165_s28 }
 0x912   : > { %v10617_v38 = vpop.permute.xlu0 %10616 }
 0x913   : > { %v10619_v29 = vunpack.i.h.bf16 %v10617_v38  ;;  %v10618_v46 = vunpack.i.l.bf16 %v10617_v38 }
 0x915   : > { %v4145_v21 = vsel %vm4144_vm4, %v4128_v41, %v10618_v46  ;;  %v4146_v50 = vsel %vm4144_vm4, %v4129_v12, %v10619_v29 }
 0x916   : > { %v10622_v16 = vpop.permute.xlu0 %10621 }
 0x917   : > { %v10624_v36 = vunpack.i.h.bf16 %v10622_v16  ;;  %v10623_v10 = vunpack.i.l.bf16 %v10622_v16 }
 0x919   : > { %v4162_v19 = vsel %vm4161_vm5, %v4145_v21, %v10623_v10  ;;  %v4163_v2 = vsel %vm4161_vm5, %v4146_v50, %v10624_v36 }
 0x91a   : > { %v10642_v32 = vpop.permute.xlu0 %10641  ;;  %v4178_v5 = vpack.c.bf16 %v4163_v2, %v4162_v19 }
 0x91b   : > { %v10644_v18 = vunpack.i.h.bf16 %v10642_v32  ;;  %v10643_v61 = vunpack.i.l.bf16 %v10642_v32 }
 0x91c   : > { %9938 = vmatprep.mubr.msk.bf16.mxu1 %vm951_vm0, %v4178_v5 }
 0x91d   : > { %v4133_v24 = vsel %vm1687_vm3, %v14433_v6, %v10644_v18  ;;  %v4132_v35 = vsel %vm1687_vm3, %v14430_v8, %v10643_v61 }
 0x91e   : > { %v10647_v56 = vpop.permute.xlu0 %10646 }
 0x91f   : > { %v10649_v15 = vunpack.i.h.bf16 %v10647_v56  ;;  %v10648_v0 = vunpack.i.l.bf16 %v10647_v56 }
 0x921   : > { %v4149_v3 = vsel %vm4144_vm4, %v4132_v35, %v10648_v0  ;;  %v4150_v42 = vsel %vm4144_vm4, %v4133_v24, %v10649_v15  ;;  %v10627_v33 = vpop.permute.xlu1 %10626 }
 0x922   : > { %v10652_v52 = vpop.permute.xlu0 %10651  ;;  %v10629_v51 = vunpack.i.h.bf16 %v10627_v33  ;;  %v10628_v57 = vunpack.i.l.bf16 %v10627_v33 }
 0x923   : > { %v10654_v25 = vunpack.i.h.bf16 %v10652_v52  ;;  %v10653_v40 = vunpack.i.l.bf16 %v10652_v52 }
 0x924   : > { %v4130_v8 = vsel %vm1687_vm3, %v14443_v63, %v10628_v57  ;;  %v4131_v59 = vsel %vm1687_vm3, %v14446_v47, %v10629_v51 }
 0x925   : > { %v4166_v20 = vsel %vm4161_vm5, %v4149_v3, %v10653_v40  ;;  %v4167_v60 = vsel %vm4161_vm5, %v4150_v42, %v10654_v25 }
 0x926   : > { %v4180_v1 = vpack.c.bf16 %v4167_v60, %v4166_v20 }
 0x92a   : > { %v10632_v30 = vpop.permute.xlu1 %10631 }
 0x92b   : > { %v10634_v39 = vunpack.i.h.bf16 %v10632_v30  ;;  %v10633_v6 = vunpack.i.l.bf16 %v10632_v30 }
 0x92d   : > { %v4148_v23 = vsel %vm4144_vm4, %v4131_v59, %v10634_v39  ;;  %v4147_v22 = vsel %vm4144_vm4, %v4130_v8, %v10633_v6  ;;  %v10672_v9 = vpop.permute.xlu0 %10671 }
 0x92e   : > { %v10637_v17 = vpop.permute.xlu1 %10636  ;;  %v10674_v55 = vunpack.i.h.bf16 %v10672_v9  ;;  %v10673_v34 = vunpack.i.l.bf16 %v10672_v9 }
 0x92f   : > { %v10639_v58 = vunpack.i.h.bf16 %v10637_v17  ;;  %v10638_v45 = vunpack.i.l.bf16 %v10637_v17 }
 0x930   : > { %v4137_v44 = vsel %vm1687_vm3, %v14459_v26, %v10674_v55  ;;  %v4136_v54 = vsel %vm1687_vm3, %v14456_v4, %v10673_v34 }
 0x931   : > { %v4164_v7 = vsel %vm4161_vm5, %v4147_v22, %v10638_v45  ;;  %v4165_v31 = vsel %vm4161_vm5, %v4148_v23, %v10639_v58 }
 0x932   : > { %v4179_v53 = vpack.c.bf16 %v4165_v31, %v4164_v7 }
 0x934   : > { %9939 = vmatmul.mubr.msk.bf16.vlgmr.msra.gmra.mrb[64].mxu1 %vm951_vm0, %v4179_v53 }
 0x935   : > { %9942 = vmatprep.mubr.msk.bf16.mxu1 %vm951_vm0, %v4180_v1 }
 0x936   : > { %v10677_v63 = vpop.permute.xlu0 %10676 }
 0x937   : > { %v10679_v47 = vunpack.i.h.bf16 %v10677_v63  ;;  %v10678_v37 = vunpack.i.l.bf16 %v10677_v63 }
 0x939   : > { %v4153_v38 = vsel %vm4144_vm4, %v4136_v54, %v10678_v37  ;;  %v4154_v49 = vsel %vm4144_vm4, %v4137_v44, %v10679_v47 }
 0x93a   : > { %v10682_v43 = vpop.permute.xlu0 %10681 }
 0x93b   : > { %v10684_v11 = vunpack.i.h.bf16 %v10682_v43  ;;  %v10683_v48 = vunpack.i.l.bf16 %v10682_v43 }
 0x93d   : > { %v4170_v27 = vsel %vm4161_vm5, %v4153_v38, %v10683_v48  ;;  %v4171_v29 = vsel %vm4161_vm5, %v4154_v49, %v10684_v11 }
 0x93e   : > { %v4182_v46 = vpack.c.bf16 %v4171_v29, %v4170_v27 }
 0x944   : > { %v10657_v12 = vpop.permute.xlu1 %10656 }
 0x945   : > { %v10658_v4 = vunpack.i.l.bf16 %v10657_v12  ;;  %v10659_v50 = vunpack.i.h.bf16 %v10657_v12 }
 0x947   : > { %v4134_v61 = vsel %vm1687_vm3, %v14465_v14, %v10658_v4  ;;  %v4135_v24 = vsel %vm1687_vm3, %v14467_v13, %v10659_v50 }
 0x948   : > { %v9908_v16 = vpop.f32.mrb[56].mxu1 }
 0x949   : > { %v14512_v41 = vpop.f32.mrb[57].mxu1 }
 0x94a   : > { %v9909_v36 = vpop.f32.mrb[58].mxu1 }
 0x94b   : > { %v10700_v26 = vpack.i.bf16 %v9909_v36, %v9908_v16  ;;  %v14514_v10 = vpop.f32.mrb[59].mxu1 }
 0x94d   : > { %v10662_v21 = vpop.permute.xlu1 %10661  ;;  %10701 = vrot.lane.b32.xlu0 %v10700_v26, %s12165_s28 }
 0x94e   : > { %v9896_v19 = vpop.f32.mrb[84].mxu0  ;;  %v10664_v2 = vunpack.i.h.bf16 %v10662_v21  ;;  %v10663_v32 = vunpack.i.l.bf16 %v10662_v21 }
 0x94f   : > { %v3767_v5 = vpop.f32.mrb[85].mxu0 }
 0x950   : > { %v9897_v56 = vpop.f32.mrb[86].mxu0  ;;  %v9912_v18 = vpop.f32.mrb[60].mxu1  ;;  %v4152_v42 = vsel %vm4144_vm4, %v4135_v24, %v10664_v2  ;;  %v4151_v20 = vsel %vm4144_vm4, %v4134_v61, %v10663_v32 }
 0x951   : > { %v10695_v15 = vpack.i.bf16 %v9897_v56, %v9896_v19  ;;  %v3770_v0 = vpop.f32.mrb[87].mxu0  ;;  %v10667_v52 = vpop.permute.xlu1 %10666 }
 0x952   : > { %v10690_v35 = vpack.i.bf16 %v3770_v0, %v3767_v5  ;;  %v10669_v25 = vunpack.i.h.bf16 %v10667_v52  ;;  %v10668_v40 = vunpack.i.l.bf16 %v10667_v52  ;;  %v3844_v3 = vpop.f32.mrb[61].mxu1 }
 0x953   : > { %v9913_v60 = vpop.f32.mrb[62].mxu1 }
 0x954   : > { %v4168_v33 = vsel %vm4161_vm5, %v4151_v20, %v10668_v40  ;;  %v4169_v1 = vsel %vm4161_vm5, %v4152_v42, %v10669_v25  ;;  %v10710_v14 = vpack.i.bf16 %v9913_v60, %v9912_v18  ;;  %10691 = vrot.lane.b32.xlu1 %v10690_v35, %s16960_s14  ;;  %v3847_v30 = vpop.f32.mrb[63].mxu1 }
 0x955   : > { %v10705_v51 = vpack.i.bf16 %v3847_v30, %v3844_v3  ;;  %v4181_v57 = vpack.c.bf16 %v4169_v1, %v4168_v33  ;;  %v14559_v1 = vld [vmem:[#allocation16] ss:$0 sm:$0xff] }
 0x956   : > { %v9924_v13 = vpop.f32.mrb[88].mxu0 }
 0x957   : > { %v3905_v39 = vpop.f32.mrb[89].mxu0  ;;  %10706 = vrot.lane.b32.xlu0 %v10705_v51, %s16960_s14  ;;  %9943 = vmatmul.mubr.msk.bf16.gmra.mrb[68].mxu1 %vm951_vm0, %v4181_v57 }
 0x958   : > { %10696 = vrot.lane.b32.xlu1 %v10695_v15, %s16962_s3  ;;  %v9925_v6 = vpop.f32.mrb[90].mxu0  ;;  %9946 = vmatprep.mubr.msk.bf16.mxu1 %vm951_vm0, %v4182_v46 }
 0x959   : > { %v10715_v17 = vpack.i.bf16 %v9925_v6, %v9924_v13  ;;  %v3908_v8 = vpop.f32.mrb[91].mxu0  ;;  %v11595_v6 = vld [vmem:[%s12750_s13] sm:$0xff] }
 0x95b   : > { %10711 = vrot.lane.b32.xlu0 %v10710_v14, %s16962_s3 }
 0x95c   : > { %10716 = vrot.lane.b32.xlu1 %v10715_v17, %s12165_s28 }
 0x95e   : > { %v9928_v59 = vpop.f32.mrb[92].mxu0 }
 0x95f   : > { %v3921_v58 = vpop.f32.mrb[93].mxu0 }
 0x960   : > { %v9929_v45 = vpop.f32.mrb[94].mxu0 }
 0x961   : > { %v10725_v23 = vpack.i.bf16 %v9929_v45, %v9928_v59  ;;  %v3924_v22 = vpop.f32.mrb[95].mxu0  ;;  %v11596_v59 = vld [vmem:[%s12750_s13 + $0x10] sm:$0xff] }
 0x962   : > { %v10720_v7 = vpack.i.bf16 %v3924_v22, %v3921_v58 }
 0x964   : > { %10721 = vrot.lane.b32.xlu1 %v10720_v7, %s16960_s14 }
 0x968   : > { %10726 = vrot.lane.b32.xlu1 %v10725_v23, %s16962_s3  ;;  %v11597_v23 = vld [vmem:[%s12750_s13 + $0x8] sm:$0xff]  ;;  %s12169_s3 = smov [#allocation26]  }
 0x983   : > { %v10687_v31 = vpop.permute.xlu1 %10686 }
 0x984   : > { %v10689_v53 = vunpack.i.h.bf16 %v10687_v31  ;;  %v10688_v63 = vunpack.i.l.bf16 %v10687_v31 }
 0x986   : > { %v4138_v44 = vsel %vm1687_vm3, %v14472_v62, %v10688_v63  ;;  %v4139_v54 = vsel %vm1687_vm3, %v14474_v28, %v10689_v53 }
 0x9bf   : > { %v10702_v9 = vpop.permute.xlu0 %10701 }
 0x9c0   : > { %v10704_v37 = vunpack.i.h.bf16 %v10702_v9  ;;  %v10703_v11 = vunpack.i.l.bf16 %v10702_v9  ;;  %v11598_v9 = vld [vmem:[%s12750_s13 + $0x18] sm:$0xff] }
 0x9c2   : > { %v4141_v12 = vsel %vm1687_vm3, %v14514_v10, %v10704_v37  ;;  %v4140_v28 = vsel %vm1687_vm3, %v14512_v41, %v10703_v11  ;;  %v11599_v11 = vld [vmem:[%s12750_s13 + $0x20] sm:$0xff] }
 0x9c6   : > { %v10692_v55 = vpop.permute.xlu1 %10691 }
 0x9c7   : > { %v10694_v34 = vunpack.i.h.bf16 %v10692_v55  ;;  %v10693_v47 = vunpack.i.l.bf16 %v10692_v55 }
 0x9c9   : > { %v10707_v43 = vpop.permute.xlu0 %10706  ;;  %v4156_v46 = vsel %vm4144_vm4, %v4139_v54, %v10694_v34  ;;  %v4155_v16 = vsel %vm4144_vm4, %v4138_v44, %v10693_v47 }
 0x9ca   : > { %v10697_v48 = vpop.permute.xlu1 %10696  ;;  %v10709_v38 = vunpack.i.h.bf16 %v10707_v43  ;;  %v10708_v49 = vunpack.i.l.bf16 %v10707_v43 }
 0x9cb   : > { %v10699_v27 = vunpack.i.h.bf16 %v10697_v48  ;;  %v10698_v29 = vunpack.i.l.bf16 %v10697_v48 }
 0x9cc   : > { %v4157_v19 = vsel %vm4144_vm4, %v4140_v28, %v10708_v49  ;;  %v4158_v2 = vsel %vm4144_vm4, %v4141_v12, %v10709_v38 }
 0x9cd   : > { %v4172_v36 = vsel %vm4161_vm5, %v4155_v16, %v10698_v29  ;;  %v4173_v62 = vsel %vm4161_vm5, %v4156_v46, %v10699_v27  ;;  %v10712_v26 = vpop.permute.xlu0 %10711  ;;  %v11600_v27 = vld [vmem:[%s12750_s13 + $0x30] sm:$0xff]  ;;  %v11601_v46 = vld [vmem:[%s12750_s13 + $0x28] sm:$0xff] }
 0x9ce   : > { %v10714_v4 = vunpack.i.h.bf16 %v10712_v26  ;;  %v10713_v21 = vunpack.i.l.bf16 %v10712_v26  ;;  %v4183_v50 = vpack.c.bf16 %v4173_v62, %v4172_v36  ;;  %v10717_v56 = vpop.permute.xlu1 %10716  ;;  %v11602_v36 = vld [vmem:[%s12750_s13 + $0x38] sm:$0xff] }
 0x9cf   : > { %v10719_v61 = vunpack.i.h.bf16 %v10717_v56  ;;  %v10718_v41 = vunpack.i.l.bf16 %v10717_v56  ;;  %v935_v56 = vld [vmem:[%s12758_s20 + $0x10] sm:$0xff] }
 0x9d0   : > { %v4174_v32 = vsel %vm4161_vm5, %v4157_v19, %v10713_v21  ;;  %v4175_v5 = vsel %vm4161_vm5, %v4158_v2, %v10714_v4  ;;  %9947 = vmatmul.mubr.msk.bf16.gmra.mrb[72].mxu1 %vm951_vm0, %v4183_v50  ;;  %v10866_v21 = vld [vmem:[#allocation19] sm:$0xff]   ;;  %v10867_v50 = vld [vmem:[#allocation19 + $0x8] sm:$0xff]  }
 0x9d1   : > { %v4184_v10 = vpack.c.bf16 %v4175_v5, %v4174_v32  ;;  %v4142_v24 = vsel %vm1687_vm3, %v3905_v39, %v10718_v41  ;;  %v4143_v35 = vsel %vm1687_vm3, %v3908_v8, %v10719_v61  ;;  %v933_v19 = vld [vmem:[%s12758_s20] sm:$0xff]  ;;  %v934_v2 = vld [vmem:[%s12758_s20 + $0x8] sm:$0xff]  ;;  %9978 = vmatprep.subr.bf16.mxu1 %v10866_v21 }
 0x9d2   : > { %v4900_v32 = vpack.c.bf16 %v934_v2, %v933_v19  ;;  %9979 = vmatpush3.bf16.msra.mxu1 %v10866_v21  ;;  %v10868_v5 = vld [vmem:[#allocation19 + $0x10] sm:$0xff]   ;;  %v11607_v21 = vld [vmem:[%s12750_s13 + $0x60] sm:$0xff] }
 0x9d3   : > { %9950 = vmatprep.mubr.msk.bf16.mxu1 %vm951_vm0, %v4184_v10  ;;  %9980 = vmatprep.subr.bf16.mxu1 %v10867_v50  ;;  %v10869_v10 = vld [vmem:[#allocation19 + $0x18] sm:$0xff]  }
 0x9d6   : > { %v10722_v18 = vpop.permute.xlu1 %10721  ;;  %9981 = vmatpush3.bf16.msra.mxu1 %v10867_v50 }
 0x9d7   : > { %v10724_v15 = vunpack.i.h.bf16 %v10722_v18  ;;  %v10723_v0 = vunpack.i.l.bf16 %v10722_v18  ;;  %9982 = vmatprep.subr.bf16.mxu1 %v10868_v5  ;;  %v936_v18 = vld [vmem:[%s12758_s20 + $0x18] sm:$0xff] }
 0x9d8   : > { %v4901_v61 = vpack.c.bf16 %v936_v18, %v935_v56  ;;  %v11609_v56 = vld [vmem:[%s12750_s13 + $0x68] sm:$0xff] }
 0x9d9   : > { %v4160_v3 = vsel %vm4144_vm4, %v4143_v35, %v10724_v15  ;;  %v4159_v42 = vsel %vm4144_vm4, %v4142_v24, %v10723_v0 }
 0x9da   : > { %v10727_v52 = vpop.permute.xlu1 %10726  ;;  %9983 = vmatpush3.bf16.msra.mxu1 %v10868_v5  ;;  %v11608_v5 = vld [vmem:[%s12750_s13 + $0x70] sm:$0xff] }
 0x9db   : > { %v10729_v25 = vunpack.i.h.bf16 %v10727_v52  ;;  %v10728_v40 = vunpack.i.l.bf16 %v10727_v52  ;;  %9984 = vmatprep.subr.bf16.mxu1 %v10869_v10 }
 0x9dd   : > { %v4176_v20 = vsel %vm4161_vm5, %v4159_v42, %v10728_v40  ;;  %v4177_v60 = vsel %vm4161_vm5, %v4160_v3, %v10729_v25 }
 0x9de   : > { %v4185_v33 = vpack.c.bf16 %v4177_v60, %v4176_v20  ;;  %9985 = vmatpush3.bf16.msra.mxu1 %v10869_v10  ;;  %v11603_v60 = vld [vmem:[%s12750_s13 + $0x40] sm:$0xff] }
 0x9e0   : > { %9951 = vmatmul.mubr.msk.bf16.gmra.mrb[76].mxu1 %vm951_vm0, %v4185_v33 }
 0x9e1   : > { %9986 = vmatprep.mubr.msk.bf16.mxu1 %vm951_vm0, %v4900_v32 }
 0x9e8   : > { %9987 = vmatmul.mubr.msk.bf16.vlgmr.msra.gmra.mrb[80].mxu1 %vm951_vm0, %v4901_v61 }
 0xa07   : > { %v9940_v14 = vpop.f32.mrb[64].mxu1 }
 0xa08   : > { %v4283_v30 = vpop.f32.mrb[65].mxu1  ;;  %v4292_v51 = vadd.f32 %v9940_v14, %v14559_v1 }
 0xa09   : > { %v4284_v57 = vadd.f32 %v14559_v1, %v4283_v30  ;;  %v9941_v13 = vpop.f32.mrb[66].mxu1 }
 0xa0a   : > { %v4286_v39 = vpop.f32.mrb[67].mxu1  ;;  %v14568_v58 = vadd.f32 %v11596_v59, %v4292_v51  ;;  %v4295_v45 = vadd.f32 %v9941_v13, %v14559_v1 }
 0xa0b   : > { %v14564_v17 = vadd.f32 %v11595_v6, %v4284_v57  ;;  %v4287_v8 = vadd.f32 %v14559_v1, %v4286_v39  ;;  %v11604_v39 = vld [vmem:[%s12750_s13 + $0x50] sm:$0xff] }
 0xa0c   : > { %17271 = vst [vmem:[#allocation43_spill] sm:$0xff] %v14568_v58  ;;  %v14579_v53 = vadd.f32 %v11598_v9, %v4295_v45  ;;  %v4370_v63 = vsel %vm951_vm0, %v14568_v58, 0.0 }
 0xa0d   : > { %17270 = vst [vmem:[#allocation47_spill] sm:$0xff] %v14564_v17  ;;  %v14572_v22 = vadd.f32 %v11597_v23, %v4287_v8  ;;  %v4364_v7 = vsel %vm951_vm0, %v14564_v17, 0.0  ;;  %v11605_v8 = vld [vmem:[%s12750_s13 + $0x48] sm:$0xff] }
 0xa0e   : > { %4365 = vadd.xlane.f32.xlu0 %v4364_v7  ;;  %17273 = vst [vmem:[#allocation50_spill] sm:$0xff] %v14579_v53  ;;  %v4373_v55 = vsel %vm951_vm0, %v14579_v53, 0.0 }
 0xa0f   : > { %17272 = vst [vmem:[#allocation49_spill] sm:$0xff] %v14572_v22  ;;  %v4367_v31 = vsel %vm951_vm0, %v14572_v22, 0.0 }
 0xa10   : > { %4368 = vadd.xlane.f32.xlu1 %v4367_v31  ;;  %v11606_v31 = vld [vmem:[%s12750_s13 + $0x58] sm:$0xff] }
 0xa12   : > { %4371 = vadd.xlane.f32.xlu0 %v4370_v63 }
 0xa16   : > { %4374 = vadd.xlane.f32.xlu0 %v4373_v55 }
 0xa2a   : > { %v9944_v34 = vpop.f32.mrb[68].mxu1 }
 0xa2b   : > { %v4299_v47 = vpop.f32.mrb[69].mxu1  ;;  %v4308_v37 = vadd.f32 %v9944_v34, %v14559_v1 }
 0xa2c   : > { %v4300_v43 = vadd.f32 %v14559_v1, %v4299_v47  ;;  %v9945_v44 = vpop.f32.mrb[70].mxu1 }
 0xa2d   : > { %v4302_v54 = vpop.f32.mrb[71].mxu1  ;;  %v4311_v38 = vadd.f32 %v9945_v44, %v14559_v1  ;;  %v14593_v29 = vadd.f32 %v11600_v27, %v4308_v37 }
 0xa2e   : > { %v14588_v48 = vadd.f32 %v11599_v11, %v4300_v43  ;;  %v4303_v49 = vadd.f32 %v14559_v1, %v4302_v54 }
 0xa2f   : > { %17275 = vst [vmem:[#allocation45_spill] sm:$0xff] %v14593_v29  ;;  %v14601_v62 = vadd.f32 %v11602_v36, %v4311_v38  ;;  %v4382_v28 = vsel %vm951_vm0, %v14593_v29, 0.0 }
 0xa30   : > { %17274 = vst [vmem:[#allocation51_spill] sm:$0xff] %v14588_v48  ;;  %v14596_v16 = vadd.f32 %v11601_v46, %v4303_v49  ;;  %v4376_v12 = vsel %vm951_vm0, %v14588_v48, 0.0 }
 0xa31   : > { %4377 = vadd.xlane.f32.xlu0 %v4376_v12  ;;  %17277 = vst [vmem:[#allocation70_spill] sm:$0xff] %v14601_v62  ;;  %v4385_v4 = vsel %vm951_vm0, %v14601_v62, 0.0 }
 0xa32   : > { %17276 = vst [vmem:[#allocation44_spill] sm:$0xff] %v14596_v16  ;;  %v4379_v26 = vsel %vm951_vm0, %v14596_v16, 0.0 }
 0xa33   : > { %4380 = vadd.xlane.f32.xlu1 %v4379_v26 }
 0xa35   : > { %4383 = vadd.xlane.f32.xlu0 %v4382_v28 }
 0xa37   : > { %4386 = vadd.xlane.f32.xlu1 %v4385_v4 }
 0xa9b   : > { %v4366_v41 = vpop.xlane.xlu0 %4365 }
 0xa9c   : > { %v4412_v52 = vmul.f32 0.015625, %v4366_v41  ;;  %v11610_v41 = vld [vmem:[%s12750_s13 + $0x78] sm:$0xff] }
 0xa9d   : > { %v4369_v24 = vpop.xlane.xlu1 %4368 }
 0xa9e   : > { %v4413_v20 = vmul.f32 0.015625, %v4369_v24  ;;  %v14623_v51 = vsub.f32 %v14564_v17, %v4412_v52 }
 0xa9f   : > { %v4372_v15 = vpop.xlane.xlu0 %4371 }
 0xaa0   : > { %v4414_v13 = vmul.f32 0.015625, %v4372_v15  ;;  %v14634_v23 = vsub.f32 %v14572_v22, %v4413_v20  ;;  %v4444_v47 = vmul.f32 %v14623_v51, %v14623_v51 }
 0xaa2   : > { %v14642_v55 = vsub.f32 %v14568_v58, %v4414_v13  ;;  %v4445_v44 = vmul.f32 %v14634_v23, %v14634_v23  ;;  %v4460_v54 = vsel %vm951_vm0, %v4444_v47, 0.0 }
 0xaa3   : > { %v9948_v0 = vpop.f32.mrb[72].mxu1  ;;  %v4375_v57 = vpop.xlane.xlu0 %4374 }
 0xaa4   : > { %v4315_v35 = vpop.f32.mrb[73].mxu1  ;;  %v4324_v25 = vadd.f32 %v9948_v0, %v14559_v1  ;;  %v4415_v7 = vmul.f32 0.015625, %v4375_v57  ;;  %v4446_v11 = vmul.f32 %v14642_v55, %v14642_v55  ;;  %v4463_v49 = vsel %vm951_vm0, %v4445_v44, 0.0  ;;  %v10871_v44 = vld [vmem:[%s17286_s12 + $0x8] sm:$0xff]  }
 0xaa5   : > { %v4316_v40 = vadd.f32 %v14559_v1, %v4315_v35  ;;  %v9949_v3 = vpop.f32.mrb[74].mxu1 }
 0xaa6   : > { %v4318_v42 = vpop.f32.mrb[75].mxu1  ;;  %v4327_v14 = vadd.f32 %v9949_v3, %v14559_v1  ;;  %v14626_v6 = vadd.f32 %v11604_v39, %v4324_v25  ;;  %v14649_v37 = vsub.f32 %v14579_v53, %v4415_v7  ;;  %v4466_v28 = vsel %vm951_vm0, %v4446_v11, 0.0  ;;  %v10873_v11 = vld [vmem:[%s17286_s12 + $0x18] sm:$0xff]  }
 0xaa7   : > { %v14618_v33 = vadd.f32 %v11603_v60, %v4316_v40  ;;  %v4319_v30 = vadd.f32 %v14559_v1, %v4318_v42 }
 0xaa8   : > { %17279 = vst [vmem:[#allocation72_spill] sm:$0xff] %v14626_v6  ;;  %v14637_v9 = vadd.f32 %v11606_v31, %v4327_v14  ;;  %v4394_v34 = vsel %vm951_vm0, %v14626_v6, 0.0  ;;  %v4447_v27 = vmul.f32 %v14649_v37, %v14649_v37 }
 0xaa9   : > { %17278 = vst [vmem:[#allocation73_spill] sm:$0xff] %v14618_v33  ;;  %v14629_v59 = vadd.f32 %v11605_v8, %v4319_v30  ;;  %v4388_v45 = vsel %vm951_vm0, %v14618_v33, 0.0 }
 0xaaa   : > { %4389 = vadd.xlane.f32.xlu0 %v4388_v45  ;;  %17281 = vst [vmem:[#allocation68_spill] sm:$0xff] %v14637_v9  ;;  %v4397_v43 = vsel %vm951_vm0, %v14637_v9, 0.0  ;;  %v4469_v32 = vsel %vm951_vm0, %v4447_v27, 0.0  ;;  %v939_v27 = vld [vmem:[%s12758_s20 + $0x30] sm:$0xff] }
 0xaab   : > { %17280 = vst [vmem:[#allocation52_spill] sm:$0xff] %v14629_v59  ;;  %v4391_v63 = vsel %vm951_vm0, %v14629_v59, 0.0 }
 0xaac   : > { %4392 = vadd.xlane.f32.xlu1 %v4391_v63 }
 0xaae   : > { %4395 = vadd.xlane.f32.xlu0 %v4394_v34 }
 0xab0   : > { %4398 = vadd.xlane.f32.xlu1 %v4397_v43  ;;  %v10870_v43 = vld [vmem:[%s17286_s12] sm:$0xff]  }
 0xab1   : > { %9954 = vmatprep.subr.bf16.mxu0 %v10870_v43 }
 0xab2   : > { %4461 = vadd.xlane.f32.xlu0 %v4460_v54  ;;  %9955 = vmatpush3.bf16.msra.mxu0 %v10870_v43  ;;  %v10872_v54 = vld [vmem:[%s17286_s12 + $0x10] sm:$0xff]  }
 0xab3   : > { %v9952_v38 = vpop.f32.mrb[76].mxu1  ;;  %9956 = vmatprep.subr.bf16.mxu0 %v10871_v44 }
 0xab4   : > { %v4331_v46 = vpop.f32.mrb[77].mxu1  ;;  %4464 = vadd.xlane.f32.xlu1 %v4463_v49  ;;  %v4340_v12 = vadd.f32 %v9952_v38, %v14559_v1  ;;  %v937_v38 = vld [vmem:[%s12758_s20 + $0x20] sm:$0xff]  ;;  %v938_v49 = vld [vmem:[%s12758_s20 + $0x28] sm:$0xff] }
 0xab5   : > { %v4332_v36 = vadd.f32 %v14559_v1, %v4331_v46  ;;  %v9953_v26 = vpop.f32.mrb[78].mxu1  ;;  %v4902_v46 = vpack.c.bf16 %v938_v49, %v937_v38 }
 0xab6   : > { %v4334_v4 = vpop.f32.mrb[79].mxu1  ;;  %4467 = vadd.xlane.f32.xlu0 %v4466_v28  ;;  %v4343_v19 = vadd.f32 %v9953_v26, %v14559_v1  ;;  %v14671_v10 = vadd.f32 %v11608_v5, %v4340_v12  ;;  %9957 = vmatpush3.bf16.msra.mxu0 %v10871_v44  ;;  %v940_v12 = vld [vmem:[%s12758_s20 + $0x38] sm:$0xff]  ;;  %v941_v26 = vld [vmem:[%s12758_s20 + $0x40] sm:$0xff]  ;;  %v942_v28 = vld [vmem:[%s12758_s20 + $0x48] sm:$0xff] }
 0xab7   : > { %v14665_v50 = vadd.f32 %v11607_v21, %v4332_v36  ;;  %v4335_v2 = vadd.f32 %v14559_v1, %v4334_v4  ;;  %9958 = vmatprep.subr.bf16.mxu0 %v10872_v54  ;;  %v4903_v36 = vpack.c.bf16 %v940_v12, %v939_v27  ;;  %9990 = vmatprep.mubr.msk.bf16.mxu1 %vm951_vm0, %v4902_v46  ;;  %v943_v4 = vld [vmem:[%s12758_s20 + $0x50] sm:$0xff] }
 0xab8   : > { %4470 = vadd.xlane.f32.xlu1 %v4469_v32  ;;  %17283 = vst [vmem:[#allocation55_spill] sm:$0xff] %v14671_v10  ;;  %v14679_v15 = vadd.f32 %v11610_v41, %v4343_v19  ;;  %v4406_v1 = vsel %vm951_vm0, %v14671_v10, 0.0  ;;  %v4904_v21 = vpack.c.bf16 %v942_v28, %v941_v26  ;;  %v944_v19 = vld [vmem:[%s12758_s20 + $0x58] sm:$0xff] }
 0xab9   : > { %17282 = vst [vmem:[#allocation54_spill] sm:$0xff] %v14665_v50  ;;  %v14674_v18 = vadd.f32 %v11609_v56, %v4335_v2  ;;  %v4400_v61 = vsel %vm951_vm0, %v14665_v50, 0.0  ;;  %9991 = vmatmul.mubr.msk.bf16.gmra.mrb[84].mxu1 %vm951_vm0, %v4903_v36  ;;  %v4905_v2 = vpack.c.bf16 %v944_v19, %v943_v4 }
 0xaba   : > { %4401 = vadd.xlane.f32.xlu0 %v4400_v61  ;;  %17285 = vst [vmem:[#allocation69_spill] sm:$0xff] %v14679_v15  ;;  %v4409_v35 = vsel %vm951_vm0, %v14679_v15, 0.0  ;;  %9959 = vmatpush3.bf16.msra.mxu0 %v10872_v54 }
 0xabb   : > { %17284 = vst [vmem:[#allocation53_spill] sm:$0xff] %v14674_v18  ;;  %v4403_v0 = vsel %vm951_vm0, %v14674_v18, 0.0  ;;  %9960 = vmatprep.subr.bf16.mxu0 %v10873_v11  ;;  %9994 = vmatprep.mubr.msk.bf16.mxu1 %vm951_vm0, %v4904_v21 }
 0xabc   : > { %4404 = vadd.xlane.f32.xlu1 %v4403_v0 }
 0xabe   : > { %4407 = vadd.xlane.f32.xlu0 %v4406_v1  ;;  %v4378_v52 = vpop.xlane.xlu0 %4377  ;;  %9961 = vmatpush3.bf16.msra.mxu0 %v10873_v11 }
 0xabf   : > { %v4416_v24 = vmul.f32 0.015625, %v4378_v52 }
 0xac0   : > { %4410 = vadd.xlane.f32.xlu1 %v4409_v35  ;;  %v4381_v25 = vpop.xlane.xlu1 %4380 }
 0xac1   : > { %v14688_v40 = vsub.f32 %v14588_v48, %v4416_v24  ;;  %v4417_v3 = vmul.f32 0.015625, %v4381_v25  ;;  %9995 = vmatmul.mubr.msk.bf16.gmra.mrb[88].mxu1 %vm951_vm0, %v4905_v2 }
 0xac2   : > { %v4384_v42 = vpop.xlane.xlu0 %4383 }
 0xac3   : > { %v14691_v20 = vsub.f32 %v14596_v16, %v4417_v3  ;;  %v4418_v60 = vmul.f32 0.015625, %v4384_v42  ;;  %v4448_v14 = vmul.f32 %v14688_v40, %v14688_v40 }
 0xac4   : > { %v4387_v30 = vpop.xlane.xlu1 %4386 }
 0xac5   : > { %v14696_v57 = vsub.f32 %v14593_v29, %v4418_v60  ;;  %v4419_v13 = vmul.f32 0.015625, %v4387_v30  ;;  %v4472_v39 = vsel %vm951_vm0, %v4448_v14, 0.0  ;;  %v4449_v8 = vmul.f32 %v14691_v20, %v14691_v20 }
 0xac6   : > { %4473 = vadd.xlane.f32.xlu0 %v4472_v39 }
 0xac7   : > { %v14702_v45 = vsub.f32 %v14601_v62, %v4419_v13  ;;  %v4450_v7 = vmul.f32 %v14696_v57, %v14696_v57  ;;  %v4475_v31 = vsel %vm951_vm0, %v4449_v8, 0.0 }
 0xac8   : > { %4476 = vadd.xlane.f32.xlu1 %v4475_v31 }
 0xac9   : > { %v4478_v63 = vsel %vm951_vm0, %v4450_v7, 0.0  ;;  %v4451_v34 = vmul.f32 %v14702_v45, %v14702_v45 }
 0xaca   : > { %4479 = vadd.xlane.f32.xlu0 %v4478_v63 }
 0xacb   : > { %v4481_v47 = vsel %vm951_vm0, %v4451_v34, 0.0 }
 0xacc   : > { %4482 = vadd.xlane.f32.xlu1 %v4481_v47 }
 0xb37   : > { %v4390_v32 = vpop.xlane.xlu0 %4389 }
 0xb38   : > { %v4420_v5 = vmul.f32 0.015625, %v4390_v32 }
 0xb39   : > { %v4393_v56 = vpop.xlane.xlu1 %4392 }
 0xb3a   : > { %v14736_v61 = vsub.f32 %v14618_v33, %v4420_v5  ;;  %v4421_v41 = vmul.f32 0.015625, %v4393_v56 }
 0xb3b   : > { %v4396_v0 = vpop.xlane.xlu0 %4395 }
 0xb3c   : > { %v14739_v1 = vsub.f32 %v14629_v59, %v4421_v41  ;;  %v4422_v52 = vmul.f32 0.015625, %v4396_v0  ;;  %v4452_v24 = vmul.f32 %v14736_v61, %v14736_v61  ;;  %v15376_v59 = vld [vmem:[#allocation7 + $0x28] sm:$0xff] }
 0xb3d   : > { %v4399_v35 = vpop.xlane.xlu1 %4398 }
 0xb3e   : > { %v14744_v25 = vsub.f32 %v14626_v6, %v4422_v52  ;;  %v4423_v3 = vmul.f32 0.015625, %v4399_v35  ;;  %v4484_v42 = vsel %vm951_vm0, %v4452_v24, 0.0  ;;  %v4453_v14 = vmul.f32 %v14739_v1, %v14739_v1 }
 0xb3f   : > { %4485 = vadd.xlane.f32.xlu0 %v4484_v42  ;;  %v4462_v60 = vpop.xlane.xlu0 %4461 }
 0xb40   : > { %v14750_v30 = vsub.f32 %v14637_v9, %v4423_v3  ;;  %v4508_v13 = vmul.f32 0.015873017, %v4462_v60  ;;  %v4454_v39 = vmul.f32 %v14744_v25, %v14744_v25  ;;  %v4487_v7 = vsel %vm951_vm0, %v4453_v14, 0.0 }
 0xb41   : > { %v4465_v8 = vpop.xlane.xlu1 %4464  ;;  %4488 = vadd.xlane.f32.xlu1 %v4487_v7 }
 0xb42   : > { %11211 = vrsqrt.f32 %v4508_v13  ;;  %v4509_v31 = vmul.f32 0.015873017, %v4465_v8  ;;  %v4490_v63 = vsel %vm951_vm0, %v4454_v39, 0.0  ;;  %v4455_v47 = vmul.f32 %v14750_v30, %v14750_v30 }
 0xb43   : > { %v4468_v34 = vpop.xlane.xlu0 %4467  ;;  %4491 = vadd.xlane.f32.xlu0 %v4490_v63  ;;  %vm4526_vm6 = vcmp.eq.f32.partialorder %v4508_v13, inf  ;;  %vm4528_vm7 = vcmp.eq.f32.partialorder %v4508_v13, 0.0  ;;  %v4529_v2 = vand.u32 2147483648, %v4508_v13 }
 0xb44   : > { %v4510_v43 = vmul.f32 0.015873017, %v4468_v34  ;;  %11213 = vrsqrt.f32 %v4509_v31  ;;  %v4493_v54 = vsel %vm951_vm0, %v4455_v47, 0.0  ;;  %vm4533_vm8 = vcmp.eq.f32.partialorder %v4509_v31, inf }
 0xb45   : > { %v4471_v44 = vpop.xlane.xlu1 %4470  ;;  %4494 = vadd.xlane.f32.xlu1 %v4493_v54  ;;  %vm4535_vm9 = vcmp.eq.f32.partialorder %v4509_v31, 0.0  ;;  %v4536_v24 = vand.u32 2147483648, %v4509_v31 }
 0xb46   : > { %11215 = vrsqrt.f32 %v4510_v43  ;;  %v14759_v11 = vmul.f32 0.015873017, %v4471_v44  ;;  %vm4540_vm10 = vcmp.eq.f32.partialorder %v4510_v43, inf  ;;  %vm4542_vm11 = vcmp.eq.f32.partialorder %v4510_v43, 0.0 }
 0xb47   : > { %v4402_v38 = vpop.xlane.xlu0 %4401  ;;  %v4543_v34 = vand.u32 2147483648, %v4510_v43 }
 0xb48   : > { %v4424_v49 = vmul.f32 0.015625, %v4402_v38  ;;  %11217 = vrsqrt.f32 %v14759_v11  ;;  %vm4547_vm12 = vcmp.eq.f32.partialorder %v14759_v11, inf  ;;  %vm4549_vm13 = vcmp.eq.f32.partialorder %v14759_v11, 0.0 }
 0xb49   : > { %v4405_v27 = vpop.xlane.xlu1 %4404 }
 0xb4a   : > { %v14763_v46 = vsub.f32 %v14665_v50, %v4424_v49  ;;  %v4425_v12 = vmul.f32 0.015625, %v4405_v27 }
 0xb4b   : > { %v4408_v36 = vpop.xlane.xlu0 %4407 }
 0xb4c   : > { %v11212_v26 = vpop.eup %11211  ;;  %v14766_v28 = vsub.f32 %v14674_v18, %v4425_v12  ;;  %v4426_v4 = vmul.f32 0.015625, %v4408_v36  ;;  %v4456_v21 = vmul.f32 %v14763_v46, %v14763_v46  ;;  %v15366_v18 = vld [vmem:[#allocation7 + $0x20] sm:$0xff] }
 0xb4d   : > { %v4525_v19 = vmul.f32 %v11212_v26, %v4508_v13  ;;  %v4411_v32 = vpop.xlane.xlu1 %4410 }
 0xb4e   : > { %v14771_v5 = vsub.f32 %v14671_v10, %v4426_v4  ;;  %v4427_v56 = vmul.f32 0.015625, %v4411_v32  ;;  %v4496_v41 = vsel %vm951_vm0, %v4456_v21, 0.0  ;;  %v11214_v0 = vpop.eup %11213  ;;  %v4457_v35 = vmul.f32 %v14766_v28, %v14766_v28 }
 0xb4f   : > { %v4527_v52 = vsel %vm4526_vm6, %v4508_v13, %v4525_v19  ;;  %4497 = vadd.xlane.f32.xlu0 %v4496_v41  ;;  %v4532_v60 = vmul.f32 %v11214_v0, %v4509_v31  ;;  %v4550_v19 = vand.u32 2147483648, %v14759_v11 }
 0xb50   : > { %v11216_v3 = vpop.eup %11215  ;;  %v4530_v42 = vsel %vm4528_vm7, %v4529_v2, %v4527_v52  ;;  %v14777_v14 = vsub.f32 %v14679_v15, %v4427_v56  ;;  %v4499_v7 = vsel %vm951_vm0, %v4457_v35, 0.0  ;;  %v4458_v13 = vmul.f32 %v14771_v5, %v14771_v5 }
 0xb51   : > { %v4656_v39 = vadd.f32 1e-06, %v4530_v42  ;;  %v4539_v8 = vmul.f32 %v11216_v3, %v4510_v43  ;;  %v4534_v63 = vsel %vm4533_vm8, %v4509_v31, %v4532_v60  ;;  %4500 = vadd.xlane.f32.xlu1 %v4499_v7  ;;  %v14793_v3 = vld [vmem:[#allocation10 + $0x1] ss:$0 sm:$0xff] }
 0xb52   : > { %v4459_v47 = vmul.f32 %v14777_v14, %v14777_v14  ;;  %v11218_v44 = vpop.eup %11217  ;;  %v4537_v54 = vsel %vm4535_vm9, %v4536_v24, %v4534_v63  ;;  %v4502_v49 = vsel %vm951_vm0, %v4458_v13, 0.0  ;;  %v4641_v7 = vmul.f32 %v14793_v3, %v14634_v23 }
 0xb53   : > { %v4541_v38 = vsel %vm4540_vm10, %v4510_v43, %v4539_v8  ;;  %v4474_v27 = vpop.xlane.xlu0 %4473  ;;  %11219 = vrcp.f32 %v4656_v39  ;;  %v4657_v12 = vadd.f32 1e-06, %v4537_v54  ;;  %v4546_v26 = vmul.f32 %v11218_v44, %v14759_v11  ;;  %4503 = vadd.xlane.f32.xlu0 %v4502_v49  ;;  %v14803_v54 = vld [vmem:[#allocation11 + $0x1] ss:$0 sm:$0xff] }
 0xb54   : > { %v4544_v36 = vsel %vm4542_vm11, %v4543_v34, %v4541_v38  ;;  %v4512_v4 = vmul.f32 0.015873017, %v4474_v27  ;;  %v4505_v2 = vsel %vm951_vm0, %v4459_v47, 0.0  ;;  %v4642_v39 = vmul.f32 %v14793_v3, %v14642_v55 }
 0xb55   : > { %v4658_v21 = vadd.f32 1e-06, %v4544_v36  ;;  %v4548_v31 = vsel %vm4547_vm12, %v14759_v11, %v4546_v26  ;;  %4506 = vadd.xlane.f32.xlu1 %v4505_v2  ;;  %v4477_v43 = vpop.xlane.xlu1 %4476  ;;  %v4640_v11 = vmul.f32 %v14793_v3, %v14623_v51  ;;  %v4643_v13 = vmul.f32 %v14793_v3, %v14649_v37 }
 0xb56   : > { %11221 = vrsqrt.f32 %v4512_v4  ;;  %v4551_v32 = vsel %vm4549_vm13, %v4550_v19, %v4548_v31  ;;  %v4513_v56 = vmul.f32 0.015873017, %v4477_v43  ;;  %vm4554_vm14 = vcmp.eq.f32.partialorder %v4512_v4, inf }
 0xb57   : > { %11223 = vrcp.f32 %v4658_v21  ;;  %v4480_v41 = vpop.xlane.xlu0 %4479  ;;  %v4659_v0 = vadd.f32 1e-06, %v4551_v32  ;;  %vm4556_vm15 = vcmp.eq.f32.partialorder %v4512_v4, 0.0  ;;  %v4557_v44 = vand.u32 2147483648, %v4512_v4 }
 0xb58   : > { %v4514_v52 = vmul.f32 0.015873017, %v4480_v41  ;;  %11225 = vrcp.f32 %v4657_v12  ;;  %vm4561_vm1 = vcmp.eq.f32.partialorder %v4513_v56, inf  ;;  %vm4563_vm2 = vcmp.eq.f32.partialorder %v4513_v56, 0.0 }
 0xb59   : > { %11227 = vrsqrt.f32 %v4513_v56  ;;  %v4483_v24 = vpop.xlane.xlu1 %4482  ;;  %v4564_v36 = vand.u32 2147483648, %v4513_v56 }
 0xb5a   : > { %11229 = vrcp.f32 %v4659_v0  ;;  %v4515_v35 = vmul.f32 0.015873017, %v4483_v24  ;;  %vm4568_vm6 = vcmp.eq.f32.partialorder %v4514_v52, inf  ;;  %v4571_v32 = vand.u32 2147483648, %v4514_v52 }
 0xb5b   : > { %11231 = vrsqrt.f32 %v4514_v52  ;;  %vm4570_vm7 = vcmp.eq.f32.partialorder %v4514_v52, 0.0 }
 0xb5c   : > { %11233 = vrsqrt.f32 %v4515_v35  ;;  %vm4575_vm8 = vcmp.eq.f32.partialorder %v4515_v35, inf  ;;  %vm4577_vm9 = vcmp.eq.f32.partialorder %v4515_v35, 0.0 }
 0xb5d   : > { %v11220_v42 = vpop.eup %11219 }
 0xb5e   : > { %v4673_v34 = vmul.f32 %v11220_v42, %v4640_v11 }
 0xb60   : > { %v11222_v60 = vpop.eup %11221  ;;  %v4708_v21 = vadd.f32 %v14803_v54, %v4673_v34 }
 0xb61   : > { %v11224_v8 = vpop.eup %11223  ;;  %v4553_v63 = vmul.f32 %v11222_v60, %v4512_v4 }
 0xb62   : > { %v11226_v47 = vpop.eup %11225  ;;  %v4677_v51 = vmul.f32 %v11224_v8, %v4642_v39 }
 0xb63   : > { %v11228_v38 = vpop.eup %11227  ;;  %v4555_v49 = vsel %vm4554_vm14, %v4512_v4, %v4553_v63  ;;  %v4675_v55 = vmul.f32 %v11226_v47, %v4641_v7  ;;  %v4578_v7 = vand.u32 2147483648, %v4515_v35 }
 0xb64   : > { %v11230_v27 = vpop.eup %11229  ;;  %v4558_v12 = vsel %vm4556_vm15, %v4557_v44, %v4555_v49  ;;  %v4560_v23 = vmul.f32 %v11228_v38, %v4513_v56  ;;  %v4710_v4 = vadd.f32 %v14803_v54, %v4677_v51  ;;  %v4645_v51 = vmul.f32 %v14793_v3, %v14691_v20  ;;  %v945_v20 = vld [vmem:[%s12758_s20 + $0x60] sm:$0xff] }
 0xb65   : > { %v11232_v37 = vpop.eup %11231  ;;  %v4660_v26 = vadd.f32 1e-06, %v4558_v12  ;;  %v4709_v19 = vadd.f32 %v14803_v54, %v4675_v55  ;;  %v4679_v2 = vmul.f32 %v11230_v27, %v4643_v13  ;;  %v4647_v12 = vmul.f32 %v14793_v3, %v14702_v45  ;;  %v948_v45 = vld [vmem:[%s12758_s20 + $0x78] sm:$0xff] }
 0xb66   : > { %v4562_v31 = vsel %vm4561_vm1, %v4513_v56, %v4560_v23  ;;  %v4567_v43 = vmul.f32 %v11232_v37, %v4514_v52  ;;  %v11234_v41 = vpop.eup %11233 }
 0xb67   : > { %v4565_v0 = vsel %vm4563_vm2, %v4564_v36, %v4562_v31  ;;  %v4724_v24 = vpack.c.bf16 %v4709_v19, %v4708_v21  ;;  %v4711_v42 = vadd.f32 %v14803_v54, %v4679_v2  ;;  %11235 = vrcp.f32 %v4660_v26  ;;  %v946_v19 = vld [vmem:[%s12758_s20 + $0x68] sm:$0xff]  ;;  %v947_v2 = vld [vmem:[%s12758_s20 + $0x70] sm:$0xff]  ;;  %v9988_v31 = vpop.f32.mrb[80].mxu1  ;;  %s17443_s20 = smov 48  }
 0xb68   : > { %v4661_v11 = vadd.f32 1e-06, %v4565_v0  ;;  %v4569_v60 = vsel %vm4568_vm6, %v4514_v52, %v4567_v43  ;;  %v4574_v39 = vmul.f32 %v11234_v41, %v4515_v35  ;;  %v4644_v52 = vmul.f32 %v14793_v3, %v14688_v40  ;;  %v5005_v41 = vpop.f32.mrb[81].mxu1 }
 0xb69   : > { %v4572_v8 = vsel %vm4570_vm7, %v4571_v32, %v4569_v60  ;;  %9962 = vmatprep.mubr.msk.bf16.mxu0 %vm951_vm0, %v4724_v24  ;;  %v4725_v13 = vpack.c.bf16 %v4711_v42, %v4710_v4  ;;  %v4906_v32 = vpack.c.bf16 %v946_v19, %v945_v20  ;;  %v14830_v4 = vld [vmem:[#allocation20] ss:$0 sm:$0xff]  ;;  %v4907_v0 = vpack.c.bf16 %v948_v45, %v947_v2 }
 0xb6a   : > { %v4662_v63 = vadd.f32 1e-06, %v4572_v8  ;;  %v4576_v34 = vsel %vm4575_vm8, %v4515_v35, %v4574_v39  ;;  %11237 = vrcp.f32 %v4661_v11  ;;  %v4646_v35 = vmul.f32 %v14793_v3, %v14696_v57  ;;  %v9989_v11 = vpop.f32.mrb[82].mxu1 }
 0xb6b   : > { %v4579_v56 = vsel %vm4577_vm9, %v4578_v7, %v4576_v34  ;;  %9963 = vmatmul.mubr.msk.bf16.vlgmr.msra.gmra.mrb[96].mxu0 %vm951_vm0, %v4725_v13  ;;  %v5014_v24 = vadd.f32 %v9988_v31, %v14830_v4  ;;  %v5006_v42 = vadd.f32 %v14830_v4, %v5005_v41  ;;  %9998 = vmatprep.mubr.msk.bf16.mxu1 %vm951_vm0, %v4906_v32  ;;  %v5008_v8 = vpop.f32.mrb[83].mxu1 }
 0xb6c   : > { %v4663_v47 = vadd.f32 1e-06, %v4579_v56  ;;  %11239 = vrcp.f32 %v4662_v63  ;;  %v5017_v39 = vadd.f32 %v9989_v11, %v14830_v4  ;;  %9999 = vmatmul.mubr.msk.bf16.gmra.mrb[92].mxu1 %vm951_vm0, %v4907_v0  ;;  %v5009_v7 = vadd.f32 %v14830_v4, %v5008_v8 }
 0xb6e   : > { %11241 = vrcp.f32 %v4663_v47  ;;  %v14839_v13 = vpack.c.bf16 %v5017_v39, %v5014_v24  ;;  %v14841_v63 = vpack.c.bf16 %v5009_v7, %v5006_v42 }
 0xb70   : > { %5142 = vrot.lane.b32.xlu1 %v14839_v13, %s12162_s5  ;;  %10390 = vmatprep.subr.msk.bf16.mxu1 %vm1687_vm3, %v14839_v13 }
 0xb71   : > { %v11236_v44 = vpop.eup %11235  ;;  %5140 = vrot.lane.b32.xlu0 %v14841_v63, %s12162_s5  ;;  %10386 = vmatprep.subr.msk.bf16.mxu0 %vm1687_vm3, %v14841_v63 }
 0xb72   : > { %v4681_v38 = vmul.f32 %v11236_v44, %v4644_v52 }
 0xb74   : > { %v11238_v49 = vpop.eup %11237  ;;  %v4712_v23 = vadd.f32 %v14803_v54, %v4681_v38  ;;  %5156 = vrot.lane.b32.xlu1 %v14841_v63, %s12161_s0 }
 0xb75   : > { %v4683_v55 = vmul.f32 %v11238_v49, %v4645_v51  ;;  %5172 = vrot.lane.b32.xlu0 %v14841_v63, %s12163_s10 }
 0xb76   : > { %v11240_v27 = vpop.eup %11239 }
 0xb77   : > { %v4713_v36 = vadd.f32 %v14803_v54, %v4683_v55  ;;  %v4685_v40 = vmul.f32 %v11240_v27, %v4646_v35 }
 0xb78   : > { %v11242_v37 = vpop.eup %11241  ;;  %5158 = vrot.lane.b32.xlu1 %v14839_v13, %s12161_s0 }
 0xb79   : > { %v4726_v26 = vpack.c.bf16 %v4713_v36, %v4712_v23  ;;  %v4687_v21 = vmul.f32 %v11242_v37, %v4647_v12  ;;  %v4714_v57 = vadd.f32 %v14803_v54, %v4685_v40 }
 0xb7b   : > { %9966 = vmatprep.mubr.msk.bf16.mxu0 %vm951_vm0, %v4726_v26  ;;  %v4715_v43 = vadd.f32 %v14803_v54, %v4687_v21 }
 0xb7c   : > { %5174 = vrot.lane.b32.xlu1 %v14839_v13, %s12163_s10 }
 0xb7d   : > { %v4727_v60 = vpack.c.bf16 %v4715_v43, %v4714_v57 }
 0xb7f   : > { %9967 = vmatmul.mubr.msk.bf16.gmra.mrb[100].mxu0 %vm951_vm0, %v4727_v60 }
 0xb8c   : > { %v9992_v34 = vpop.f32.mrb[84].mxu1 }
 0xb8d   : > { %v5030_v56 = vadd.f32 %v9992_v34, %v14830_v4  ;;  %v5021_v47 = vpop.f32.mrb[85].mxu1 }
 0xb8e   : > { %v5022_v44 = vadd.f32 %v14830_v4, %v5021_v47  ;;  %v9993_v52 = vpop.f32.mrb[86].mxu1 }
 0xb8f   : > { %v5033_v51 = vadd.f32 %v9993_v52, %v14830_v4  ;;  %v5024_v38 = vpop.f32.mrb[87].mxu1 }
 0xb90   : > { %v5025_v49 = vadd.f32 %v14830_v4, %v5024_v38 }
 0xb91   : > { %v14863_v35 = vpack.c.bf16 %v5033_v51, %v5030_v56 }
 0xb92   : > { %v14865_v55 = vpack.c.bf16 %v5025_v49, %v5022_v44 }
 0xb94   : > { %v9996_v19 = vpop.f32.mrb[88].mxu1 }
 0xb95   : > { %v5046_v31 = vadd.f32 %v9996_v19, %v14830_v4  ;;  %v5037_v57 = vpop.f32.mrb[89].mxu1 }
 0xb96   : > { %v9997_v32 = vpop.f32.mrb[90].mxu1  ;;  %v5038_v24 = vadd.f32 %v14830_v4, %v5037_v57 }
 0xb97   : > { %v5049_v42 = vadd.f32 %v9997_v32, %v14830_v4  ;;  %v5040_v11 = vpop.f32.mrb[91].mxu1 }
 0xb98   : > { %v5041_v7 = vadd.f32 %v14830_v4, %v5040_v11  ;;  %v4649_v11 = vmul.f32 %v14793_v3, %v14739_v1 }
 0xb99   : > { %v14871_v47 = vpack.c.bf16 %v5049_v42, %v5046_v31  ;;  %v4648_v42 = vmul.f32 %v14793_v3, %v14736_v61 }
 0xbcc   : > { %v4486_v27 = vpop.xlane.xlu0 %4485 }
 0xbcd   : > { %v4516_v12 = vmul.f32 0.015873017, %v4486_v27 }
 0xbce   : > { %v4489_v23 = vpop.xlane.xlu1 %4488 }
 0xbcf   : > { %11243 = vrsqrt.f32 %v4516_v12  ;;  %v4517_v36 = vmul.f32 0.015873017, %v4489_v23  ;;  %vm4582_vm10 = vcmp.eq.f32.partialorder %v4516_v12, inf  ;;  %v4585_v43 = vand.u32 2147483648, %v4516_v12 }
 0xbd0   : > { %v4492_v40 = vpop.xlane.xlu0 %4491  ;;  %vm4584_vm11 = vcmp.eq.f32.partialorder %v4516_v12, 0.0 }
 0xbd1   : > { %11245 = vrsqrt.f32 %v4517_v36  ;;  %v4518_v37 = vmul.f32 0.015873017, %v4492_v40  ;;  %vm4589_vm12 = vcmp.eq.f32.partialorder %v4517_v36, inf  ;;  %v4592_v56 = vand.u32 2147483648, %v4517_v36 }
 0xbd2   : > { %v4495_v26 = vpop.xlane.xlu1 %4494  ;;  %vm4591_vm13 = vcmp.eq.f32.partialorder %v4517_v36, 0.0 }
 0xbd3   : > { %11247 = vrsqrt.f32 %v4518_v37  ;;  %v4519_v21 = vmul.f32 0.015873017, %v4495_v26  ;;  %vm4596_vm14 = vcmp.eq.f32.partialorder %v4518_v37, inf  ;;  %v4599_v23 = vand.u32 2147483648, %v4518_v37 }
 0xbd4   : > { %v14873_v26 = vpack.c.bf16 %v5041_v7, %v5038_v24  ;;  %vm4598_vm15 = vcmp.eq.f32.partialorder %v4518_v37, 0.0  ;;  %v4650_v7 = vmul.f32 %v14793_v3, %v14744_v25 }
 0xbd5   : > { %11249 = vrsqrt.f32 %v4519_v21  ;;  %vm4603_vm1 = vcmp.eq.f32.partialorder %v4519_v21, inf  ;;  %v4606_v32 = vand.u32 2147483648, %v4519_v21  ;;  %vm4605_vm2 = vcmp.eq.f32.partialorder %v4519_v21, 0.0 }
 0xbd9   : > { %v11244_v20 = vpop.eup %11243 }
 0xbda   : > { %v4581_v2 = vmul.f32 %v11244_v20, %v4516_v12 }
 0xbdb   : > { %v11246_v45 = vpop.eup %11245 }
 0xbdc   : > { %v4583_v41 = vsel %vm4582_vm10, %v4516_v12, %v4581_v2  ;;  %v4498_v0 = vpop.xlane.xlu0 %4497  ;;  %v4588_v39 = vmul.f32 %v11246_v45, %v4517_v36 }
 0xbdd   : > { %v4586_v60 = vsel %vm4584_vm11, %v4585_v43, %v4583_v41  ;;  %v4520_v8 = vmul.f32 0.015873017, %v4498_v0  ;;  %v11248_v44 = vpop.eup %11247 }
 0xbde   : > { %v4664_v34 = vadd.f32 1e-06, %v4586_v60  ;;  %v4590_v52 = vsel %vm4589_vm12, %v4517_v36, %v4588_v39  ;;  %v4501_v51 = vpop.xlane.xlu1 %4500  ;;  %v4595_v49 = vmul.f32 %v11248_v44, %v4518_v37 }
 0xbdf   : > { %11251 = vrsqrt.f32 %v4520_v8  ;;  %v4593_v38 = vsel %vm4591_vm13, %v4592_v56, %v4590_v52  ;;  %v4521_v27 = vmul.f32 0.015873017, %v4501_v51  ;;  %v11250_v20 = vpop.eup %11249  ;;  %vm4610_vm6 = vcmp.eq.f32.partialorder %v4520_v8, inf }
 0xbe0   : > { %v4665_v12 = vadd.f32 1e-06, %v4593_v38  ;;  %v4504_v40 = vpop.xlane.xlu0 %4503  ;;  %11253 = vrcp.f32 %v4664_v34  ;;  %v4597_v19 = vsel %vm4596_vm14, %v4518_v37, %v4595_v49  ;;  %v4602_v31 = vmul.f32 %v11250_v20, %v4519_v21 }
 0xbe1   : > { %11255 = vrsqrt.f32 %v4521_v27  ;;  %v4600_v2 = vsel %vm4598_vm15, %v4599_v23, %v4597_v19  ;;  %v4522_v36 = vmul.f32 0.015873017, %v4504_v40  ;;  %v4613_v34 = vand.u32 2147483648, %v4520_v8 }
 0xbe2   : > { %v4507_v57 = vpop.xlane.xlu1 %4506  ;;  %v4666_v43 = vadd.f32 1e-06, %v4600_v2  ;;  %11257 = vrcp.f32 %v4665_v12  ;;  %v4604_v41 = vsel %vm4603_vm1, %v4519_v21, %v4602_v31  ;;  %v4651_v21 = vmul.f32 %v14793_v3, %v14750_v30 }
 0xbe3   : > { %v14875_v45 = vmul.f32 0.015873017, %v4507_v57  ;;  %11259 = vrsqrt.f32 %v4522_v36  ;;  %v4607_v0 = vsel %vm4605_vm2, %v4606_v32, %v4604_v41  ;;  %vm4612_vm7 = vcmp.eq.f32.partialorder %v4520_v8, 0.0 }
 0xbe4   : > { %v4667_v24 = vadd.f32 1e-06, %v4607_v0  ;;  %vm4617_vm8 = vcmp.eq.f32.partialorder %v4521_v27, inf  ;;  %vm4619_vm9 = vcmp.eq.f32.partialorder %v4521_v27, 0.0  ;;  %v4620_v38 = vand.u32 2147483648, %v4521_v27 }
 0xbe5   : > { %11261 = vrsqrt.f32 %v14875_v45  ;;  %vm4624_vm10 = vcmp.eq.f32.partialorder %v4522_v36, inf  ;;  %vm4626_vm11 = vcmp.eq.f32.partialorder %v4522_v36, 0.0  ;;  %v4627_v12 = vand.u32 2147483648, %v4522_v36 }
 0xbe6   : > { %11263 = vrcp.f32 %v4666_v43  ;;  %vm4631_vm12 = vcmp.eq.f32.partialorder %v14875_v45, inf  ;;  %vm4633_vm13 = vcmp.eq.f32.partialorder %v14875_v45, 0.0  ;;  %v4634_v41 = vand.u32 2147483648, %v14875_v45 }
 0xbe7   : > { %11265 = vrcp.f32 %v4667_v24  ;;  %v5453_v24 = vsel %vm1687_vm3, %v14839_v13, 0 }
 0xbe8   : > { %10019 = vmatpush3.bf16.xpose.msra.mxu1 %v5453_v24 }
 0xbe9   : > { %v11252_v37 = vpop.eup %11251 }
 0xbea   : > { %v4609_v60 = vmul.f32 %v11252_v37, %v4520_v8  ;;  %v11254_v39 = vpop.eup %11253 }
 0xbeb   : > { %v11256_v56 = vpop.eup %11255  ;;  %v4689_v52 = vmul.f32 %v11254_v39, %v4648_v42  ;;  %v14901_v39 = vpop.permute.xlu1 %5142 }
 0xbec   : > { %v4611_v44 = vsel %vm4610_vm6, %v4520_v8, %v4609_v60  ;;  %v4616_v61 = vmul.f32 %v11256_v56, %v4521_v27  ;;  %v11258_v1 = vpop.eup %11257  ;;  %10391 = vmatprep.subr.msk.bf16.mxu1 %vm1687_vm3, %v14901_v39 }
 0xbed   : > { %v4614_v51 = vsel %vm4612_vm7, %v4613_v34, %v4611_v44  ;;  %v11260_v25 = vpop.eup %11259  ;;  %v4691_v30 = vmul.f32 %v11258_v1, %v4649_v11  ;;  %v4716_v19 = vadd.f32 %v14803_v54, %v4689_v52  ;;  %v14905_v44 = vpop.permute.xlu0 %5140 }
 0xbee   : > { %v4668_v49 = vadd.f32 1e-06, %v4614_v51  ;;  %v4618_v23 = vsel %vm4617_vm8, %v4521_v27, %v4616_v61  ;;  %v4623_v20 = vmul.f32 %v11260_v25, %v4522_v36  ;;  %v5364_v27 = vsel %vm1687_vm3, %v14841_v63, 0 }
 0xbef   : > { %v11262_v40 = vpop.eup %11261  ;;  %v4621_v8 = vsel %vm4619_vm9, %v4620_v38, %v4618_v23  ;;  %v4717_v43 = vadd.f32 %v14803_v54, %v4691_v30  ;;  %10003 = vmatpush3.bf16.xpose.msra.mxu0 %v5364_v27  ;;  %v5456_v61 = vsel %vm1687_vm3, %v14901_v39, 0  ;;  %v5367_v38 = vsel %vm1687_vm3, %v14905_v44, 0 }
 0xbf0   : > { %11267 = vrcp.f32 %v4668_v49  ;;  %v11264_v2 = vpop.eup %11263  ;;  %v4669_v31 = vadd.f32 1e-06, %v4621_v8  ;;  %v4630_v57 = vmul.f32 %v11262_v40, %v14875_v45  ;;  %v4625_v32 = vsel %vm4624_vm10, %v4522_v36, %v4623_v20  ;;  %10387 = vmatprep.subr.msk.bf16.mxu0 %vm1687_vm3, %v14905_v44  ;;  %10021 = vmatpush3.bf16.xpose.msra.mxu1 %v5456_v61 }
 0xbf1   : > { %v4693_v0 = vmul.f32 %v11264_v2, %v4650_v7  ;;  %v11266_v37 = vpop.eup %11265  ;;  %v4628_v42 = vsel %vm4626_vm11, %v4627_v12, %v4625_v32  ;;  %v4728_v60 = vpack.c.bf16 %v4717_v43, %v4716_v19  ;;  %v4652_v49 = vmul.f32 %v14793_v3, %v14763_v46  ;;  %v14941_v27 = vpop.permute.xlu0 %5172 }
 0xbf2   : > { %v4632_v11 = vsel %vm4631_vm12, %v14875_v45, %v4630_v57  ;;  %11269 = vrcp.f32 %v4669_v31  ;;  %v4670_v34 = vadd.f32 1e-06, %v4628_v42  ;;  %v4695_v56 = vmul.f32 %v11266_v37, %v4651_v21  ;;  %v14914_v45 = vpop.permute.xlu1 %5156  ;;  %v14961_v42 = vld [vmem:[#allocation17] ss:$0 sm:$0xff] }
 0xbf3   : > { %v4635_v7 = vsel %vm4633_vm13, %v4634_v41, %v4632_v11  ;;  %9970 = vmatprep.mubr.msk.bf16.mxu0 %vm951_vm0, %v4728_v60  ;;  %v4718_v52 = vadd.f32 %v14803_v54, %v4693_v0  ;;  %v4653_v25 = vmul.f32 %v14793_v3, %v14766_v28  ;;  %v4654_v46 = vmul.f32 %v14793_v3, %v14771_v5 }
 0xbf4   : > { %v4671_v36 = vadd.f32 1e-06, %v4635_v7  ;;  %v4719_v51 = vadd.f32 %v14803_v54, %v4695_v56  ;;  %11271 = vrcp.f32 %v4670_v34  ;;  %v4655_v8 = vmul.f32 %v14793_v3, %v14777_v14 }
 0xbf5   : > { %v5370_v2 = vsel %vm1687_vm3, %v14914_v45, 0  ;;  %v5373_v24 = vsel %vm1687_vm3, %v14941_v27, 0 }
 0xbf6   : > { %11273 = vrcp.f32 %v4671_v36  ;;  %v4729_v21 = vpack.c.bf16 %v4719_v51, %v4718_v52  ;;  %v14923_v12 = vpop.permute.xlu1 %5158 }
 0xbf7   : > { %10005 = vmatpush3.bf16.xpose.msra.mxu0 %v5367_v38  ;;  %10392 = vmatprep.subr.msk.bf16.mxu1 %vm1687_vm3, %v14923_v12  ;;  %v5459_v31 = vsel %vm1687_vm3, %v14923_v12, 0 }
 0xbf8   : > { %9971 = vmatmul.mubr.msk.bf16.gmra.mrb[104].mxu0 %vm951_vm0, %v4729_v21  ;;  %10388 = vmatprep.subr.msk.bf16.mxu0 %vm1687_vm3, %v14914_v45 }
 0xbf9   : > { %10023 = vmatpush3.bf16.xpose.msra.mxu1 %v5459_v31 }
 0xbfa   : > { %v11268_v1 = vpop.eup %11267  ;;  %v14943_v41 = vpop.permute.xlu1 %5174 }
 0xbfb   : > { %v4697_v23 = vmul.f32 %v11268_v1, %v4652_v49  ;;  %10393 = vmatprep.subr.msk.bf16.mxu1 %vm1687_vm3, %v14943_v41  ;;  %v5462_v37 = vsel %vm1687_vm3, %v14943_v41, 0 }
 0xbfc   : > { %v11270_v30 = vpop.eup %11269 }
 0xbfd   : > { %v4699_v40 = vmul.f32 %v11270_v30, %v4653_v25  ;;  %v4720_v19 = vadd.f32 %v14803_v54, %v4697_v23 }
 0xbfe   : > { %v11272_v20 = vpop.eup %11271 }
 0xbff   : > { %v4721_v28 = vadd.f32 %v14803_v54, %v4699_v40  ;;  %v4701_v43 = vmul.f32 %v11272_v20, %v4654_v46  ;;  %10007 = vmatpush3.bf16.xpose.msra.mxu0 %v5370_v2 }
 0xc00   : > { %v11274_v57 = vpop.eup %11273  ;;  %10389 = vmatprep.subr.msk.bf16.mxu0 %vm1687_vm3, %v14941_v27 }
 0xc01   : > { %v4730_v32 = vpack.c.bf16 %v4721_v28, %v4720_v19  ;;  %v4703_v5 = vmul.f32 %v11274_v57, %v4655_v8  ;;  %v4722_v14 = vadd.f32 %v14803_v54, %v4701_v43  ;;  %10025 = vmatpush3.bf16.xpose.msra.mxu1 %v5462_v37 }
 0xc02   : > { %10398 = vmatprep.subr.msk.bf16.mxu1 %vm1687_vm3, %v14863_v35 }
 0xc03   : > { %9974 = vmatprep.mubr.msk.bf16.mxu0 %vm951_vm0, %v4730_v32  ;;  %v4723_v3 = vadd.f32 %v14803_v54, %v4703_v5 }
 0xc05   : > { %v4731_v0 = vpack.c.bf16 %v4723_v3, %v4722_v14  ;;  %v5631_v3 = vsel %vm1687_vm3, %v14863_v35, 0 }
 0xc07   : > { %9975 = vmatmul.mubr.msk.bf16.gmra.mrb[108].mxu0 %vm951_vm0, %v4731_v0 }
 0xc08   : > { %10009 = vmatpush3.bf16.xpose.msra.mxu0 %v5373_v24  ;;  %v5542_v24 = vsel %vm1687_vm3, %v14865_v55, 0 }
 0xc09   : > { %10394 = vmatprep.subr.msk.bf16.mxu0 %vm1687_vm3, %v14865_v55 }
 0xc3e   : > { %v9964_v54 = vpop.f32.mrb[96].mxu0 }
 0xc3f   : > { %v4829_v11 = vpop.f32.mrb[97].mxu0  ;;  %v4838_v34 = vadd.f32 %v9964_v54, %v14961_v42  ;;  %v10000_v61 = vpop.f32.mrb[92].mxu1 }
 0xc40   : > { %v9965_v60 = vpop.f32.mrb[98].mxu0  ;;  %v4830_v36 = vadd.f32 %v14961_v42, %v4829_v11  ;;  %v5062_v1 = vadd.f32 %v10000_v61, %v14830_v4  ;;  %v5053_v49 = vpop.f32.mrb[93].mxu1 }
 0xc41   : > { %v4841_v7 = vadd.f32 %v9965_v60, %v14961_v42  ;;  %v4832_v56 = vpop.f32.mrb[99].mxu0  ;;  %v5054_v23 = vadd.f32 %v14830_v4, %v5053_v49  ;;  %v10001_v30 = vpop.f32.mrb[94].mxu1 }
 0xc42   : > { %v4833_v52 = vadd.f32 %v14961_v42, %v4832_v56  ;;  %v5065_v46 = vadd.f32 %v10001_v30, %v14830_v4  ;;  %v5056_v8 = vpop.f32.mrb[95].mxu1 }
 0xc43   : > { %v4893_v51 = vpack.c.bf16 %v4841_v7, %v4838_v34  ;;  %v5057_v2 = vadd.f32 %v14830_v4, %v5056_v8 }
 0xc44   : > { %v4892_v21 = vpack.c.bf16 %v4833_v52, %v4830_v36  ;;  %v14992_v43 = vpack.c.bf16 %v5065_v46, %v5062_v1 }
 0xc45   : > { %5086 = vrot.lane.b32.xlu1 %v4893_v51, %s12162_s5  ;;  %10026 = vmatprep.mubr.msk.bf16.mxu1 %vm1687_vm3, %v4893_v51  ;;  %v14994_v5 = vpack.c.bf16 %v5057_v2, %v5054_v23 }
 0xc46   : > { %5084 = vrot.lane.b32.xlu0 %v4892_v21, %s12162_s5  ;;  %10010 = vmatprep.mubr.msk.bf16.mxu0 %vm1687_vm3, %v4892_v21 }
 0xc49   : > { %5146 = vrot.lane.b32.xlu1 %v14863_v35, %s12162_s5 }
 0xc4a   : > { %5144 = vrot.lane.b32.xlu0 %v14865_v55, %s12162_s5 }
 0xc4d   : > { %5162 = vrot.lane.b32.xlu1 %v14863_v35, %s12161_s0 }
 0xc4e   : > { %5160 = vrot.lane.b32.xlu0 %v14865_v55, %s12161_s0 }
 0xc51   : > { %5176 = vrot.lane.b32.xlu1 %v14865_v55, %s12163_s10 }
 0xc52   : > { %5102 = vrot.lane.b32.xlu0 %v4893_v51, %s12161_s0  ;;  %v9968_v38 = vpop.f32.mrb[100].mxu0 }
 0xc53   : > { %v4845_v25 = vpop.f32.mrb[101].mxu0  ;;  %v4854_v20 = vadd.f32 %v9968_v38, %v14961_v42 }
 0xc54   : > { %v9969_v40 = vpop.f32.mrb[102].mxu0  ;;  %v4846_v31 = vadd.f32 %v14961_v42, %v4845_v25 }
 0xc55   : > { %5116 = vrot.lane.b32.xlu1 %v4892_v21, %s12163_s10  ;;  %v4857_v19 = vadd.f32 %v9969_v40, %v14961_v42  ;;  %v4848_v28 = vpop.f32.mrb[103].mxu0 }
 0xc56   : > { %5100 = vrot.lane.b32.xlu0 %v4892_v21, %s12161_s0  ;;  %v4849_v57 = vadd.f32 %v14961_v42, %v4848_v28 }
 0xc57   : > { %v4895_v32 = vpack.c.bf16 %v4857_v19, %v4854_v20 }
 0xc58   : > { %v4894_v14 = vpack.c.bf16 %v4849_v57, %v4846_v31 }
 0xc59   : > { %5118 = vrot.lane.b32.xlu1 %v4893_v51, %s12163_s10 }
 0xc5a   : > { %5178 = vrot.lane.b32.xlu0 %v14863_v35, %s12163_s10 }
 0xc5d   : > { %5090 = vrot.lane.b32.xlu1 %v4895_v32, %s12162_s5 }
 0xc5e   : > { %5088 = vrot.lane.b32.xlu0 %v4894_v14, %s12162_s5 }
 0xc61   : > { %5150 = vrot.lane.b32.xlu1 %v14871_v47, %s12162_s5 }
 0xc62   : > { %5148 = vrot.lane.b32.xlu0 %v14873_v26, %s12162_s5 }
 0xc65   : > { %5166 = vrot.lane.b32.xlu1 %v14871_v47, %s12161_s0 }
 0xc66   : > { %5164 = vrot.lane.b32.xlu0 %v14873_v26, %s12161_s0 }
 0xc69   : > { %5180 = vrot.lane.b32.xlu1 %v14873_v26, %s12163_s10 }
 0xc6a   : > { %5106 = vrot.lane.b32.xlu0 %v4895_v32, %s12161_s0 }
 0xc6d   : > { %5120 = vrot.lane.b32.xlu1 %v4894_v14, %s12163_s10 }
 0xc6e   : > { %5104 = vrot.lane.b32.xlu0 %v4894_v14, %s12161_s0 }
 0xc71   : > { %5122 = vrot.lane.b32.xlu1 %v4895_v32, %s12163_s10 }
 0xc72   : > { %5182 = vrot.lane.b32.xlu0 %v14871_v47, %s12163_s10 }
 0xcb7   : > { %v5087_v4 = vpop.permute.xlu1 %5086 }
 0xcb8   : > { %10027 = vmatmul.mubr.msk.bf16.vlgmr.msra.gmra.mrb[96].mxu1 %vm1687_vm3, %v5087_v4  ;;  %v5085_v0 = vpop.permute.xlu0 %5084 }
 0xcb9   : > { %10051 = vmatpush3.bf16.xpose.msra.mxu1 %v5631_v3  ;;  %10011 = vmatmul.mubr.msk.bf16.vlgmr.msra.gmra.mrb[112].mxu0 %vm1687_vm3, %v5085_v0 }
 0xcba   : > { %10035 = vmatpush3.bf16.xpose.msra.mxu0 %v5542_v24  ;;  %v5809_v24 = vsel %vm1687_vm3, %v14871_v47, 0 }
 0xcbb   : > { %v15023_v37 = vpop.permute.xlu1 %5146 }
 0xcbc   : > { %v15025_v54 = vpop.permute.xlu0 %5144  ;;  %10399 = vmatprep.subr.msk.bf16.mxu1 %vm1687_vm3, %v15023_v37  ;;  %v5634_v11 = vsel %vm1687_vm3, %v15023_v37, 0 }
 0xcbd   : > { %10395 = vmatprep.subr.msk.bf16.mxu0 %vm1687_vm3, %v15025_v54  ;;  %v5545_v34 = vsel %vm1687_vm3, %v15025_v54, 0 }
 0xcbf   : > { %v15033_v60 = vpop.permute.xlu1 %5162 }
 0xcc0   : > { %v15037_v7 = vpop.permute.xlu0 %5160  ;;  %v5637_v52 = vsel %vm1687_vm3, %v15033_v60, 0 }
 0xcc1   : > { %10053 = vmatpush3.bf16.xpose.msra.mxu1 %v5634_v11  ;;  %v5548_v21 = vsel %vm1687_vm3, %v15037_v7, 0  ;;  %v5720_v11 = vsel %vm1687_vm3, %v14873_v26, 0 }
 0xcc2   : > { %10037 = vmatpush3.bf16.xpose.msra.mxu0 %v5545_v34  ;;  %10400 = vmatprep.subr.msk.bf16.mxu1 %vm1687_vm3, %v15033_v60 }
 0xcc3   : > { %v15041_v56 = vpop.permute.xlu1 %5176  ;;  %10396 = vmatprep.subr.msk.bf16.mxu0 %vm1687_vm3, %v15037_v7 }
 0xcc4   : > { %v5103_v36 = vpop.permute.xlu0 %5102  ;;  %v5551_v46 = vsel %vm1687_vm3, %v15041_v56, 0 }
 0xcc5   : > { %10030 = vmatprep.mubr.msk.bf16.mxu1 %vm1687_vm3, %v5103_v36 }
 0xcc7   : > { %v5117_v51 = vpop.permute.xlu1 %5116 }
 0xcc8   : > { %v5101_v61 = vpop.permute.xlu0 %5100 }
 0xcc9   : > { %10055 = vmatpush3.bf16.xpose.msra.mxu1 %v5637_v52  ;;  %10014 = vmatprep.mubr.msk.bf16.mxu0 %vm1687_vm3, %v5101_v61 }
 0xcca   : > { %10039 = vmatpush3.bf16.xpose.msra.mxu0 %v5548_v21 }
 0xccb   : > { %10015 = vmatmul.mubr.msk.bf16.gmra.mrb[116].mxu0 %vm1687_vm3, %v5117_v51  ;;  %v5119_v38 = vpop.permute.xlu1 %5118  ;;  %10397 = vmatprep.subr.msk.bf16.mxu0 %vm1687_vm3, %v15041_v56  ;;  %v9972_v49 = vpop.f32.mrb[104].mxu0 }
 0xccc   : > { %10042 = vmatprep.mubr.msk.bf16.mxu0 %vm1687_vm3, %v4894_v14  ;;  %10031 = vmatmul.mubr.msk.bf16.gmra.mrb[100].mxu1 %vm1687_vm3, %v5119_v38  ;;  %v15056_v1 = vpop.permute.xlu0 %5178  ;;  %v4861_v25 = vpop.f32.mrb[105].mxu0  ;;  %v4870_v8 = vadd.f32 %v9972_v49, %v14961_v42 }
 0xccd   : > { %10058 = vmatprep.mubr.msk.bf16.mxu1 %vm1687_vm3, %v4895_v32  ;;  %10401 = vmatprep.subr.msk.bf16.mxu1 %vm1687_vm3, %v15056_v1  ;;  %v5640_v23 = vsel %vm1687_vm3, %v15056_v1, 0  ;;  %v9973_v30 = vpop.f32.mrb[106].mxu0  ;;  %v4862_v2 = vadd.f32 %v14961_v42, %v4861_v25 }
 0xcce   : > { %v4873_v20 = vadd.f32 %v9973_v30, %v14961_v42  ;;  %v4864_v19 = vpop.f32.mrb[107].mxu0 }
 0xccf   : > { %v5091_v40 = vpop.permute.xlu1 %5090  ;;  %v4865_v31 = vadd.f32 %v14961_v42, %v4864_v19 }
 0xcd0   : > { %v5089_v28 = vpop.permute.xlu0 %5088  ;;  %v4897_v57 = vpack.c.bf16 %v4873_v20, %v4870_v8 }
 0xcd1   : > { %10057 = vmatpush3.bf16.xpose.msra.mxu1 %v5640_v23  ;;  %v4896_v32 = vpack.c.bf16 %v4865_v31, %v4862_v2 }
 0xcd2   : > { %10041 = vmatpush3.bf16.xpose.msra.mxu0 %v5551_v46  ;;  %10406 = vmatprep.subr.msk.bf16.mxu1 %vm1687_vm3, %v14871_v47 }
 0xcd3   : > { %10402 = vmatprep.subr.msk.bf16.mxu0 %vm1687_vm3, %v14873_v26  ;;  %v15073_v14 = vpop.permute.xlu1 %5150  ;;  %5094 = vrot.lane.b32.xlu1 %v4897_v57, %s12162_s5 }
 0xcd4   : > { %v15076_v4 = vpop.permute.xlu0 %5148  ;;  %5092 = vrot.lane.b32.xlu0 %v4896_v32, %s12162_s5 }
 0xcd5   : > { %v5723_v46 = vsel %vm1687_vm3, %v15076_v4, 0 }
 0xcd7   : > { %v15079_v3 = vpop.permute.xlu1 %5166  ;;  %5154 = vrot.lane.b32.xlu1 %v14992_v43, %s12162_s5 }
 0xcd8   : > { %10059 = vmatmul.mubr.msk.bf16.vlgmr.msra.gmra.mrb[104].mxu1 %vm1687_vm3, %v5091_v40  ;;  %v15084_v0 = vpop.permute.xlu0 %5164  ;;  %5152 = vrot.lane.b32.xlu0 %v14994_v5, %s12162_s5  ;;  %v5812_v40 = vsel %vm1687_vm3, %v15073_v14, 0 }
 0xcd9   : > { %10043 = vmatmul.mubr.msk.bf16.vlgmr.msra.gmra.mrb[120].mxu0 %vm1687_vm3, %v5089_v28  ;;  %10083 = vmatpush3.bf16.xpose.msra.mxu1 %v5809_v24  ;;  %v5815_v28 = vsel %vm1687_vm3, %v15079_v3, 0  ;;  %v5726_v2 = vsel %vm1687_vm3, %v15084_v0, 0 }
 0xcda   : > { %10067 = vmatpush3.bf16.xpose.msra.mxu0 %v5720_v11  ;;  %v9976_v36 = vpop.f32.mrb[108].mxu0  ;;  %10407 = vmatprep.subr.msk.bf16.mxu1 %vm1687_vm3, %v15073_v14 }
 0xcdb   : > { %v15093_v34 = vpop.permute.xlu1 %5180  ;;  %10403 = vmatprep.subr.msk.bf16.mxu0 %vm1687_vm3, %v15076_v4  ;;  %5170 = vrot.lane.b32.xlu1 %v14992_v43, %s12161_s0  ;;  %v4877_v52 = vpop.f32.mrb[109].mxu0  ;;  %v4886_v61 = vadd.f32 %v9976_v36, %v14961_v42 }
 0xcdc   : > { %v5107_v51 = vpop.permute.xlu0 %5106  ;;  %5168 = vrot.lane.b32.xlu0 %v14994_v5, %s12161_s0  ;;  %v9977_v21 = vpop.f32.mrb[110].mxu0  ;;  %v4878_v25 = vadd.f32 %v14961_v42, %v4877_v52  ;;  %v5729_v24 = vsel %vm1687_vm3, %v15093_v34, 0 }
 0xcdd   : > { %10062 = vmatprep.mubr.msk.bf16.mxu1 %vm1687_vm3, %v5107_v51  ;;  %v4889_v38 = vadd.f32 %v9977_v21, %v14961_v42  ;;  %v4880_v49 = vpop.f32.mrb[111].mxu0  ;;  %v12168_v51 = vmov 1966171168  }
 0xcde   : > { %v4881_v23 = vadd.f32 %v14961_v42, %v4880_v49  ;;  %v5200_v21 = vunpack.c.l.s4 %v12168_v51 }
 0xcdf   : > { %v5121_v30 = vpop.permute.xlu1 %5120  ;;  %v15112_v8 = vpack.c.bf16 %v4889_v38, %v4886_v61  ;;  %5110 = vrot.lane.b32.xlu1 %v4897_v57, %s12161_s0 }
 0xce0   : > { %v5105_v20 = vpop.permute.xlu0 %5104  ;;  %v15115_v19 = vpack.c.bf16 %v4881_v23, %v4878_v25  ;;  %5108 = vrot.lane.b32.xlu0 %v4896_v32, %s12161_s0  ;;  %v5201_v49 = vunpack.c.0.s8 %v5200_v21 }
 0xce1   : > { %10046 = vmatprep.mubr.msk.bf16.mxu0 %vm1687_vm3, %v5105_v20  ;;  %10085 = vmatpush3.bf16.xpose.msra.mxu1 %v5812_v40 }
 0xce2   : > { %10069 = vmatpush3.bf16.xpose.msra.mxu0 %v5723_v46  ;;  %10408 = vmatprep.subr.msk.bf16.mxu1 %vm1687_vm3, %v15079_v3 }
 0xce3   : > { %10047 = vmatmul.mubr.msk.bf16.gmra.mrb[124].mxu0 %vm1687_vm3, %v5121_v30  ;;  %v5123_v42 = vpop.permute.xlu1 %5122  ;;  %5184 = vrot.lane.b32.xlu1 %v14994_v5, %s12163_s10  ;;  %v17292_v30 = vld [vmem:[#allocation41_spill] sm:$0xff] }
 0xce4   : > { %10074 = vmatprep.mubr.msk.bf16.mxu0 %vm1687_vm3, %v4896_v32  ;;  %5124 = vrot.lane.b32.xlu0 %v4896_v32, %s12163_s10  ;;  %v5183_v31 = vpop.permute.xlu0 %5182  ;;  %v15261_v40 = vsub.s32 %v5201_v49, %v17292_v30 }
 0xce5   : > { %10063 = vmatmul.mubr.msk.bf16.gmra.mrb[108].mxu1 %vm1687_vm3, %v5123_v42  ;;  %10404 = vmatprep.subr.msk.bf16.mxu0 %vm1687_vm3, %v15084_v0  ;;  %v5818_v32 = vsel %vm1687_vm3, %v5183_v31, 0 }
 0xce6   : > { %10090 = vmatprep.mubr.msk.bf16.mxu1 %vm1687_vm3, %v4897_v57 }
 0xce7   : > { %5186 = vrot.lane.b32.xlu1 %v14992_v43, %s12163_s10 }
 0xce8   : > { %5126 = vrot.lane.b32.xlu0 %v4897_v57, %s12163_s10 }
 0xce9   : > { %10087 = vmatpush3.bf16.xpose.msra.mxu1 %v5815_v28 }
 0xcea   : > { %10071 = vmatpush3.bf16.xpose.msra.mxu0 %v5726_v2  ;;  %10409 = vmatprep.subr.msk.bf16.mxu1 %vm1687_vm3, %v5183_v31 }
 0xceb   : > { %10405 = vmatprep.subr.msk.bf16.mxu0 %vm1687_vm3, %v15093_v34  ;;  %5098 = vrot.lane.b32.xlu1 %v15112_v8, %s12162_s5 }
 0xcec   : > { %5096 = vrot.lane.b32.xlu0 %v15115_v19, %s12162_s5 }
 0xcef   : > { %5114 = vrot.lane.b32.xlu1 %v15112_v8, %s12161_s0 }
 0xcf0   : > { %5112 = vrot.lane.b32.xlu0 %v15115_v19, %s12161_s0 }
 0xcf1   : > { %10089 = vmatpush3.bf16.xpose.msra.mxu1 %v5818_v32 }
 0xcf2   : > { %10073 = vmatpush3.bf16.xpose.msra.mxu0 %v5729_v24  ;;  %10414 = vmatprep.subr.msk.bf16.mxu1 %vm1687_vm3, %v14992_v43 }
 0xcf3   : > { %10410 = vmatprep.subr.msk.bf16.mxu0 %vm1687_vm3, %v14994_v5  ;;  %5130 = vrot.lane.b32.xlu1 %v15112_v8, %s12163_s10 }
 0xcf4   : > { %5128 = vrot.lane.b32.xlu0 %v15115_v19, %s12163_s10  ;;  %s17461_s10 = sld [smem:[#allocation126_spill]] }
 0xcf7   : > { %6929 = vrot.lane.b32.xlu1 %v14905_v44, %s12164_s21 }
 0xcf8   : > { %6927 = vrot.lane.b32.xlu0 %v14841_v63, %s12164_s21  ;;  %v5987_v63 = vsel %vm1687_vm3, %v14992_v43, 0 }
 0xcfb   : > { %7016 = vrot.lane.b32.xlu1 %v14839_v13, %s12164_s21 }
 0xcfc   : > { %6931 = vrot.lane.b32.xlu0 %v14914_v45, %s12164_s21 }
 0xcff   : > { %7018 = vrot.lane.b32.xlu1 %v14901_v39, %s12164_s21 }
 0xd00   : > { %6933 = vrot.lane.b32.xlu0 %v14941_v27, %s12164_s21 }
 0xd03   : > { %7022 = vrot.lane.b32.xlu1 %v14943_v41, %s12164_s21 }
 0xd04   : > { %7020 = vrot.lane.b32.xlu0 %v14923_v12, %s12164_s21 }
 0xd07   : > { %7194 = vrot.lane.b32.xlu1 %v14863_v35, %s12164_s21 }
 0xd08   : > { %7105 = vrot.lane.b32.xlu0 %v14865_v55, %s12164_s21  ;;  %v5898_v55 = vsel %vm1687_vm3, %v14994_v5, 0 }
 0xd0b   : > { %7196 = vrot.lane.b32.xlu1 %v15023_v37, %s12164_s21 }
 0xd0c   : > { %7107 = vrot.lane.b32.xlu0 %v15025_v54, %s12164_s21 }
 0xd0f   : > { %7109 = vrot.lane.b32.xlu1 %v15037_v7, %s12164_s21 }
 0xd10   : > { %7111 = vrot.lane.b32.xlu0 %v15041_v56, %s12164_s21 }
 0xd13   : > { %7198 = vrot.lane.b32.xlu1 %v15033_v60, %s12164_s21 }
 0xd14   : > { %7285 = vrot.lane.b32.xlu0 %v15076_v4, %s12164_s21 }
 0xd17   : > { %7200 = vrot.lane.b32.xlu1 %v15056_v1, %s12164_s21 }
 0xd18   : > { %7289 = vrot.lane.b32.xlu0 %v15093_v34, %s12164_s21 }
 0xd1b   : > { %7283 = vrot.lane.b32.xlu1 %v14873_v26, %s12164_s21 }
 0xd1f   : > { %7372 = vrot.lane.b32.xlu1 %v14871_v47, %s12164_s21 }
 0xd23   : > { %7374 = vrot.lane.b32.xlu1 %v15073_v14, %s12164_s21 }
 0xd27   : > { %7287 = vrot.lane.b32.xlu1 %v15084_v0, %s12164_s21 }
 0xd2b   : > { %7376 = vrot.lane.b32.xlu1 %v15079_v3, %s12164_s21 }
 0xd2f   : > { %7378 = vrot.lane.b32.xlu1 %v5183_v31, %s12164_s21 }
 0xd33   : > { %7461 = vrot.lane.b32.xlu1 %v14994_v5, %s12164_s21 }
 0xd37   : > { %7550 = vrot.lane.b32.xlu1 %v14992_v43, %s12164_s21 }
 0xd45   : > { %v5095_v13 = vpop.permute.xlu1 %5094 }
 0xd46   : > { %10091 = vmatmul.mubr.msk.bf16.vlgmr.msra.gmra.mrb[112].mxu1 %vm1687_vm3, %v5095_v13  ;;  %v5093_v35 = vpop.permute.xlu0 %5092 }
 0xd47   : > { %10115 = vmatpush3.bf16.xpose.msra.mxu1 %v5987_v63  ;;  %10075 = vmatmul.mubr.msk.bf16.vlgmr.msra.gmra.mrb[128].mxu0 %vm1687_vm3, %v5093_v35 }
 0xd48   : > { %10099 = vmatpush3.bf16.xpose.msra.mxu0 %v5898_v55  ;;  %v17297_v55 = vld [vmem:[#allocation42_spill] sm:$0xff] }
 0xd49   : > { %v5155_v47 = vpop.permute.xlu1 %5154 }
 0xd4a   : > { %10415 = vmatprep.subr.msk.bf16.mxu1 %vm1687_vm3, %v5155_v47  ;;  %7552 = vrot.lane.b32.xlu1 %v5155_v47, %s12164_s21  ;;  %v5153_v26 = vpop.permute.xlu0 %5152  ;;  %v5990_v44 = vsel %vm1687_vm3, %v5155_v47, 0 }
 0xd4b   : > { %10411 = vmatprep.subr.msk.bf16.mxu0 %vm1687_vm3, %v5153_v26  ;;  %7463 = vrot.lane.b32.xlu0 %v5153_v26, %s12164_s21  ;;  %v5901_v12 = vsel %vm1687_vm3, %v5153_v26, 0  ;;  %v15287_v26 = vld [vmem:[#allocation7 + $0x10] sm:$0xff] }
 0xd4d   : > { %v5171_v39 = vpop.permute.xlu1 %5170 }
 0xd4e   : > { %7554 = vrot.lane.b32.xlu1 %v5171_v39, %s12164_s21  ;;  %v5169_v45 = vpop.permute.xlu0 %5168  ;;  %v5993_v5 = vsel %vm1687_vm3, %v5171_v39, 0 }
 0xd4f   : > { %10117 = vmatpush3.bf16.xpose.msra.mxu1 %v5990_v44  ;;  %7465 = vrot.lane.b32.xlu0 %v5169_v45, %s12164_s21  ;;  %v5904_v54 = vsel %vm1687_vm3, %v5169_v45, 0  ;;  %v15293_v44 = vld [vmem:[#allocation7 + $0x18] sm:$0xff] }
 0xd50   : > { %10101 = vmatpush3.bf16.xpose.msra.mxu0 %v5901_v12  ;;  %10416 = vmatprep.subr.msk.bf16.mxu1 %vm1687_vm3, %v5171_v39 }
 0xd51   : > { %10412 = vmatprep.subr.msk.bf16.mxu0 %vm1687_vm3, %v5169_v45  ;;  %v5111_v27 = vpop.permute.xlu1 %5110 }
 0xd52   : > { %10094 = vmatprep.mubr.msk.bf16.mxu1 %vm1687_vm3, %v5111_v27  ;;  %v5109_v41 = vpop.permute.xlu0 %5108 }
 0xd53   : > { %10078 = vmatprep.mubr.msk.bf16.mxu0 %vm1687_vm3, %v5109_v41  ;;  %v15299_v41 = vld [vmem:[#allocation7 + $0x8] sm:$0xff] }
 0xd55   : > { %v15228_v43 = vpop.permute.xlu1 %5184 }
 0xd56   : > { %17287 = vst [vmem:[#allocation46_spill] sm:$0xff] %v15228_v43  ;;  %v5125_v37 = vpop.permute.xlu0 %5124  ;;  %v5907_v14 = vsel %vm1687_vm3, %v15228_v43, 0 }
 0xd57   : > { %10119 = vmatpush3.bf16.xpose.msra.mxu1 %v5993_v5  ;;  %10079 = vmatmul.mubr.msk.bf16.gmra.mrb[132].mxu0 %vm1687_vm3, %v5125_v37 }
 0xd58   : > { %10103 = vmatpush3.bf16.xpose.msra.mxu0 %v5904_v54  ;;  %10106 = vmatprep.mubr.msk.bf16.mxu0 %vm1687_vm3, %v15115_v19 }
 0xd59   : > { %10413 = vmatprep.subr.msk.bf16.mxu0 %vm1687_vm3, %v15228_v43  ;;  %v15237_v60 = vpop.permute.xlu1 %5186 }
 0xd5a   : > { %17288 = vst [vmem:[#allocation58_spill] sm:$0xff] %v15237_v60  ;;  %10417 = vmatprep.subr.msk.bf16.mxu1 %vm1687_vm3, %v15237_v60  ;;  %v5127_v7 = vpop.permute.xlu0 %5126  ;;  %v5996_v1 = vsel %vm1687_vm3, %v15237_v60, 0 }
 0xd5b   : > { %10095 = vmatmul.mubr.msk.bf16.gmra.mrb[116].mxu1 %vm1687_vm3, %v5127_v7 }
 0xd5c   : > { %10122 = vmatprep.mubr.msk.bf16.mxu1 %vm1687_vm3, %v15112_v8  ;;  %v15266_v8 = vld [vmem:[%s12769_s29] sm:$0xff]  ;;  %s17444_s29 = smov 32  }
 0xd5d   : > { %v5099_v56 = vpop.permute.xlu1 %5098  ;;  %v5205_v19 = vrot.slane %v15266_v8, %v15261_v40 }
 0xd5e   : > { %v5097_v57 = vpop.permute.xlu0 %5096 }
 0xd5f   : > { %10121 = vmatpush3.bf16.xpose.msra.mxu1 %v5996_v1  ;;  %v5213_v2 = vcombine.high %v5205_v19, %v5205_v19  ;;  %v15279_v63 = vrot.slane %v5205_v19, %v15261_v40 }
 0xd60   : > { %10105 = vmatpush3.bf16.xpose.msra.mxu0 %v5907_v14 }
 0xd61   : > { %v5115_v4 = vpop.permute.xlu1 %5114  ;;  %v15276_v24 = vrot.slane %v5213_v2, %v15261_v40  ;;  %v15291_v39 = vrot.slane %v15279_v63, %v17297_v55 }
 0xd62   : > { %v5113_v3 = vpop.permute.xlu0 %5112 }
 0xd63   : > { %v15285_v47 = vrot.slane %v15276_v24, %v17297_v55  ;;  %v5245_v50 = vcombine.high %v15276_v24, %v15276_v24  ;;  %v5291_v24 = vadd.f32 %v15291_v39, %v15366_v18 }
 0xd65   : > { %v5131_v0 = vpop.permute.xlu1 %5130  ;;  %v5297_v12 = vadd.f32 %v15285_v47, %v15287_v26  ;;  %v5298_v7 = vadd.f32 %v15285_v47, %v15293_v44 }
 0xd66   : > { %10123 = vmatmul.mubr.msk.bf16.vlgmr.msra.gmra.mrb[120].mxu1 %vm1687_vm3, %v5099_v56  ;;  %v5129_v11 = vpop.permute.xlu0 %5128  ;;  %v5289_v56 = vadd.f32 %v15291_v39, %v15287_v26 }
 0xd67   : > { %10107 = vmatmul.mubr.msk.bf16.vlgmr.msra.gmra.mrb[136].mxu0 %vm1687_vm3, %v5097_v57  ;;  %10126 = vmatprep.mubr.msk.bf16.mxu1 %vm1687_vm3, %v5115_v4 }
 0xd68   : > { %10110 = vmatprep.mubr.msk.bf16.mxu0 %vm1687_vm3, %v5113_v3  ;;  %v15307_v3 = vld [vmem:[#allocation7] sm:$0xff] }
 0xd69   : > { %v6930_v34 = vpop.permute.xlu1 %6929  ;;  %v5295_v30 = vadd.f32 %v15285_v47, %v15307_v3 }
 0xd6a   : > { %v6928_v36 = vpop.permute.xlu0 %6927 }
 0xd6b   : > { %10130 = vmatprep.subr.bf16.mxu0 %v6928_v36 }
 0xd6c   : > { %10131 = vmatpush3.bf16.msra.mxu0 %v6928_v36  ;;  %v5296_v36 = vadd.f32 %v15285_v47, %v15299_v41 }
 0xd6d   : > { %v15252_v52 = vpop.permute.xlu1 %7016  ;;  %10132 = vmatprep.subr.bf16.mxu0 %v6930_v34 }
 0xd6e   : > { %17289 = vst [vmem:[#allocation56_spill] sm:$0xff] %v15252_v52  ;;  %10127 = vmatmul.mubr.msk.bf16.gmra.mrb[124].mxu1 %vm1687_vm3, %v5131_v0  ;;  %v6932_v61 = vpop.permute.xlu0 %6931 }
 0xd6f   : > { %10111 = vmatmul.mubr.msk.bf16.gmra.mrb[140].mxu0 %vm1687_vm3, %v5129_v11 }
 0xd70   : > { %10133 = vmatpush3.bf16.msra.mxu0 %v6930_v34 }
 0xd71   : > { %v15256_v38 = vpop.permute.xlu1 %7018  ;;  %10134 = vmatprep.subr.bf16.mxu0 %v6932_v61 }
 0xd72   : > { %17290 = vst [vmem:[#allocation57_spill] sm:$0xff] %v15256_v38  ;;  %v6934_v25 = vpop.permute.xlu0 %6933 }
 0xd74   : > { %10135 = vmatpush3.bf16.msra.mxu0 %v6932_v61 }
 0xd75   : > { %v15258_v23 = vpop.permute.xlu1 %7022  ;;  %10136 = vmatprep.subr.bf16.mxu0 %v6934_v25 }
 0xd76   : > { %17291 = vst [vmem:[#allocation59_spill] sm:$0xff] %v15258_v23  ;;  %v15263_v46 = vpop.permute.xlu0 %7020 }
 0xd77   : > { %17293 = vst [vmem:[#allocation61_spill] sm:$0xff] %v15263_v46 }
 0xd78   : > { %10137 = vmatpush3.bf16.msra.mxu0 %v6934_v25 }
 0xd79   : > { %v15268_v20 = vpop.permute.xlu1 %7194  ;;  %10146 = vmatprep.subr.bf16.mxu0 %v15252_v52 }
 0xd7a   : > { %17294 = vst [vmem:[#allocation62_spill] sm:$0xff] %v15268_v20  ;;  %v7106_v42 = vpop.permute.xlu0 %7105 }
 0xd7b   : > { %10162 = vmatprep.subr.bf16.mxu1 %v7106_v42 }
 0xd7c   : > { %10163 = vmatpush3.bf16.msra.mxu1 %v7106_v42 }
 0xd7d   : > { %v15273_v28 = vpop.permute.xlu1 %7196 }
 0xd7e   : > { %17295 = vst [vmem:[#allocation63_spill] sm:$0xff] %v15273_v28  ;;  %v7108_v31 = vpop.permute.xlu0 %7107 }
 0xd7f   : > { %10164 = vmatprep.subr.bf16.mxu1 %v7108_v31 }
 0xd80   : > { %10165 = vmatpush3.bf16.msra.mxu1 %v7108_v31  ;;  %v5288_v31 = vadd.f32 %v15291_v39, %v15299_v41 }
 0xd81   : > { %v7110_v32 = vpop.permute.xlu1 %7109 }
 0xd82   : > { %10166 = vmatprep.subr.bf16.mxu1 %v7110_v32  ;;  %v7112_v13 = vpop.permute.xlu0 %7111 }
 0xd84   : > { %10167 = vmatpush3.bf16.msra.mxu1 %v7110_v32 }
 0xd85   : > { %v15281_v35 = vpop.permute.xlu1 %7198  ;;  %10168 = vmatprep.subr.bf16.mxu1 %v7112_v13 }
 0xd86   : > { %17296 = vst [vmem:[#allocation60_spill] sm:$0xff] %v15281_v35 }
 0xd88   : > { %10169 = vmatpush3.bf16.msra.mxu1 %v7112_v13 }
 0xd89   : > { %v15295_v45 = vpop.permute.xlu1 %7200 }
 0xd8a   : > { %17298 = vst [vmem:[#allocation71_spill] sm:$0xff] %v15295_v45 }
 0xd8b   : > { %v10028_v27 = vpop.f32.mrb[96].mxu1 }
 0xd8c   : > { %v6073_v5 = vmul.f32 0.25, %v10028_v27  ;;  %v10012_v37 = vpop.f32.mrb[112].mxu0  ;;  %v5498_v54 = vpop.f32.mrb[97].mxu1  ;;  %v5287_v27 = vadd.f32 %v15291_v39, %v15307_v3 }
 0xd8d   : > { %v6065_v1 = vmul.f32 0.25, %v10012_v37  ;;  %v5409_v57 = vpop.f32.mrb[113].mxu0  ;;  %v10029_v14 = vpop.f32.mrb[98].mxu1  ;;  %v6071_v19 = vmul.f32 0.25, %v5498_v54 }
 0xd8e   : > { %v15305_v4 = vadd.f32 %v6073_v5, %v5297_v12  ;;  %v15309_v0 = vpop.permute.xlu1 %7283  ;;  %v6074_v11 = vmul.f32 0.25, %v10029_v14  ;;  %v10013_v34 = vpop.f32.mrb[114].mxu0  ;;  %v6063_v5 = vmul.f32 0.25, %v5409_v57 }
 0xd8f   : > { %17299 = vst [vmem:[#allocation64_spill] sm:$0xff] %v15309_v0  ;;  %10194 = vmatprep.subr.bf16.mxu1 %v15309_v0  ;;  %v5501_v51 = vpop.f32.mrb[99].mxu1  ;;  %v5412_v21 = vpop.f32.mrb[115].mxu0  ;;  %v15316_v25 = vadd.f32 %v6065_v1, %v5289_v56  ;;  %v15328_v12 = vadd.f32 %v6071_v19, %v5295_v30  ;;  %v5290_v1 = vadd.f32 %v15291_v39, %v15293_v44  ;;  %v6066_v14 = vmul.f32 0.25, %v10013_v34  ;;  %v15354_v19 = vld [vmem:[#allocation7 + $0x38] sm:$0xff] }
 0xd90   : > { %v15314_v61 = vadd.f32 %v6074_v11, %v5298_v7  ;;  %v6072_v49 = vmul.f32 0.25, %v5501_v51  ;;  %v6221_v42 = vsel %vm951_vm0, %v15305_v4, -inf  ;;  %v6064_v32 = vmul.f32 0.25, %v5412_v21  ;;  %v15348_v51 = vld [vmem:[#allocation7 + $0x30] sm:$0xff] }
 0xd91   : > { %6222 = vmax.xlane.f32.xlu0 %v6221_v42  ;;  %v6197_v37 = vsel %vm951_vm0, %v15316_v25, -inf  ;;  %v15338_v56 = vadd.f32 %v6063_v5, %v5287_v27  ;;  %v6215_v11 = vsel %vm951_vm0, %v15328_v12, -inf  ;;  %v5301_v34 = vadd.f32 %v15285_v47, %v15348_v51 }
 0xd92   : > { %v15322_v2 = vadd.f32 %v6072_v49, %v5296_v36  ;;  %v6224_v13 = vsel %vm951_vm0, %v15314_v61, -inf  ;;  %v15334_v54 = vadd.f32 %v6064_v32, %v5288_v31  ;;  %v15346_v36 = vadd.f32 %v6066_v14, %v5290_v1 }
 0xd93   : > { %6225 = vmax.xlane.f32.xlu1 %v6224_v13  ;;  %v6191_v21 = vsel %vm951_vm0, %v15338_v56, -inf  ;;  %v5302_v27 = vadd.f32 %v15285_v47, %v15354_v19  ;;  %v5293_v5 = vadd.f32 %v15291_v39, %v15348_v51 }
 0xd94   : > { %v6218_v7 = vsel %vm951_vm0, %v15322_v2, -inf  ;;  %v6194_v57 = vsel %vm951_vm0, %v15334_v54, -inf  ;;  %v6200_v14 = vsel %vm951_vm0, %v15346_v36, -inf }
 0xd95   : > { %6198 = vmax.xlane.f32.xlu0 %v6197_v37 }
 0xd97   : > { %6219 = vmax.xlane.f32.xlu1 %v6218_v7 }
 0xd99   : > { %6216 = vmax.xlane.f32.xlu0 %v6215_v11  ;;  %v5294_v11 = vadd.f32 %v15291_v39, %v15354_v19 }
 0xd9b   : > { %6195 = vmax.xlane.f32.xlu1 %v6194_v57 }
 0xd9d   : > { %6192 = vmax.xlane.f32.xlu0 %v6191_v21 }
 0xd9e   : > { %v10016_v49 = vpop.f32.mrb[116].mxu0 }
 0xd9f   : > { %v5425_v30 = vpop.f32.mrb[117].mxu0  ;;  %v10032_v42 = vpop.f32.mrb[100].mxu1  ;;  %v6069_v37 = vmul.f32 0.25, %v10016_v49 }
 0xda0   : > { %v10017_v31 = vpop.f32.mrb[118].mxu0  ;;  %v6077_v32 = vmul.f32 0.25, %v10032_v42  ;;  %v5514_v13 = vpop.f32.mrb[101].mxu1 }
 0xda1   : > { %v5428_v7 = vpop.f32.mrb[119].mxu0  ;;  %v10033_v1 = vpop.f32.mrb[102].mxu1  ;;  %v6070_v57 = vmul.f32 0.25, %v10017_v31  ;;  %6201 = vmax.xlane.f32.xlu0 %v6200_v14  ;;  %v15374_v9 = vadd.f32 %v6069_v37, %v5293_v5  ;;  %v6075_v31 = vmul.f32 0.25, %v5514_v13  ;;  %v15389_v5 = vrot.slane %v5245_v50, %v17297_v55 }
 0xda2   : > { %v15364_v21 = vadd.f32 %v6077_v32, %v5301_v34  ;;  %v6078_v42 = vmul.f32 0.25, %v10033_v1  ;;  %v5517_v15 = vpop.f32.mrb[103].mxu1  ;;  %v5299_v34 = vadd.f32 %v15285_v47, %v15366_v18  ;;  %v6067_v37 = vmul.f32 0.25, %v5425_v30 }
 0xda3   : > { %v15380_v32 = vadd.f32 %v6070_v57, %v5294_v11  ;;  %v6076_v1 = vmul.f32 0.25, %v5517_v15  ;;  %v6209_v13 = vsel %vm951_vm0, %v15374_v9, -inf  ;;  %v5243_v15 = vcombine.high %v15279_v63, %v15279_v63 }
 0xda4   : > { %v15368_v10 = vadd.f32 %v6078_v42, %v5302_v27  ;;  %v6233_v49 = vsel %vm951_vm0, %v15364_v21, -inf  ;;  %v5300_v27 = vadd.f32 %v15285_v47, %v15376_v59  ;;  %v15391_v42 = vadd.f32 %v6075_v31, %v5299_v34 }
 0xda5   : > { %6234 = vmax.xlane.f32.xlu0 %v6233_v49  ;;  %v5292_v47 = vadd.f32 %v15291_v39, %v15376_v59  ;;  %v6068_v11 = vmul.f32 0.25, %v5428_v7  ;;  %v6212_v50 = vsel %vm951_vm0, %v15380_v32, -inf  ;;  %v5313_v30 = vadd.f32 %v15389_v5, %v15287_v26 }
 0xda6   : > { %v6236_v14 = vsel %vm951_vm0, %v15368_v10, -inf  ;;  %v15399_v57 = vadd.f32 %v6076_v1, %v5300_v27  ;;  %v15408_v6 = vrot.slane %v5243_v15, %v17297_v55  ;;  %v6227_v27 = vsel %vm951_vm0, %v15391_v42, -inf }
 0xda7   : > { %6237 = vmax.xlane.f32.xlu1 %v6236_v14  ;;  %v15405_v14 = vadd.f32 %v6067_v37, %v5291_v24  ;;  %v15412_v1 = vadd.f32 %v6068_v11, %v5292_v47 }
 0xda8   : > { %v6230_v24 = vsel %vm951_vm0, %v15399_v57, -inf }
 0xda9   : > { %6210 = vmax.xlane.f32.xlu0 %v6209_v13  ;;  %v5314_v13 = vadd.f32 %v15389_v5, %v15293_v44  ;;  %v6203_v47 = vsel %vm951_vm0, %v15405_v14, -inf  ;;  %v6206_v29 = vsel %vm951_vm0, %v15412_v1, -inf }
 0xdab   : > { %v10060_v49 = vpop.f32.mrb[104].mxu1  ;;  %6213 = vmax.xlane.f32.xlu1 %v6212_v50 }
 0xdac   : > { %v10044_v34 = vpop.f32.mrb[120].mxu0  ;;  %v5676_v31 = vpop.f32.mrb[105].mxu1  ;;  %v6089_v63 = vmul.f32 0.25, %v10060_v49  ;;  %v5305_v49 = vadd.f32 %v15408_v6, %v15287_v26 }
 0xdad   : > { %v5587_v39 = vpop.f32.mrb[121].mxu0  ;;  %v10061_v7 = vpop.f32.mrb[106].mxu1  ;;  %6228 = vmax.xlane.f32.xlu0 %v6227_v27  ;;  %v6081_v16 = vmul.f32 0.25, %v10044_v34  ;;  %v6087_v34 = vmul.f32 0.25, %v5676_v31  ;;  %v5303_v31 = vadd.f32 %v15408_v6, %v15307_v3 }
 0xdae   : > { %v6090_v50 = vmul.f32 0.25, %v10061_v7  ;;  %v10045_v33 = vpop.f32.mrb[122].mxu0  ;;  %v5679_v62 = vpop.f32.mrb[107].mxu1  ;;  %v15418_v15 = vadd.f32 %v6089_v63, %v5313_v30  ;;  %v5306_v7 = vadd.f32 %v15408_v6, %v15293_v44  ;;  %v5311_v63 = vadd.f32 %v15389_v5, %v15307_v3 }
 0xdaf   : > { %v5590_v37 = vpop.f32.mrb[123].mxu0  ;;  %6231 = vmax.xlane.f32.xlu1 %v6230_v24  ;;  %v6082_v27 = vmul.f32 0.25, %v10045_v33  ;;  %v15430_v30 = vadd.f32 %v6081_v16, %v5305_v49  ;;  %v6088_v33 = vmul.f32 0.25, %v5679_v62 }
 0xdb0   : > { %v15424_v11 = vadd.f32 %v6090_v50, %v5314_v13  ;;  %v6269_v24 = vsel %vm951_vm0, %v15418_v15, -inf  ;;  %v5312_v50 = vadd.f32 %v15389_v5, %v15299_v41  ;;  %v15442_v53 = vadd.f32 %v6087_v34, %v5311_v63 }
 0xdb1   : > { %6204 = vmax.xlane.f32.xlu0 %v6203_v47  ;;  %v15436_v13 = vadd.f32 %v6082_v27, %v5306_v7  ;;  %v6079_v7 = vmul.f32 0.25, %v5587_v39  ;;  %v6245_v62 = vsel %vm951_vm0, %v15430_v30, -inf  ;;  %v6080_v17 = vmul.f32 0.25, %v5590_v37 }
 0xdb2   : > { %v15448_v58 = vadd.f32 %v6088_v33, %v5312_v50  ;;  %v5317_v39 = vadd.f32 %v15389_v5, %v15348_v51  ;;  %v6263_v50 = vsel %vm951_vm0, %v15442_v53, -inf  ;;  %v5318_v37 = vadd.f32 %v15389_v5, %v15354_v19 }
 0xdb3   : > { %6207 = vmax.xlane.f32.xlu1 %v6206_v29  ;;  %v6272_v29 = vsel %vm951_vm0, %v15424_v11, -inf  ;;  %v6248_v63 = vsel %vm951_vm0, %v15436_v13, -inf  ;;  %v15454_v45 = vadd.f32 %v6079_v7, %v5303_v31  ;;  %v5309_v31 = vadd.f32 %v15408_v6, %v15348_v51 }
 0xdb4   : > { %v6266_v0 = vsel %vm951_vm0, %v15448_v58, -inf }
 0xdb5   : > { %6270 = vmax.xlane.f32.xlu0 %v6269_v24  ;;  %v5304_v24 = vadd.f32 %v15408_v6, %v15299_v41  ;;  %17300 = vst [vmem:[#allocation66_spill] sm:$0xff] %v15454_v45 }
 0xdb6   : > { %v10048_v47 = vpop.f32.mrb[124].mxu0 }
 0xdb7   : > { %v5603_v16 = vpop.f32.mrb[125].mxu0  ;;  %6273 = vmax.xlane.f32.xlu1 %v6272_v29  ;;  %v15460_v33 = vadd.f32 %v6080_v17, %v5304_v24  ;;  %v6085_v7 = vmul.f32 0.25, %v10048_v47  ;;  %v5310_v17 = vadd.f32 %v15408_v6, %v15354_v19 }
 0xdb8   : > { %v10049_v49 = vpop.f32.mrb[126].mxu0  ;;  %v10064_v48 = vpop.f32.mrb[108].mxu1 }
 0xdb9   : > { %v5606_v27 = vpop.f32.mrb[127].mxu0  ;;  %v5692_v22 = vpop.f32.mrb[109].mxu1  ;;  %6246 = vmax.xlane.f32.xlu0 %v6245_v62  ;;  %v6093_v35 = vmul.f32 0.25, %v10064_v48  ;;  %17301 = vst [vmem:[#allocation67_spill] sm:$0xff] %v15460_v33  ;;  %v6239_v48 = vsel %vm951_vm0, %v15454_v45, -inf  ;;  %v6086_v24 = vmul.f32 0.25, %v10049_v49  ;;  %v5316_v49 = vadd.f32 %v15389_v5, %v15376_v59 }
 0xdba   : > { %v10065_v29 = vpop.f32.mrb[110].mxu1  ;;  %v6091_v47 = vmul.f32 0.25, %v5692_v22 }
 0xdbb   : > { %v5695_v34 = vpop.f32.mrb[111].mxu1  ;;  %6249 = vmax.xlane.f32.xlu1 %v6248_v63  ;;  %v6094_v62 = vmul.f32 0.25, %v10065_v29  ;;  %v15468_v63 = vadd.f32 %v6093_v35, %v5317_v39  ;;  %v6242_v29 = vsel %vm951_vm0, %v15460_v33, -inf  ;;  %v5315_v35 = vadd.f32 %v15389_v5, %v15366_v18 }
 0xdbd   : > { %6264 = vmax.xlane.f32.xlu0 %v6263_v50  ;;  %17302 = vst [vmem:[#allocation48_spill] sm:$0xff] %v15468_v63  ;;  %v15474_v28 = vadd.f32 %v6094_v62, %v5318_v37  ;;  %v6281_v39 = vsel %vm951_vm0, %v15468_v63, -inf  ;;  %v15484_v50 = vadd.f32 %v6086_v24, %v5310_v17  ;;  %v6092_v37 = vmul.f32 0.25, %v5695_v34 }
 0xdbe   : > { %v5308_v17 = vadd.f32 %v15408_v6, %v15376_v59  ;;  %v6084_v24 = vmul.f32 0.25, %v5606_v27 }
 0xdbf   : > { %6267 = vmax.xlane.f32.xlu1 %v6266_v0  ;;  %17303 = vst [vmem:[#allocation65_spill] sm:$0xff] %v15474_v28  ;;  %v15478_v0 = vadd.f32 %v6085_v7, %v5309_v31  ;;  %17305 = vst [vmem:[#allocation81_spill] sm:$0xff] %v15484_v50  ;;  %v6284_v62 = vsel %vm951_vm0, %v15474_v28, -inf  ;;  %v5307_v31 = vadd.f32 %v15408_v6, %v15366_v18  ;;  %v6083_v7 = vmul.f32 0.25, %v5603_v16 }
 0xdc0   : > { %v15498_v5 = vadd.f32 %v6092_v37, %v5316_v49  ;;  %v6260_v34 = vsel %vm951_vm0, %v15484_v50, -inf  ;;  %v5198_v49 = vcombine.high %v15266_v8, %v15266_v8 }
 0xdc1   : > { %6240 = vmax.xlane.f32.xlu0 %v6239_v48  ;;  %17304 = vst [vmem:[#allocation76_spill] sm:$0xff] %v15478_v0  ;;  %v15492_v48 = vadd.f32 %v6091_v47, %v5315_v35  ;;  %v6257_v22 = vsel %vm951_vm0, %v15478_v0, -inf  ;;  %v15506_v35 = vadd.f32 %v6084_v24, %v5308_v17 }
 0xdc2   : > { %17307 = vst [vmem:[#allocation75_spill] sm:$0xff] %v15498_v5  ;;  %v6278_v47 = vsel %vm951_vm0, %v15498_v5, -inf }
 0xdc3   : > { %6243 = vmax.xlane.f32.xlu1 %v6242_v29  ;;  %17306 = vst [vmem:[#allocation78_spill] sm:$0xff] %v15492_v48  ;;  %v15502_v29 = vadd.f32 %v6083_v7, %v5307_v31  ;;  %v6275_v16 = vsel %vm951_vm0, %v15492_v48, -inf  ;;  %17309 = vst [vmem:[#allocation85_spill] sm:$0xff] %v15506_v35  ;;  %v6254_v27 = vsel %vm951_vm0, %v15506_v35, -inf }
 0xdc5   : > { %6282 = vmax.xlane.f32.xlu0 %v6281_v39  ;;  %17308 = vst [vmem:[#allocation86_spill] sm:$0xff] %v15502_v29  ;;  %v6251_v6 = vsel %vm951_vm0, %v15502_v29, -inf  ;;  %v15514_v39 = vpop.permute.xlu1 %7372 }
 0xdc6   : > { %17310 = vst [vmem:[#allocation88_spill] sm:$0xff] %v15514_v39 }
 0xdc7   : > { %6285 = vmax.xlane.f32.xlu1 %v6284_v62  ;;  %v5212_v62 = vrot.slane %v5198_v49, %v15261_v40 }
 0xdc9   : > { %6258 = vmax.xlane.f32.xlu0 %v6257_v22  ;;  %v15518_v37 = vpop.permute.xlu1 %7374  ;;  %v5214_v7 = vcombine.high %v5212_v62, %v5212_v62  ;;  %v15529_v24 = vrot.slane %v5212_v62, %v15261_v40 }
 0xdca   : > { %17311 = vst [vmem:[#allocation83_spill] sm:$0xff] %v15518_v37 }
 0xdcb   : > { %6261 = vmax.xlane.f32.xlu1 %v6260_v34  ;;  %v15524_v22 = vrot.slane %v5214_v7, %v15261_v40  ;;  %v15531_v34 = vpop.permute.xlu0 %7285 }
 0xdcc   : > { %17314 = vst [vmem:[#allocation74_spill] sm:$0xff] %v15531_v34 }
 0xdcd   : > { %6276 = vmax.xlane.f32.xlu0 %v6275_v16  ;;  %v15521_v31 = vpop.permute.xlu1 %7287  ;;  %v15535_v8 = vrot.slane %v15524_v22, %v17297_v55  ;;  %v15539_v16 = vrot.slane %v15529_v24, %v17297_v55 }
 0xdce   : > { %17312 = vst [vmem:[#allocation77_spill] sm:$0xff] %v15521_v31 }
 0xdcf   : > { %6279 = vmax.xlane.f32.xlu1 %v6278_v47  ;;  %v5321_v62 = vadd.f32 %v15539_v16, %v15287_v26  ;;  %v5330_v37 = vadd.f32 %v15535_v8, %v15293_v44  ;;  %v5322_v23 = vadd.f32 %v15539_v16, %v15293_v44  ;;  %v5327_v46 = vadd.f32 %v15535_v8, %v15307_v3 }
 0xdd1   : > { %6252 = vmax.xlane.f32.xlu0 %v6251_v6  ;;  %v15526_v17 = vpop.permute.xlu1 %7376  ;;  %v5329_v6 = vadd.f32 %v15535_v8, %v15287_v26 }
 0xdd2   : > { %17313 = vst [vmem:[#allocation84_spill] sm:$0xff] %v15526_v17 }
 0xdd3   : > { %6255 = vmax.xlane.f32.xlu1 %v6254_v27  ;;  %v15545_v27 = vpop.permute.xlu0 %7289 }
 0xdd4   : > { %17316 = vst [vmem:[#allocation89_spill] sm:$0xff] %v15545_v27 }
 0xdd5   : > { %v15541_v47 = vpop.permute.xlu1 %7378 }
 0xdd6   : > { %17315 = vst [vmem:[#allocation79_spill] sm:$0xff] %v15541_v47 }
 0xdd9   : > { %v15559_v60 = vpop.permute.xlu1 %7461 }
 0xdda   : > { %17319 = vst [vmem:[#allocation80_spill] sm:$0xff] %v15559_v60 }
 0xe19   : > { %v10092_v49 = vpop.f32.mrb[112].mxu1 }
 0xe1a   : > { %v6105_v40 = vmul.f32 0.25, %v10092_v49  ;;  %v10076_v7 = vpop.f32.mrb[128].mxu0  ;;  %v5854_v17 = vpop.f32.mrb[113].mxu1 }
 0xe1b   : > { %v6097_v39 = vmul.f32 0.25, %v10076_v7  ;;  %v5765_v31 = vpop.f32.mrb[129].mxu0  ;;  %v10093_v34 = vpop.f32.mrb[114].mxu1  ;;  %v6103_v29 = vmul.f32 0.25, %v5854_v17 }
 0xe1c   : > { %v15551_v20 = vadd.f32 %v6105_v40, %v5329_v6  ;;  %v6106_v47 = vmul.f32 0.25, %v10093_v34  ;;  %v10077_v27 = vpop.f32.mrb[130].mxu0  ;;  %v5857_v43 = vpop.f32.mrb[115].mxu1 }
 0xe1d   : > { %v15555_v49 = vpop.permute.xlu0 %7463  ;;  %v6098_v38 = vmul.f32 0.25, %v10077_v27  ;;  %v5768_v52 = vpop.f32.mrb[131].mxu0  ;;  %v15561_v7 = vadd.f32 %v6097_v39, %v5321_v62  ;;  %v6104_v35 = vmul.f32 0.25, %v5857_v43  ;;  %v15573_v60 = vadd.f32 %v6103_v29, %v5327_v46 }
 0xe1e   : > { %17317 = vst [vmem:[#allocation87_spill] sm:$0xff] %v15551_v20  ;;  %17318 = vst [vmem:[#allocation82_spill] sm:$0xff] %v15555_v49  ;;  %v15563_v6 = vadd.f32 %v6106_v47, %v5330_v37  ;;  %v6317_v34 = vsel %vm951_vm0, %v15551_v20, -inf  ;;  %v5328_v49 = vadd.f32 %v15535_v8, %v15299_v41  ;;  %v5319_v39 = vadd.f32 %v15539_v16, %v15307_v3 }
 0xe1f   : > { %17320 = vst [vmem:[#allocation41_spill] sm:$0xff] %v15561_v7  ;;  %6318 = vmax.xlane.f32.xlu0 %v6317_v34  ;;  %v15567_v40 = vadd.f32 %v6098_v38, %v5322_v23  ;;  %17323 = vst [vmem:[#allocation91_spill] sm:$0xff] %v15573_v60  ;;  %v6095_v37 = vmul.f32 0.25, %v5765_v31  ;;  %v6293_v17 = vsel %vm951_vm0, %v15561_v7, -inf  ;;  %v15581_v38 = vpop.permute.xlu1 %7550  ;;  %v5320_v43 = vadd.f32 %v15539_v16, %v15299_v41 }
 0xe20   : > { %17321 = vst [vmem:[#allocation42_spill] sm:$0xff] %v15563_v6  ;;  %v6320_v27 = vsel %vm951_vm0, %v15563_v6, -inf  ;;  %17325 = vst [vmem:[#allocation93_spill] sm:$0xff] %v15581_v38  ;;  %v15583_v23 = vadd.f32 %v6104_v35, %v5328_v49  ;;  %v6096_v62 = vmul.f32 0.25, %v5768_v52  ;;  %v6311_v31 = vsel %vm951_vm0, %v15573_v60, -inf }
 0xe21   : > { %17322 = vst [vmem:[#allocation90_spill] sm:$0xff] %v15567_v40  ;;  %6321 = vmax.xlane.f32.xlu1 %v6320_v27  ;;  %v15579_v47 = vpop.permute.xlu0 %7465  ;;  %v6296_v46 = vsel %vm951_vm0, %v15567_v40, -inf  ;;  %v15589_v29 = vadd.f32 %v6095_v37, %v5319_v39  ;;  %v5334_v40 = vadd.f32 %v15535_v8, %v15354_v19  ;;  %v5331_v20 = vadd.f32 %v15535_v8, %v15366_v18 }
 0xe22   : > { %17324 = vst [vmem:[#allocation92_spill] sm:$0xff] %v15579_v47  ;;  %17326 = vst [vmem:[#allocation94_spill] sm:$0xff] %v15583_v23  ;;  %v15597_v35 = vadd.f32 %v6096_v62, %v5320_v43  ;;  %v6314_v49 = vsel %vm951_vm0, %v15583_v23, -inf  ;;  %v5333_v43 = vadd.f32 %v15535_v8, %v15348_v51 }
 0xe23   : > { %6294 = vmax.xlane.f32.xlu0 %v6293_v17  ;;  %17327 = vst [vmem:[#allocation95_spill] sm:$0xff] %v15589_v29  ;;  %v15595_v27 = vpop.permute.xlu1 %7552  ;;  %v6287_v17 = vsel %vm951_vm0, %v15589_v29, -inf }
 0xe24   : > { %17328 = vst [vmem:[#allocation96_spill] sm:$0xff] %v15595_v27  ;;  %17329 = vst [vmem:[#allocation97_spill] sm:$0xff] %v15597_v35  ;;  %v5325_v27 = vadd.f32 %v15539_v16, %v15348_v51 }
 0xe25   : > { %6297 = vmax.xlane.f32.xlu1 %v6296_v46  ;;  %v15593_v34 = vpop.xlane.xlu0 %6222  ;;  %v6290_v46 = vsel %vm951_vm0, %v15597_v35, -inf }
 0xe27   : > { %6312 = vmax.xlane.f32.xlu0 %v6311_v31  ;;  %v15609_v62 = vpop.permute.xlu1 %7554 }
 0xe28   : > { %17330 = vst [vmem:[#allocation98_spill] sm:$0xff] %v15609_v62 }
 0xe29   : > { %6315 = vmax.xlane.f32.xlu1 %v6314_v49  ;;  %v15605_v47 = vpop.xlane.xlu0 %6198 }
 0xe2a   : > { %v10080_v52 = vpop.f32.mrb[132].mxu0 }
 0xe2b   : > { %6288 = vmax.xlane.f32.xlu0 %v6287_v17  ;;  %v5781_v39 = vpop.f32.mrb[133].mxu0  ;;  %v6101_v38 = vmul.f32 0.25, %v10080_v52  ;;  %v15619_v62 = vpop.xlane.xlu1 %6225  ;;  %v5246_v52 = vcombine.high %v15524_v22, %v15524_v22 }
 0xe2c   : > { %v10081_v37 = vpop.f32.mrb[134].mxu0 }
 0xe2d   : > { %6291 = vmax.xlane.f32.xlu1 %v6290_v46  ;;  %v5784_v31 = vpop.f32.mrb[135].mxu0  ;;  %v5326_v46 = vadd.f32 %v15539_v16, %v15354_v19  ;;  %v6102_v29 = vmul.f32 0.25, %v10081_v37  ;;  %v15627_v48 = vadd.f32 %v6101_v38, %v5325_v27  ;;  %v5323_v38 = vadd.f32 %v15539_v16, %v15366_v18 }
 0xe2e   : > { %v10096_v49 = vpop.f32.mrb[116].mxu1 }
 0xe2f   : > { %v6109_v17 = vmul.f32 0.25, %v10096_v49  ;;  %v5870_v23 = vpop.f32.mrb[117].mxu1  ;;  %v15625_v49 = vpop.xlane.xlu0 %6216  ;;  %17332 = vst [vmem:[#allocation100_spill] sm:$0xff] %v15627_v48 }
 0xe30   : > { %v10097_v35 = vpop.f32.mrb[118].mxu1  ;;  %v6107_v5 = vmul.f32 0.25, %v5870_v23 }
 0xe31   : > { %v15617_v6 = vadd.f32 %v6109_v17, %v5333_v43  ;;  %v6110_v60 = vmul.f32 0.25, %v10097_v35  ;;  %v5873_v7 = vpop.f32.mrb[119].mxu1  ;;  %v15633_v35 = vadd.f32 %v6102_v29, %v5326_v46  ;;  %v5332_v43 = vadd.f32 %v15535_v8, %v15376_v59 }
 0xe32   : > { %v6108_v17 = vmul.f32 0.25, %v5873_v7  ;;  %v15644_v23 = vadd.f32 %v6107_v5, %v5331_v20  ;;  %v6305_v29 = vsel %vm951_vm0, %v15627_v48, -inf  ;;  %v5244_v8 = vcombine.high %v15529_v24, %v15529_v24  ;;  %v15650_v7 = vpop.xlane.xlu1 %6219 }
 0xe33   : > { %17331 = vst [vmem:[#allocation99_spill] sm:$0xff] %v15617_v6  ;;  %v15629_v0 = vadd.f32 %v6110_v60, %v5334_v40  ;;  %v6329_v37 = vsel %vm951_vm0, %v15617_v6, -inf  ;;  %17334 = vst [vmem:[#allocation102_spill] sm:$0xff] %v15633_v35  ;;  %v15642_v60 = vrot.slane %v5246_v52, %v17297_v55  ;;  %v6099_v40 = vmul.f32 0.25, %v5781_v39  ;;  %v15652_v27 = vpop.xlane.xlu0 %6192 }
 0xe34   : > { %6330 = vmax.xlane.f32.xlu0 %v6329_v37  ;;  %17335 = vst [vmem:[#allocation103_spill] sm:$0xff] %v15644_v23  ;;  %v5324_v46 = vadd.f32 %v15539_v16, %v15376_v59  ;;  %v6100_v37 = vmul.f32 0.25, %v5784_v31  ;;  %v15656_v52 = vadd.f32 %v6108_v17, %v5332_v43  ;;  %v6308_v20 = vsel %vm951_vm0, %v15633_v35, -inf }
 0xe35   : > { %17333 = vst [vmem:[#allocation101_spill] sm:$0xff] %v15629_v0  ;;  %v6332_v22 = vsel %vm951_vm0, %v15629_v0, -inf  ;;  %v5345_v5 = vadd.f32 %v15642_v60, %v15287_v26  ;;  %v15662_v48 = vadd.f32 %v6099_v40, %v5323_v38  ;;  %v15665_v0 = vrot.slane %v5244_v8, %v17297_v55 }
 0xe36   : > { %6333 = vmax.xlane.f32.xlu1 %v6332_v22  ;;  %17336 = vst [vmem:[#allocation104_spill] sm:$0xff] %v15656_v52  ;;  %v6323_v43 = vsel %vm951_vm0, %v15644_v23, -inf  ;;  %v15669_v35 = vadd.f32 %v6100_v37, %v5324_v46  ;;  %v5346_v50 = vadd.f32 %v15642_v60, %v15293_v44  ;;  %v6326_v40 = vsel %vm951_vm0, %v15656_v52, -inf  ;;  %v15681_v46 = vpop.xlane.xlu1 %6195 }
 0xe37   : > { %17337 = vst [vmem:[#allocation105_spill] sm:$0xff] %v15662_v48  ;;  %v5337_v8 = vadd.f32 %v15665_v0, %v15287_v26  ;;  %v15683_v37 = vpop.xlane.xlu0 %6201  ;;  %v5338_v52 = vadd.f32 %v15665_v0, %v15293_v44 }
 0xe38   : > { %6306 = vmax.xlane.f32.xlu0 %v6305_v29  ;;  %17338 = vst [vmem:[#allocation106_spill] sm:$0xff] %v15669_v35 }
 0xe39   : > { %v10124_v39 = vpop.f32.mrb[120].mxu1 }
 0xe3a   : > { %v10108_v22 = vpop.f32.mrb[136].mxu0  ;;  %v6032_v24 = vpop.f32.mrb[121].mxu1  ;;  %6309 = vmax.xlane.f32.xlu1 %v6308_v20  ;;  %v6121_v29 = vmul.f32 0.25, %v10124_v39 }
 0xe3b   : > { %v5943_v16 = vpop.f32.mrb[137].mxu0  ;;  %v10125_v31 = vpop.f32.mrb[122].mxu1  ;;  %v6113_v39 = vmul.f32 0.25, %v10108_v22 }
 0xe3c   : > { %v10109_v17 = vpop.f32.mrb[138].mxu0  ;;  %v6035_v6 = vpop.f32.mrb[123].mxu1  ;;  %6324 = vmax.xlane.f32.xlu0 %v6323_v43  ;;  %v6122_v20 = vmul.f32 0.25, %v10125_v31  ;;  %v15675_v55 = vadd.f32 %v6121_v29, %v5345_v5  ;;  %v6299_v43 = vsel %vm951_vm0, %v15662_v48, -inf  ;;  %v6302_v29 = vsel %vm951_vm0, %v15669_v35, -inf }
 0xe3d   : > { %v5946_v38 = vpop.f32.mrb[139].mxu0  ;;  %v15691_v22 = vadd.f32 %v6113_v39, %v5337_v8  ;;  %v5343_v48 = vadd.f32 %v15642_v60, %v15307_v3  ;;  %v5344_v8 = vadd.f32 %v15642_v60, %v15299_v41  ;;  %v6120_v39 = vmul.f32 0.25, %v6035_v6  ;;  %v15709_v45 = vpop.xlane.xlu0 %6234 }
 0xe3e   : > { %6327 = vmax.xlane.f32.xlu1 %v6326_v40  ;;  %17339 = vst [vmem:[#allocation107_spill] sm:$0xff] %v15675_v55  ;;  %v15685_v31 = vadd.f32 %v6122_v20, %v5346_v50  ;;  %v6114_v40 = vmul.f32 0.25, %v10109_v17  ;;  %v6365_v50 = vsel %vm951_vm0, %v15675_v55, -inf  ;;  %v15699_v20 = vpop.xlane.xlu1 %6237  ;;  %v6112_v33 = vmul.f32 0.25, %v5946_v38 }
 0xe3f   : > { %v15717_v6 = vadd.f32 %v6120_v39, %v5344_v8  ;;  %v5350_v38 = vadd.f32 %v15642_v60, %v15354_v19 }
 0xe40   : > { %6300 = vmax.xlane.f32.xlu0 %v6299_v43  ;;  %17340 = vst [vmem:[#allocation108_spill] sm:$0xff] %v15685_v31  ;;  %v6119_v43 = vmul.f32 0.25, %v6032_v24  ;;  %v15701_v35 = vadd.f32 %v6114_v40, %v5338_v52  ;;  %v6368_v24 = vsel %vm951_vm0, %v15685_v31, -inf  ;;  %v6111_v52 = vmul.f32 0.25, %v5943_v16 }
 0xe41   : > { %v10128_v5 = vpop.f32.mrb[124].mxu1  ;;  %v6341_v40 = vsel %vm951_vm0, %v15691_v22, -inf  ;;  %v5336_v31 = vadd.f32 %v15665_v0, %v15299_v41  ;;  %v15731_v39 = vpop.xlane.xlu0 %6210 }
 0xe42   : > { %v10112_v26 = vpop.f32.mrb[140].mxu0  ;;  %6303 = vmax.xlane.f32.xlu1 %v6302_v29  ;;  %v6048_v23 = vpop.f32.mrb[125].mxu1  ;;  %17341 = vst [vmem:[#allocation109_spill] sm:$0xff] %v15701_v35  ;;  %v15711_v55 = vadd.f32 %v6119_v43, %v5343_v48  ;;  %v6125_v16 = vmul.f32 0.25, %v10128_v5 }
 0xe43   : > { %v15695_v63 = vpop.f32.mrb[141].mxu0  ;;  %v10129_v44 = vpop.f32.mrb[126].mxu1  ;;  %v15733_v41 = vadd.f32 %v6112_v33, %v5336_v31  ;;  %v6393_v31 = vsub.f32 %v15305_v4, %v15593_v34  ;;  %v5347_v4 = vadd.f32 %v15642_v60, %v15366_v18  ;;  %v6123_v34 = vmul.f32 0.25, %v6048_v23 }
 0xe44   : > { %v10113_v17 = vpop.f32.mrb[142].mxu0  ;;  %6366 = vmax.xlane.f32.xlu0 %v6365_v50  ;;  %v6051_v29 = vpop.f32.mrb[127].mxu1  ;;  %v5335_v50 = vadd.f32 %v15665_v0, %v15307_v3  ;;  %v5349_v3 = vadd.f32 %v15642_v60, %v15348_v51  ;;  %v6359_v8 = vsel %vm951_vm0, %v15711_v55, -inf  ;;  %v6397_v23 = vsub.f32 %v15364_v21, %v15709_v45 }
 0xe45   : > { %v15707_v28 = vpop.f32.mrb[143].mxu0  ;;  %v15723_v48 = vpop.xlane.xlu1 %6213 }
 0xe46   : > { %6369 = vmax.xlane.f32.xlu1 %v6368_v24  ;;  %v6344_v24 = vsel %vm951_vm0, %v15701_v35, -inf  ;;  %v15725_v43 = vadd.f32 %v6111_v52, %v5335_v50  ;;  %v6362_v50 = vsel %vm951_vm0, %v15717_v6, -inf  ;;  %v6385_v52 = vsub.f32 %v15316_v25, %v15605_v47 }
 0xe47   : > { %v15741_v5 = vadd.f32 %v6125_v16, %v5349_v3  ;;  %v5342_v25 = vadd.f32 %v15665_v0, %v15354_v19  ;;  %v6118_v47 = vmul.f32 0.25, %v10113_v17  ;;  %v6338_v3 = vsel %vm951_vm0, %v15733_v41, -inf  ;;  %v6229_v16 = vpop.xlane.xlu0 %6228 }
 0xe48   : > { %6342 = vmax.xlane.f32.xlu0 %v6341_v40  ;;  %v6126_v40 = vmul.f32 0.25, %v10129_v44  ;;  %v6335_v33 = vsel %vm951_vm0, %v15725_v43, -inf  ;;  %v6467_v19 = vmul.f32 1.442695, %v6393_v31  ;;  %v6391_v17 = vsub.f32 %v15328_v12, %v15625_v49 }
 0xe49   : > { %v15749_v44 = vpop.xlane.xlu1 %6231  ;;  %v5339_v12 = vadd.f32 %v15665_v0, %v15366_v18  ;;  %v6115_v49 = vmul.f32 0.25, %v15695_v63  ;;  %v6475_v63 = vmul.f32 1.442695, %v6397_v23 }
 0xe4a   : > { %6345 = vmax.xlane.f32.xlu1 %v6344_v24  ;;  %v5341_v24 = vadd.f32 %v15665_v0, %v15348_v51  ;;  %v15751_v35 = vadd.f32 %v6126_v40, %v5350_v38  ;;  %v6451_v51 = vmul.f32 1.442695, %v6385_v52  ;;  %v6377_v38 = vsel %vm951_vm0, %v15741_v5, -inf }
 0xe4b   : > { %v15767_v40 = vadd.f32 %v6118_v47, %v5342_v25  ;;  %v6463_v31 = vmul.f32 1.442695, %v6391_v17  ;;  %v6205_v45 = vpop.xlane.xlu0 %6204  ;;  %v5340_v25 = vadd.f32 %v15665_v0, %v15376_v59  ;;  %v6116_v47 = vmul.f32 0.25, %v15707_v28 }
 0xe4c   : > { %6360 = vmax.xlane.f32.xlu0 %v6359_v8  ;;  %v6117_v8 = vmul.f32 0.25, %v10112_v26  ;;  %v6383_v26 = vsub.f32 %v15338_v56, %v15652_v27  ;;  %v5348_v56 = vadd.f32 %v15642_v60, %v15376_v59  ;;  %v6124_v27 = vmul.f32 0.25, %v6051_v29 }
 0xe4d   : > { %v6380_v52 = vsel %vm951_vm0, %v15751_v35, -inf  ;;  %11275 = vpow2.f32 %v6451_v51  ;;  %v6394_v29 = vsub.f32 %v15314_v61, %v15619_v62  ;;  %v6356_v18 = vsel %vm951_vm0, %v15767_v40, -inf }
 0xe4e   : > { %6363 = vmax.xlane.f32.xlu1 %v6362_v50  ;;  %v15759_v50 = vadd.f32 %v6117_v8, %v5341_v24  ;;  %v6447_v24 = vmul.f32 1.442695, %v6383_v26  ;;  %v15775_v8 = vpop.xlane.xlu1 %6207  ;;  %11277 = vpow2.f32 %v6467_v19  ;;  %v15786_v21 = vadd.f32 %v6124_v27, %v5348_v56 }
 0xe4f   : > { %v15795_v61 = vadd.f32 %v6115_v49, %v5339_v12  ;;  %v6469_v51 = vmul.f32 1.442695, %v6394_v29  ;;  %v6386_v59 = vsub.f32 %v15346_v36, %v15683_v37  ;;  %v15801_v28 = vadd.f32 %v6116_v47, %v5340_v25 }
 0xe50   : > { %6336 = vmax.xlane.f32.xlu0 %v6335_v33  ;;  %v15777_v33 = vadd.f32 %v6123_v34, %v5347_v4  ;;  %v6353_v60 = vsel %vm951_vm0, %v15759_v50, -inf  ;;  %11279 = vpow2.f32 %v6447_v24  ;;  %v6374_v26 = vsel %vm951_vm0, %v15786_v21, -inf  ;;  %v15808_v4 = vpop.xlane.xlu0 %6270 }
 0xe51   : > { %11281 = vpow2.f32 %v6463_v31  ;;  %v6347_v34 = vsel %vm951_vm0, %v15795_v61, -inf  ;;  %v6392_v36 = vsub.f32 %v15322_v2, %v15650_v7  ;;  %v6453_v37 = vmul.f32 1.442695, %v6386_v59 }
 0xe52   : > { %6339 = vmax.xlane.f32.xlu1 %v6338_v3  ;;  %v6389_v3 = vsub.f32 %v15374_v9, %v15731_v39  ;;  %v6371_v62 = vsel %vm951_vm0, %v15777_v33, -inf  ;;  %v15803_v0 = vpop.xlane.xlu1 %6273  ;;  %11283 = vpow2.f32 %v6475_v63  ;;  %v6395_v39 = vsub.f32 %v15391_v42, %v6229_v16 }
 0xe53   : > { %11285 = vpow2.f32 %v6469_v51  ;;  %v6350_v19 = vsel %vm951_vm0, %v15801_v28, -inf  ;;  %v6387_v16 = vsub.f32 %v15405_v14, %v6205_v45  ;;  %v6465_v2 = vmul.f32 1.442695, %v6392_v36 }
 0xe54   : > { %6378 = vmax.xlane.f32.xlu0 %v6377_v38  ;;  %v6459_v9 = vmul.f32 1.442695, %v6389_v3  ;;  %v6471_v42 = vmul.f32 1.442695, %v6395_v39  ;;  %v6384_v7 = vsub.f32 %v15334_v54, %v15681_v46  ;;  %v6247_v24 = vpop.xlane.xlu0 %6246  ;;  %v6398_v14 = vsub.f32 %v15368_v10, %v15699_v20 }
 0xe55   : > { %v6455_v49 = vmul.f32 1.442695, %v6387_v16  ;;  %v6390_v46 = vsub.f32 %v15380_v32, %v15723_v48  ;;  %v6401_v20 = vsub.f32 %v15430_v30, %v6247_v24  ;;  %v6396_v48 = vsub.f32 %v15399_v57, %v15749_v44 }
 0xe56   : > { %6381 = vmax.xlane.f32.xlu1 %v6380_v52  ;;  %11287 = vpow2.f32 %v6459_v9  ;;  %v15821_v56 = vpop.xlane.xlu1 %6249  ;;  %v6449_v54 = vmul.f32 1.442695, %v6384_v7  ;;  %v6477_v10 = vmul.f32 1.442695, %v6398_v14  ;;  %v6410_v30 = vsub.f32 %v15424_v11, %v15803_v0 }
 0xe57   : > { %v15812_v38 = vpop.eup %11275  ;;  %11289 = vpow2.f32 %v6453_v37  ;;  %v6461_v32 = vmul.f32 1.442695, %v6390_v46  ;;  %v6483_v51 = vmul.f32 1.442695, %v6401_v20  ;;  %v6473_v57 = vmul.f32 1.442695, %v6396_v48 }
 0xe58   : > { %6354 = vmax.xlane.f32.xlu0 %v6353_v60  ;;  %v15818_v17 = vpop.eup %11277  ;;  %v6581_v27 = vsel %vm951_vm0, %v15812_v38, 0.0  ;;  %11291 = vpow2.f32 %v6471_v42  ;;  %v6265_v47 = vpop.xlane.xlu0 %6264  ;;  %v6388_v44 = vsub.f32 %v15412_v1, %v15775_v8  ;;  %v6501_v11 = vmul.f32 1.442695, %v6410_v30  ;;  %v17344_v48 = vld [vmem:[#allocation65_spill] sm:$0xff] }
 0xe59   : > { %v6605_v23 = vsel %vm951_vm0, %v15818_v17, 0.0  ;;  %11293 = vpow2.f32 %v6465_v2  ;;  %v6402_v0 = vsub.f32 %v15436_v13, %v15821_v56  ;;  %v6409_v8 = vsub.f32 %v15418_v15, %v15808_v4 }
 0xe5a   : > { %6357 = vmax.xlane.f32.xlu1 %v6356_v18  ;;  %v15825_v52 = vpop.eup %11279  ;;  %v6268_v31 = vpop.xlane.xlu1 %6267  ;;  %11295 = vpow2.f32 %v6455_v49  ;;  %v6457_v1 = vmul.f32 1.442695, %v6388_v44  ;;  %v6407_v4 = vsub.f32 %v15442_v53, %v6265_v47  ;;  %v17343_v53 = vld [vmem:[#allocation66_spill] sm:$0xff] }
 0xe5b   : > { %v15831_v12 = vpop.eup %11281  ;;  %v6575_v60 = vsel %vm951_vm0, %v15825_v52, 0.0  ;;  %11297 = vpow2.f32 %v6449_v54  ;;  %v6485_v13 = vmul.f32 1.442695, %v6402_v0  ;;  %v6408_v56 = vsub.f32 %v15448_v58, %v6268_v31  ;;  %v17342_v58 = vld [vmem:[#allocation67_spill] sm:$0xff]  ;;  %v17346_v0 = vld [vmem:[#allocation81_spill] sm:$0xff] }
 0xe5c   : > { %6372 = vmax.xlane.f32.xlu0 %v6371_v62  ;;  %v15837_v29 = vpop.eup %11283  ;;  %v6599_v45 = vsel %vm951_vm0, %v15831_v12, 0.0  ;;  %11299 = vpow2.f32 %v6477_v10  ;;  %v6241_v39 = vpop.xlane.xlu0 %6240  ;;  %v6499_v15 = vmul.f32 1.442695, %v6409_v8 }
 0xe5d   : > { %v15843_v25 = vpop.eup %11285  ;;  %v6617_v18 = vsel %vm951_vm0, %v15837_v29, 0.0  ;;  %11301 = vpow2.f32 %v6461_v32  ;;  %v6497_v49 = vmul.f32 1.442695, %v6408_v56  ;;  %v6399_v10 = vsub.f32 %v17343_v53, %v6241_v39 }
 0xe5e   : > { %6375 = vmax.xlane.f32.xlu1 %v6374_v26  ;;  %v6608_v3 = vsel %vm951_vm0, %v15843_v25, 0.0  ;;  %v6244_v59 = vpop.xlane.xlu1 %6243  ;;  %11303 = vpow2.f32 %v6483_v51 }
 0xe5f   : > { %11305 = vpow2.f32 %v6473_v57 }
 0xe60   : > { %6348 = vmax.xlane.f32.xlu0 %v6347_v34  ;;  %v15848_v63 = vpop.eup %11287  ;;  %11307 = vpow2.f32 %v6501_v11  ;;  %v6283_v2 = vpop.xlane.xlu0 %6282 }
 0xe61   : > { %v15854_v62 = vpop.eup %11289  ;;  %v6593_v26 = vsel %vm951_vm0, %v15848_v63, 0.0  ;;  %11309 = vpow2.f32 %v6457_v1 }
 0xe62   : > { %6351 = vmax.xlane.f32.xlu1 %v6350_v19  ;;  %v15860_v9 = vpop.eup %11291  ;;  %v6584_v34 = vsel %vm951_vm0, %v15854_v62, 0.0  ;;  %v6286_v42 = vpop.xlane.xlu1 %6285  ;;  %11311 = vpow2.f32 %v6485_v13  ;;  %v17347_v13 = vld [vmem:[#allocation76_spill] sm:$0xff] }
 0xe63   : > { %v15866_v36 = vpop.eup %11293  ;;  %v6611_v37 = vsel %vm951_vm0, %v15860_v9, 0.0  ;;  %11313 = vpow2.f32 %v6499_v15 }
 0xe64   : > { %6582 = vadd.xlane.f32.xlu0 %v6581_v27  ;;  %v15872_v19 = vpop.eup %11295  ;;  %v6602_v16 = vsel %vm951_vm0, %v15866_v36, 0.0  ;;  %v6259_v20 = vpop.xlane.xlu0 %6258  ;;  %11315 = vpow2.f32 %v6497_v49 }
 0xe65   : > { %v15878_v27 = vpop.eup %11297  ;;  %v6587_v7 = vsel %vm951_vm0, %v15872_v19, 0.0  ;;  %v6405_v56 = vsub.f32 %v17347_v13, %v6259_v20 }
 0xe66   : > { %6606 = vadd.xlane.f32.xlu1 %v6605_v23  ;;  %v15883_v24 = vpop.eup %11299  ;;  %v6578_v23 = vsel %vm951_vm0, %v15878_v27, 0.0  ;;  %v6262_v54 = vpop.xlane.xlu1 %6261 }
 0xe67   : > { %v15888_v14 = vpop.eup %11301  ;;  %v6620_v46 = vsel %vm951_vm0, %v15883_v24, 0.0 }
 0xe68   : > { %6576 = vadd.xlane.f32.xlu0 %v6575_v60  ;;  %v6400_v60 = vsub.f32 %v17342_v58, %v6244_v59  ;;  %v15893_v31 = vpop.eup %11303  ;;  %v6596_v47 = vsel %vm951_vm0, %v15888_v14, 0.0  ;;  %v6479_v59 = vmul.f32 1.442695, %v6399_v10  ;;  %v6277_v1 = vpop.xlane.xlu0 %6276 }
 0xe69   : > { %v6629_v30 = vsel %vm951_vm0, %v15893_v31, 0.0 }
 0xe6a   : > { %6600 = vadd.xlane.f32.xlu1 %v6599_v45  ;;  %v6495_v45 = vmul.f32 1.442695, %v6407_v4  ;;  %v6481_v32 = vmul.f32 1.442695, %v6400_v60  ;;  %v6280_v44 = vpop.xlane.xlu1 %6279  ;;  %v17348_v4 = vld [vmem:[#allocation75_spill] sm:$0xff] }
 0xe6c   : > { %6618 = vadd.xlane.f32.xlu0 %v6617_v18  ;;  %v15898_v18 = vpop.eup %11305  ;;  %11317 = vpow2.f32 %v6495_v45  ;;  %v6253_v53 = vpop.xlane.xlu0 %6252 }
 0xe6d   : > { %v15903_v51 = vpop.eup %11307  ;;  %v6614_v39 = vsel %vm951_vm0, %v15898_v18, 0.0  ;;  %11319 = vpow2.f32 %v6481_v32  ;;  %v17350_v32 = vld [vmem:[#allocation85_spill] sm:$0xff] }
 0xe6e   : > { %6609 = vadd.xlane.f32.xlu1 %v6608_v3  ;;  %v6414_v3 = vsub.f32 %v17344_v48, %v6286_v42  ;;  %v6656_v8 = vsel %vm951_vm0, %v15903_v51, 0.0  ;;  %11321 = vpow2.f32 %v6479_v59  ;;  %v6256_v49 = vpop.xlane.xlu1 %6255 }
 0xe6f   : > { %v6404_v48 = vsub.f32 %v17350_v32, %v6256_v49 }
 0xe70   : > { %6594 = vadd.xlane.f32.xlu0 %v6593_v26  ;;  %v17345_v26 = vld [vmem:[#allocation48_spill] sm:$0xff]  ;;  %v6509_v11 = vmul.f32 1.442695, %v6414_v3 }
 0xe71   : > { %v6413_v57 = vsub.f32 %v17345_v26, %v6283_v2  ;;  %v17351_v26 = vld [vmem:[#allocation86_spill] sm:$0xff] }
 0xe72   : > { %6585 = vadd.xlane.f32.xlu1 %v6584_v34  ;;  %v15908_v34 = vpop.eup %11309  ;;  %11323 = vpow2.f32 %v6509_v11  ;;  %v6489_v11 = vmul.f32 1.442695, %v6404_v48  ;;  %v17354_v48 = vld [vmem:[#allocation87_spill] sm:$0xff] }
 0xe73   : > { %v15913_v42 = vpop.eup %11311  ;;  %v6590_v2 = vsel %vm951_vm0, %v15908_v34, 0.0 }
 0xe74   : > { %6612 = vadd.xlane.f32.xlu0 %v6611_v37  ;;  %v6406_v37 = vsub.f32 %v17346_v0, %v6262_v54  ;;  %v6632_v58 = vsel %vm951_vm0, %v15913_v42, 0.0  ;;  %v6491_v54 = vmul.f32 1.442695, %v6405_v56 }
 0xe76   : > { %6603 = vadd.xlane.f32.xlu1 %v6602_v16  ;;  %v6507_v16 = vmul.f32 1.442695, %v6413_v57  ;;  %v6493_v15 = vmul.f32 1.442695, %v6406_v37  ;;  %v6403_v57 = vsub.f32 %v17351_v26, %v6253_v53 }
 0xe78   : > { %6588 = vadd.xlane.f32.xlu0 %v6587_v7  ;;  %v15918_v7 = vpop.eup %11313  ;;  %11325 = vpow2.f32 %v6507_v16 }
 0xe79   : > { %v15923_v60 = vpop.eup %11315  ;;  %v6653_v10 = vsel %vm951_vm0, %v15918_v7, 0.0  ;;  %11327 = vpow2.f32 %v6493_v15 }
 0xe7a   : > { %6579 = vadd.xlane.f32.xlu1 %v6578_v23  ;;  %v6412_v23 = vsub.f32 %v17348_v4, %v6280_v44  ;;  %v15928_v20 = vpop.eup %11317  ;;  %v6650_v3 = vsel %vm951_vm0, %v15923_v60, 0.0  ;;  %11329 = vpow2.f32 %v6491_v54 }
 0xe7b   : > { %v6647_v44 = vsel %vm951_vm0, %v15928_v20, 0.0 }
 0xe7c   : > { %6621 = vadd.xlane.f32.xlu0 %v6620_v46  ;;  %v17349_v46 = vld [vmem:[#allocation78_spill] sm:$0xff] }
 0xe7d   : > { %v6411_v45 = vsub.f32 %v17349_v46, %v6277_v1  ;;  %v6487_v1 = vmul.f32 1.442695, %v6403_v57 }
 0xe7e   : > { %6597 = vadd.xlane.f32.xlu1 %v6596_v47  ;;  %v6505_v47 = vmul.f32 1.442695, %v6412_v23 }
 0xe7f   : > { %v6503_v59 = vmul.f32 1.442695, %v6411_v45 }
 0xe80   : > { %6630 = vadd.xlane.f32.xlu0 %v6629_v30  ;;  %v15933_v30 = vpop.eup %11319  ;;  %11331 = vpow2.f32 %v6505_v47 }
 0xe81   : > { %v6626_v0 = vsel %vm951_vm0, %v15933_v30, 0.0  ;;  %11333 = vpow2.f32 %v6503_v59 }
 0xe82   : > { %6615 = vadd.xlane.f32.xlu1 %v6614_v39  ;;  %v15938_v39 = vpop.eup %11321  ;;  %11335 = vpow2.f32 %v6489_v11 }
 0xe83   : > { %v15942_v37 = vpop.eup %11323  ;;  %11337 = vpow2.f32 %v6487_v1 }
 0xe84   : > { %6657 = vadd.xlane.f32.xlu0 %v6656_v8  ;;  %17352 = vst [vmem:[#allocation67_spill] sm:$0xff] %v15942_v37  ;;  %v6623_v8 = vsel %vm951_vm0, %v15938_v39, 0.0  ;;  %v15946_v16 = vpop.eup %11325  ;;  %v6668_v13 = vsel %vm951_vm0, %v15942_v37, 0.0 }
 0xe85   : > { %17353 = vst [vmem:[#allocation66_spill] sm:$0xff] %v15946_v16  ;;  %v15950_v56 = vpop.eup %11327 }
 0xe86   : > { %6591 = vadd.xlane.f32.xlu1 %v6590_v2  ;;  %v6665_v2 = vsel %vm951_vm0, %v15946_v16, 0.0  ;;  %v15954_v15 = vpop.eup %11329  ;;  %v6644_v4 = vsel %vm951_vm0, %v15950_v56, 0.0 }
 0xe87   : > { %v6641_v49 = vsel %vm951_vm0, %v15954_v15, 0.0 }
 0xe88   : > { %6633 = vadd.xlane.f32.xlu0 %v6632_v58 }
 0xe8a   : > { %6654 = vadd.xlane.f32.xlu1 %v6653_v10  ;;  %v15958_v23 = vpop.eup %11331 }
 0xe8b   : > { %v15962_v58 = vpop.eup %11333  ;;  %v6662_v54 = vsel %vm951_vm0, %v15958_v23, 0.0 }
 0xe8c   : > { %6651 = vadd.xlane.f32.xlu0 %v6650_v3  ;;  %v15966_v46 = vpop.eup %11335  ;;  %v6659_v45 = vsel %vm951_vm0, %v15962_v58, 0.0 }
 0xe8d   : > { %v15970_v53 = vpop.eup %11337  ;;  %v6638_v10 = vsel %vm951_vm0, %v15966_v46, 0.0 }
 0xe8e   : > { %6648 = vadd.xlane.f32.xlu1 %v6647_v44  ;;  %v6635_v47 = vsel %vm951_vm0, %v15970_v53, 0.0  ;;  %v17355_v44 = vld [vmem:[#allocation41_spill] sm:$0xff] }
 0xe90   : > { %6627 = vadd.xlane.f32.xlu0 %v6626_v0 }
 0xe92   : > { %6624 = vadd.xlane.f32.xlu1 %v6623_v8 }
 0xe94   : > { %6669 = vadd.xlane.f32.xlu0 %v6668_v13  ;;  %v17356_v13 = vld [vmem:[#allocation91_spill] sm:$0xff] }
 0xe96   : > { %6666 = vadd.xlane.f32.xlu1 %v6665_v2 }
 0xe98   : > { %6645 = vadd.xlane.f32.xlu0 %v6644_v4  ;;  %v17357_v4 = vld [vmem:[#allocation42_spill] sm:$0xff] }
 0xe9a   : > { %6642 = vadd.xlane.f32.xlu1 %v6641_v49 }
 0xe9c   : > { %6663 = vadd.xlane.f32.xlu0 %v6662_v54 }
 0xe9e   : > { %6660 = vadd.xlane.f32.xlu1 %v6659_v45 }
 0xea0   : > { %6639 = vadd.xlane.f32.xlu0 %v6638_v10 }
 0xea2   : > { %6636 = vadd.xlane.f32.xlu1 %v6635_v47  ;;  %v17358_v47 = vld [vmem:[#allocation95_spill] sm:$0xff] }
 0xeac   : > { %v6319_v32 = vpop.xlane.xlu0 %6318 }
 0xead   : > { %v6425_v3 = vsub.f32 %v17354_v48, %v6319_v32 }
 0xeae   : > { %v6322_v59 = vpop.xlane.xlu1 %6321 }
 0xeaf   : > { %v6531_v26 = vmul.f32 1.442695, %v6425_v3  ;;  %v6426_v49 = vsub.f32 %v17357_v4, %v6322_v59 }
 0xeb0   : > { %v6295_v57 = vpop.xlane.xlu0 %6294 }
 0xeb1   : > { %11339 = vpow2.f32 %v6531_v26  ;;  %v6417_v11 = vsub.f32 %v17355_v44, %v6295_v57  ;;  %v6533_v48 = vmul.f32 1.442695, %v6426_v49  ;;  %v17360_v26 = vld [vmem:[#allocation90_spill] sm:$0xff] }
 0xeb2   : > { %v6298_v0 = vpop.xlane.xlu1 %6297 }
 0xeb3   : > { %v6515_v1 = vmul.f32 1.442695, %v6417_v11  ;;  %v6418_v57 = vsub.f32 %v17360_v26, %v6298_v0  ;;  %v17361_v11 = vld [vmem:[#allocation97_spill] sm:$0xff] }
 0xeb4   : > { %v6313_v8 = vpop.xlane.xlu0 %6312 }
 0xeb5   : > { %11341 = vpow2.f32 %v6515_v1  ;;  %v6423_v2 = vsub.f32 %v17356_v13, %v6313_v8  ;;  %v6517_v13 = vmul.f32 1.442695, %v6418_v57 }
 0xeb6   : > { %v6316_v54 = vpop.xlane.xlu1 %6315 }
 0xeb7   : > { %v6527_v45 = vmul.f32 1.442695, %v6423_v2  ;;  %v17363_v2 = vld [vmem:[#allocation94_spill] sm:$0xff] }
 0xeb8   : > { %v6289_v10 = vpop.xlane.xlu0 %6288  ;;  %v6424_v4 = vsub.f32 %v17363_v2, %v6316_v54 }
 0xeb9   : > { %11343 = vpow2.f32 %v6527_v45  ;;  %v6415_v32 = vsub.f32 %v17358_v47, %v6289_v10  ;;  %v17364_v45 = vld [vmem:[#allocation99_spill] sm:$0xff] }
 0xeba   : > { %v6292_v3 = vpop.xlane.xlu1 %6291 }
 0xebb   : > { %v15981_v37 = vpop.eup %11339  ;;  %v6511_v44 = vmul.f32 1.442695, %v6415_v32  ;;  %v6416_v16 = vsub.f32 %v17361_v11, %v6292_v3  ;;  %v6529_v32 = vmul.f32 1.442695, %v6424_v4 }
 0xebc   : > { %17359 = vst [vmem:[#allocation65_spill] sm:$0xff] %v15981_v37  ;;  %v6701_v1 = vsel %vm951_vm0, %v15981_v37, 0.0 }
 0xebd   : > { %11345 = vpow2.f32 %v6511_v44  ;;  %v6513_v59 = vmul.f32 1.442695, %v6416_v16  ;;  %6702 = vadd.xlane.f32.xlu0 %v6701_v1  ;;  %v17367_v44 = vld [vmem:[#allocation100_spill] sm:$0xff] }
 0xebe   : > { %11347 = vpow2.f32 %v6533_v48  ;;  %v17366_v48 = vld [vmem:[#allocation101_spill] sm:$0xff] }
 0xebf   : > { %v15987_v8 = vpop.eup %11341  ;;  %11349 = vpow2.f32 %v6513_v59 }
 0xec0   : > { %17362 = vst [vmem:[#allocation48_spill] sm:$0xff] %v15987_v8  ;;  %v6677_v49 = vsel %vm951_vm0, %v15987_v8, 0.0  ;;  %11351 = vpow2.f32 %v6517_v13 }
 0xec1   : > { %6678 = vadd.xlane.f32.xlu0 %v6677_v49  ;;  %v6331_v0 = vpop.xlane.xlu0 %6330 }
 0xec2   : > { %v6429_v10 = vsub.f32 %v17364_v45, %v6331_v0 }
 0xec3   : > { %v15993_v47 = vpop.eup %11343  ;;  %v6334_v16 = vpop.xlane.xlu1 %6333 }
 0xec4   : > { %17365 = vst [vmem:[#allocation81_spill] sm:$0xff] %v15993_v47  ;;  %v6539_v3 = vmul.f32 1.442695, %v6429_v10  ;;  %v6430_v26 = vsub.f32 %v17366_v48, %v6334_v16  ;;  %v6695_v57 = vsel %vm951_vm0, %v15993_v47, 0.0  ;;  %v17368_v10 = vld [vmem:[#allocation103_spill] sm:$0xff] }
 0xec5   : > { %6696 = vadd.xlane.f32.xlu0 %v6695_v57  ;;  %v6307_v54 = vpop.xlane.xlu0 %6306 }
 0xec6   : > { %11353 = vpow2.f32 %v6539_v3  ;;  %v6421_v11 = vsub.f32 %v17367_v44, %v6307_v54  ;;  %v6541_v59 = vmul.f32 1.442695, %v6430_v26  ;;  %v17370_v54 = vld [vmem:[#allocation104_spill] sm:$0xff] }
 0xec7   : > { %v15999_v1 = vpop.eup %11345  ;;  %11355 = vpow2.f32 %v6529_v32  ;;  %v6310_v2 = vpop.xlane.xlu1 %6309  ;;  %v17369_v32 = vld [vmem:[#allocation102_spill] sm:$0xff] }
 0xec8   : > { %v16001_v49 = vpop.eup %11347  ;;  %v6523_v13 = vmul.f32 1.442695, %v6421_v11  ;;  %v6671_v4 = vsel %vm951_vm0, %v15999_v1, 0.0  ;;  %v6422_v48 = vsub.f32 %v17369_v32, %v6310_v2 }
 0xec9   : > { %v16005_v0 = vpop.eup %11349  ;;  %6672 = vadd.xlane.f32.xlu1 %v6671_v4  ;;  %v6325_v45 = vpop.xlane.xlu0 %6324  ;;  %v6704_v11 = vsel %vm951_vm0, %v16001_v49, 0.0 }
 0xeca   : > { %11357 = vpow2.f32 %v6523_v13  ;;  %v6427_v16 = vsub.f32 %v17368_v10, %v6325_v45  ;;  %v6674_v3 = vsel %vm951_vm0, %v16005_v0, 0.0  ;;  %v16014_v37 = vpop.eup %11351  ;;  %v17371_v45 = vld [vmem:[#allocation105_spill] sm:$0xff]  ;;  %v6525_v47 = vmul.f32 1.442695, %v6422_v48  ;;  %v17374_v48 = vld [vmem:[#allocation107_spill] sm:$0xff] }
 0xecb   : > { %11359 = vpow2.f32 %v6541_v59  ;;  %v6328_v26 = vpop.xlane.xlu1 %6327  ;;  %6675 = vadd.xlane.f32.xlu0 %v6674_v3  ;;  %v6680_v32 = vsel %vm951_vm0, %v16014_v37, 0.0 }
 0xecc   : > { %v6535_v57 = vmul.f32 1.442695, %v6427_v16  ;;  %v6428_v44 = vsub.f32 %v17370_v54, %v6328_v26  ;;  %v17373_v16 = vld [vmem:[#allocation106_spill] sm:$0xff] }
 0xecd   : > { %6705 = vadd.xlane.f32.xlu1 %v6704_v11  ;;  %v6301_v13 = vpop.xlane.xlu0 %6300 }
 0xece   : > { %11361 = vpow2.f32 %v6535_v57  ;;  %v6537_v4 = vmul.f32 1.442695, %v6428_v44  ;;  %v6419_v10 = vsub.f32 %v17371_v45, %v6301_v13 }
 0xecf   : > { %v6304_v59 = vpop.xlane.xlu1 %6303 }
 0xed0   : > { %v16017_v8 = vpop.eup %11353  ;;  %11363 = vpow2.f32 %v6537_v4  ;;  %v6519_v2 = vmul.f32 1.442695, %v6419_v10  ;;  %v6420_v3 = vsub.f32 %v17373_v16, %v6304_v59  ;;  %v17376_v10 = vld [vmem:[#allocation108_spill] sm:$0xff] }
 0xed1   : > { %17372 = vst [vmem:[#allocation76_spill] sm:$0xff] %v16017_v8  ;;  %v16022_v26 = vpop.eup %11355  ;;  %6681 = vadd.xlane.f32.xlu1 %v6680_v32  ;;  %v6367_v54 = vpop.xlane.xlu0 %6366  ;;  %v6713_v57 = vsel %vm951_vm0, %v16017_v8, 0.0 }
 0xed2   : > { %11365 = vpow2.f32 %v6519_v2  ;;  %v6521_v44 = vmul.f32 1.442695, %v6420_v3  ;;  %v6441_v11 = vsub.f32 %v17374_v48, %v6367_v54  ;;  %6714 = vadd.xlane.f32.xlu0 %v6713_v57  ;;  %v6698_v16 = vsel %vm951_vm0, %v16022_v26, 0.0 }
 0xed3   : > { %11367 = vpow2.f32 %v6525_v47  ;;  %v6370_v13 = vpop.xlane.xlu1 %6369 }
 0xed4   : > { %v16027_v4 = vpop.eup %11357  ;;  %11369 = vpow2.f32 %v6521_v44  ;;  %v6563_v45 = vmul.f32 1.442695, %v6441_v11  ;;  %v6442_v59 = vsub.f32 %v17376_v10, %v6370_v13 }
 0xed5   : > { %17375 = vst [vmem:[#allocation75_spill] sm:$0xff] %v16027_v4  ;;  %v16032_v32 = vpop.eup %11359  ;;  %6699 = vadd.xlane.f32.xlu1 %v6698_v16  ;;  %v6343_v8 = vpop.xlane.xlu0 %6342  ;;  %v6689_v2 = vsel %vm951_vm0, %v16027_v4, 0.0 }
 0xed6   : > { %v6565_v3 = vmul.f32 1.442695, %v6442_v59  ;;  %v6433_v47 = vsub.f32 %v15691_v22, %v6343_v8  ;;  %6690 = vadd.xlane.f32.xlu0 %v6689_v2  ;;  %11371 = vpow2.f32 %v6563_v45  ;;  %v6716_v48 = vsel %vm951_vm0, %v16032_v32, 0.0 }
 0xed7   : > { %v6346_v54 = vpop.xlane.xlu1 %6345 }
 0xed8   : > { %v16037_v57 = vpop.eup %11361  ;;  %11373 = vpow2.f32 %v6565_v3  ;;  %v6547_v44 = vmul.f32 1.442695, %v6433_v47 }
 0xed9   : > { %6717 = vadd.xlane.f32.xlu1 %v6716_v48  ;;  %v6361_v11 = vpop.xlane.xlu0 %6360  ;;  %v6707_v13 = vsel %vm951_vm0, %v16037_v57, 0.0 }
 0xeda   : > { %v16043_v10 = vpop.eup %11363  ;;  %v6439_v59 = vsub.f32 %v15711_v55, %v6361_v11  ;;  %6708 = vadd.xlane.f32.xlu0 %v6707_v13  ;;  %11375 = vpow2.f32 %v6547_v44  ;;  %v17379_v13 = vld [vmem:[#allocation109_spill] sm:$0xff] }
 0xedb   : > { %17377 = vst [vmem:[#allocation78_spill] sm:$0xff] %v16043_v10  ;;  %v6364_v22 = vpop.xlane.xlu1 %6363  ;;  %v6710_v8 = vsel %vm951_vm0, %v16043_v10, 0.0  ;;  %v6434_v10 = vsub.f32 %v17379_v13, %v6346_v54 }
 0xedc   : > { %v16048_v45 = vpop.eup %11365  ;;  %v6559_v16 = vmul.f32 1.442695, %v6439_v59  ;;  %v6440_v2 = vsub.f32 %v15717_v6, %v6364_v22 }
 0xedd   : > { %17378 = vst [vmem:[#allocation85_spill] sm:$0xff] %v16048_v45  ;;  %v16051_v3 = vpop.eup %11367  ;;  %6711 = vadd.xlane.f32.xlu1 %v6710_v8  ;;  %v6337_v47 = vpop.xlane.xlu0 %6336  ;;  %v6683_v48 = vsel %vm951_vm0, %v16048_v45, 0.0  ;;  %v6549_v54 = vmul.f32 1.442695, %v6434_v10 }
 0xede   : > { %v16055_v4 = vpop.eup %11369  ;;  %v6561_v55 = vmul.f32 1.442695, %v6440_v2  ;;  %v6431_v11 = vsub.f32 %v15725_v43, %v6337_v47  ;;  %6684 = vadd.xlane.f32.xlu0 %v6683_v48  ;;  %11377 = vpow2.f32 %v6559_v16  ;;  %v6692_v2 = vsel %vm951_vm0, %v16051_v3, 0.0 }
 0xedf   : > { %v6340_v44 = vpop.xlane.xlu1 %6339  ;;  %v6686_v6 = vsel %vm951_vm0, %v16055_v4, 0.0 }
 0xee0   : > { %11379 = vpow2.f32 %v6561_v55  ;;  %v6543_v59 = vmul.f32 1.442695, %v6431_v11  ;;  %v6432_v22 = vsub.f32 %v15733_v41, %v6340_v44  ;;  %v16062_v8 = vpop.eup %11371 }
 0xee1   : > { %17380 = vst [vmem:[#allocation86_spill] sm:$0xff] %v16062_v8  ;;  %6687 = vadd.xlane.f32.xlu1 %v6686_v6  ;;  %v6379_v45 = vpop.xlane.xlu0 %6378  ;;  %v6749_v13 = vsel %vm951_vm0, %v16062_v8, 0.0 }
 0xee2   : > { %v16066_v43 = vpop.eup %11373  ;;  %v6545_v47 = vmul.f32 1.442695, %v6432_v22  ;;  %6693 = vadd.xlane.f32.xlu0 %v6692_v2  ;;  %11381 = vpow2.f32 %v6543_v59  ;;  %v6445_v41 = vsub.f32 %v15741_v5, %v6379_v45 }
 0xee3   : > { %17381 = vst [vmem:[#allocation87_spill] sm:$0xff] %v16066_v43  ;;  %v6382_v16 = vpop.xlane.xlu1 %6381  ;;  %v6752_v48 = vsel %vm951_vm0, %v16066_v43, 0.0 }
 0xee4   : > { %11383 = vpow2.f32 %v6545_v47  ;;  %v6446_v55 = vsub.f32 %v15751_v35, %v6382_v16  ;;  %v16074_v44 = vpop.eup %11375  ;;  %v6571_v22 = vmul.f32 1.442695, %v6445_v41 }
 0xee5   : > { %6753 = vadd.xlane.f32.xlu1 %v6752_v48  ;;  %v6355_v11 = vpop.xlane.xlu0 %6354  ;;  %17382 = vst [vmem:[#allocation41_spill] sm:$0xff] %v16074_v44  ;;  %11385 = vpow2.f32 %v6549_v54  ;;  %v6725_v35 = vsel %vm951_vm0, %v16074_v44, 0.0 }
 0xee6   : > { %v6573_v6 = vmul.f32 1.442695, %v6446_v55  ;;  %6750 = vadd.xlane.f32.xlu0 %v6749_v13  ;;  %v6437_v10 = vsub.f32 %v15759_v50, %v6355_v11 }
 0xee7   : > { %v6358_v59 = vpop.xlane.xlu1 %6357 }
 0xee8   : > { %11387 = vpow2.f32 %v6573_v6  ;;  %v16077_v2 = vpop.eup %11377  ;;  %v6555_v47 = vmul.f32 1.442695, %v6437_v10 }
 0xee9   : > { %v6373_v5 = vpop.xlane.xlu0 %6372  ;;  %11389 = vpow2.f32 %v6571_v22  ;;  %v6743_v11 = vsel %vm951_vm0, %v16077_v2, 0.0 }
 0xeea   : > { %v16081_v45 = vpop.eup %11379  ;;  %6726 = vadd.xlane.f32.xlu0 %v6725_v35  ;;  %v6443_v16 = vsub.f32 %v15777_v33, %v6373_v5  ;;  %11391 = vpow2.f32 %v6555_v47 }
 0xeeb   : > { %17383 = vst [vmem:[#allocation91_spill] sm:$0xff] %v16081_v45  ;;  %v6376_v48 = vpop.xlane.xlu1 %6375  ;;  %v6746_v54 = vsel %vm951_vm0, %v16081_v45, 0.0 }
 0xeec   : > { %v6444_v50 = vsub.f32 %v15786_v21, %v6376_v48  ;;  %6747 = vadd.xlane.f32.xlu1 %v6746_v54  ;;  %v16087_v41 = vpop.eup %11381  ;;  %v6567_v33 = vmul.f32 1.442695, %v6443_v16 }
 0xeed   : > { %17384 = vst [vmem:[#allocation42_spill] sm:$0xff] %v16087_v41  ;;  %v6349_v55 = vpop.xlane.xlu0 %6348  ;;  %v6719_v54 = vsel %vm951_vm0, %v16087_v41, 0.0 }
 0xeee   : > { %v16091_v13 = vpop.eup %11383  ;;  %v6569_v6 = vmul.f32 1.442695, %v6444_v50  ;;  %6744 = vadd.xlane.f32.xlu0 %v6743_v11  ;;  %v6435_v21 = vsub.f32 %v15795_v61, %v6349_v55  ;;  %v6438_v61 = vsub.f32 %v15767_v40, %v6358_v59 }
 0xeef   : > { %17385 = vst [vmem:[#allocation95_spill] sm:$0xff] %v16091_v13  ;;  %v6352_v10 = vpop.xlane.xlu1 %6351  ;;  %v6722_v5 = vsel %vm951_vm0, %v16091_v13, 0.0  ;;  %v16097_v35 = vpop.eup %11385 }
 0xef0   : > { %11393 = vpow2.f32 %v6569_v6  ;;  %v6436_v22 = vsub.f32 %v15801_v28, %v6352_v10  ;;  %6723 = vadd.xlane.f32.xlu1 %v6722_v5  ;;  %17386 = vst [vmem:[#allocation90_spill] sm:$0xff] %v16097_v35  ;;  %v6551_v28 = vmul.f32 1.442695, %v6435_v21  ;;  %v6728_v6 = vsel %vm951_vm0, %v16097_v35, 0.0 }
 0xef1   : > { %v6583_v48 = vpop.xlane.xlu0 %6582  ;;  %11395 = vpow2.f32 %v6567_v33 }
 0xef2   : > { %v16101_v50 = vpop.eup %11387  ;;  %v6553_v47 = vmul.f32 1.442695, %v6436_v22  ;;  %6720 = vadd.xlane.f32.xlu0 %v6719_v54  ;;  %v6557_v22 = vmul.f32 1.442695, %v6438_v61 }
 0xef3   : > { %17387 = vst [vmem:[#allocation97_spill] sm:$0xff] %v16101_v50  ;;  %v16103_v16 = vpop.xlane.xlu1 %6606  ;;  %v6764_v11 = vsel %vm951_vm0, %v16101_v50, 0.0  ;;  %v16110_v10 = vpop.eup %11389 }
 0xef4   : > { %11397 = vpow2.f32 %v6553_v47  ;;  %6765 = vadd.xlane.f32.xlu1 %v6764_v11  ;;  %17388 = vst [vmem:[#allocation94_spill] sm:$0xff] %v16110_v10  ;;  %v16112_v33 = vpop.eup %11391  ;;  %v6761_v40 = vsel %vm951_vm0, %v16110_v10, 0.0 }
 0xef5   : > { %v6577_v55 = vpop.xlane.xlu0 %6576  ;;  %11399 = vpow2.f32 %v6551_v28  ;;  %17389 = vst [vmem:[#allocation99_spill] sm:$0xff] %v16112_v33  ;;  %v6737_v28 = vsel %vm951_vm0, %v16112_v33, 0.0 }
 0xef6   : > { %6729 = vadd.xlane.f32.xlu0 %v6728_v6  ;;  %11401 = vpow2.f32 %v6557_v22 }
 0xef7   : > { %v6601_v5 = vpop.xlane.xlu1 %6600 }
 0xef9   : > { %v16114_v54 = vpop.xlane.xlu0 %6618 }
 0xefa   : > { %v16118_v59 = vpop.eup %11393  ;;  %6762 = vadd.xlane.f32.xlu0 %v6761_v40 }
 0xefb   : > { %17390 = vst [vmem:[#allocation101_spill] sm:$0xff] %v16118_v59  ;;  %v6610_v21 = vpop.xlane.xlu1 %6609  ;;  %v6758_v47 = vsel %vm951_vm0, %v16118_v59, 0.0  ;;  %v16122_v11 = vpop.eup %11395 }
 0xefc   : > { %6759 = vadd.xlane.f32.xlu1 %v6758_v47  ;;  %17391 = vst [vmem:[#allocation100_spill] sm:$0xff] %v16122_v11  ;;  %v6755_v59 = vsel %vm951_vm0, %v16122_v11, 0.0 }
 0xefd   : > { %v6595_v61 = vpop.xlane.xlu0 %6594 }
 0xefe   : > { %v16126_v6 = vpop.eup %11397  ;;  %6738 = vadd.xlane.f32.xlu0 %v6737_v28 }
 0xeff   : > { %17392 = vst [vmem:[#allocation103_spill] sm:$0xff] %v16126_v6  ;;  %v6586_v50 = vpop.xlane.xlu1 %6585  ;;  %v6734_v44 = vsel %vm951_vm0, %v16126_v6, 0.0  ;;  %v16132_v22 = vpop.eup %11399 }
 0xf00   : > { %6735 = vadd.xlane.f32.xlu1 %v6734_v44  ;;  %17393 = vst [vmem:[#allocation102_spill] sm:$0xff] %v16132_v22  ;;  %11403 = vrcp.f32 %v6586_v50  ;;  %v6731_v33 = vsel %vm951_vm0, %v16132_v22, 0.0  ;;  %v16136_v35 = vpop.eup %11401 }
 0xf01   : > { %v6613_v40 = vpop.xlane.xlu0 %6612  ;;  %17394 = vst [vmem:[#allocation104_spill] sm:$0xff] %v16136_v35  ;;  %11405 = vrcp.f32 %v6577_v55  ;;  %v6740_v6 = vsel %vm951_vm0, %v16136_v35, 0.0  ;;  %v17395_v55 = vld [vmem:[#allocation58_spill] sm:$0xff] }
 0xf02   : > { %6756 = vadd.xlane.f32.xlu0 %v6755_v59  ;;  %11407 = vrcp.f32 %v6583_v48 }
 0xf03   : > { %v6604_v47 = vpop.xlane.xlu1 %6603 }
 0xf05   : > { %v6589_v10 = vpop.xlane.xlu0 %6588 }
 0xf06   : > { %6732 = vadd.xlane.f32.xlu0 %v6731_v33 }
 0xf07   : > { %v6580_v28 = vpop.xlane.xlu1 %6579 }
 0xf08   : > { %11409 = vrcp.f32 %v6580_v28 }
 0xf09   : > { %v6622_v44 = vpop.xlane.xlu0 %6621  ;;  %11411 = vrcp.f32 %v6601_v5 }
 0xf0a   : > { %6741 = vadd.xlane.f32.xlu0 %v6740_v6  ;;  %v11404_v8 = vpop.eup %11403  ;;  %11413 = vrcp.f32 %v6604_v47 }
 0xf0b   : > { %v6598_v11 = vpop.xlane.xlu1 %6597  ;;  %v11406_v43 = vpop.eup %11405  ;;  %v6834_v28 = vmul.f32 %v11404_v8, %v15854_v62  ;;  %v17396_v62 = vld [vmem:[#allocation56_spill] sm:$0xff] }
 0xf0c   : > { %v11408_v22 = vpop.eup %11407  ;;  %11415 = vrcp.f32 %v6598_v11  ;;  %v6831_v35 = vmul.f32 %v11406_v43, %v15825_v52  ;;  %v17397_v52 = vld [vmem:[#allocation57_spill] sm:$0xff] }
 0xf0d   : > { %v6631_v59 = vpop.xlane.xlu0 %6630  ;;  %11417 = vrcp.f32 %v6589_v10  ;;  %v6833_v13 = vmul.f32 %v11408_v22, %v15812_v38 }
 0xf0e   : > { %11419 = vrcp.f32 %v6595_v61 }
 0xf0f   : > { %v6616_v50 = vpop.xlane.xlu1 %6615  ;;  %v6896_v41 = vpack.c.bf16 %v6834_v28, %v6833_v13 }
 0xf11   : > { %7556 = vrot.lane.b32.xlu1 %v17395_v55, %s12164_s21  ;;  %v16142_v48 = vpop.xlane.xlu0 %6657 }
 0xf12   : > { %v11410_v33 = vpop.eup %11409 }
 0xf13   : > { %v6592_v6 = vpop.xlane.xlu1 %6591  ;;  %v6832_v5 = vmul.f32 %v11410_v33, %v15878_v27  ;;  %v11412_v55 = vpop.eup %11411 }
 0xf14   : > { %11421 = vrcp.f32 %v6592_v6  ;;  %v11414_v10 = vpop.eup %11413 }
 0xf15   : > { %v6634_v47 = vpop.xlane.xlu0 %6633  ;;  %v6895_v11 = vpack.c.bf16 %v6832_v5, %v6831_v35  ;;  %11423 = vrcp.f32 %v6610_v21  ;;  %v17398_v21 = vld [vmem:[#allocation61_spill] sm:$0xff]  ;;  %v6840_v33 = vmul.f32 %v11414_v10, %v15866_v36 }
 0xf16   : > { %11425 = vrcp.f32 %v6616_v50  ;;  %v11416_v27 = vpop.eup %11415 }
 0xf17   : > { %v6655_v45 = vpop.xlane.xlu1 %6654  ;;  %10138 = vmatprep.mubr.msk.bf16.mxu0 %vm951_vm0, %v6895_v11  ;;  %11427 = vrcp.f32 %v16103_v16  ;;  %v11418_v43 = vpop.eup %11417  ;;  %v6838_v61 = vmul.f32 %v11416_v27, %v15888_v14 }
 0xf18   : > { %10139 = vmatmul.mubr.msk.bf16.vlgmr.msra.gmra.mrb[144].mxu0 %vm951_vm0, %v6896_v41  ;;  %11429 = vrcp.f32 %v6613_v40  ;;  %v11420_v13 = vpop.eup %11419  ;;  %v6835_v50 = vmul.f32 %v11418_v43, %v15872_v19  ;;  %v17399_v40 = vld [vmem:[#allocation46_spill] sm:$0xff]  ;;  %v17400_v19 = vld [vmem:[#allocation59_spill] sm:$0xff] }
 0xf19   : > { %10147 = vmatpush3.bf16.msra.mxu0 %v17396_v62  ;;  %v6652_v8 = vpop.xlane.xlu0 %6651  ;;  %11431 = vrcp.f32 %v6634_v47  ;;  %v6837_v28 = vmul.f32 %v11420_v13, %v15848_v63 }
 0xf1a   : > { %10148 = vmatprep.subr.bf16.mxu0 %v17397_v52 }
 0xf1b   : > { %v6649_v38 = vpop.xlane.xlu1 %6648 }
 0xf1d   : > { %10149 = vmatpush3.bf16.msra.mxu0 %v17397_v52  ;;  %v6628_v41 = vpop.xlane.xlu0 %6627 }
 0xf1e   : > { %v11422_v35 = vpop.eup %11421  ;;  %10150 = vmatprep.subr.bf16.mxu0 %v17398_v21  ;;  %11433 = vrcp.f32 %v6628_v41 }
 0xf1f   : > { %11435 = vrcp.f32 %v6631_v59  ;;  %v6625_v22 = vpop.xlane.xlu1 %6624  ;;  %v6836_v16 = vmul.f32 %v11422_v35, %v15908_v34  ;;  %v6839_v59 = vmul.f32 %v11412_v55, %v15831_v12  ;;  %v6898_v34 = vpack.c.bf16 %v6838_v61, %v6837_v28  ;;  %v11424_v36 = vpop.eup %11423  ;;  %v17401_v55 = vld [vmem:[#allocation62_spill] sm:$0xff] }
 0xf20   : > { %11437 = vrcp.f32 %v6625_v22  ;;  %7467 = vrot.lane.b32.xlu0 %v17399_v40, %s12164_s21  ;;  %v11426_v63 = vpop.eup %11425  ;;  %v6842_v11 = vmul.f32 %v11424_v36, %v15843_v25  ;;  %s17464_s21 = sld [smem:[#allocation128_spill]] }
 0xf21   : > { %11439 = vrcp.f32 %v6622_v44  ;;  %10151 = vmatpush3.bf16.msra.mxu0 %v17398_v21  ;;  %v16163_v6 = vpop.xlane.xlu0 %6669  ;;  %v6897_v14 = vpack.c.bf16 %v6836_v16, %v6835_v50  ;;  %v6899_v47 = vpack.c.bf16 %v6840_v33, %v6839_v59  ;;  %v11428_v44 = vpop.eup %11427  ;;  %v6844_v52 = vmul.f32 %v11426_v63, %v15898_v18  ;;  %v17402_v33 = vld [vmem:[#allocation63_spill] sm:$0xff]  ;;  %v17404_v59 = vld [vmem:[#allocation60_spill] sm:$0xff] }
 0xf22   : > { %11441 = vrcp.f32 %v16114_v54  ;;  %10152 = vmatprep.subr.bf16.mxu0 %v17400_v19  ;;  %v11430_v54 = vpop.eup %11429 }
 0xf23   : > { %11443 = vrcp.f32 %v6649_v38  ;;  %v6667_v5 = vpop.xlane.xlu1 %6666  ;;  %10142 = vmatprep.mubr.msk.bf16.mxu0 %vm951_vm0, %v6897_v14  ;;  %v11432_v62 = vpop.eup %11431  ;;  %v6841_v38 = vmul.f32 %v11428_v44, %v15818_v17  ;;  %v6843_v13 = vmul.f32 %v11430_v54, %v15860_v9  ;;  %v17403_v14 = vld [vmem:[#allocation64_spill] sm:$0xff]  ;;  %v17406_v44 = vld [vmem:[#allocation71_spill] sm:$0xff] }
 0xf24   : > { %10143 = vmatmul.mubr.msk.bf16.gmra.mrb[148].mxu0 %vm951_vm0, %v6898_v34  ;;  %11445 = vrcp.f32 %v6652_v8  ;;  %v6850_v25 = vmul.f32 %v11432_v62, %v15913_v42 }
 0xf25   : > { %10153 = vmatpush3.bf16.msra.mxu0 %v17400_v19  ;;  %10154 = vmatprep.mubr.msk.bf16.mxu0 %vm951_vm0, %v6899_v47  ;;  %v6646_v12 = vpop.xlane.xlu0 %6645  ;;  %11447 = vrcp.f32 %v6655_v45  ;;  %v6900_v35 = vpack.c.bf16 %v6842_v11, %v6841_v38  ;;  %v6901_v22 = vpack.c.bf16 %v6844_v52, %v6843_v13  ;;  %v17409_v52 = vld [vmem:[#allocation88_spill] sm:$0xff] }
 0xf26   : > { %10178 = vmatprep.subr.bf16.mxu0 %v17401_v55  ;;  %11449 = vrcp.f32 %v16142_v48 }
 0xf27   : > { %v6643_v10 = vpop.xlane.xlu1 %6642 }
 0xf28   : > { %v11434_v27 = vpop.eup %11433  ;;  %11451 = vrcp.f32 %v6643_v10 }
 0xf29   : > { %v11436_v43 = vpop.eup %11435  ;;  %v6664_v8 = vpop.xlane.xlu0 %6663  ;;  %v6848_v50 = vmul.f32 %v11434_v27, %v15933_v30 }
 0xf2a   : > { %v11438_v41 = vpop.eup %11437  ;;  %v6849_v45 = vmul.f32 %v11436_v43, %v15893_v31 }
 0xf2b   : > { %v11440_v21 = vpop.eup %11439  ;;  %v6661_v61 = vpop.xlane.xlu1 %6660  ;;  %v6847_v18 = vmul.f32 %v11438_v41, %v15938_v39 }
 0xf2c   : > { %v11442_v17 = vpop.eup %11441  ;;  %11453 = vrcp.f32 %v6661_v61  ;;  %10155 = vmatmul.mubr.msk.bf16.vlgmr.msra.gmra.mrb[152].mxu0 %vm951_vm0, %v6900_v35  ;;  %v6904_v16 = vpack.c.bf16 %v6850_v25, %v6849_v45  ;;  %v6846_v30 = vmul.f32 %v11440_v21, %v15883_v24  ;;  %v17405_v24 = vld [vmem:[#allocation74_spill] sm:$0xff]  ;;  %v17412_v21 = vld [vmem:[#allocation80_spill] sm:$0xff] }
 0xf2d   : > { %v11444_v9 = vpop.eup %11443  ;;  %11455 = vrcp.f32 %v6664_v8  ;;  %10179 = vmatpush3.bf16.msra.mxu0 %v17401_v55  ;;  %10158 = vmatprep.mubr.msk.bf16.mxu0 %vm951_vm0, %v6901_v22  ;;  %v6640_v42 = vpop.xlane.xlu0 %6639  ;;  %v6903_v48 = vpack.c.bf16 %v6848_v50, %v6847_v18  ;;  %v6845_v40 = vmul.f32 %v11442_v17, %v15837_v29  ;;  %v17411_v25 = vld [vmem:[#allocation66_spill] sm:$0xff]  ;;  %v17414_v61 = vld [vmem:[#allocation84_spill] sm:$0xff]  ;;  %v17415_v18 = vld [vmem:[#allocation79_spill] sm:$0xff] }
 0xf2e   : > { %10180 = vmatprep.subr.bf16.mxu0 %v17402_v33  ;;  %11457 = vrcp.f32 %v6640_v42  ;;  %v11446_v39 = vpop.eup %11445  ;;  %v6855_v28 = vmul.f32 %v11444_v9, %v15928_v20  ;;  %v17416_v50 = vld [vmem:[#allocation93_spill] sm:$0xff] }
 0xf2f   : > { %11459 = vrcp.f32 %v6646_v12  ;;  %v6637_v31 = vpop.xlane.xlu1 %6636  ;;  %10170 = vmatprep.mubr.msk.bf16.mxu1 %vm951_vm0, %v6903_v48  ;;  %v6902_v19 = vpack.c.bf16 %v6846_v30, %v6845_v40  ;;  %v6856_v34 = vmul.f32 %v11446_v39, %v15923_v60  ;;  %v11448_v36 = vpop.eup %11447  ;;  %v17407_v12 = vld [vmem:[#allocation77_spill] sm:$0xff] }
 0xf30   : > { %11461 = vrcp.f32 %v6637_v31  ;;  %10171 = vmatmul.mubr.msk.bf16.vlgmr.msra.gmra.mrb[128].mxu1 %vm951_vm0, %v6904_v16  ;;  %v11450_v47 = vpop.eup %11449  ;;  %v6857_v63 = vmul.f32 %v11448_v36, %v15918_v7  ;;  %v17408_v7 = vld [vmem:[#allocation89_spill] sm:$0xff] }
 0xf31   : > { %11463 = vrcp.f32 %v6667_v5  ;;  %10181 = vmatpush3.bf16.msra.mxu0 %v17402_v33  ;;  %10195 = vmatpush3.bf16.msra.mxu1 %v17403_v14  ;;  %v6907_v29 = vpack.c.bf16 %v6856_v34, %v6855_v28  ;;  %v6858_v54 = vmul.f32 %v11450_v47, %v15903_v51 }
 0xf32   : > { %10182 = vmatprep.subr.bf16.mxu0 %v17404_v59  ;;  %10196 = vmatprep.subr.bf16.mxu1 %v17405_v24  ;;  %11465 = vrcp.f32 %v16163_v6  ;;  %v11452_v20 = vpop.eup %11451 }
 0xf33   : > { %v6908_v10 = vpack.c.bf16 %v6858_v54, %v6857_v63  ;;  %v6853_v38 = vmul.f32 %v11452_v20, %v15954_v15  ;;  %v17417_v20 = vld [vmem:[#allocation48_spill] sm:$0xff] }
 0xf34   : > { %10159 = vmatmul.mubr.msk.bf16.gmra.mrb[156].mxu0 %vm951_vm0, %v6902_v19 }
 0xf35   : > { %10183 = vmatpush3.bf16.msra.mxu0 %v17404_v59  ;;  %10197 = vmatpush3.bf16.msra.mxu1 %v17405_v24 }
 0xf36   : > { %v11454_v5 = vpop.eup %11453  ;;  %10184 = vmatprep.subr.bf16.mxu0 %v17406_v44  ;;  %10186 = vmatprep.mubr.msk.bf16.mxu0 %vm951_vm0, %v6907_v29 }
 0xf37   : > { %v11456_v60 = vpop.eup %11455  ;;  %10198 = vmatprep.subr.bf16.mxu1 %v17407_v12  ;;  %v6859_v11 = vmul.f32 %v11454_v5, %v15962_v58 }
 0xf38   : > { %v11458_v6 = vpop.eup %11457  ;;  %v6860_v27 = vmul.f32 %v11456_v60, %v15958_v23  ;;  %v17410_v23 = vld [vmem:[#allocation83_spill] sm:$0xff] }
 0xf39   : > { %v11460_v55 = vpop.eup %11459  ;;  %10185 = vmatpush3.bf16.msra.mxu0 %v17406_v44  ;;  %10199 = vmatpush3.bf16.msra.mxu1 %v17407_v12  ;;  %v6852_v58 = vmul.f32 %v11458_v6, %v15966_v46 }
 0xf3a   : > { %v11462_v62 = vpop.eup %11461  ;;  %10200 = vmatprep.subr.bf16.mxu1 %v17408_v7  ;;  %10210 = vmatprep.subr.bf16.mxu0 %v17409_v52  ;;  %v6909_v8 = vpack.c.bf16 %v6860_v27, %v6859_v11  ;;  %v6854_v13 = vmul.f32 %v11460_v55, %v15950_v56  ;;  %v17413_v56 = vld [vmem:[#allocation67_spill] sm:$0xff]  ;;  %v17418_v55 = vld [vmem:[#allocation81_spill] sm:$0xff]  ;;  %v17420_v27 = vld [vmem:[#allocation82_spill] sm:$0xff] }
 0xf3b   : > { %v11464_v43 = vpop.eup %11463  ;;  %v6851_v51 = vmul.f32 %v11462_v62, %v15970_v53 }
 0xf3c   : > { %10187 = vmatmul.mubr.msk.bf16.vlgmr.msra.gmra.mrb[160].mxu0 %vm951_vm0, %v6908_v10  ;;  %v11466_v41 = vpop.eup %11465  ;;  %v6906_v15 = vpack.c.bf16 %v6854_v13, %v6853_v38  ;;  %v6861_v53 = vmul.f32 %v11464_v43, %v17411_v25  ;;  %v17423_v25 = vld [vmem:[#allocation78_spill] sm:$0xff] }
 0xf3d   : > { %10201 = vmatpush3.bf16.msra.mxu1 %v17408_v7  ;;  %10211 = vmatpush3.bf16.msra.mxu0 %v17409_v52  ;;  %v6905_v35 = vpack.c.bf16 %v6852_v58, %v6851_v51  ;;  %v6862_v46 = vmul.f32 %v11466_v41, %v17413_v56 }
 0xf3e   : > { %10190 = vmatprep.mubr.msk.bf16.mxu0 %vm951_vm0, %v6909_v8  ;;  %10212 = vmatprep.subr.bf16.mxu0 %v17410_v23  ;;  %v17421_v8 = vld [vmem:[#allocation92_spill] sm:$0xff] }
 0xf3f   : > { %10226 = vmatprep.subr.bf16.mxu1 %v17412_v21  ;;  %10174 = vmatprep.mubr.msk.bf16.mxu1 %vm951_vm0, %v6905_v35  ;;  %v6910_v22 = vpack.c.bf16 %v6862_v46, %v6861_v53  ;;  %v17422_v35 = vld [vmem:[#allocation96_spill] sm:$0xff] }
 0xf40   : > { %10175 = vmatmul.mubr.msk.bf16.gmra.mrb[132].mxu1 %vm951_vm0, %v6906_v15  ;;  %v17424_v46 = vld [vmem:[#allocation76_spill] sm:$0xff] }
 0xf41   : > { %10213 = vmatpush3.bf16.msra.mxu0 %v17410_v23 }
 0xf42   : > { %10214 = vmatprep.subr.bf16.mxu0 %v17414_v61 }
 0xf44   : > { %10191 = vmatmul.mubr.msk.bf16.gmra.mrb[164].mxu0 %vm951_vm0, %v6910_v22 }
 0xf45   : > { %10215 = vmatpush3.bf16.msra.mxu0 %v17414_v61 }
 0xf46   : > { %10216 = vmatprep.subr.bf16.mxu0 %v17415_v18 }
 0xf49   : > { %10217 = vmatpush3.bf16.msra.mxu0 %v17415_v18 }
 0xf4a   : > { %10242 = vmatprep.subr.bf16.mxu0 %v17416_v50  ;;  %v6703_v17 = vpop.xlane.xlu0 %6702 }
 0xf4e   : > { %v6679_v45 = vpop.xlane.xlu0 %6678 }
 0xf52   : > { %v6697_v9 = vpop.xlane.xlu0 %6696 }
 0xf56   : > { %v6673_v42 = vpop.xlane.xlu1 %6672 }
 0xf57   : > { %11467 = vrcp.f32 %v6673_v42 }
 0xf58   : > { %v6676_v48 = vpop.xlane.xlu0 %6675 }
 0xf59   : > { %11469 = vrcp.f32 %v6676_v48 }
 0xf5a   : > { %v6706_v16 = vpop.xlane.xlu1 %6705  ;;  %11471 = vrcp.f32 %v6679_v45 }
 0xf5e   : > { %v6682_v33 = vpop.xlane.xlu1 %6681 }
 0xf5f   : > { %11473 = vrcp.f32 %v6682_v33  ;;  %v6715_v30 = vpop.xlane.xlu0 %6714  ;;  %v17427_v33 = vld [vmem:[#allocation75_spill] sm:$0xff] }
 0xf60   : > { %11475 = vrcp.f32 %v6706_v16 }
 0xf61   : > { %v11468_v39 = vpop.eup %11467  ;;  %11477 = vrcp.f32 %v6697_v9 }
 0xf62   : > { %11479 = vrcp.f32 %v6703_v17  ;;  %v6700_v31 = vpop.xlane.xlu1 %6699  ;;  %v6863_v14 = vmul.f32 %v11468_v39, %v15999_v1  ;;  %v17425_v17 = vld [vmem:[#allocation98_spill] sm:$0xff] }
 0xf63   : > { %v11470_v40 = vpop.eup %11469  ;;  %11481 = vrcp.f32 %v6700_v31  ;;  %v6691_v28 = vpop.xlane.xlu0 %6690 }
 0xf64   : > { %v6864_v59 = vmul.f32 %v11470_v40, %v16005_v0  ;;  %v11472_v34 = vpop.eup %11471 }
 0xf65   : > { %v6865_v5 = vmul.f32 %v11472_v34, %v17417_v20 }
 0xf66   : > { %v6718_v24 = vpop.xlane.xlu1 %6717  ;;  %v6911_v19 = vpack.c.bf16 %v6864_v59, %v6863_v14 }
 0xf67   : > { %v6709_v36 = vpop.xlane.xlu0 %6708  ;;  %11483 = vrcp.f32 %v6718_v24 }
 0xf68   : > { %10202 = vmatprep.mubr.msk.bf16.mxu1 %vm951_vm0, %v6911_v19  ;;  %11485 = vrcp.f32 %v6709_v36  ;;  %v17428_v36 = vld [vmem:[#allocation91_spill] sm:$0xff] }
 0xf69   : > { %v11474_v47 = vpop.eup %11473  ;;  %11487 = vrcp.f32 %v6715_v30 }
 0xf6a   : > { %v11476_v29 = vpop.eup %11475  ;;  %v6866_v63 = vmul.f32 %v11474_v47, %v16014_v37  ;;  %v6712_v44 = vpop.xlane.xlu1 %6711  ;;  %v17419_v37 = vld [vmem:[#allocation65_spill] sm:$0xff] }
 0xf6b   : > { %v11478_v60 = vpop.eup %11477  ;;  %11489 = vrcp.f32 %v6712_v44  ;;  %v6685_v1 = vpop.xlane.xlu0 %6684  ;;  %v6874_v54 = vmul.f32 %v11476_v29, %v16001_v49 }
 0xf6c   : > { %v11480_v0 = vpop.eup %11479  ;;  %v6912_v12 = vpack.c.bf16 %v6866_v63, %v6865_v5  ;;  %11491 = vrcp.f32 %v6685_v1  ;;  %v6871_v62 = vmul.f32 %v11478_v60, %v17418_v55  ;;  %v17429_v60 = vld [vmem:[#allocation42_spill] sm:$0xff] }
 0xf6d   : > { %v11482_v6 = vpop.eup %11481  ;;  %11493 = vrcp.f32 %v6691_v28  ;;  %v6873_v7 = vmul.f32 %v11480_v0, %v17419_v37  ;;  %v17430_v0 = vld [vmem:[#allocation95_spill] sm:$0xff]  ;;  %v17432_v37 = vld [vmem:[#allocation86_spill] sm:$0xff] }
 0xf6e   : > { %v6688_v11 = vpop.xlane.xlu1 %6687  ;;  %10203 = vmatmul.mubr.msk.bf16.vlgmr.msra.gmra.mrb[136].mxu1 %vm951_vm0, %v6912_v12  ;;  %v6872_v10 = vmul.f32 %v11482_v6, %v16022_v26 }
 0xf6f   : > { %11495 = vrcp.f32 %v6688_v11  ;;  %10227 = vmatpush3.bf16.msra.mxu1 %v17412_v21  ;;  %v6694_v52 = vpop.xlane.xlu0 %6693  ;;  %v6916_v49 = vpack.c.bf16 %v6874_v54, %v6873_v7 }
 0xf70   : > { %10228 = vmatprep.subr.bf16.mxu1 %v17420_v27  ;;  %11497 = vrcp.f32 %v6694_v52  ;;  %v6915_v38 = vpack.c.bf16 %v6872_v10, %v6871_v62  ;;  %v17431_v62 = vld [vmem:[#allocation87_spill] sm:$0xff] }
 0xf71   : > { %v11484_v43 = vpop.eup %11483 }
 0xf72   : > { %10218 = vmatprep.mubr.msk.bf16.mxu0 %vm951_vm0, %v6915_v38  ;;  %v11486_v51 = vpop.eup %11485  ;;  %v6754_v41 = vpop.xlane.xlu1 %6753  ;;  %v6878_v23 = vmul.f32 %v11484_v43, %v16032_v32 }
 0xf73   : > { %10229 = vmatpush3.bf16.msra.mxu1 %v17420_v27  ;;  %10219 = vmatmul.mubr.msk.bf16.vlgmr.msra.gmra.mrb[168].mxu0 %vm951_vm0, %v6916_v49  ;;  %v6751_v26 = vpop.xlane.xlu0 %6750  ;;  %v11488_v58 = vpop.eup %11487  ;;  %v6875_v15 = vmul.f32 %v11486_v51, %v16037_v57  ;;  %v17426_v57 = vld [vmem:[#allocation85_spill] sm:$0xff] }
 0xf74   : > { %10230 = vmatprep.subr.bf16.mxu1 %v17421_v8  ;;  %10243 = vmatpush3.bf16.msra.mxu0 %v17416_v50  ;;  %v6877_v61 = vmul.f32 %v11488_v58, %v17424_v46 }
 0xf75   : > { %v11490_v13 = vpop.eup %11489  ;;  %10244 = vmatprep.subr.bf16.mxu0 %v17422_v35 }
 0xf76   : > { %v6876_v53 = vmul.f32 %v11490_v13, %v17423_v25  ;;  %v11492_v21 = vpop.eup %11491  ;;  %v6918_v9 = vpack.c.bf16 %v6878_v23, %v6877_v61  ;;  %v17434_v23 = vld [vmem:[#allocation94_spill] sm:$0xff] }
 0xf77   : > { %10231 = vmatpush3.bf16.msra.mxu1 %v17421_v8  ;;  %v6727_v56 = vpop.xlane.xlu0 %6726  ;;  %v11494_v22 = vpop.eup %11493  ;;  %v6867_v42 = vmul.f32 %v11492_v21, %v17426_v57 }
 0xf78   : > { %10245 = vmatpush3.bf16.msra.mxu0 %v17422_v35  ;;  %v6917_v18 = vpack.c.bf16 %v6876_v53, %v6875_v15  ;;  %v6869_v30 = vmul.f32 %v11494_v22, %v17427_v33  ;;  %v17435_v53 = vld [vmem:[#allocation100_spill] sm:$0xff]  ;;  %v17437_v22 = vld [vmem:[#allocation41_spill] sm:$0xff] }
 0xf79   : > { %v11496_v50 = vpop.eup %11495  ;;  %10246 = vmatprep.subr.bf16.mxu0 %v17425_v17  ;;  %v6748_v45 = vpop.xlane.xlu1 %6747 }
 0xf7a   : > { %v11498_v32 = vpop.eup %11497  ;;  %11499 = vrcp.f32 %v6748_v45  ;;  %10222 = vmatprep.mubr.msk.bf16.mxu0 %vm951_vm0, %v6917_v18  ;;  %v6868_v48 = vmul.f32 %v11496_v50, %v16055_v4  ;;  %v17438_v50 = vld [vmem:[#allocation97_spill] sm:$0xff] }
 0xf7b   : > { %10223 = vmatmul.mubr.msk.bf16.gmra.mrb[172].mxu0 %vm951_vm0, %v6918_v9  ;;  %v6745_v16 = vpop.xlane.xlu0 %6744  ;;  %v6870_v39 = vmul.f32 %v11498_v32, %v16051_v3 }
 0xf7c   : > { %10247 = vmatpush3.bf16.msra.mxu0 %v17425_v17  ;;  %11501 = vrcp.f32 %v6745_v16  ;;  %v6913_v31 = vpack.c.bf16 %v6868_v48, %v6867_v42  ;;  %v17439_v42 = vld [vmem:[#allocation102_spill] sm:$0xff]  ;;  %v17440_v16 = vld [vmem:[#allocation103_spill] sm:$0xff] }
 0xf7d   : > { %v6724_v40 = vpop.xlane.xlu1 %6723  ;;  %v6914_v28 = vpack.c.bf16 %v6870_v39, %v6869_v30 }
 0xf7e   : > { %11503 = vrcp.f32 %v6724_v40  ;;  %10206 = vmatprep.mubr.msk.bf16.mxu1 %vm951_vm0, %v6913_v31  ;;  %v17441_v40 = vld [vmem:[#allocation99_spill] sm:$0xff] }
 0xf7f   : > { %10207 = vmatmul.mubr.msk.bf16.gmra.mrb[140].mxu1 %vm951_vm0, %v6914_v28  ;;  %v6721_v14 = vpop.xlane.xlu0 %6720 }
 0xf80   : > { %11505 = vrcp.f32 %v6721_v14  ;;  %v17442_v14 = vld [vmem:[#allocation104_spill] sm:$0xff] }
 0xf81   : > { %11507 = vrcp.f32 %v6754_v41  ;;  %v6766_v24 = vpop.xlane.xlu1 %6765  ;;  %v17433_v41 = vld [vmem:[#allocation90_spill] sm:$0xff] }
 0xf82   : > { %11509 = vrcp.f32 %v6751_v26 }
 0xf83   : > { %v6730_v4 = vpop.xlane.xlu0 %6729  ;;  %11511 = vrcp.f32 %v6727_v56  ;;  %v17436_v56 = vld [vmem:[#allocation101_spill] sm:$0xff] }
 0xf84   : > { %v11500_v59 = vpop.eup %11499  ;;  %11513 = vrcp.f32 %v6730_v4 }
 0xf85   : > { %v6888_v47 = vmul.f32 %v11500_v59, %v17428_v36 }
 0xf86   : > { %v11502_v19 = vpop.eup %11501 }
 0xf87   : > { %v6763_v3 = vpop.xlane.xlu0 %6762  ;;  %v6887_v34 = vmul.f32 %v11502_v19, %v16077_v2 }
 0xf88   : > { %v11504_v29 = vpop.eup %11503  ;;  %11515 = vrcp.f32 %v6763_v3 }
 0xf89   : > { %v6760_v20 = vpop.xlane.xlu1 %6759  ;;  %v6923_v5 = vpack.c.bf16 %v6888_v47, %v6887_v34  ;;  %v6880_v12 = vmul.f32 %v11504_v29, %v17430_v0 }
 0xf8a   : > { %v11506_v63 = vpop.eup %11505  ;;  %11517 = vrcp.f32 %v6760_v20 }
 0xf8b   : > { %10250 = vmatprep.mubr.msk.bf16.mxu0 %vm951_vm0, %v6923_v5  ;;  %v6739_v44 = vpop.xlane.xlu0 %6738  ;;  %v6879_v1 = vmul.f32 %v11506_v63, %v17429_v60  ;;  %v11508_v6 = vpop.eup %11507  ;;  %11519 = vrcp.f32 %v6766_v24 }
 0xf8c   : > { %v11510_v54 = vpop.eup %11509  ;;  %v6890_v10 = vmul.f32 %v11508_v6, %v17431_v62 }
 0xf8d   : > { %v6736_v11 = vpop.xlane.xlu1 %6735  ;;  %v6919_v2 = vpack.c.bf16 %v6880_v12, %v6879_v1  ;;  %v6889_v7 = vmul.f32 %v11510_v54, %v17432_v37  ;;  %v11512_v49 = vpop.eup %11511  ;;  %v10876_v1 = vld [vmem:[#allocation22 + $0x8] sm:$0xff]   ;;  %v10877_v12 = vld [vmem:[#allocation22 + $0x10] sm:$0xff]  }
 0xf8e   : > { %v11514_v43 = vpop.eup %11513  ;;  %v6881_v18 = vmul.f32 %v11512_v49, %v17437_v22 }
 0xf8f   : > { %10234 = vmatprep.mubr.msk.bf16.mxu1 %vm951_vm0, %v6919_v2  ;;  %v6757_v55 = vpop.xlane.xlu0 %6756  ;;  %v6924_v38 = vpack.c.bf16 %v6890_v10, %v6889_v7  ;;  %v6882_v35 = vmul.f32 %v11514_v43, %v17433_v41 }
 0xf90   : > { %11521 = vrcp.f32 %v6757_v55 }
 0xf91   : > { %v7557_v52 = vpop.permute.xlu1 %7556  ;;  %11523 = vrcp.f32 %v6736_v11  ;;  %v6920_v32 = vpack.c.bf16 %v6882_v35, %v6881_v18 }
 0xf92   : > { %10248 = vmatprep.subr.bf16.mxu0 %v7557_v52  ;;  %v11516_v51 = vpop.eup %11515 }
 0xf93   : > { %10249 = vmatpush3.bf16.msra.mxu0 %v7557_v52  ;;  %v6733_v27 = vpop.xlane.xlu0 %6732  ;;  %v6893_v15 = vmul.f32 %v11516_v51, %v17434_v23 }
 0xf94   : > { %11525 = vrcp.f32 %v6733_v27  ;;  %v11518_v58 = vpop.eup %11517  ;;  %v10878_v27 = vld [vmem:[#allocation22 + $0x18] sm:$0xff]  }
 0xf95   : > { %11527 = vrcp.f32 %v6739_v44  ;;  %v11520_v8 = vpop.eup %11519  ;;  %v6892_v46 = vmul.f32 %v11518_v58, %v17436_v56  ;;  %v10875_v44 = vld [vmem:[#allocation22] sm:$0xff]  }
 0xf96   : > { %10251 = vmatmul.mubr.msk.bf16.vlgmr.msra.gmra.mrb[176].mxu0 %vm951_vm0, %v6924_v38  ;;  %v6894_v17 = vmul.f32 %v11520_v8, %v17438_v50 }
 0xf97   : > { %v6742_v26 = vpop.xlane.xlu0 %6741 }
 0xf98   : > { %11529 = vrcp.f32 %v6742_v26  ;;  %v6926_v57 = vpack.c.bf16 %v6894_v17, %v6893_v15 }
 0xf9a   : > { %v11522_v13 = vpop.eup %11521 }
 0xf9b   : > { %v7468_v25 = vpop.permute.xlu0 %7467  ;;  %v6891_v21 = vmul.f32 %v11522_v13, %v17435_v53  ;;  %v11524_v61 = vpop.eup %11523 }
 0xf9c   : > { %10232 = vmatprep.subr.bf16.mxu1 %v7468_v25  ;;  %v6884_v33 = vmul.f32 %v11524_v61, %v17440_v16 }
 0xf9d   : > { %10233 = vmatpush3.bf16.msra.mxu1 %v7468_v25  ;;  %v6925_v45 = vpack.c.bf16 %v6892_v46, %v6891_v21 }
 0xf9e   : > { %v11526_v9 = vpop.eup %11525  ;;  %10258 = vmatprep.subr.bf16.mxu1 %v10875_v44 }
 0xf9f   : > { %10254 = vmatprep.mubr.msk.bf16.mxu0 %vm951_vm0, %v6925_v45  ;;  %v6883_v48 = vmul.f32 %v11526_v9, %v17439_v42  ;;  %v11528_v30 = vpop.eup %11527 }
 0xfa0   : > { %10235 = vmatmul.mubr.msk.bf16.vlgmr.msra.gmra.mrb[144].mxu1 %vm951_vm0, %v6920_v32  ;;  %10255 = vmatmul.mubr.msk.bf16.gmra.mrb[180].mxu0 %vm951_vm0, %v6926_v57  ;;  %v6885_v28 = vmul.f32 %v11528_v30, %v17441_v40 }
 0xfa1   : > { %v6921_v39 = vpack.c.bf16 %v6884_v33, %v6883_v48  ;;  %10259 = vmatpush3.bf16.msra.mxu1 %v10875_v44 }
 0xfa2   : > { %v11530_v31 = vpop.eup %11529  ;;  %10260 = vmatprep.subr.bf16.mxu1 %v10876_v1 }
 0xfa3   : > { %10238 = vmatprep.mubr.msk.bf16.mxu1 %vm951_vm0, %v6921_v39  ;;  %v6886_v4 = vmul.f32 %v11530_v31, %v17442_v14 }
 0xfa5   : > { %v6922_v59 = vpack.c.bf16 %v6886_v4, %v6885_v28  ;;  %10261 = vmatpush3.bf16.msra.mxu1 %v10876_v1 }
 0xfa6   : > { %10262 = vmatprep.subr.bf16.mxu1 %v10877_v12 }
 0xfa8   : > { %10239 = vmatmul.mubr.msk.bf16.gmra.mrb[148].mxu1 %vm951_vm0, %v6922_v59 }
 0xfa9   : > { %10263 = vmatpush3.bf16.msra.mxu1 %v10877_v12 }
 0xfaa   : > { %10264 = vmatprep.subr.bf16.mxu1 %v10878_v27 }
 0xfad   : > { %10265 = vmatpush3.bf16.msra.mxu1 %v10878_v27 }
 0xfeb   : > { %v10140_v24 = vpop.f32.mrb[144].mxu0 }
 0xfec   : > { %v16290_v19 = vpop.f32.mrb[145].mxu0 }
 0xfed   : > { %v10141_v3 = vpop.f32.mrb[146].mxu0 }
 0xfee   : > { %v10730_v34 = vpack.i.bf16 %v10141_v3, %v10140_v24  ;;  %v16292_v36 = vpop.f32.mrb[147].mxu0 }
 0xff0   : > { %10731 = vrot.lane.b32.xlu0 %v10730_v34, %s12165_s28 }
 0xff7   : > { %v10144_v47 = vpop.f32.mrb[148].mxu0 }
 0xff8   : > { %v7001_v29 = vpop.f32.mrb[149].mxu0 }
 0xff9   : > { %v10145_v20 = vpop.f32.mrb[150].mxu0 }
 0xffa   : > { %v10735_v5 = vpack.i.bf16 %v10145_v20, %v10144_v47  ;;  %v7004_v63 = vpop.f32.mrb[151].mxu0 }
 0xffb   : > { %v10740_v60 = vpack.i.bf16 %v7004_v63, %v7001_v29 }
 0xffc   : > { %10736 = vrot.lane.b32.xlu0 %v10735_v5, %s17443_s20 }
 0xfff   : > { %v10156_v0 = vpop.f32.mrb[152].mxu0 }
0x1000   : > { %10741 = vrot.lane.b32.xlu0 %v10740_v60, %s17444_s29  ;;  %v16297_v6 = vpop.f32.mrb[153].mxu0 }
0x1001   : > { %v10157_v54 = vpop.f32.mrb[154].mxu0 }
0x1002   : > { %v10745_v11 = vpack.i.bf16 %v10157_v54, %v10156_v0  ;;  %v16299_v2 = vpop.f32.mrb[155].mxu0 }
0x1003   : > { %v10172_v55 = vpop.f32.mrb[128].mxu1 }
0x1004   : > { %10746 = vrot.lane.b32.xlu1 %v10745_v11, %s12165_s28  ;;  %v16302_v62 = vpop.f32.mrb[129].mxu1 }
0x1005   : > { %v10173_v10 = vpop.f32.mrb[130].mxu1 }
0x1006   : > { %v10760_v37 = vpack.i.bf16 %v10173_v10, %v10172_v55  ;;  %v16304_v7 = vpop.f32.mrb[131].mxu1 }
0x1007   : > { %v10160_v52 = vpop.f32.mrb[156].mxu0 }
0x1008   : > { %v7090_v38 = vpop.f32.mrb[157].mxu0  ;;  %10761 = vrot.lane.b32.xlu0 %v10760_v37, %s12165_s28 }
0x1009   : > { %v10161_v49 = vpop.f32.mrb[158].mxu0 }
0x100a   : > { %v10750_v43 = vpack.i.bf16 %v10161_v49, %v10160_v52  ;;  %v7093_v51 = vpop.f32.mrb[159].mxu0 }
0x100b   : > { %v10755_v26 = vpack.i.bf16 %v7093_v51, %v7090_v38 }
0x100c   : > { %10751 = vrot.lane.b32.xlu1 %v10750_v43, %s17443_s20 }
0x100f   : > { %v10188_v58 = vpop.f32.mrb[160].mxu0 }
0x1010   : > { %10756 = vrot.lane.b32.xlu1 %v10755_v26, %s17444_s29  ;;  %v16309_v8 = vpop.f32.mrb[161].mxu0 }
0x1011   : > { %v10189_v13 = vpop.f32.mrb[162].mxu0 }
0x1012   : > { %v10765_v41 = vpack.i.bf16 %v10189_v13, %v10188_v58  ;;  %v16311_v35 = vpop.f32.mrb[163].mxu0 }
0x1013   : > { %v10176_v23 = vpop.f32.mrb[132].mxu1 }
0x1014   : > { %10766 = vrot.lane.b32.xlu1 %v10765_v41, %s12165_s28  ;;  %v7179_v15 = vpop.f32.mrb[133].mxu1 }
0x1015   : > { %v10177_v25 = vpop.f32.mrb[134].mxu1 }
0x1016   : > { %v10770_v53 = vpack.i.bf16 %v10177_v25, %v10176_v23  ;;  %v7182_v21 = vpop.f32.mrb[135].mxu1 }
0x1017   : > { %v10780_v56 = vpack.i.bf16 %v7182_v21, %v7179_v15  ;;  %v10192_v46 = vpop.f32.mrb[164].mxu0 }
0x1018   : > { %v7268_v61 = vpop.f32.mrb[165].mxu0  ;;  %10771 = vrot.lane.b32.xlu0 %v10770_v53, %s17443_s20 }
0x1019   : > { %v10193_v22 = vpop.f32.mrb[166].mxu0 }
0x101a   : > { %v10775_v18 = vpack.i.bf16 %v10193_v22, %v10192_v46  ;;  %v7271_v50 = vpop.f32.mrb[167].mxu0 }
0x101b   : > { %v10785_v17 = vpack.i.bf16 %v7271_v50, %v7268_v61 }
0x101c   : > { %10776 = vrot.lane.b32.xlu1 %v10775_v18, %s17443_s20  ;;  %10781 = vrot.lane.b32.xlu0 %v10780_v56, %s17444_s29 }
0x1020   : > { %10786 = vrot.lane.b32.xlu1 %v10785_v17, %s17444_s29 }
0x1041   : > { %v10204_v45 = vpop.f32.mrb[136].mxu1 }
0x1042   : > { %v16318_v9 = vpop.f32.mrb[137].mxu1 }
0x1043   : > { %v10205_v32 = vpop.f32.mrb[138].mxu1 }
0x1044   : > { %v10795_v57 = vpack.i.bf16 %v10205_v32, %v10204_v45  ;;  %v16320_v42 = vpop.f32.mrb[139].mxu1 }
0x1046   : > { %v10220_v48 = vpop.f32.mrb[168].mxu0  ;;  %10796 = vrot.lane.b32.xlu0 %v10795_v57, %s12165_s28 }
0x1047   : > { %v16323_v16 = vpop.f32.mrb[169].mxu0 }
0x1048   : > { %v10221_v33 = vpop.f32.mrb[170].mxu0 }
0x1049   : > { %v10790_v30 = vpack.i.bf16 %v10221_v33, %v10220_v48  ;;  %v16325_v39 = vpop.f32.mrb[171].mxu0 }
0x104b   : > { %10791 = vrot.lane.b32.xlu1 %v10790_v30, %s12165_s28 }
0x104e   : > { %v10224_v31 = vpop.f32.mrb[172].mxu0 }
0x104f   : > { %v7446_v40 = vpop.f32.mrb[173].mxu0 }
0x1050   : > { %v10225_v28 = vpop.f32.mrb[174].mxu0 }
0x1051   : > { %v10800_v14 = vpack.i.bf16 %v10225_v28, %v10224_v31  ;;  %v7449_v4 = vpop.f32.mrb[175].mxu0 }
0x1052   : > { %v10805_v59 = vpack.i.bf16 %v7449_v4, %v7446_v40  ;;  %v10208_v24 = vpop.f32.mrb[140].mxu1 }
0x1053   : > { %10801 = vrot.lane.b32.xlu1 %v10800_v14, %s17443_s20  ;;  %v7357_v3 = vpop.f32.mrb[141].mxu1 }
0x1054   : > { %v10209_v34 = vpop.f32.mrb[142].mxu1 }
0x1055   : > { %v10810_v47 = vpack.i.bf16 %v10209_v34, %v10208_v24  ;;  %v7360_v29 = vpop.f32.mrb[143].mxu1 }
0x1056   : > { %v10815_v20 = vpack.i.bf16 %v7360_v29, %v7357_v3 }
0x1057   : > { %10806 = vrot.lane.b32.xlu1 %v10805_v59, %s17444_s29  ;;  %10811 = vrot.lane.b32.xlu0 %v10810_v47, %s17443_s20 }
0x105b   : > { %10816 = vrot.lane.b32.xlu0 %v10815_v20, %s17444_s29 }
0x1062   : > { %v10732_v63 = vpop.permute.xlu0 %10731 }
0x1063   : > { %v10734_v54 = vunpack.i.h.bf16 %v10732_v63  ;;  %v10733_v11 = vunpack.i.l.bf16 %v10732_v63 }
0x1065   : > { %v7832_v38 = vsel %vm1687_vm3, %v16292_v36, %v10734_v54  ;;  %v7831_v49 = vsel %vm1687_vm3, %v16290_v19, %v10733_v11 }
0x1069   : > { %v10252_v5 = vpop.f32.mrb[176].mxu0 }
0x106a   : > { %v16332_v44 = vpop.f32.mrb[177].mxu0 }
0x106b   : > { %v10253_v60 = vpop.f32.mrb[178].mxu0 }
0x106c   : > { %v10820_v1 = vpack.i.bf16 %v10253_v60, %v10252_v5  ;;  %v16334_v0 = vpop.f32.mrb[179].mxu0 }
0x106e   : > { %10821 = vrot.lane.b32.xlu1 %v10820_v1, %s12165_s28  ;;  %v10737_v12 = vpop.permute.xlu0 %10736 }
0x106f   : > { %v10739_v43 = vunpack.i.h.bf16 %v10737_v12  ;;  %v10738_v51 = vunpack.i.l.bf16 %v10737_v12 }
0x1072   : > { %v10742_v55 = vpop.permute.xlu0 %10741 }
0x1073   : > { %v10744_v10 = vunpack.i.h.bf16 %v10742_v55  ;;  %v10743_v37 = vunpack.i.l.bf16 %v10742_v55  ;;  %v10236_v52 = vpop.f32.mrb[144].mxu1  ;;  %v10256_v27 = vpop.f32.mrb[180].mxu0 }
0x1074   : > { %v16341_v26 = vpop.f32.mrb[145].mxu1  ;;  %v7624_v58 = vpop.f32.mrb[181].mxu0 }
0x1075   : > { %v7847_v13 = vsel %vm4144_vm4, %v7831_v49, %v10743_v37  ;;  %v7848_v41 = vsel %vm4144_vm4, %v7832_v38, %v10744_v10  ;;  %v10237_v23 = vpop.f32.mrb[146].mxu1  ;;  %v10257_v15 = vpop.f32.mrb[182].mxu0 }
0x1076   : > { %v10825_v25 = vpack.i.bf16 %v10237_v23, %v10236_v52  ;;  %v10845_v53 = vpack.i.bf16 %v10257_v15, %v10256_v27  ;;  %v16345_v21 = vpop.f32.mrb[147].mxu1  ;;  %v7863_v36 = vsel %vm4161_vm5, %v7847_v13, %v10738_v51  ;;  %v7864_v56 = vsel %vm4161_vm5, %v7848_v41, %v10739_v43  ;;  %v7627_v19 = vpop.f32.mrb[183].mxu0 }
0x1077   : > { %v7879_v46 = vpack.c.bf16 %v7864_v56, %v7863_v36  ;;  %v10830_v61 = vpack.i.bf16 %v7627_v19, %v7624_v58  ;;  %v10747_v22 = vpop.permute.xlu1 %10746 }
0x1078   : > { %10826 = vrot.lane.b32.xlu0 %v10825_v25, %s12165_s28  ;;  %v10749_v33 = vunpack.i.h.bf16 %v10747_v22  ;;  %v10748_v30 = vunpack.i.l.bf16 %v10747_v22 }
0x1079   : > { %10266 = vmatprep.mubr.msk.bf16.mxu1 %vm951_vm0, %v7879_v46  ;;  %10831 = vrot.lane.b32.xlu1 %v10830_v61, %s17444_s29 }
0x107a   : > { %v7833_v14 = vsel %vm1687_vm3, %v16297_v6, %v10748_v30  ;;  %v7834_v4 = vsel %vm1687_vm3, %v16299_v2, %v10749_v33  ;;  %v10762_v47 = vpop.permute.xlu0 %10761 }
0x107b   : > { %v10240_v18 = vpop.f32.mrb[148].mxu1  ;;  %v10764_v60 = vunpack.i.h.bf16 %v10762_v47  ;;  %v10763_v2 = vunpack.i.l.bf16 %v10762_v47 }
0x107c   : > { %v7535_v50 = vpop.f32.mrb[149].mxu1 }
0x107d   : > { %v10241_v17 = vpop.f32.mrb[150].mxu1  ;;  %10846 = vrot.lane.b32.xlu1 %v10845_v53, %s17443_s20  ;;  %v7836_v54 = vsel %vm1687_vm3, %v16304_v7, %v10764_v60  ;;  %v7835_v11 = vsel %vm1687_vm3, %v16302_v62, %v10763_v2 }
0x107e   : > { %v10840_v45 = vpack.i.bf16 %v10241_v17, %v10240_v18  ;;  %v10752_v32 = vpop.permute.xlu1 %10751  ;;  %v7538_v57 = vpop.f32.mrb[151].mxu1 }
0x107f   : > { %v10835_v48 = vpack.i.bf16 %v7538_v57, %v7535_v50  ;;  %v10754_v59 = vunpack.i.h.bf16 %v10752_v32  ;;  %v10753_v24 = vunpack.i.l.bf16 %v10752_v32 }
0x1081   : > { %10836 = vrot.lane.b32.xlu0 %v10835_v48, %s17444_s29 }
0x1082   : > { %v10757_v31 = vpop.permute.xlu1 %10756 }
0x1083   : > { %v10759_v40 = vunpack.i.h.bf16 %v10757_v31  ;;  %v10758_v28 = vunpack.i.l.bf16 %v10757_v31 }
0x1085   : > { %v7850_v3 = vsel %vm4144_vm4, %v7834_v4, %v10759_v40  ;;  %v7849_v34 = vsel %vm4144_vm4, %v7833_v14, %v10758_v28  ;;  %10841 = vrot.lane.b32.xlu0 %v10840_v45, %s17443_s20  ;;  %s16737_s20 = scalar_lea.vmem [#allocation26], %s12746_s6  ;;  %s9341_s6 = sshll.u32 %s17110_s1, 11 }
0x1086   : > { %v7866_v29 = vsel %vm4161_vm5, %v7850_v3, %v10754_v59  ;;  %v7865_v20 = vsel %vm4161_vm5, %v7849_v34, %v10753_v24  ;;  %v10767_v6 = vpop.permute.xlu1 %10766  ;;  %s8832_s29 = sshll.u32 %s16737_s20, 4  ;;  %s16783_s28 = scalar_lea.hbm %s17464_s21, %s9341_s6  ;;  %s16785_s29 = int_to_ptr.vmem [resolvable:$true] %s8832_s29 }
0x1087   : > { %v7880_v5 = vpack.c.bf16 %v7866_v29, %v7865_v20  ;;  %v10769_v37 = vunpack.i.h.bf16 %v10767_v6  ;;  %v10768_v52 = vunpack.i.l.bf16 %v10767_v6  ;;  %s8818_s1 = scalar_lea.sflag [#allocation4], %s12743_s18  ;;  %s12037_s14 = scalar_lea.vmem %s16785_s29, 2048 }
0x1088   : > { %p12038_p8 = scmp.ne.s32.totalorder %s16785_s29, %s12037_s14 }
0x1089   : > { %10267 = vmatmul.mubr.msk.bf16.vlgmr.msra.gmra.mrb[152].mxu1 %vm951_vm0, %v7880_v5  ;;  %v7837_v62 = vsel %vm1687_vm3, %v16309_v8, %v10768_v52  ;;  %v7838_v15 = vsel %vm1687_vm3, %v16311_v35, %v10769_v37 }
0x108a   : > { %v10772_v63 = vpop.permute.xlu0 %10771  ;;  %p12039_p1 = pnand %p12038_p8, %p17465_p13 }
0x108b   : > { %v10774_v27 = vunpack.i.h.bf16 %v10772_v63  ;;  %v10773_v38 = vunpack.i.l.bf16 %v10772_v63 }
0x108c   : > { %p12040_p3 = pneg %p12039_p1 }
0x108e   : > { %v10777_v1 = vpop.permute.xlu1 %10776  ;;  %v10782_v12 = vpop.permute.xlu0 %10781 }
0x108f   : > { %v10784_v55 = vunpack.i.h.bf16 %v10782_v12  ;;  %v10783_v10 = vunpack.i.l.bf16 %v10782_v12  ;;  %v10779_v25 = vunpack.i.h.bf16 %v10777_v1  ;;  %v10778_v53 = vunpack.i.l.bf16 %v10777_v1 }
0x1091   : > { %v7851_v49 = vsel %vm4144_vm4, %v7835_v11, %v10783_v10  ;;  %v7852_v43 = vsel %vm4144_vm4, %v7836_v54, %v10784_v55 }
0x1092   : > { %v10787_v51 = vpop.permute.xlu1 %10786  ;;  %v7867_v58 = vsel %vm4161_vm5, %v7851_v49, %v10773_v38  ;;  %v7868_v13 = vsel %vm4161_vm5, %v7852_v43, %v10774_v27 }
0x1093   : > { %v10789_v41 = vunpack.i.h.bf16 %v10787_v51  ;;  %v10788_v7 = vunpack.i.l.bf16 %v10787_v51  ;;  %v7881_v23 = vpack.c.bf16 %v7868_v13, %v7867_v58 }
0x1095   : > { %v7854_v36 = vsel %vm4144_vm4, %v7838_v15, %v10789_v41  ;;  %v7853_v56 = vsel %vm4144_vm4, %v7837_v62, %v10788_v7  ;;  %10270 = vmatprep.mubr.msk.bf16.mxu1 %vm951_vm0, %v7881_v23 }
0x1096   : > { %v7869_v19 = vsel %vm4161_vm5, %v7853_v56, %v10778_v53  ;;  %v7870_v46 = vsel %vm4161_vm5, %v7854_v36, %v10779_v25 }
0x1097   : > { %v7882_v61 = vpack.c.bf16 %v7870_v46, %v7869_v19 }
0x1099   : > { %10271 = vmatmul.mubr.msk.bf16.gmra.mrb[156].mxu1 %vm951_vm0, %v7882_v61 }
0x10b8   : > { %v10797_v8 = vpop.permute.xlu0 %10796 }
0x10b9   : > { %v10799_v32 = vunpack.i.h.bf16 %v10797_v8  ;;  %v10798_v57 = vunpack.i.l.bf16 %v10797_v8 }
0x10bd   : > { %v10792_v22 = vpop.permute.xlu1 %10791 }
0x10be   : > { %v10794_v50 = vunpack.i.h.bf16 %v10792_v22  ;;  %v10793_v35 = vunpack.i.l.bf16 %v10792_v22 }
0x10c0   : > { %v7841_v30 = vsel %vm1687_vm3, %v16323_v16, %v10793_v35  ;;  %v7842_v31 = vsel %vm1687_vm3, %v16325_v39, %v10794_v50  ;;  %v7840_v16 = vsel %vm1687_vm3, %v16320_v42, %v10799_v32  ;;  %v7839_v39 = vsel %vm1687_vm3, %v16318_v9, %v10798_v57  ;;  %v17445_v32 = vld [vmem:[#allocation47_spill] sm:$0xff] }
0x10c5   : > { %v10802_v18 = vpop.permute.xlu1 %10801 }
0x10c6   : > { %v10804_v40 = vunpack.i.h.bf16 %v10802_v18  ;;  %v10803_v28 = vunpack.i.l.bf16 %v10802_v18  ;;  %v16418_v18 = vld [vmem:[#allocation23] ss:$0 sm:$0xff] }
0x10c9   : > { %v10807_v17 = vpop.permute.xlu1 %10806  ;;  %v10812_v45 = vpop.permute.xlu0 %10811 }
0x10ca   : > { %v10809_v48 = vunpack.i.h.bf16 %v10807_v17  ;;  %v10808_v33 = vunpack.i.l.bf16 %v10807_v17  ;;  %v10814_v20 = vunpack.i.h.bf16 %v10812_v45  ;;  %v10813_v5 = vunpack.i.l.bf16 %v10812_v45 }
0x10cc   : > { %v7858_v14 = vsel %vm4144_vm4, %v7842_v31, %v10809_v48  ;;  %v7857_v4 = vsel %vm4144_vm4, %v7841_v30, %v10808_v33  ;;  %v17446_v33 = vld [vmem:[#allocation43_spill] sm:$0xff] }
0x10cd   : > { %v10817_v59 = vpop.permute.xlu0 %10816  ;;  %v7873_v24 = vsel %vm4161_vm5, %v7857_v4, %v10803_v28  ;;  %v7874_v3 = vsel %vm4161_vm5, %v7858_v14, %v10804_v40  ;;  %v17447_v40 = vld [vmem:[#allocation49_spill] sm:$0xff] }
0x10ce   : > { %v10819_v34 = vunpack.i.h.bf16 %v10817_v59  ;;  %v10818_v47 = vunpack.i.l.bf16 %v10817_v59  ;;  %v7884_v29 = vpack.c.bf16 %v7874_v3, %v7873_v24  ;;  %v17448_v59 = vld [vmem:[#allocation50_spill] sm:$0xff] }
0x10d0   : > { %v7855_v6 = vsel %vm4144_vm4, %v7839_v39, %v10818_v47  ;;  %v7856_v63 = vsel %vm4144_vm4, %v7840_v16, %v10819_v34 }
0x10d1   : > { %v7871_v60 = vsel %vm4161_vm5, %v7855_v6, %v10813_v5  ;;  %v7872_v2 = vsel %vm4161_vm5, %v7856_v63, %v10814_v20  ;;  %v17449_v6 = vld [vmem:[#allocation51_spill] sm:$0xff] }
0x10d2   : > { %v7883_v1 = vpack.c.bf16 %v7872_v2, %v7871_v60 }
0x10d4   : > { %10274 = vmatprep.mubr.msk.bf16.mxu1 %vm951_vm0, %v7883_v1  ;;  %v17450_v1 = vld [vmem:[#allocation45_spill] sm:$0xff] }
0x10d5   : > { %10275 = vmatmul.mubr.msk.bf16.gmra.mrb[160].mxu1 %vm951_vm0, %v7884_v29 }
0x10e0   : > { %v10822_v12 = vpop.permute.xlu1 %10821 }
0x10e1   : > { %v10824_v54 = vunpack.i.h.bf16 %v10822_v12  ;;  %v10823_v11 = vunpack.i.l.bf16 %v10822_v12 }
0x10e3   : > { %v7845_v52 = vsel %vm1687_vm3, %v16332_v44, %v10823_v11  ;;  %v7846_v27 = vsel %vm1687_vm3, %v16334_v0, %v10824_v54 }
0x10ea   : > { %v10827_v10 = vpop.permute.xlu0 %10826 }
0x10eb   : > { %v10832_v42 = vpop.permute.xlu1 %10831  ;;  %v10829_v7 = vunpack.i.h.bf16 %v10827_v10  ;;  %v10828_v23 = vunpack.i.l.bf16 %v10827_v10 }
0x10ec   : > { %v10834_v9 = vunpack.i.h.bf16 %v10832_v42  ;;  %v10833_v55 = vunpack.i.l.bf16 %v10832_v42  ;;  %v17451_v42 = vld [vmem:[#allocation44_spill] sm:$0xff] }
0x10ed   : > { %v7844_v0 = vsel %vm1687_vm3, %v16345_v21, %v10829_v7  ;;  %v7843_v53 = vsel %vm1687_vm3, %v16341_v26, %v10828_v23 }
0x10ee   : > { %v7862_v43 = vsel %vm4144_vm4, %v7846_v27, %v10834_v9  ;;  %v7861_v51 = vsel %vm4144_vm4, %v7845_v52, %v10833_v55  ;;  %v17452_v9 = vld [vmem:[#allocation70_spill] sm:$0xff] }
0x10ef   : > { %v10847_v37 = vpop.permute.xlu1 %10846 }
0x10f0   : > { %v10849_v38 = vunpack.i.h.bf16 %v10847_v37  ;;  %v10848_v49 = vunpack.i.l.bf16 %v10847_v37 }
0x10f2   : > { %v7877_v58 = vsel %vm4161_vm5, %v7861_v51, %v10848_v49  ;;  %v7878_v13 = vsel %vm4161_vm5, %v7862_v43, %v10849_v38 }
0x10f3   : > { %v10837_v41 = vpop.permute.xlu0 %10836  ;;  %v7886_v62 = vpack.c.bf16 %v7878_v13, %v7877_v58  ;;  %v17453_v13 = vld [vmem:[#allocation73_spill] sm:$0xff] }
0x10f4   : > { %v10839_v15 = vunpack.i.h.bf16 %v10837_v41  ;;  %v10838_v25 = vunpack.i.l.bf16 %v10837_v41 }
0x10f6   : > { %v7859_v19 = vsel %vm4144_vm4, %v7843_v53, %v10838_v25  ;;  %v7860_v46 = vsel %vm4144_vm4, %v7844_v0, %v10839_v15  ;;  %v17455_v25 = vld [vmem:[#allocation52_spill] sm:$0xff] }
0x10f7   : > { %v10842_v44 = vpop.permute.xlu0 %10841  ;;  %v17456_v53 = vld [vmem:[#allocation68_spill] sm:$0xff] }
0x10f8   : > { %v10844_v36 = vunpack.i.h.bf16 %v10842_v44  ;;  %v10843_v56 = vunpack.i.l.bf16 %v10842_v44 }
0x10fa   : > { %v7875_v61 = vsel %vm4161_vm5, %v7859_v19, %v10843_v56  ;;  %v7876_v22 = vsel %vm4161_vm5, %v7860_v46, %v10844_v36 }
0x10fb   : > { %v7885_v8 = vpack.c.bf16 %v7876_v22, %v7875_v61 }
0x10fd   : > { %10278 = vmatprep.mubr.msk.bf16.mxu1 %vm951_vm0, %v7885_v8 }
0x10fe   : > { %10279 = vmatmul.mubr.msk.bf16.gmra.mrb[164].mxu1 %vm951_vm0, %v7886_v62  ;;  %v17454_v62 = vld [vmem:[#allocation72_spill] sm:$0xff] }
0x115c   : > { %v10268_v21 = vpop.f32.mrb[152].mxu1 }
0x115d   : > { %v7984_v50 = vpop.f32.mrb[153].mxu1  ;;  %v7993_v26 = vadd.f32 %v10268_v21, %v16418_v18 }
0x115e   : > { %v7985_v35 = vadd.f32 %v16418_v18, %v7984_v50  ;;  %v10269_v17 = vpop.f32.mrb[154].mxu1 }
0x115f   : > { %v7987_v45 = vpop.f32.mrb[155].mxu1  ;;  %v16427_v30 = vadd.f32 %v7993_v26, %v17446_v33  ;;  %v7996_v31 = vadd.f32 %v10269_v17, %v16418_v18 }
0x1160   : > { %v16423_v57 = vadd.f32 %v7985_v35, %v17445_v32  ;;  %v7988_v48 = vadd.f32 %v16418_v18, %v7987_v45  ;;  %v17457_v35 = vld [vmem:[#allocation54_spill] sm:$0xff] }
0x1161   : > { %v16438_v24 = vadd.f32 %v7996_v31, %v17448_v59  ;;  %v8071_v3 = vsel %vm951_vm0, %v16427_v30, 0.0  ;;  %v17459_v31 = vld [vmem:[#allocation53_spill] sm:$0xff] }
0x1162   : > { %v16431_v28 = vadd.f32 %v7988_v48, %v17447_v40  ;;  %v8065_v14 = vsel %vm951_vm0, %v16423_v57, 0.0  ;;  %v17458_v48 = vld [vmem:[#allocation55_spill] sm:$0xff] }
0x1163   : > { %8066 = vadd.xlane.f32.xlu0 %v8065_v14  ;;  %v8074_v34 = vsel %vm951_vm0, %v16438_v24, 0.0 }
0x1164   : > { %v8068_v4 = vsel %vm951_vm0, %v16431_v28, 0.0 }
0x1165   : > { %8069 = vadd.xlane.f32.xlu1 %v8068_v4  ;;  %v17460_v4 = vld [vmem:[#allocation69_spill] sm:$0xff] }
0x1167   : > { %8072 = vadd.xlane.f32.xlu0 %v8071_v3 }
0x116b   : > { %8075 = vadd.xlane.f32.xlu0 %v8074_v34 }
0x116c   : > { %v10272_v47 = vpop.f32.mrb[156].mxu1 }
0x116d   : > { %v8000_v29 = vpop.f32.mrb[157].mxu1  ;;  %v8009_v16 = vadd.f32 %v10272_v47, %v16418_v18 }
0x116e   : > { %v8001_v39 = vadd.f32 %v16418_v18, %v8000_v29  ;;  %v10273_v20 = vpop.f32.mrb[158].mxu1 }
0x116f   : > { %v8003_v5 = vpop.f32.mrb[159].mxu1  ;;  %v8012_v60 = vadd.f32 %v10273_v20, %v16418_v18  ;;  %v16452_v12 = vadd.f32 %v8009_v16, %v17450_v1 }
0x1170   : > { %v16447_v63 = vadd.f32 %v8001_v39, %v17449_v6  ;;  %v8004_v2 = vadd.f32 %v16418_v18, %v8003_v5 }
0x1171   : > { %v16460_v55 = vadd.f32 %v8012_v60, %v17452_v9  ;;  %v8083_v37 = vsel %vm951_vm0, %v16452_v12, 0.0 }
0x1172   : > { %v16455_v54 = vadd.f32 %v8004_v2, %v17451_v42  ;;  %v8077_v11 = vsel %vm951_vm0, %v16447_v63, 0.0 }
0x1173   : > { %8078 = vadd.xlane.f32.xlu0 %v8077_v11  ;;  %v8086_v52 = vsel %vm951_vm0, %v16460_v55, 0.0 }
0x1174   : > { %v8080_v10 = vsel %vm951_vm0, %v16455_v54, 0.0 }
0x1175   : > { %8081 = vadd.xlane.f32.xlu1 %v8080_v10 }
0x1177   : > { %8084 = vadd.xlane.f32.xlu0 %v8083_v37 }
0x1179   : > { %8087 = vadd.xlane.f32.xlu1 %v8086_v52 }
0x11a8   : > { %v10276_v27 = vpop.f32.mrb[160].mxu1 }
0x11a9   : > { %v8016_v38 = vpop.f32.mrb[161].mxu1  ;;  %v8025_v49 = vadd.f32 %v10276_v27, %v16418_v18 }
0x11aa   : > { %v8017_v43 = vadd.f32 %v16418_v18, %v8016_v38  ;;  %v10277_v51 = vpop.f32.mrb[162].mxu1 }
0x11ab   : > { %v8019_v58 = vpop.f32.mrb[163].mxu1  ;;  %v8028_v7 = vadd.f32 %v10277_v51, %v16418_v18  ;;  %v16476_v15 = vadd.f32 %v8025_v49, %v17454_v62 }
0x11ac   : > { %v16471_v41 = vadd.f32 %v8017_v43, %v17453_v13  ;;  %v8020_v23 = vadd.f32 %v16418_v18, %v8019_v58 }
0x11ad   : > { %v16484_v36 = vadd.f32 %v8028_v7, %v17456_v53  ;;  %v8095_v19 = vsel %vm951_vm0, %v16476_v15, 0.0 }
0x11ae   : > { %v16479_v44 = vadd.f32 %v8020_v23, %v17455_v25  ;;  %v8089_v0 = vsel %vm951_vm0, %v16471_v41, 0.0 }
0x11af   : > { %8090 = vadd.xlane.f32.xlu0 %v8089_v0  ;;  %v8098_v46 = vsel %vm951_vm0, %v16484_v36, 0.0 }
0x11b0   : > { %v8092_v56 = vsel %vm951_vm0, %v16479_v44, 0.0 }
0x11b1   : > { %8093 = vadd.xlane.f32.xlu1 %v8092_v56 }
0x11b3   : > { %8096 = vadd.xlane.f32.xlu0 %v8095_v19 }
0x11b5   : > { %8099 = vadd.xlane.f32.xlu1 %v8098_v46 }
0x11d1   : > { %v10280_v61 = vpop.f32.mrb[164].mxu1 }
0x11d2   : > { %v8032_v22 = vpop.f32.mrb[165].mxu1  ;;  %v8041_v8 = vadd.f32 %v10280_v61, %v16418_v18 }
0x11d3   : > { %v8033_v21 = vadd.f32 %v16418_v18, %v8032_v22  ;;  %v10281_v50 = vpop.f32.mrb[166].mxu1 }
0x11d4   : > { %v8035_v26 = vpop.f32.mrb[167].mxu1  ;;  %v8044_v45 = vadd.f32 %v10281_v50, %v16418_v18  ;;  %v16500_v33 = vadd.f32 %v8041_v8, %v17458_v48  ;;  %v10880_v48 = vld [vmem:[#allocation25 + $0x8] sm:$0xff]  }
0x11d5   : > { %v16495_v17 = vadd.f32 %v8033_v21, %v17457_v35  ;;  %v8036_v32 = vadd.f32 %v16418_v18, %v8035_v26 }
0x11d6   : > { %v16508_v59 = vadd.f32 %v8044_v45, %v17460_v4  ;;  %v8107_v18 = vsel %vm951_vm0, %v16500_v33, 0.0 }
0x11d7   : > { %v16503_v40 = vadd.f32 %v8036_v32, %v17459_v31  ;;  %v8101_v14 = vsel %vm951_vm0, %v16495_v17, 0.0  ;;  %v10879_v32 = vld [vmem:[#allocation25] sm:$0xff]   ;;  %v10881_v31 = vld [vmem:[#allocation25 + $0x10] sm:$0xff]  }
0x11d8   : > { %8102 = vadd.xlane.f32.xlu0 %v8101_v14  ;;  %v8110_v34 = vsel %vm951_vm0, %v16508_v59, 0.0  ;;  %10282 = vmatprep.subr.bf16.mxu0 %v10879_v32  ;;  %v10882_v14 = vld [vmem:[#allocation25 + $0x18] sm:$0xff]  }
0x11d9   : > { %v8104_v3 = vsel %vm951_vm0, %v16503_v40, 0.0  ;;  %10283 = vmatpush3.bf16.msra.mxu0 %v10879_v32 }
0x11da   : > { %8105 = vadd.xlane.f32.xlu1 %v8104_v3  ;;  %10284 = vmatprep.subr.bf16.mxu0 %v10880_v48 }
0x11dc   : > { %8108 = vadd.xlane.f32.xlu0 %v8107_v18 }
0x11dd   : > { %10285 = vmatpush3.bf16.msra.mxu0 %v10880_v48 }
0x11de   : > { %8111 = vadd.xlane.f32.xlu1 %v8110_v34  ;;  %10286 = vmatprep.subr.bf16.mxu0 %v10881_v31 }
0x11e1   : > { %10287 = vmatpush3.bf16.msra.mxu0 %v10881_v31 }
0x11e2   : > { %10288 = vmatprep.subr.bf16.mxu0 %v10882_v14 }
0x11e5   : > { %10289 = vmatpush3.bf16.msra.mxu0 %v10882_v14 }
0x11f0   : > { %v8067_v47 = vpop.xlane.xlu0 %8066 }
0x11f1   : > { %v8113_v29 = vmul.f32 0.015625, %v8067_v47 }
0x11f2   : > { %v8070_v16 = vpop.xlane.xlu1 %8069 }
0x11f3   : > { %v16517_v39 = vsub.f32 %v16423_v57, %v8113_v29  ;;  %v8114_v20 = vmul.f32 0.015625, %v8070_v16 }
0x11f4   : > { %v8073_v5 = vpop.xlane.xlu0 %8072 }
0x11f5   : > { %v16520_v6 = vsub.f32 %v16431_v28, %v8114_v20  ;;  %v8115_v60 = vmul.f32 0.015625, %v8073_v5  ;;  %v8145_v2 = vmul.f32 %v16517_v39, %v16517_v39 }
0x11f7   : > { %v16525_v1 = vsub.f32 %v16427_v30, %v8115_v60  ;;  %v8161_v42 = vsel %vm951_vm0, %v8145_v2, 0.0  ;;  %v8146_v11 = vmul.f32 %v16520_v6, %v16520_v6 }
0x11f8   : > { %8162 = vadd.xlane.f32.xlu0 %v8161_v42  ;;  %v8076_v9 = vpop.xlane.xlu0 %8075 }
0x11f9   : > { %v8116_v10 = vmul.f32 0.015625, %v8076_v9  ;;  %v8164_v37 = vsel %vm951_vm0, %v8146_v11, 0.0  ;;  %v8147_v52 = vmul.f32 %v16525_v1, %v16525_v1 }
0x11fa   : > { %8165 = vadd.xlane.f32.xlu1 %v8164_v37 }
0x11fb   : > { %v16534_v27 = vsub.f32 %v16438_v24, %v8116_v10  ;;  %v8167_v38 = vsel %vm951_vm0, %v8147_v52, 0.0 }
0x11fc   : > { %8168 = vadd.xlane.f32.xlu0 %v8167_v38 }
0x11fd   : > { %v8148_v49 = vmul.f32 %v16534_v27, %v16534_v27 }
0x11ff   : > { %v8170_v43 = vsel %vm951_vm0, %v8148_v49, 0.0 }
0x1200   : > { %8171 = vadd.xlane.f32.xlu1 %v8170_v43  ;;  %v8079_v51 = vpop.xlane.xlu0 %8078 }
0x1201   : > { %v8117_v58 = vmul.f32 0.015625, %v8079_v51 }
0x1202   : > { %v8082_v13 = vpop.xlane.xlu1 %8081 }
0x1203   : > { %v16541_v7 = vsub.f32 %v16447_v63, %v8117_v58  ;;  %v8118_v23 = vmul.f32 0.015625, %v8082_v13 }
0x1204   : > { %v8085_v62 = vpop.xlane.xlu0 %8084 }
0x1205   : > { %v16544_v25 = vsub.f32 %v16455_v54, %v8118_v23  ;;  %v8119_v0 = vmul.f32 0.015625, %v8085_v62  ;;  %v8149_v53 = vmul.f32 %v16541_v7, %v16541_v7 }
0x1206   : > { %v8088_v56 = vpop.xlane.xlu1 %8087 }
0x1207   : > { %v16549_v19 = vsub.f32 %v16452_v12, %v8119_v0  ;;  %v8120_v46 = vmul.f32 0.015625, %v8088_v56  ;;  %v8173_v61 = vsel %vm951_vm0, %v8149_v53, 0.0  ;;  %v8150_v22 = vmul.f32 %v16544_v25, %v16544_v25 }
0x1208   : > { %8174 = vadd.xlane.f32.xlu0 %v8173_v61 }
0x1209   : > { %v16555_v8 = vsub.f32 %v16460_v55, %v8120_v46  ;;  %v8151_v21 = vmul.f32 %v16549_v19, %v16549_v19  ;;  %v8176_v50 = vsel %vm951_vm0, %v8150_v22, 0.0 }
0x120a   : > { %8177 = vadd.xlane.f32.xlu1 %v8176_v50 }
0x120b   : > { %v8179_v26 = vsel %vm951_vm0, %v8151_v21, 0.0  ;;  %v8152_v35 = vmul.f32 %v16555_v8, %v16555_v8 }
0x120c   : > { %8180 = vadd.xlane.f32.xlu0 %v8179_v26 }
0x120d   : > { %v8182_v45 = vsel %vm951_vm0, %v8152_v35, 0.0 }
0x120e   : > { %8183 = vadd.xlane.f32.xlu1 %v8182_v45 }
0x123c   : > { %v8091_v4 = vpop.xlane.xlu0 %8090 }
0x123d   : > { %v8121_v3 = vmul.f32 0.015625, %v8091_v4 }
0x123e   : > { %v8094_v18 = vpop.xlane.xlu1 %8093 }
0x123f   : > { %v16565_v34 = vsub.f32 %v16471_v41, %v8121_v3  ;;  %v8122_v47 = vmul.f32 0.015625, %v8094_v18 }
0x1240   : > { %v8097_v29 = vpop.xlane.xlu0 %8096 }
0x1241   : > { %v16568_v16 = vsub.f32 %v16479_v44, %v8122_v47  ;;  %v8123_v20 = vmul.f32 0.015625, %v8097_v29  ;;  %v8153_v5 = vmul.f32 %v16565_v34, %v16565_v34 }
0x1242   : > { %v8100_v60 = vpop.xlane.xlu1 %8099 }
0x1243   : > { %v16573_v2 = vsub.f32 %v16476_v15, %v8123_v20  ;;  %v8124_v42 = vmul.f32 0.015625, %v8100_v60  ;;  %v8185_v11 = vsel %vm951_vm0, %v8153_v5, 0.0  ;;  %v8154_v9 = vmul.f32 %v16568_v16, %v16568_v16 }
0x1244   : > { %8186 = vadd.xlane.f32.xlu0 %v8185_v11 }
0x1245   : > { %v16579_v10 = vsub.f32 %v16484_v36, %v8124_v42  ;;  %v8155_v37 = vmul.f32 %v16573_v2, %v16573_v2  ;;  %v8188_v52 = vsel %vm951_vm0, %v8154_v9, 0.0 }
0x1246   : > { %8189 = vadd.xlane.f32.xlu1 %v8188_v52 }
0x1247   : > { %v8191_v38 = vsel %vm951_vm0, %v8155_v37, 0.0  ;;  %v8156_v49 = vmul.f32 %v16579_v10, %v16579_v10 }
0x1248   : > { %8192 = vadd.xlane.f32.xlu0 %v8191_v38 }
0x1249   : > { %v8194_v43 = vsel %vm951_vm0, %v8156_v49, 0.0 }
0x124a   : > { %8195 = vadd.xlane.f32.xlu1 %v8194_v43 }
0x1265   : > { %v8103_v51 = vpop.xlane.xlu0 %8102 }
0x1266   : > { %v8125_v58 = vmul.f32 0.015625, %v8103_v51 }
0x1267   : > { %v8106_v13 = vpop.xlane.xlu1 %8105 }
0x1268   : > { %v16589_v23 = vsub.f32 %v16495_v17, %v8125_v58  ;;  %v8126_v62 = vmul.f32 0.015625, %v8106_v13 }
0x1269   : > { %v8109_v0 = vpop.xlane.xlu0 %8108 }
0x126a   : > { %v16592_v53 = vsub.f32 %v16503_v40, %v8126_v62  ;;  %v8127_v56 = vmul.f32 0.015625, %v8109_v0  ;;  %v8157_v46 = vmul.f32 %v16589_v23, %v16589_v23 }
0x126b   : > { %v8112_v61 = vpop.xlane.xlu1 %8111 }
0x126c   : > { %v16597_v22 = vsub.f32 %v16500_v33, %v8127_v56  ;;  %v8128_v21 = vmul.f32 0.015625, %v8112_v61  ;;  %v8197_v50 = vsel %vm951_vm0, %v8157_v46, 0.0  ;;  %v8158_v26 = vmul.f32 %v16592_v53, %v16592_v53 }
0x126d   : > { %8198 = vadd.xlane.f32.xlu0 %v8197_v50 }
0x126e   : > { %v16603_v35 = vsub.f32 %v16508_v59, %v8128_v21  ;;  %v8159_v45 = vmul.f32 %v16597_v22, %v16597_v22  ;;  %v8200_v32 = vsel %vm951_vm0, %v8158_v26, 0.0 }
0x126f   : > { %8201 = vadd.xlane.f32.xlu1 %v8200_v32 }
0x1270   : > { %v8203_v48 = vsel %vm951_vm0, %v8159_v45, 0.0  ;;  %v8160_v31 = vmul.f32 %v16603_v35, %v16603_v35 }
0x1271   : > { %8204 = vadd.xlane.f32.xlu0 %v8203_v48 }
0x1272   : > { %v8206_v14 = vsel %vm951_vm0, %v8160_v31, 0.0 }
0x1273   : > { %8207 = vadd.xlane.f32.xlu1 %v8206_v14 }
0x1285   : > { %v8163_v4 = vpop.xlane.xlu0 %8162 }
0x1286   : > { %v8209_v3 = vmul.f32 0.015873017, %v8163_v4 }
0x1287   : > { %v8166_v18 = vpop.xlane.xlu1 %8165 }
0x1288   : > { %11531 = vrsqrt.f32 %v8209_v3  ;;  %v8210_v47 = vmul.f32 0.015873017, %v8166_v18  ;;  %vm8227_vm3 = vcmp.eq.f32.partialorder %v8209_v3, inf  ;;  %v8230_v9 = vand.u32 2147483648, %v8209_v3 }
0x1289   : > { %v8169_v29 = vpop.xlane.xlu0 %8168  ;;  %vm8229_vm4 = vcmp.eq.f32.partialorder %v8209_v3, 0.0 }
0x128a   : > { %v8211_v20 = vmul.f32 0.015873017, %v8169_v29  ;;  %11533 = vrsqrt.f32 %v8210_v47  ;;  %vm8234_vm5 = vcmp.eq.f32.partialorder %v8210_v47, inf  ;;  %vm8236_vm14 = vcmp.eq.f32.partialorder %v8210_v47, 0.0 }
0x128b   : > { %v8237_v62 = vand.u32 2147483648, %v8210_v47 }
0x128c   : > { %11535 = vrsqrt.f32 %v8211_v20  ;;  %vm8241_vm15 = vcmp.eq.f32.partialorder %v8211_v20, inf  ;;  %v8244_v46 = vand.u32 2147483648, %v8211_v20  ;;  %vm8243_vm1 = vcmp.eq.f32.partialorder %v8211_v20, 0.0 }
0x128d   : > { %v8172_v5 = vpop.xlane.xlu1 %8171 }
0x128e   : > { %v8212_v60 = vmul.f32 0.015873017, %v8172_v5 }
0x1290   : > { %11537 = vrsqrt.f32 %v8212_v60  ;;  %vm8248_vm2 = vcmp.eq.f32.partialorder %v8212_v60, inf  ;;  %v8251_v18 = vand.u32 2147483648, %v8212_v60  ;;  %vm8250_vm6 = vcmp.eq.f32.partialorder %v8212_v60, 0.0 }
0x1292   : > { %v11532_v42 = vpop.eup %11531 }
0x1293   : > { %v8226_v11 = vmul.f32 %v11532_v42, %v8209_v3 }
0x1294   : > { %v11534_v37 = vpop.eup %11533 }
0x1295   : > { %v8228_v52 = vsel %vm8227_vm3, %v8209_v3, %v8226_v11  ;;  %v8175_v38 = vpop.xlane.xlu0 %8174  ;;  %v8233_v51 = vmul.f32 %v11534_v37, %v8210_v47  ;;  %v16620_v11 = vld [vmem:[#allocation10 + $0x2] ss:$0 sm:$0xff] }
0x1296   : > { %v11536_v49 = vpop.eup %11535  ;;  %v8231_v43 = vsel %vm8229_vm4, %v8230_v9, %v8228_v52  ;;  %v8213_v58 = vmul.f32 0.015873017, %v8175_v38  ;;  %v8341_v52 = vmul.f32 %v16620_v11, %v16517_v39  ;;  %v8343_v39 = vmul.f32 %v16620_v11, %v16525_v1 }
0x1297   : > { %v8357_v13 = vadd.f32 1e-06, %v8231_v43  ;;  %v8240_v0 = vmul.f32 %v11536_v49, %v8211_v20  ;;  %v8235_v56 = vsel %vm8234_vm5, %v8210_v47, %v8233_v51  ;;  %v8178_v61 = vpop.xlane.xlu1 %8177  ;;  %v8342_v49 = vmul.f32 %v16620_v11, %v16520_v6 }
0x1298   : > { %11539 = vrsqrt.f32 %v8213_v58  ;;  %v8238_v21 = vsel %vm8236_vm14, %v8237_v62, %v8235_v56  ;;  %v16612_v31 = vmul.f32 0.015873017, %v8178_v61  ;;  %vm8255_vm7 = vcmp.eq.f32.partialorder %v8213_v58, inf  ;;  %v10883_v56 = vld [vmem:[%s17461_s10] sm:$0xff]  }
0x1299   : > { %11541 = vrcp.f32 %v8357_v13  ;;  %v8242_v50 = vsel %vm8241_vm15, %v8211_v20, %v8240_v0  ;;  %v8181_v26 = vpop.xlane.xlu0 %8180  ;;  %v8358_v32 = vadd.f32 1e-06, %v8238_v21  ;;  %vm8257_vm8 = vcmp.eq.f32.partialorder %v8213_v58, 0.0  ;;  %v16627_v0 = vld [vmem:[#allocation11 + $0x2] ss:$0 sm:$0xff]  ;;  %10306 = vmatprep.subr.bf16.mxu0 %v10883_v56  ;;  %10338 = vmatprep.subr.bf16.mxu1 %v10883_v56 }
0x129a   : > { %v11538_v45 = vpop.eup %11537  ;;  %v8245_v48 = vsel %vm8243_vm1, %v8244_v46, %v8242_v50  ;;  %v16614_v3 = vmul.f32 0.015873017, %v8181_v26  ;;  %v8344_v61 = vmul.f32 %v16620_v11, %v16534_v27  ;;  %vm8262_vm9 = vcmp.eq.f32.partialorder %v16612_v31, inf  ;;  %v10884_v26 = vld [vmem:[%s17461_s10 + $0x8] sm:$0xff]   ;;  %10346 = vmatpush3.bf16.msra.mxu1 %v10883_v56 }
0x129b   : > { %v8359_v14 = vadd.f32 1e-06, %v8245_v48  ;;  %v8247_v4 = vmul.f32 %v11538_v45, %v8212_v60  ;;  %11543 = vrcp.f32 %v8358_v32  ;;  %v8184_v47 = vpop.xlane.xlu1 %8183  ;;  %vm8264_vm10 = vcmp.eq.f32.partialorder %v16612_v31, 0.0  ;;  %10339 = vmatprep.subr.bf16.mxu1 %v10884_v26 }
0x129c   : > { %v16617_v20 = vmul.f32 0.015873017, %v8184_v47  ;;  %vm8269_vm11 = vcmp.eq.f32.partialorder %v16614_v3, inf  ;;  %vm8271_vm12 = vcmp.eq.f32.partialorder %v16614_v3, 0.0 }
0x129d   : > { %11545 = vrcp.f32 %v8359_v14  ;;  %v8249_v29 = vsel %vm8248_vm2, %v8212_v60, %v8247_v4  ;;  %v8258_v60 = vand.u32 2147483648, %v8213_v58  ;;  %v8272_v4 = vand.u32 2147483648, %v16614_v3 }
0x129e   : > { %v8252_v5 = vsel %vm8250_vm6, %v8251_v18, %v8249_v29  ;;  %11547 = vrsqrt.f32 %v16612_v31  ;;  %vm8276_vm13 = vcmp.eq.f32.partialorder %v16617_v20, inf  ;;  %vm8278_vm3 = vcmp.eq.f32.partialorder %v16617_v20, 0.0  ;;  %10347 = vmatpush3.bf16.msra.mxu1 %v10884_v26 }
0x129f   : > { %v8360_v42 = vadd.f32 1e-06, %v8252_v5  ;;  %11549 = vrsqrt.f32 %v16614_v3 }
0x12a0   : > { %11551 = vrsqrt.f32 %v16617_v20 }
0x12a1   : > { %11553 = vrcp.f32 %v8360_v42 }
0x12a2   : > { %v11540_v9 = vpop.eup %11539 }
0x12a3   : > { %v11542_v37 = vpop.eup %11541  ;;  %v8254_v38 = vmul.f32 %v11540_v9, %v8213_v58 }
0x12a4   : > { %v8374_v51 = vmul.f32 %v11542_v37, %v8341_v52  ;;  %v8279_v52 = vand.u32 2147483648, %v16617_v20 }
0x12a5   : > { %v8256_v43 = vsel %vm8255_vm7, %v8213_v58, %v8254_v38  ;;  %v11544_v13 = vpop.eup %11543  ;;  %v8265_v58 = vand.u32 2147483648, %v16612_v31 }
0x12a6   : > { %v8259_v62 = vsel %vm8257_vm8, %v8258_v60, %v8256_v43  ;;  %v8376_v6 = vmul.f32 %v11544_v13, %v8342_v49  ;;  %v8409_v45 = vadd.f32 %v16627_v0, %v8374_v51  ;;  %v10885_v60 = vld [vmem:[%s17461_s10 + $0x10] sm:$0xff]  }
0x12a7   : > { %v11546_v46 = vpop.eup %11545  ;;  %v8361_v21 = vadd.f32 1e-06, %v8259_v62  ;;  %10340 = vmatprep.subr.bf16.mxu1 %v10885_v60 }
0x12a8   : > { %v11548_v50 = vpop.eup %11547  ;;  %v8410_v32 = vadd.f32 %v16627_v0, %v8376_v6  ;;  %v8378_v18 = vmul.f32 %v11546_v46, %v8343_v39  ;;  %10348 = vmatpush3.bf16.msra.mxu1 %v10885_v60  ;;  %v8345_v6 = vmul.f32 %v16620_v11, %v16541_v7  ;;  %v8348_v7 = vmul.f32 %v16620_v11, %v16555_v8 }
0x12a9   : > { %v11550_v1 = vpop.eup %11549  ;;  %v8261_v27 = vmul.f32 %v11548_v50, %v16612_v31  ;;  %11555 = vrcp.f32 %v8361_v21  ;;  %v8346_v50 = vmul.f32 %v16620_v11, %v16544_v25 }
0x12aa   : > { %v11552_v48 = vpop.eup %11551  ;;  %v8268_v14 = vmul.f32 %v11550_v1, %v16614_v3  ;;  %v8425_v42 = vpack.c.bf16 %v8410_v32, %v8409_v45  ;;  %v8411_v62 = vadd.f32 %v16627_v0, %v8378_v18 }
0x12ab   : > { %v11554_v47 = vpop.eup %11553  ;;  %v8263_v29 = vsel %vm8262_vm9, %v16612_v31, %v8261_v27  ;;  %v8275_v5 = vmul.f32 %v11552_v48, %v16617_v20  ;;  %v8347_v27 = vmul.f32 %v16620_v11, %v16549_v19 }
0x12ac   : > { %v8266_v9 = vsel %vm8264_vm10, %v8265_v58, %v8263_v29  ;;  %v8270_v37 = vsel %vm8269_vm11, %v16614_v3, %v8268_v14  ;;  %v8380_v38 = vmul.f32 %v11554_v47, %v8344_v61  ;;  %10290 = vmatprep.mubr.msk.bf16.mxu0 %vm951_vm0, %v8425_v42  ;;  %v10886_v3 = vld [vmem:[%s17461_s10 + $0x18] sm:$0xff]  }
0x12ad   : > { %v8362_v49 = vadd.f32 1e-06, %v8266_v9  ;;  %v8273_v43 = vsel %vm8271_vm12, %v8272_v4, %v8270_v37  ;;  %v8277_v51 = vsel %vm8276_vm13, %v16617_v20, %v8275_v5  ;;  %10341 = vmatprep.subr.bf16.mxu1 %v10886_v3  ;;  %v10887_v20 = vld [vmem:[%s17461_s10 + $0x20] sm:$0xff]  }
0x12ae   : > { %v8363_v31 = vadd.f32 1e-06, %v8273_v43  ;;  %v8280_v13 = vsel %vm8278_vm3, %v8279_v52, %v8277_v51  ;;  %v8412_v46 = vadd.f32 %v16627_v0, %v8380_v38  ;;  %10349 = vmatpush3.bf16.msra.mxu1 %v10886_v3 }
0x12af   : > { %11557 = vrcp.f32 %v8362_v49  ;;  %v8364_v39 = vadd.f32 1e-06, %v8280_v13  ;;  %10342 = vmatprep.subr.bf16.mxu1 %v10887_v20 }
0x12b0   : > { %11559 = vrcp.f32 %v8363_v31  ;;  %v8426_v61 = vpack.c.bf16 %v8412_v46, %v8411_v62 }
0x12b1   : > { %11561 = vrcp.f32 %v8364_v39 }
0x12b2   : > { %10291 = vmatmul.mubr.msk.bf16.vlgmr.msra.gmra.mrb[184].mxu0 %vm951_vm0, %v8426_v61  ;;  %10350 = vmatpush3.bf16.msra.mxu1 %v10887_v20 }
0x12b3   : > { %10307 = vmatpush3.bf16.msra.mxu0 %v10883_v56  ;;  %v11556_v21 = vpop.eup %11555  ;;  %v10888_v56 = vld [vmem:[%s17461_s10 + $0x28] sm:$0xff]  }
0x12b4   : > { %10308 = vmatprep.subr.bf16.mxu0 %v10884_v26  ;;  %v8382_v58 = vmul.f32 %v11556_v21, %v8345_v6  ;;  %10343 = vmatprep.subr.bf16.mxu1 %v10888_v56 }
0x12b6   : > { %v8413_v25 = vadd.f32 %v16627_v0, %v8382_v58  ;;  %10351 = vmatpush3.bf16.msra.mxu1 %v10888_v56 }
0x12b7   : > { %10309 = vmatpush3.bf16.msra.mxu0 %v10884_v26 }
0x12b8   : > { %10310 = vmatprep.subr.bf16.mxu0 %v10885_v60 }
0x12b9   : > { %v11558_v1 = vpop.eup %11557 }
0x12ba   : > { %v11560_v45 = vpop.eup %11559  ;;  %v8384_v32 = vmul.f32 %v11558_v1, %v8346_v50 }
0x12bb   : > { %v11562_v26 = vpop.eup %11561  ;;  %v8386_v48 = vmul.f32 %v11560_v45, %v8347_v27  ;;  %10311 = vmatpush3.bf16.msra.mxu0 %v10885_v60 }
0x12bc   : > { %v8414_v14 = vadd.f32 %v16627_v0, %v8384_v32  ;;  %v8388_v4 = vmul.f32 %v11562_v26, %v8348_v7  ;;  %10312 = vmatprep.subr.bf16.mxu0 %v10886_v3 }
0x12bd   : > { %v8415_v19 = vadd.f32 %v16627_v0, %v8386_v48 }
0x12be   : > { %v8427_v18 = vpack.c.bf16 %v8414_v14, %v8413_v25  ;;  %v8416_v47 = vadd.f32 %v16627_v0, %v8388_v4  ;;  %v8349_v4 = vmul.f32 %v16620_v11, %v16565_v34 }
0x12bf   : > { %10313 = vmatpush3.bf16.msra.mxu0 %v10886_v3 }
0x12c0   : > { %10294 = vmatprep.mubr.msk.bf16.mxu0 %vm951_vm0, %v8427_v18  ;;  %v8428_v8 = vpack.c.bf16 %v8416_v47, %v8415_v19  ;;  %10314 = vmatprep.subr.bf16.mxu0 %v10887_v20  ;;  %v8350_v18 = vmul.f32 %v16620_v11, %v16568_v16 }
0x12c2   : > { %10295 = vmatmul.mubr.msk.bf16.gmra.mrb[188].mxu0 %vm951_vm0, %v8428_v8 }
0x12c3   : > { %10315 = vmatpush3.bf16.msra.mxu0 %v10887_v20 }
0x12c4   : > { %10316 = vmatprep.subr.bf16.mxu0 %v10888_v56 }
0x12c7   : > { %10317 = vmatpush3.bf16.msra.mxu0 %v10888_v56 }
0x12d1   : > { %v8187_v29 = vpop.xlane.xlu0 %8186 }
0x12d2   : > { %v8217_v5 = vmul.f32 0.015873017, %v8187_v29  ;;  %v8351_v29 = vmul.f32 %v16620_v11, %v16573_v2 }
0x12d3   : > { %v8190_v42 = vpop.xlane.xlu1 %8189 }
0x12d4   : > { %11563 = vrsqrt.f32 %v8217_v5  ;;  %v8218_v9 = vmul.f32 0.015873017, %v8190_v42  ;;  %vm8283_vm4 = vcmp.eq.f32.partialorder %v8217_v5, inf  ;;  %v8286_v51 = vand.u32 2147483648, %v8217_v5 }
0x12d5   : > { %v8193_v37 = vpop.xlane.xlu0 %8192  ;;  %vm8285_vm5 = vcmp.eq.f32.partialorder %v8217_v5, 0.0  ;;  %v8352_v42 = vmul.f32 %v16620_v11, %v16579_v10 }
0x12d6   : > { %v8219_v52 = vmul.f32 0.015873017, %v8193_v37  ;;  %11565 = vrsqrt.f32 %v8218_v9  ;;  %vm8290_vm14 = vcmp.eq.f32.partialorder %v8218_v9, inf  ;;  %v8293_v3 = vand.u32 2147483648, %v8218_v9 }
0x12d7   : > { %v8196_v38 = vpop.xlane.xlu1 %8195  ;;  %vm8292_vm15 = vcmp.eq.f32.partialorder %v8218_v9, 0.0 }
0x12d8   : > { %11567 = vrsqrt.f32 %v8219_v52  ;;  %v8220_v60 = vmul.f32 0.015873017, %v8196_v38  ;;  %vm8297_vm1 = vcmp.eq.f32.partialorder %v8219_v52, inf  ;;  %v8300_v6 = vand.u32 2147483648, %v8219_v52 }
0x12d9   : > { %vm8299_vm2 = vcmp.eq.f32.partialorder %v8219_v52, 0.0 }
0x12da   : > { %11569 = vrsqrt.f32 %v8220_v60  ;;  %vm8304_vm6 = vcmp.eq.f32.partialorder %v8220_v60, inf  ;;  %v8307_v32 = vand.u32 2147483648, %v8220_v60  ;;  %vm8306_vm7 = vcmp.eq.f32.partialorder %v8220_v60, 0.0 }
0x12de   : > { %v11564_v49 = vpop.eup %11563 }
0x12df   : > { %v8282_v43 = vmul.f32 %v11564_v49, %v8217_v5 }
0x12e0   : > { %v11566_v31 = vpop.eup %11565 }
0x12e1   : > { %v8284_v13 = vsel %vm8283_vm4, %v8217_v5, %v8282_v43  ;;  %v8289_v39 = vmul.f32 %v11566_v31, %v8218_v9 }
0x12e2   : > { %v11568_v62 = vpop.eup %11567  ;;  %v8287_v46 = vsel %vm8285_vm5, %v8286_v51, %v8284_v13 }
0x12e3   : > { %v8365_v61 = vadd.f32 1e-06, %v8287_v46  ;;  %v8296_v20 = vmul.f32 %v11568_v62, %v8219_v52  ;;  %v8291_v21 = vsel %vm8290_vm14, %v8218_v9, %v8289_v39 }
0x12e4   : > { %v11570_v50 = vpop.eup %11569  ;;  %v8294_v58 = vsel %vm8292_vm15, %v8293_v3, %v8291_v21 }
0x12e5   : > { %11571 = vrcp.f32 %v8365_v61  ;;  %v8298_v56 = vsel %vm8297_vm1, %v8219_v52, %v8296_v20  ;;  %v8366_v1 = vadd.f32 1e-06, %v8294_v58  ;;  %v8303_v45 = vmul.f32 %v11570_v50, %v8220_v60 }
0x12e6   : > { %v8301_v27 = vsel %vm8299_vm2, %v8300_v6, %v8298_v56 }
0x12e7   : > { %v8367_v7 = vadd.f32 1e-06, %v8301_v27  ;;  %11573 = vrcp.f32 %v8366_v1  ;;  %v8305_v26 = vsel %vm8304_vm6, %v8220_v60, %v8303_v45 }
0x12e8   : > { %v8308_v48 = vsel %vm8306_vm7, %v8307_v32, %v8305_v26  ;;  %v10889_v26 = vld [vmem:[%s17461_s10 + $0x30] sm:$0xff]  }
0x12e9   : > { %11575 = vrcp.f32 %v8367_v7  ;;  %v8368_v25 = vadd.f32 1e-06, %v8308_v48  ;;  %v10890_v48 = vld [vmem:[%s17461_s10 + $0x38] sm:$0xff]   ;;  %10318 = vmatprep.subr.bf16.mxu0 %v10889_v26  ;;  %10344 = vmatprep.subr.bf16.mxu1 %v10889_v26 }
0x12ea   : > { %10319 = vmatpush3.bf16.msra.mxu0 %v10889_v26  ;;  %10352 = vmatpush3.bf16.msra.mxu1 %v10889_v26 }
0x12eb   : > { %11577 = vrcp.f32 %v8368_v25  ;;  %10320 = vmatprep.subr.bf16.mxu0 %v10890_v48  ;;  %10345 = vmatprep.subr.bf16.mxu1 %v10890_v48 }
0x12ee   : > { %10321 = vmatpush3.bf16.msra.mxu0 %v10890_v48  ;;  %10353 = vmatpush3.bf16.msra.mxu1 %v10890_v48 }
0x12ef   : > { %v11572_v14 = vpop.eup %11571 }
0x12f0   : > { %v8390_v19 = vmul.f32 %v11572_v14, %v8349_v4 }
0x12f1   : > { %v11574_v47 = vpop.eup %11573 }
0x12f2   : > { %v8392_v5 = vmul.f32 %v11574_v47, %v8350_v18  ;;  %v8417_v9 = vadd.f32 %v16627_v0, %v8390_v19 }
0x12f3   : > { %v11576_v8 = vpop.eup %11575 }
0x12f4   : > { %v8418_v37 = vadd.f32 %v16627_v0, %v8392_v5  ;;  %v8394_v52 = vmul.f32 %v11576_v8, %v8351_v29 }
0x12f5   : > { %v11578_v38 = vpop.eup %11577 }
0x12f6   : > { %v8429_v34 = vpack.c.bf16 %v8418_v37, %v8417_v9  ;;  %v8396_v60 = vmul.f32 %v11578_v38, %v8352_v42  ;;  %v8419_v16 = vadd.f32 %v16627_v0, %v8394_v52  ;;  %v8353_v52 = vmul.f32 %v16620_v11, %v16589_v23 }
0x12f7   : > { %v8354_v38 = vmul.f32 %v16620_v11, %v16592_v53 }
0x12f8   : > { %10298 = vmatprep.mubr.msk.bf16.mxu0 %vm951_vm0, %v8429_v34  ;;  %v8420_v49 = vadd.f32 %v16627_v0, %v8396_v60 }
0x12fa   : > { %v8199_v43 = vpop.xlane.xlu0 %8198  ;;  %v8430_v51 = vpack.c.bf16 %v8420_v49, %v8419_v16  ;;  %v8355_v49 = vmul.f32 %v16620_v11, %v16597_v22  ;;  %v9308_v22 = vld [vmem:[%s17462_s2] ss:$0 sm:$0xff]  ;;  %s12041_s2 = sshll.u32 %s12169_s3, 4  ;;  %s12042_s2 = int_to_ptr.vmem [resolvable:$false] %s12041_s2 }
0x12fb   : > { %v8221_v2 = vmul.f32 0.015873017, %v8199_v43  ;;  %s12043_s22 = scalar_lea.vmem %s12042_s2, 4096  ;;  %p12044_p6 = scmp.lt.s32.totalorder %s16785_s29, %s12042_s2 }
0x12fc   : > { %v8202_v31 = vpop.xlane.xlu1 %8201  ;;  %10299 = vmatmul.mubr.msk.bf16.gmra.mrb[192].mxu0 %vm951_vm0, %v8430_v51  ;;  %p12045_p4 = scmp.lt.s32.totalorder %s12043_s22, %s12037_s14 }
0x12fd   : > { %11579 = vrsqrt.f32 %v8221_v2  ;;  %v8222_v10 = vmul.f32 0.015873017, %v8202_v31  ;;  %vm8311_vm8 = vcmp.eq.f32.partialorder %v8221_v2, inf  ;;  %v8314_v20 = vand.u32 2147483648, %v8221_v2 }
0x12fe   : > { %v8205_v13 = vpop.xlane.xlu0 %8204  ;;  %vm8313_vm9 = vcmp.eq.f32.partialorder %v8221_v2, 0.0  ;;  %p12046_p0 = por %p12045_p4, %p12044_p6 }
0x12ff   : > { %v8223_v62 = vmul.f32 0.015873017, %v8205_v13  ;;  %11581 = vrsqrt.f32 %v8222_v10  ;;  %vm8318_vm10 = vcmp.eq.f32.partialorder %v8222_v10, inf  ;;  %v8321_v27 = vand.u32 2147483648, %v8222_v10 }
0x1300   : > { %v8208_v46 = vpop.xlane.xlu1 %8207  ;;  %vm8320_vm11 = vcmp.eq.f32.partialorder %v8222_v10, 0.0  ;;  %p12047_p2 = pnand %p12046_p0, %p12040_p3 }
0x1301   : > { %11583 = vrsqrt.f32 %v8223_v62  ;;  %v8224_v39 = vmul.f32 0.015873017, %v8208_v46  ;;  %vm8325_vm12 = vcmp.eq.f32.partialorder %v8223_v62, inf  ;;  %v8328_v32 = vand.u32 2147483648, %v8223_v62 }
0x1302   : > { %vm8327_vm13 = vcmp.eq.f32.partialorder %v8223_v62, 0.0 }
0x1303   : > { %11585 = vrsqrt.f32 %v8224_v39  ;;  %vm8332_vm3 = vcmp.eq.f32.partialorder %v8224_v39, inf  ;;  %v8335_v29 = vand.u32 2147483648, %v8224_v39  ;;  %vm8334_vm4 = vcmp.eq.f32.partialorder %v8224_v39, 0.0 }
0x1307   : > { %v11580_v61 = vpop.eup %11579 }
0x1308   : > { %v8310_v3 = vmul.f32 %v11580_v61, %v8221_v2 }
0x1309   : > { %v11582_v21 = vpop.eup %11581 }
0x130a   : > { %v8312_v6 = vsel %vm8311_vm8, %v8221_v2, %v8310_v3  ;;  %v8317_v56 = vmul.f32 %v11582_v21, %v8222_v10  ;;  %v8356_v2 = vmul.f32 %v16620_v11, %v16603_v35 }
0x130b   : > { %v11584_v50 = vpop.eup %11583  ;;  %v8315_v58 = vsel %vm8313_vm9, %v8314_v20, %v8312_v6 }
0x130c   : > { %v8369_v1 = vadd.f32 1e-06, %v8315_v58  ;;  %v8324_v45 = vmul.f32 %v11584_v50, %v8223_v62  ;;  %v8319_v7 = vsel %vm8318_vm10, %v8222_v10, %v8317_v56 }
0x130d   : > { %v11586_v25 = vpop.eup %11585  ;;  %v8322_v14 = vsel %vm8320_vm11, %v8321_v27, %v8319_v7 }
0x130e   : > { %11587 = vrcp.f32 %v8369_v1  ;;  %v8326_v4 = vsel %vm8325_vm12, %v8223_v62, %v8324_v45  ;;  %v8370_v18 = vadd.f32 1e-06, %v8322_v14  ;;  %v8331_v47 = vmul.f32 %v11586_v25, %v8224_v39 }
0x130f   : > { %v8329_v19 = vsel %vm8327_vm13, %v8328_v32, %v8326_v4 }
0x1310   : > { %v8371_v8 = vadd.f32 1e-06, %v8329_v19  ;;  %11589 = vrcp.f32 %v8370_v18  ;;  %v8333_v5 = vsel %vm8332_vm3, %v8224_v39, %v8331_v47 }
0x1311   : > { %v8336_v42 = vsel %vm8334_vm4, %v8335_v29, %v8333_v5 }
0x1312   : > { %11591 = vrcp.f32 %v8371_v8  ;;  %v8372_v9 = vadd.f32 1e-06, %v8336_v42 }
0x1314   : > { %11593 = vrcp.f32 %v8372_v9 }
0x1318   : > { %v11588_v37 = vpop.eup %11587 }
0x1319   : > { %v8398_v34 = vmul.f32 %v11588_v37, %v8353_v52 }
0x131a   : > { %v11590_v60 = vpop.eup %11589 }
0x131b   : > { %v8400_v43 = vmul.f32 %v11590_v60, %v8354_v38  ;;  %v8421_v51 = vadd.f32 %v16627_v0, %v8398_v34 }
0x131c   : > { %v11592_v16 = vpop.eup %11591 }
0x131d   : > { %v8422_v31 = vadd.f32 %v16627_v0, %v8400_v43  ;;  %v8402_v10 = vmul.f32 %v11592_v16, %v8355_v49 }
0x131e   : > { %v11594_v13 = vpop.eup %11593 }
0x131f   : > { %v8431_v23 = vpack.c.bf16 %v8422_v31, %v8421_v51  ;;  %v8404_v62 = vmul.f32 %v11594_v13, %v8356_v2  ;;  %v8423_v53 = vadd.f32 %v16627_v0, %v8402_v10 }
0x1321   : > { %10302 = vmatprep.mubr.msk.bf16.mxu0 %vm951_vm0, %v8431_v23  ;;  %v8424_v46 = vadd.f32 %v16627_v0, %v8404_v62 }
0x1323   : > { %v8432_v39 = vpack.c.bf16 %v8424_v46, %v8423_v53 }
0x1325   : > { %10303 = vmatmul.mubr.msk.bf16.gmra.mrb[196].mxu0 %vm951_vm0, %v8432_v39 }
0x1385   : > { %v10292_v35 = vpop.f32.mrb[184].mxu0 }
0x1386   : > { %v8539_v11 = vadd.f32 %v10292_v35, %v9308_v22  ;;  %v8530_v61 = vpop.f32.mrb[185].mxu0 }
0x1387   : > { %v8531_v3 = vadd.f32 %v9308_v22, %v8530_v61  ;;  %v10293_v20 = vpop.f32.mrb[186].mxu0 }
0x1388   : > { %v8542_v21 = vadd.f32 %v10293_v20, %v9308_v22  ;;  %v8533_v6 = vpop.f32.mrb[187].mxu0  ;;  %v8595_v58 = vmax.f32 %v8539_v11, 0.0 }
0x1389   : > { %v8534_v50 = vadd.f32 %v9308_v22, %v8533_v6  ;;  %v8593_v1 = vmax.f32 %v8531_v3, 0.0 }
0x138a   : > { %v8596_v56 = vmax.f32 %v8542_v21, 0.0 }
0x138b   : > { %v8594_v27 = vmax.f32 %v8534_v50, 0.0 }
0x138c   : > { %v8610_v0 = vpack.c.bf16 %v8596_v56, %v8595_v58  ;;  %v9321_v56 = vld [vmem:[%s17463_s11] ss:$0 sm:$0xff] }
0x138d   : > { %v8609_v45 = vpack.c.bf16 %v8594_v27, %v8593_v1 }
0x138f   : > { %10322 = vmatprep.mubr.bf16.mxu0 %v8609_v45 }
0x1390   : > { %10323 = vmatmul.mubr.bf16.vlgmr.msra.gmra.mrb[200].mxu0 %v8610_v0 }
0x1395   : > { %v10296_v7 = vpop.f32.mrb[188].mxu0 }
0x1396   : > { %v8555_v32 = vadd.f32 %v10296_v7, %v9308_v22  ;;  %v8546_v26 = vpop.f32.mrb[189].mxu0 }
0x1397   : > { %v8547_v48 = vadd.f32 %v9308_v22, %v8546_v26  ;;  %v10297_v25 = vpop.f32.mrb[190].mxu0 }
0x1398   : > { %v8558_v14 = vadd.f32 %v10297_v25, %v9308_v22  ;;  %v8549_v4 = vpop.f32.mrb[191].mxu0  ;;  %v8599_v19 = vmax.f32 %v8555_v32, 0.0 }
0x1399   : > { %v8550_v18 = vadd.f32 %v9308_v22, %v8549_v4  ;;  %v8597_v8 = vmax.f32 %v8547_v48, 0.0 }
0x139a   : > { %v8600_v47 = vmax.f32 %v8558_v14, 0.0 }
0x139b   : > { %v8598_v29 = vmax.f32 %v8550_v18, 0.0 }
0x139c   : > { %v8612_v5 = vpack.c.bf16 %v8600_v47, %v8599_v19 }
0x139d   : > { %v8611_v42 = vpack.c.bf16 %v8598_v29, %v8597_v8 }
0x139f   : > { %10326 = vmatprep.mubr.bf16.mxu1 %v8611_v42 }
0x13a0   : > { %10327 = vmatmul.mubr.bf16.vlgmr.msra.gmra.mrb[168].mxu1 %v8612_v5 }
0x13cf   : > { %v10300_v9 = vpop.f32.mrb[192].mxu0 }
0x13d0   : > { %v8571_v37 = vadd.f32 %v10300_v9, %v9308_v22  ;;  %v8562_v52 = vpop.f32.mrb[193].mxu0 }
0x13d1   : > { %v8563_v38 = vadd.f32 %v9308_v22, %v8562_v52  ;;  %v10301_v34 = vpop.f32.mrb[194].mxu0 }
0x13d2   : > { %v8574_v60 = vadd.f32 %v10301_v34, %v9308_v22  ;;  %v8565_v16 = vpop.f32.mrb[195].mxu0  ;;  %v8603_v43 = vmax.f32 %v8571_v37, 0.0 }
0x13d3   : > { %v8566_v49 = vadd.f32 %v9308_v22, %v8565_v16  ;;  %v8601_v51 = vmax.f32 %v8563_v38, 0.0 }
0x13d4   : > { %v8604_v2 = vmax.f32 %v8574_v60, 0.0 }
0x13d5   : > { %v8602_v31 = vmax.f32 %v8566_v49, 0.0 }
0x13d6   : > { %v8614_v10 = vpack.c.bf16 %v8604_v2, %v8603_v43 }
0x13d7   : > { %v8613_v13 = vpack.c.bf16 %v8602_v31, %v8601_v51 }
0x13d9   : > { %10330 = vmatprep.mubr.bf16.mxu1 %v8613_v13 }
0x13da   : > { %10331 = vmatmul.mubr.bf16.gmra.mrb[172].mxu1 %v8614_v10 }
0x13f8   : > { %v10304_v23 = vpop.f32.mrb[196].mxu0 }
0x13f9   : > { %v8587_v62 = vadd.f32 %v10304_v23, %v9308_v22  ;;  %v8578_v53 = vpop.f32.mrb[197].mxu0 }
0x13fa   : > { %v8579_v46 = vadd.f32 %v9308_v22, %v8578_v53  ;;  %v10305_v39 = vpop.f32.mrb[198].mxu0 }
0x13fb   : > { %v8590_v35 = vadd.f32 %v10305_v39, %v9308_v22  ;;  %v8581_v11 = vpop.f32.mrb[199].mxu0  ;;  %v8607_v3 = vmax.f32 %v8587_v62, 0.0 }
0x13fc   : > { %v8582_v61 = vadd.f32 %v9308_v22, %v8581_v11  ;;  %v8605_v21 = vmax.f32 %v8579_v46, 0.0 }
0x13fd   : > { %v8608_v20 = vmax.f32 %v8590_v35, 0.0 }
0x13fe   : > { %v8606_v6 = vmax.f32 %v8582_v61, 0.0 }
0x13ff   : > { %v8616_v50 = vpack.c.bf16 %v8608_v20, %v8607_v3 }
0x1400   : > { %v8615_v58 = vpack.c.bf16 %v8606_v6, %v8605_v21 }
0x1402   : > { %10334 = vmatprep.mubr.bf16.mxu1 %v8615_v58 }
0x1403   : > { %10335 = vmatmul.mubr.bf16.gmra.mrb[176].mxu1 %v8616_v50 }
0x1463   : > { %v10324_v1 = vpop.f32.mrb[200].mxu0 }
0x1464   : > { %v8731_v27 = vadd.f32 %v10324_v1, %v9321_v56  ;;  %v8722_v0 = vpop.f32.mrb[201].mxu0 }
0x1465   : > { %v8723_v45 = vadd.f32 %v9321_v56, %v8722_v0  ;;  %v10325_v7 = vpop.f32.mrb[202].mxu0 }
0x1466   : > { %v8787_v22 = vadd.f32 %v8731_v27, %v16427_v30  ;;  %v8734_v32 = vadd.f32 %v10325_v7, %v9321_v56  ;;  %v8725_v26 = vpop.f32.mrb[203].mxu0 }
0x1467   : > { %v8785_v48 = vadd.f32 %v8723_v45, %v16423_v57  ;;  %v8726_v25 = vadd.f32 %v9321_v56, %v8725_v26 }
0x1468   : > { %8803 = vst.msk [vmem:[%s16737_s20 + $0x10] sm:$0xff] %vm951_vm0, %v8787_v22  ;;  %v8788_v14 = vadd.f32 %v8734_v32, %v16438_v24 }
0x1469   : > { %8801 = vst.msk [vmem:[%s16737_s20] sm:$0xff] %vm951_vm0, %v8785_v48  ;;  %v8786_v30 = vadd.f32 %v8726_v25, %v16431_v28 }
0x146a   : > { %8804 = vst.msk [vmem:[%s16737_s20 + $0x18] sm:$0xff] %vm951_vm0, %v8788_v14 }
0x146b   : > { %8802 = vst.msk [vmem:[%s16737_s20 + $0x8] sm:$0xff] %vm951_vm0, %v8786_v30 }
0x1473   : > { %v10328_v57 = vpop.f32.mrb[168].mxu1 }
0x1474   : > { %v8747_v4 = vadd.f32 %v10328_v57, %v9321_v56  ;;  %v8738_v18 = vpop.f32.mrb[169].mxu1 }
0x1475   : > { %v8739_v19 = vadd.f32 %v9321_v56, %v8738_v18  ;;  %v10329_v47 = vpop.f32.mrb[170].mxu1 }
0x1476   : > { %v8791_v8 = vadd.f32 %v8747_v4, %v16452_v12  ;;  %v8750_v29 = vadd.f32 %v10329_v47, %v9321_v56  ;;  %v8741_v24 = vpop.f32.mrb[171].mxu1 }
0x1477   : > { %v8789_v5 = vadd.f32 %v8739_v19, %v16447_v63  ;;  %v8742_v42 = vadd.f32 %v9321_v56, %v8741_v24 }
0x1478   : > { %8807 = vst.msk [vmem:[%s16737_s20 + $0x30] sm:$0xff] %vm951_vm0, %v8791_v8  ;;  %v8792_v28 = vadd.f32 %v8750_v29, %v16460_v55 }
0x1479   : > { %8805 = vst.msk [vmem:[%s16737_s20 + $0x20] sm:$0xff] %vm951_vm0, %v8789_v5  ;;  %v8790_v9 = vadd.f32 %v8742_v42, %v16455_v54 }
0x147a   : > { %8808 = vst.msk [vmem:[%s16737_s20 + $0x38] sm:$0xff] %vm951_vm0, %v8792_v28 }
0x147b   : > { %8806 = vst.msk [vmem:[%s16737_s20 + $0x28] sm:$0xff] %vm951_vm0, %v8790_v9 }
0x14ad   : > { %v10332_v12 = vpop.f32.mrb[172].mxu1 }
0x14ae   : > { %v8763_v37 = vadd.f32 %v10332_v12, %v9321_v56  ;;  %v8754_v63 = vpop.f32.mrb[173].mxu1 }
0x14af   : > { %v8755_v52 = vadd.f32 %v9321_v56, %v8754_v63  ;;  %v10333_v38 = vpop.f32.mrb[174].mxu1 }
0x14b0   : > { %v8795_v34 = vadd.f32 %v8763_v37, %v16476_v15  ;;  %v8766_v55 = vadd.f32 %v10333_v38, %v9321_v56  ;;  %v8757_v60 = vpop.f32.mrb[175].mxu1 }
0x14b1   : > { %v8793_v16 = vadd.f32 %v8755_v52, %v16471_v41  ;;  %v8758_v54 = vadd.f32 %v9321_v56, %v8757_v60 }
0x14b2   : > { %8811 = vst.msk [vmem:[%s16737_s20 + $0x50] sm:$0xff] %vm951_vm0, %v8795_v34  ;;  %v8796_v49 = vadd.f32 %v8766_v55, %v16484_v36 }
0x14b3   : > { %8809 = vst.msk [vmem:[%s16737_s20 + $0x40] sm:$0xff] %vm951_vm0, %v8793_v16  ;;  %v8794_v43 = vadd.f32 %v8758_v54, %v16479_v44 }
0x14b4   : > { %8812 = vst.msk [vmem:[%s16737_s20 + $0x58] sm:$0xff] %vm951_vm0, %v8796_v49 }
0x14b5   : > { %8810 = vst.msk [vmem:[%s16737_s20 + $0x48] sm:$0xff] %vm951_vm0, %v8794_v43 }
0x14d6   : > { %v10336_v15 = vpop.f32.mrb[176].mxu1 }
0x14d7   : > { %v8779_v2 = vadd.f32 %v10336_v15, %v9321_v56  ;;  %v8770_v51 = vpop.f32.mrb[177].mxu1 }
0x14d8   : > { %v8771_v41 = vadd.f32 %v9321_v56, %v8770_v51  ;;  %v10337_v31 = vpop.f32.mrb[178].mxu1 }
0x14d9   : > { %v8799_v36 = vadd.f32 %v8779_v2, %v16500_v33  ;;  %v8782_v10 = vadd.f32 %v10337_v31, %v9321_v56  ;;  %v8773_v44 = vpop.f32.mrb[179].mxu1 }
0x14da   : > { %v8797_v13 = vadd.f32 %v8771_v41, %v16495_v17  ;;  %v8774_v23 = vadd.f32 %v9321_v56, %v8773_v44 }
0x14db   : > { %8815 = vst.msk [vmem:[%s16737_s20 + $0x70] sm:$0xff] %vm951_vm0, %v8799_v36  ;;  %v8800_v62 = vadd.f32 %v8782_v10, %v16508_v59 }
0x14dc   : > { %8813 = vst.msk [vmem:[%s16737_s20 + $0x60] sm:$0xff] %vm951_vm0, %v8797_v13  ;;  %v8798_v33 = vadd.f32 %v8774_v23, %v16503_v40 }
0x14dd   : > { %8816 = vst.msk [vmem:[%s16737_s20 + $0x78] sm:$0xff] %vm951_vm0, %v8800_v62 }
0x14de   : > { %8814 = vst.msk [vmem:[%s16737_s20 + $0x68] sm:$0xff] %vm951_vm0, %v8798_v33 }
0x14df   : > { %12050 = shalt.err (!%p12047_p2)
}
0x14e0   : > { %s12051_s13 = scalar_lea.hbm %s16783_s28, 2048  ;;  %s12055_s6 = scalar_lea.hbm %s17464_s21, 4096 }
0x14e1   : > { %p12052_p10 = scmp.ne.s32.totalorder %s16783_s28, %s12051_s13  ;;  %p12056_p12 = scmp.lt.u32.totalorder %s16783_s28, %s17464_s21 }
0x14e2   : > { %p12057_p7 = scmp.lt.u32.totalorder %s12055_s6, %s12051_s13  ;;  %p12059_p8 = scmp.lt.u32.totalorder %s12051_s13, %s16783_s28 }
0x14e3   : > { %p12053_p5 = pnand %p12052_p10, %p17465_p13 }
0x14e4   : > { %p12058_p11 = por %p12057_p7, %p12056_p12 }
0x14e5   : > { %p12054_p9 = pneg %p12053_p5 }
0x14e6   : > { %p12060_p1 = por %p12059_p8, %p12058_p11 }
0x14e8   : > { %p12061_p3 = pnand %p12060_p1, %p12054_p9 }
0x14ea   : > { %12064 = shalt.err (!%p12061_p3)
}
0x14eb   : > { %s12170_s14 = smov 128   ;;  %s12171_s3 = smov 8  }
0x14ec   : > { %10472 = dma.vmem_to_hbm [thread:$0]  (%p17465_p13), %s16785_s29, 2048, %s16783_s28, %s8818_s1, %s12170_s14, %s12170_s14, %s12171_s3  }
0x14ed PF: > { %s17466_s2 = sld [smem:[#allocation38_spill]]  ;;  %p17467_p6 = scmp.ne.s32.totalorder %s17098_s30, 0 }
0x14ee   : > { %p17468_p4 = scmp.ge.s32.totalorder %s12139_s27, 2 }
0x14f0   : > { %p10522_p0 = pnand %p17468_p4, %p17467_p6 }
0x14f3   : > { %s8847_s22 = sand.u32 1, %s17466_s2  }
0x14f4   : > { %s8848_s13 = scalar_lea.sflag [#allocation4], %s8847_s22 }
0x14f5   : > { %12122 = dma.done.wait (!%p10522_p0), %s8848_s13, 2048  }
0x14f6   : > { %12124 = vsyncadd (!%p10522_p0), %s8848_s13, 4294965248  ;;  %p45_p2 = scmp.ge.s32.totalorder %s12588_s23, 4   ;;  %s17469_s2 = smov %s12131_s25 }
0x14f7   : > { %s17470_s25 = smov %s12135_s26  ;;  %s17471_s26 = smov %s12599_s24 }
0x14f8   : > { %s17472_s27 = smov %s12588_s23  ;;  %47 = sbr.rel (!%p45_p2) target bundleno = 34 (0x22), region = 223 }
0x14ff   :  { %8853 = vsyncpa [#allocation3], 1 }
0x1500   :  { %8855 = vsyncpa [#allocation3 + $0x1], 1 }
0x1501   :  { %8856 = vsyncpa [#allocation6], 1 }
0x1502   :  { %8858 = vsyncpa [#allocation6 + $0x1], 1 }
0x1503   :  { %8859 = vsyncpa [#allocation9], 1 }
0x1504   :  { %8861 = vsyncpa [#allocation9 + $0x1], 1 }
0x1505   :  { %8862 = vsyncpa [#allocation12], 1 }
0x1506   :  { %8863 = vsyncpa [#allocation15], 1 }
0x1507   :  { %8864 = vsyncpa [#allocation18], 1 }
0x1508   :  { %8865 = vsyncpa [#allocation21], 1 }
0x1509   :  { %8866 = vsyncpa [#allocation24], 1 }
0x150a   :  { %8867 = vsyncpa [#allocation4], 1 }
0x150b   :  { %8869 = vsyncpa [#allocation4 + $0x1], 1 }

</bundles_post_ra>
